<compile_context>
chip_gen: v6e
topology: v6e:2x2x1
jax: 0.10.0
libtpu: 0.0.40
codegen_flags: <defaults>
</compile_context>

<pallas_src>
import math

import jax
import jax.numpy as jnp
import numpy as np
from jax import lax
from jax.experimental import pallas as pl
from jax.experimental.pallas import tpu as pltpu

NEG_SLOPE = 0.01   # nn.LeakyReLU() default negative_slope
BN_EPS = 1e-5      # nn.BatchNorm2d default eps
LANE = 128         # TPU lane width
PADL = 8           # sublane-aligned offset of the interior inside xpad (W is on sublanes there)
SAOFF = 3          # halo width of the 7x7 spatial-attention maps
STAGE_DT = jnp.bfloat16   # dtype of im2col staging + conv weights (MXU operands)


def _round_up(x, m):
    return (x + m - 1) // m * m


def _sigmoid(x, approx=False):
    return pl.reciprocal(1.0 + jnp.exp(-x), approx=approx)


def _sigmoid_ref(x):
    return 1.0 / (1.0 + jnp.exp(-x))


# ----------------------------------------------------------------------------
# In-kernel helpers
# ----------------------------------------------------------------------------
def _zero_halo3(xpad, H, W):
    """Zero ONLY the halo cells a 3x3/pad-1 conv actually reads (2 rows + 2 cols),
    instead of the whole buffer.  Done every step -> no cross-iteration state."""
    c = xpad.shape[2]
    zrow = jnp.zeros((1, W + 2, c), jnp.float32)
    zcol = jnp.zeros((H, 1, c), jnp.float32)
    xpad[0:1, PADL - 1:PADL + W + 1, :] = zrow
    xpad[H + 1:H + 2, PADL - 1:PADL + W + 1, :] = zrow
    xpad[1:1 + H, PADL - 1:PADL, :] = zcol
    xpad[1:1 + H, PADL + W:PADL + W + 1, :] = zcol


def _conv3x3_bn_lrelu(xpad, col, w_ref, scale_ref, shift_ref, H, W, cin):
    """3x3 / stride-1 / pad-1 conv + folded BN + LeakyReLU as ONE MXU matmul.

    xpad : (H+2, W+2*PADL, >=cin) f32; interior at [1:1+H, PADL:PADL+W, :cin],
           1-px halo already zeroed by _zero_halo3.
    col  : (H*W, >=9*cin) bf16 im2col scratch.  K is NOT padded per tap: the
           column block for tap t=(dy*3+dx) is [t*cin, (t+1)*cin); Mosaic pads
           the matmul K tile internally, so no explicit pad-lane zeroing needed.
    w_ref: (9*cin, cout) bf16 weights in matching row order.
    Returns (H*W, cout) f32 activation (stays in VMEM).
    """
    for dy in range(3):
        for dx in range(3):
            t = dy * 3 + dx
            x0 = PADL - 1 + dx
            patch = xpad[dy:dy + H, x0:x0 + W, :cin]
            col[:, t * cin:(t + 1) * cin] = patch.reshape(H * W, cin).astype(STAGE_DT)
    y = jnp.dot(col[:, :9 * cin], w_ref[...], preferred_element_type=jnp.float32)
    y = y * scale_ref[...] + shift_ref[...]
    return jnp.maximum(y, NEG_SLOPE * y)          # LeakyReLU without compare+select


# ----------------------------------------------------------------------------
# Fused AttnConv kernel: conv1 -> CBAM (channel + spatial) -> conv2 -> residual.
# ----------------------------------------------------------------------------
def _attn_conv_kernel(x_ref, w1_ref, s1_ref, b1_ref,
                      w2_ref, s2_ref, b2_ref,
                      ca_w1_ref, ca_w2_ref, sa_ref,
                      o_ref,
                      xpad, col, apad, mpad):
    _, H, W, Cin = x_ref.shape
    Cout = o_ref.shape[3]

    # ---------------- conv1 + BN + LeakyReLU ----------------
    _zero_halo3(xpad, H, W)
    xpad[1:1 + H, PADL:PADL + W, :Cin] = x_ref[0]
    h1 = _conv3x3_bn_lrelu(xpad, col, w1_ref, s1_ref, b1_ref, H, W, Cin)    # (H*W, C) f32

    # ---------------- CBAM channel attention ----------------
    avg = jnp.mean(h1, axis=0, keepdims=True)                               # (1, C)
    mx = jnp.max(h1, axis=0, keepdims=True)                                 # (1, C)
    pooled = jnp.concatenate([avg, mx], axis=0)                             # (2, C): one MLP pass
    hid = jnp.maximum(
        jnp.dot(pooled, ca_w1_ref[...], preferred_element_type=jnp.float32), 0.0)
    logit = jnp.dot(hid, ca_w2_ref[...], preferred_element_type=jnp.float32)
    ca = _sigmoid(logit[0:1, :] + logit[1:2, :])                            # (1, C), exact
    x1 = h1 * ca                                                            # (H*W, C)

    # Park h1 in the output block: it is only needed again for the residual add,
    # so stop carrying it live through spatial attention + conv2.
    o_ref[0] = h1.reshape(H, W, Cout)

    # ---------------- CBAM spatial attention (7x7, pad 3), lane-dense 2-D maps ----
    x1_sp = x1.reshape(H, W, Cout)
    apad[...] = jnp.zeros(apad.shape, jnp.float32)      # 2-D: whole-buffer zero ~3 vregs
    mpad[...] = jnp.zeros(mpad.shape, jnp.float32)
    apad[SAOFF:SAOFF + H, SAOFF:SAOFF + W] = jnp.mean(x1_sp, axis=-1)
    mpad[SAOFF:SAOFF + H, SAOFF:SAOFF + W] = jnp.max(x1_sp, axis=-1)
    sa = sa_ref[...]                                                        # (49, 2)
    acc = jnp.zeros((H, W), jnp.float32)
    for ky in range(7):
        for kx in range(7):
            t = ky * 7 + kx
            acc = (acc
                   + apad[ky:ky + H, kx:kx + W] * sa[t, 0]
                   + mpad[ky:ky + H, kx:kx + W] * sa[t, 1])
    x2 = x1_sp * _sigmoid(acc, approx=True)[:, :, None]                     # (H, W, C)

    # ---------------- conv2 + BN + LeakyReLU + residual ----------------
    _zero_halo3(xpad, H, W)                            # xpad / col reused from conv1
    xpad[1:1 + H, PADL:PADL + W, :Cout] = x2
    h2 = _conv3x3_bn_lrelu(xpad, col, w2_ref, s2_ref, b2_ref, H, W, Cout)
    o_ref[0] = o_ref[0] + h2.reshape(H, W, Cout)


# ----------------------------------------------------------------------------
# Wrapper
# ----------------------------------------------------------------------------
def _tiled_bytes(shape, dtype):
    """Physical VMEM bytes of an array (last dim -> 128 lanes, 2nd-last -> sublane tile)."""
    *lead, s, l = shape
    if dtype == jnp.bfloat16:
        sub, elt = 16, 2
    else:
        sub, elt = 8, 4
    return math.prod(lead) * _round_up(s, sub) * _round_up(l, LANE) * elt


def attn_conv_forward(x_nchw, p):
    x = jnp.transpose(x_nchw, (0, 2, 3, 1)).astype(jnp.float32)   # NCHW -> NHWC
    B, H, W, Cin = x.shape
    Cout = p["w1"].shape[-1]
    Cr = p["ca_w1"].shape[-1]
    Cmax = max(Cin, Cout)
    wpad = W + 2 * PADL

    # conv weights as (9*C_in, C_out) matching im2col column order; bf16 MXU operands.
    w1m = p["w1"].reshape(9 * Cin, Cout).astype(STAGE_DT)
    w2m = p["w2"].reshape(9 * Cout, Cout).astype(STAGE_DT)

    # VMEM budget from the actual footprint, clamped to be safe on all generations
    # (v7x has 64 MiB physical per TC -> cap at 56 MiB; floor 16 MiB).
    scratch_bytes = (_tiled_bytes((H + 2, wpad, Cmax), jnp.float32)       # shared xpad
                     + _tiled_bytes((H * W, 9 * Cmax), STAGE_DT)          # shared im2col
                     + 2 * _tiled_bytes((H + 6, W + 6), jnp.float32))     # apad/mpad
    io_bytes = 2 * (_tiled_bytes((H, W, Cin), jnp.float32)                # double-buffered blocks
                    + _tiled_bytes((H, W, Cout), jnp.float32))
    wgt_bytes = (_tiled_bytes((9 * Cin, Cout), STAGE_DT)
                 + _tiled_bytes((9 * Cout, Cout), STAGE_DT)
                 + 4 * _tiled_bytes((1, Cout), jnp.float32)
                 + _tiled_bytes((Cout, Cr), jnp.float32)
                 + _tiled_bytes((Cr, Cout), jnp.float32)
                 + _tiled_bytes((49, 2), jnp.float32))
    vmem_limit = int(min(max(1.5 * (scratch_bytes + io_bytes + wgt_bytes) + (4 << 20),
                             16 << 20), 56 << 20))

    out = pl.pallas_call(
        _attn_conv_kernel,
        out_shape=jax.ShapeDtypeStruct((B, H, W, Cout), jnp.float32),
        grid=(B,),
        in_specs=[
            pl.BlockSpec((1, H, W, Cin), lambda b: (b, 0, 0, 0)),
            pl.BlockSpec((9 * Cin, Cout), lambda b: (0, 0)),
            pl.BlockSpec((1, Cout), lambda b: (0, 0)),
            pl.BlockSpec((1, Cout), lambda b: (0, 0)),
            pl.BlockSpec((9 * Cout, Cout), lambda b: (0, 0)),
            pl.BlockSpec((1, Cout), lambda b: (0, 0)),
            pl.BlockSpec((1, Cout), lambda b: (0, 0)),
            pl.BlockSpec((Cout, Cr), lambda b: (0, 0)),
            pl.BlockSpec((Cr, Cout), lambda b: (0, 0)),
            pl.BlockSpec((49, 2), lambda b: (0, 0)),
        ],
        out_specs=pl.BlockSpec((1, H, W, Cout), lambda b: (b, 0, 0, 0)),
        scratch_shapes=[
            pltpu.VMEM((H + 2, wpad, Cmax), jnp.float32),   # shared zero-halo conv input
            pltpu.VMEM((H * W, 9 * Cmax), STAGE_DT),        # shared im2col block (unpadded K)
            pltpu.VMEM((H + 6, W + 6), jnp.float32),        # 2-D lane-dense avg map (pad 3)
            pltpu.VMEM((H + 6, W + 6), jnp.float32),        # 2-D lane-dense max map (pad 3)
        ],
        compiler_params=pltpu.CompilerParams(
            dimension_semantics=("parallel",),              # batch axis; see CORE_PARALLEL TODO
            vmem_limit_bytes=vmem_limit),
    )(x, w1m, p["scale1"], p["shift1"], w2m, p["scale2"], p["shift2"],
      p["ca_w1"], p["ca_w2"], p["sa_w"])
    return jnp.transpose(out, (0, 3, 1, 2))                 # NHWC -> NCHW


# ----------------------------------------------------------------------------
# Deterministic parameter construction (synthetic; BN folded to scale/shift)
# ----------------------------------------------------------------------------
def init_params(key, in_ch, out_ch):
    ks = jax.random.split(key, 12)

    def conv_block(kw, kb, kbn, cin, cout):
        w = 0.1 * jax.random.normal(kw, (3, 3, cin, cout), jnp.float32)
        bias = 0.1 * jax.random.normal(kb, (cout,), jnp.float32)
        k1, k2, k3, k4 = jax.random.split(kbn, 4)
        gamma = 1.0 + 0.1 * jax.random.normal(k1, (cout,), jnp.float32)
        beta = 0.1 * jax.random.normal(k2, (cout,), jnp.float32)
        mean = 0.1 * jax.random.normal(k3, (cout,), jnp.float32)
        var = 0.5 + 0.5 * jnp.abs(jax.random.normal(k4, (cout,), jnp.float32))
        scale = gamma / jnp.sqrt(var + BN_EPS)
        shift = scale * (bias - mean) + beta
        return w, scale.reshape(1, cout), shift.reshape(1, cout)

    w1, s1, sh1 = conv_block(ks[0], ks[1], ks[2], in_ch, out_ch)
    w2, s2, sh2 = conv_block(ks[3], ks[4], ks[5], out_ch, out_ch)
    c = out_ch
    cr = c // 2  # CBAM reduction = 2
    ca_w1 = 0.2 * jax.random.normal(ks[6], (c, cr), jnp.float32)
    ca_w2 = 0.2 * jax.random.normal(ks[7], (cr, c), jnp.float32)
    sa_w = 0.1 * jax.random.normal(ks[8], (49, 2), jnp.float32)
    return dict(w1=w1, scale1=s1, shift1=sh1,
                w2=w2, scale2=s2, shift2=sh2,
                ca_w1=ca_w1, ca_w2=ca_w2, sa_w=sa_w)


# ----------------------------------------------------------------------------
# Pure-JAX f32 reference for validation
# ----------------------------------------------------------------------------
def _conv_ref(x, w, scale, shift):
    y = lax.conv_general_dilated(x, w, (1, 1), "SAME",
                                 dimension_numbers=("NHWC", "HWIO", "NHWC"))
    y = y * scale.reshape(1, 1, 1, -1) + shift.reshape(1, 1, 1, -1)
    return jnp.where(y > 0, y, NEG_SLOPE * y)


def _cbam_ref(x, w1, w2, w7):
    avg = jnp.mean(x, axis=(1, 2))
    mx = jnp.max(x, axis=(1, 2))

    def mlp(v):
        return jnp.maximum(v @ w1, 0.0) @ w2

    ca = _sigmoid_ref(mlp(avg) + mlp(mx))
    x1 = x * ca[:, None, None, :]
    maps = jnp.concatenate([jnp.mean(x1, -1, keepdims=True),
                            jnp.max(x1, -1, keepdims=True)], axis=-1)
    sa = _sigmoid_ref(lax.conv_general_dilated(
        maps, w7.reshape(7, 7, 2, 1), (1, 1), "SAME",
        dimension_numbers=("NHWC", "HWIO", "NHWC")))
    return x1 * sa


def _attn_conv_ref(x_nchw, p):
    x = jnp.transpose(x_nchw, (0, 2, 3, 1))
    h1 = _conv_ref(x, p["w1"], p["scale1"], p["shift1"])
    a = _cbam_ref(h1, p["ca_w1"], p["ca_w2"], p["sa_w"])
    out = h1 + _conv_ref(a, p["w2"], p["scale2"], p["shift2"])
    return jnp.transpose(out, (0, 3, 1, 2))


if __name__ == "__main__":
    key = jax.random.PRNGKey(0)
    kx, kp = jax.random.split(key)
    B, Cin, Cout, H, W = 2, 4, 8, 16, 16
    x = jax.random.normal(kx, (B, Cin, H, W), jnp.float32)  # NCHW, like PyTorch
    params = init_params(kp, Cin, Cout)

    out = jax.block_until_ready(attn_conv_forward(x, params))
    ref = jax.block_until_ready(_attn_conv_ref(x, params))

    assert out.shape == (B, Cout, H, W)
    # Tolerance loosened vs the all-f32 version: conv operands are staged in bf16
    # (f32 accumulation); estimated worst-case element error ~1e-2 on O(1) outputs.
    np.testing.assert_allclose(np.asarray(out), np.asarray(ref), rtol=3e-2, atol=3e-2)
    print("KERNEL_OK")
</pallas_src>

<mosaic_0001>
module attributes {stable_mosaic.version = 11 : i64} {
  func.func @_attn_conv_kernel(%arg0: i32, %arg1: memref<1x16x16x4xf32, #tpu.memory_space<vmem>>, %arg2: memref<36x8xbf16, #tpu.memory_space<vmem>>, %arg3: memref<1x8xf32, #tpu.memory_space<vmem>>, %arg4: memref<1x8xf32, #tpu.memory_space<vmem>>, %arg5: memref<72x8xbf16, #tpu.memory_space<vmem>>, %arg6: memref<1x8xf32, #tpu.memory_space<vmem>>, %arg7: memref<1x8xf32, #tpu.memory_space<vmem>>, %arg8: memref<8x4xf32, #tpu.memory_space<vmem>>, %arg9: memref<4x8xf32, #tpu.memory_space<vmem>>, %arg10: memref<49x2xf32, #tpu.memory_space<vmem>>, %arg11: memref<1x16x16x8xf32, #tpu.memory_space<vmem>>, %arg12: memref<18x32x8xf32, #tpu.memory_space<vmem>>, %arg13: memref<256x72xbf16, #tpu.memory_space<vmem>>, %arg14: memref<22x22xf32, #tpu.memory_space<vmem>>, %arg15: memref<22x22xf32, #tpu.memory_space<vmem>>) attributes {dimension_semantics = [#tpu.dimension_semantics<parallel>], iteration_bounds = array<i64: 2>, scalar_prefetch = 0 : i64, scratch_operands = 4 : i64, tpu.core_type = #tpu.core_type<tc>, window_params = [{transform_indices = @transform_0, window_bounds = array<i64: 1, 16, 16, 4>}, {pipeline_mode = #tpu.pipeline_mode<synchronous>, transform_indices = @transform_1, window_bounds = array<i64: 36, 8>}, {pipeline_mode = #tpu.pipeline_mode<synchronous>, transform_indices = @transform_2, window_bounds = array<i64: 1, 8>}, {pipeline_mode = #tpu.pipeline_mode<synchronous>, transform_indices = @transform_3, window_bounds = array<i64: 1, 8>}, {pipeline_mode = #tpu.pipeline_mode<synchronous>, transform_indices = @transform_4, window_bounds = array<i64: 72, 8>}, {pipeline_mode = #tpu.pipeline_mode<synchronous>, transform_indices = @transform_5, window_bounds = array<i64: 1, 8>}, {pipeline_mode = #tpu.pipeline_mode<synchronous>, transform_indices = @transform_6, window_bounds = array<i64: 1, 8>}, {pipeline_mode = #tpu.pipeline_mode<synchronous>, transform_indices = @transform_7, window_bounds = array<i64: 8, 4>}, {pipeline_mode = #tpu.pipeline_mode<synchronous>, transform_indices = @transform_8, window_bounds = array<i64: 4, 8>}, {pipeline_mode = #tpu.pipeline_mode<synchronous>, transform_indices = @transform_9, window_bounds = array<i64: 49, 2>}, {transform_indices = @transform_10, window_bounds = array<i64: 1, 16, 16, 8>}]} {
    %cst = arith.constant 0.000000e+00 : f32
    %0 = vector.broadcast %cst : f32 to vector<1x18x8xf32>
    %cst_0 = arith.constant 0.000000e+00 : f32
    %1 = vector.broadcast %cst_0 : f32 to vector<16x1x8xf32>
    %c0 = arith.constant 0 : index
    %c7 = arith.constant 7 : index
    %c0_1 = arith.constant 0 : index
    %2 = vector.load %arg12[%c0, %c7, %c0_1] : memref<18x32x8xf32, #tpu.memory_space<vmem>>, vector<1x18x8xf32>
    tpu.vector_store %arg12[%c0, %c7, %c0_1], %0 {strides = array<i32>} : memref<18x32x8xf32, #tpu.memory_space<vmem>>, vector<1x18x8xf32>,
    %c17 = arith.constant 17 : index
    %c7_2 = arith.constant 7 : index
    %c0_3 = arith.constant 0 : index
    %3 = vector.load %arg12[%c17, %c7_2, %c0_3] : memref<18x32x8xf32, #tpu.memory_space<vmem>>, vector<1x18x8xf32>
    tpu.vector_store %arg12[%c17, %c7_2, %c0_3], %0 {strides = array<i32>} : memref<18x32x8xf32, #tpu.memory_space<vmem>>, vector<1x18x8xf32>,
    %c1 = arith.constant 1 : index
    %c7_4 = arith.constant 7 : index
    %c0_5 = arith.constant 0 : index
    %4 = vector.load %arg12[%c1, %c7_4, %c0_5] : memref<18x32x8xf32, #tpu.memory_space<vmem>>, vector<16x1x8xf32>
    tpu.vector_store %arg12[%c1, %c7_4, %c0_5], %1 {strides = array<i32>} : memref<18x32x8xf32, #tpu.memory_space<vmem>>, vector<16x1x8xf32>,
    %c1_6 = arith.constant 1 : index
    %c24 = arith.constant 24 : index
    %c0_7 = arith.constant 0 : index
    %5 = vector.load %arg12[%c1_6, %c24, %c0_7] : memref<18x32x8xf32, #tpu.memory_space<vmem>>, vector<16x1x8xf32>
    tpu.vector_store %arg12[%c1_6, %c24, %c0_7], %1 {strides = array<i32>} : memref<18x32x8xf32, #tpu.memory_space<vmem>>, vector<16x1x8xf32>,
    %c0_8 = arith.constant 0 : index
    %c0_9 = arith.constant 0 : index
    %c0_10 = arith.constant 0 : index
    %c0_11 = arith.constant 0 : index
    %6 = vector.load %arg1[%c0_8, %c0_9, %c0_10, %c0_11] : memref<1x16x16x4xf32, #tpu.memory_space<vmem>>, vector<1x16x16x4xf32>
    %7 = vector.shape_cast %6 : vector<1x16x16x4xf32> to vector<16x16x4xf32>
    %c1_12 = arith.constant 1 : index
    %c8 = arith.constant 8 : index
    %c0_13 = arith.constant 0 : index
    %8 = vector.load %arg12[%c1_12, %c8, %c0_13] : memref<18x32x8xf32, #tpu.memory_space<vmem>>, vector<16x16x4xf32>
    tpu.vector_store %arg12[%c1_12, %c8, %c0_13], %7 {strides = array<i32>} : memref<18x32x8xf32, #tpu.memory_space<vmem>>, vector<16x16x4xf32>,
    %c0_14 = arith.constant 0 : index
    %c7_15 = arith.constant 7 : index
    %c0_16 = arith.constant 0 : index
    %9 = vector.load %arg12[%c0_14, %c7_15, %c0_16] : memref<18x32x8xf32, #tpu.memory_space<vmem>>, vector<16x16x4xf32>
    %10 = vector.shape_cast %9 : vector<16x16x4xf32> to vector<256x4xf32>
    %11 = arith.truncf %10 : vector<256x4xf32> to vector<256x4xbf16>
    %c0_17 = arith.constant 0 : index
    %c0_18 = arith.constant 0 : index
    %12 = vector.load %arg13[%c0_17, %c0_18] : memref<256x72xbf16, #tpu.memory_space<vmem>>, vector<256x4xbf16>
    tpu.vector_store %arg13[%c0_17, %c0_18], %11 {strides = array<i32>} : memref<256x72xbf16, #tpu.memory_space<vmem>>, vector<256x4xbf16>,
    %c0_19 = arith.constant 0 : index
    %c8_20 = arith.constant 8 : index
    %c0_21 = arith.constant 0 : index
    %13 = vector.load %arg12[%c0_19, %c8_20, %c0_21] : memref<18x32x8xf32, #tpu.memory_space<vmem>>, vector<16x16x4xf32>
    %14 = vector.shape_cast %13 : vector<16x16x4xf32> to vector<256x4xf32>
    %15 = arith.truncf %14 : vector<256x4xf32> to vector<256x4xbf16>
    %c0_22 = arith.constant 0 : index
    %c4 = arith.constant 4 : index
    %16 = vector.load %arg13[%c0_22, %c4] : memref<256x72xbf16, #tpu.memory_space<vmem>>, vector<256x4xbf16>
    tpu.vector_store %arg13[%c0_22, %c4], %15 {strides = array<i32>} : memref<256x72xbf16, #tpu.memory_space<vmem>>, vector<256x4xbf16>,
    %c0_23 = arith.constant 0 : index
    %c9 = arith.constant 9 : index
    %c0_24 = arith.constant 0 : index
    %17 = vector.load %arg12[%c0_23, %c9, %c0_24] : memref<18x32x8xf32, #tpu.memory_space<vmem>>, vector<16x16x4xf32>
    %18 = vector.shape_cast %17 : vector<16x16x4xf32> to vector<256x4xf32>
    %19 = arith.truncf %18 : vector<256x4xf32> to vector<256x4xbf16>
    %c0_25 = arith.constant 0 : index
    %c8_26 = arith.constant 8 : index
    %20 = vector.load %arg13[%c0_25, %c8_26] : memref<256x72xbf16, #tpu.memory_space<vmem>>, vector<256x4xbf16>
    tpu.vector_store %arg13[%c0_25, %c8_26], %19 {strides = array<i32>} : memref<256x72xbf16, #tpu.memory_space<vmem>>, vector<256x4xbf16>,
    %c1_27 = arith.constant 1 : index
    %c7_28 = arith.constant 7 : index
    %c0_29 = arith.constant 0 : index
    %21 = vector.load %arg12[%c1_27, %c7_28, %c0_29] : memref<18x32x8xf32, #tpu.memory_space<vmem>>, vector<16x16x4xf32>
    %22 = vector.shape_cast %21 : vector<16x16x4xf32> to vector<256x4xf32>
    %23 = arith.truncf %22 : vector<256x4xf32> to vector<256x4xbf16>
    %c0_30 = arith.constant 0 : index
    %c12 = arith.constant 12 : index
    %24 = vector.load %arg13[%c0_30, %c12] : memref<256x72xbf16, #tpu.memory_space<vmem>>, vector<256x4xbf16>
    tpu.vector_store %arg13[%c0_30, %c12], %23 {strides = array<i32>} : memref<256x72xbf16, #tpu.memory_space<vmem>>, vector<256x4xbf16>,
    %c1_31 = arith.constant 1 : index
    %c8_32 = arith.constant 8 : index
    %c0_33 = arith.constant 0 : index
    %25 = vector.load %arg12[%c1_31, %c8_32, %c0_33] : memref<18x32x8xf32, #tpu.memory_space<vmem>>, vector<16x16x4xf32>
    %26 = vector.shape_cast %25 : vector<16x16x4xf32> to vector<256x4xf32>
    %27 = arith.truncf %26 : vector<256x4xf32> to vector<256x4xbf16>
    %c0_34 = arith.constant 0 : index
    %c16 = arith.constant 16 : index
    %28 = vector.load %arg13[%c0_34, %c16] : memref<256x72xbf16, #tpu.memory_space<vmem>>, vector<256x4xbf16>
    tpu.vector_store %arg13[%c0_34, %c16], %27 {strides = array<i32>} : memref<256x72xbf16, #tpu.memory_space<vmem>>, vector<256x4xbf16>,
    %c1_35 = arith.constant 1 : index
    %c9_36 = arith.constant 9 : index
    %c0_37 = arith.constant 0 : index
    %29 = vector.load %arg12[%c1_35, %c9_36, %c0_37] : memref<18x32x8xf32, #tpu.memory_space<vmem>>, vector<16x16x4xf32>
    %30 = vector.shape_cast %29 : vector<16x16x4xf32> to vector<256x4xf32>
    %31 = arith.truncf %30 : vector<256x4xf32> to vector<256x4xbf16>
    %c0_38 = arith.constant 0 : index
    %c20 = arith.constant 20 : index
    %32 = vector.load %arg13[%c0_38, %c20] : memref<256x72xbf16, #tpu.memory_space<vmem>>, vector<256x4xbf16>
    tpu.vector_store %arg13[%c0_38, %c20], %31 {strides = array<i32>} : memref<256x72xbf16, #tpu.memory_space<vmem>>, vector<256x4xbf16>,
    %c2 = arith.constant 2 : index
    %c7_39 = arith.constant 7 : index
    %c0_40 = arith.constant 0 : index
    %33 = vector.load %arg12[%c2, %c7_39, %c0_40] : memref<18x32x8xf32, #tpu.memory_space<vmem>>, vector<16x16x4xf32>
    %34 = vector.shape_cast %33 : vector<16x16x4xf32> to vector<256x4xf32>
    %35 = arith.truncf %34 : vector<256x4xf32> to vector<256x4xbf16>
    %c0_41 = arith.constant 0 : index
    %c24_42 = arith.constant 24 : index
    %36 = vector.load %arg13[%c0_41, %c24_42] : memref<256x72xbf16, #tpu.memory_space<vmem>>, vector<256x4xbf16>
    tpu.vector_store %arg13[%c0_41, %c24_42], %35 {strides = array<i32>} : memref<256x72xbf16, #tpu.memory_space<vmem>>, vector<256x4xbf16>,
    %c2_43 = arith.constant 2 : index
    %c8_44 = arith.constant 8 : index
    %c0_45 = arith.constant 0 : index
    %37 = vector.load %arg12[%c2_43, %c8_44, %c0_45] : memref<18x32x8xf32, #tpu.memory_space<vmem>>, vector<16x16x4xf32>
    %38 = vector.shape_cast %37 : vector<16x16x4xf32> to vector<256x4xf32>
    %39 = arith.truncf %38 : vector<256x4xf32> to vector<256x4xbf16>
    %c0_46 = arith.constant 0 : index
    %c28 = arith.constant 28 : index
    %40 = vector.load %arg13[%c0_46, %c28] : memref<256x72xbf16, #tpu.memory_space<vmem>>, vector<256x4xbf16>
    tpu.vector_store %arg13[%c0_46, %c28], %39 {strides = array<i32>} : memref<256x72xbf16, #tpu.memory_space<vmem>>, vector<256x4xbf16>,
    %c2_47 = arith.constant 2 : index
    %c9_48 = arith.constant 9 : index
    %c0_49 = arith.constant 0 : index
    %41 = vector.load %arg12[%c2_47, %c9_48, %c0_49] : memref<18x32x8xf32, #tpu.memory_space<vmem>>, vector<16x16x4xf32>
    %42 = vector.shape_cast %41 : vector<16x16x4xf32> to vector<256x4xf32>
    %43 = arith.truncf %42 : vector<256x4xf32> to vector<256x4xbf16>
    %c0_50 = arith.constant 0 : index
    %c32 = arith.constant 32 : index
    %44 = vector.load %arg13[%c0_50, %c32] : memref<256x72xbf16, #tpu.memory_space<vmem>>, vector<256x4xbf16>
    tpu.vector_store %arg13[%c0_50, %c32], %43 {strides = array<i32>} : memref<256x72xbf16, #tpu.memory_space<vmem>>, vector<256x4xbf16>,
    %c0_51 = arith.constant 0 : index
    %c0_52 = arith.constant 0 : index
    %45 = vector.load %arg13[%c0_51, %c0_52] : memref<256x72xbf16, #tpu.memory_space<vmem>>, vector<256x36xbf16>
    %c0_53 = arith.constant 0 : index
    %c0_54 = arith.constant 0 : index
    %46 = vector.load %arg2[%c0_53, %c0_54] : memref<36x8xbf16, #tpu.memory_space<vmem>>, vector<36x8xbf16>
    %cst_55 = arith.constant dense<0.000000e+00> : vector<256x8xf32>
    %47 = tpu.matmul %45, %46, %cst_55 {dimension_numbers = #tpu.dot_dimension_numbers<[1], [0], [0], [1], [0, 0, 1, 1], [], []>} : vector<256x36xbf16>, vector<36x8xbf16>, vector<256x8xf32> -> vector<256x8xf32>
    %c0_56 = arith.constant 0 : index
    %c0_57 = arith.constant 0 : index
    %48 = vector.load %arg3[%c0_56, %c0_57] : memref<1x8xf32, #tpu.memory_space<vmem>>, vector<1x8xf32>
    %49 = vector.broadcast %48 : vector<1x8xf32> to vector<256x8xf32>
    %50 = arith.mulf %47, %49 : vector<256x8xf32>
    %c0_58 = arith.constant 0 : index
    %c0_59 = arith.constant 0 : index
    %51 = vector.load %arg4[%c0_58, %c0_59] : memref<1x8xf32, #tpu.memory_space<vmem>>, vector<1x8xf32>
    %52 = vector.broadcast %51 : vector<1x8xf32> to vector<256x8xf32>
    %53 = arith.addf %50, %52 : vector<256x8xf32>
    %cst_60 = arith.constant 0.00999999977 : f32
    %54 = vector.broadcast %cst_60 : f32 to vector<256x8xf32>
    %55 = arith.mulf %54, %53 : vector<256x8xf32>
    %56 = arith.maximumf %53, %55 : vector<256x8xf32>
    %cst_61 = arith.constant dense<0.000000e+00> : vector<8xf32>
    %57 = vector.multi_reduction <add>, %56, %cst_61 [0] : vector<256x8xf32> to vector<8xf32>
    %58 = vector.shape_cast %57 : vector<8xf32> to vector<1x8xf32>
    %cst_62 = arith.constant 2.560000e+02 : f32
    %59 = vector.broadcast %cst_62 : f32 to vector<1x8xf32>
    %60 = arith.divf %58, %59 : vector<1x8xf32>
    %cst_63 = arith.constant dense<0xFF800000> : vector<8xf32>
    %61 = vector.multi_reduction <maximumf>, %56, %cst_63 [0] : vector<256x8xf32> to vector<8xf32>
    %62 = vector.shape_cast %61 : vector<8xf32> to vector<1x8xf32>
    %63 = tpu.concatenate %60, %62 in 0 : vector<1x8xf32>, vector<1x8xf32> -> vector<2x8xf32>
    %c0_64 = arith.constant 0 : index
    %c0_65 = arith.constant 0 : index
    %64 = vector.load %arg8[%c0_64, %c0_65] : memref<8x4xf32, #tpu.memory_space<vmem>>, vector<8x4xf32>
    %cst_66 = arith.constant dense<0.000000e+00> : vector<2x4xf32>
    %65 = tpu.matmul %63, %64, %cst_66 {dimension_numbers = #tpu.dot_dimension_numbers<[1], [0], [0], [1], [0, 0, 1, 1], [], []>} : vector<2x8xf32>, vector<8x4xf32>, vector<2x4xf32> -> vector<2x4xf32>
    %cst_67 = arith.constant 0.000000e+00 : f32
    %66 = vector.broadcast %cst_67 : f32 to vector<2x4xf32>
    %67 = arith.maximumf %65, %66 : vector<2x4xf32>
    %c0_68 = arith.constant 0 : index
    %c0_69 = arith.constant 0 : index
    %68 = vector.load %arg9[%c0_68, %c0_69] : memref<4x8xf32, #tpu.memory_space<vmem>>, vector<4x8xf32>
    %cst_70 = arith.constant dense<0.000000e+00> : vector<2x8xf32>
    %69 = tpu.matmul %67, %68, %cst_70 {dimension_numbers = #tpu.dot_dimension_numbers<[1], [0], [0], [1], [0, 0, 1, 1], [], []>} : vector<2x4xf32>, vector<4x8xf32>, vector<2x8xf32> -> vector<2x8xf32>
    %70 = vector.extract_strided_slice %69 {offsets = [0, 0], sizes = [1, 8], strides = [1, 1]} : vector<2x8xf32> to vector<1x8xf32>
    %71 = vector.extract_strided_slice %69 {offsets = [1, 0], sizes = [1, 8], strides = [1, 1]} : vector<2x8xf32> to vector<1x8xf32>
    %72 = arith.addf %70, %71 : vector<1x8xf32>
    %cst_71 = arith.constant 0.000000e+00 : f32
    %73 = vector.broadcast %cst_71 : f32 to vector<1x8xf32>
    %74 = arith.subf %73, %72 : vector<1x8xf32>
    %75 = math.exp %74 : vector<1x8xf32>
    %cst_72 = arith.constant 1.000000e+00 : f32
    %76 = vector.broadcast %cst_72 : f32 to vector<1x8xf32>
    %77 = arith.addf %76, %75 : vector<1x8xf32>
    %78 = tpu.reciprocal %77 : vector<1x8xf32> -> vector<1x8xf32>
    %79 = vector.broadcast %78 : vector<1x8xf32> to vector<256x8xf32>
    %80 = arith.mulf %56, %79 : vector<256x8xf32>
    %81 = vector.shape_cast %56 : vector<256x8xf32> to vector<16x16x8xf32>
    %c0_73 = arith.constant 0 : index
    %c0_74 = arith.constant 0 : index
    %c0_75 = arith.constant 0 : index
    %c0_76 = arith.constant 0 : index
    %82 = vector.load %arg11[%c0_73, %c0_74, %c0_75, %c0_76] : memref<1x16x16x8xf32, #tpu.memory_space<vmem>>, vector<1x16x16x8xf32>
    %83 = vector.shape_cast %82 : vector<1x16x16x8xf32> to vector<16x16x8xf32>
    %84 = vector.shape_cast %81 : vector<16x16x8xf32> to vector<1x16x16x8xf32>
    tpu.vector_store %arg11[%c0_73, %c0_74, %c0_75, %c0_76], %84 {strides = array<i32>} : memref<1x16x16x8xf32, #tpu.memory_space<vmem>>, vector<1x16x16x8xf32>,
    %85 = vector.shape_cast %80 : vector<256x8xf32> to vector<16x16x8xf32>
    %cst_77 = arith.constant 0.000000e+00 : f32
    %86 = vector.broadcast %cst_77 : f32 to vector<22x22xf32>
    %c0_78 = arith.constant 0 : index
    %c0_79 = arith.constant 0 : index
    %87 = vector.load %arg14[%c0_78, %c0_79] : memref<22x22xf32, #tpu.memory_space<vmem>>, vector<22x22xf32>
    tpu.vector_store %arg14[%c0_78, %c0_79], %86 {strides = array<i32>} : memref<22x22xf32, #tpu.memory_space<vmem>>, vector<22x22xf32>,
    %cst_80 = arith.constant 0.000000e+00 : f32
    %88 = vector.broadcast %cst_80 : f32 to vector<22x22xf32>
    %c0_81 = arith.constant 0 : index
    %c0_82 = arith.constant 0 : index
    %89 = vector.load %arg15[%c0_81, %c0_82] : memref<22x22xf32, #tpu.memory_space<vmem>>, vector<22x22xf32>
    tpu.vector_store %arg15[%c0_81, %c0_82], %88 {strides = array<i32>} : memref<22x22xf32, #tpu.memory_space<vmem>>, vector<22x22xf32>,
    %cst_83 = arith.constant dense<0.000000e+00> : vector<16x16xf32>
    %90 = vector.multi_reduction <add>, %85, %cst_83 [2] : vector<16x16x8xf32> to vector<16x16xf32>
    %cst_84 = arith.constant 8.000000e+00 : f32
    %91 = vector.broadcast %cst_84 : f32 to vector<16x16xf32>
    %92 = arith.divf %90, %91 : vector<16x16xf32>
    %c3 = arith.constant 3 : index
    %c3_85 = arith.constant 3 : index
    %93 = vector.load %arg14[%c3, %c3_85] : memref<22x22xf32, #tpu.memory_space<vmem>>, vector<16x16xf32>
    tpu.vector_store %arg14[%c3, %c3_85], %92 {strides = array<i32>} : memref<22x22xf32, #tpu.memory_space<vmem>>, vector<16x16xf32>,
    %cst_86 = arith.constant dense<0xFF800000> : vector<16x16xf32>
    %94 = vector.multi_reduction <maximumf>, %85, %cst_86 [2] : vector<16x16x8xf32> to vector<16x16xf32>
    %c3_87 = arith.constant 3 : index
    %c3_88 = arith.constant 3 : index
    %95 = vector.load %arg15[%c3_87, %c3_88] : memref<22x22xf32, #tpu.memory_space<vmem>>, vector<16x16xf32>
    tpu.vector_store %arg15[%c3_87, %c3_88], %94 {strides = array<i32>} : memref<22x22xf32, #tpu.memory_space<vmem>>, vector<16x16xf32>,
    %c0_89 = arith.constant 0 : index
    %c0_90 = arith.constant 0 : index
    %96 = vector.load %arg10[%c0_89, %c0_90] : memref<49x2xf32, #tpu.memory_space<vmem>>, vector<49x2xf32>
    %cst_91 = arith.constant 0.000000e+00 : f32
    %97 = vector.broadcast %cst_91 : f32 to vector<16x16xf32>
    %c0_92 = arith.constant 0 : index
    %c0_93 = arith.constant 0 : index
    %98 = vector.load %arg14[%c0_92, %c0_93] : memref<22x22xf32, #tpu.memory_space<vmem>>, vector<16x16xf32>
    %99 = vector.extract_strided_slice %96 {offsets = [0, 0], sizes = [1, 1], strides = [1, 1]} : vector<49x2xf32> to vector<1x1xf32>
    %100 = vector.extract %99[0, 0] : f32 from vector<1x1xf32>
    %101 = vector.broadcast %100 : f32 to vector<16x16xf32>
    %102 = arith.mulf %98, %101 : vector<16x16xf32>
    %103 = arith.addf %97, %102 : vector<16x16xf32>
    %c0_94 = arith.constant 0 : index
    %c0_95 = arith.constant 0 : index
    %104 = vector.load %arg15[%c0_94, %c0_95] : memref<22x22xf32, #tpu.memory_space<vmem>>, vector<16x16xf32>
    %105 = vector.extract_strided_slice %96 {offsets = [0, 1], sizes = [1, 1], strides = [1, 1]} : vector<49x2xf32> to vector<1x1xf32>
    %106 = vector.extract %105[0, 0] : f32 from vector<1x1xf32>
    %107 = vector.broadcast %106 : f32 to vector<16x16xf32>
    %108 = arith.mulf %104, %107 : vector<16x16xf32>
    %109 = arith.addf %103, %108 : vector<16x16xf32>
    %c0_96 = arith.constant 0 : index
    %c1_97 = arith.constant 1 : index
    %110 = vector.load %arg14[%c0_96, %c1_97] : memref<22x22xf32, #tpu.memory_space<vmem>>, vector<16x16xf32>
    %111 = vector.extract_strided_slice %96 {offsets = [1, 0], sizes = [1, 1], strides = [1, 1]} : vector<49x2xf32> to vector<1x1xf32>
    %112 = vector.extract %111[0, 0] : f32 from vector<1x1xf32>
    %113 = vector.broadcast %112 : f32 to vector<16x16xf32>
    %114 = arith.mulf %110, %113 : vector<16x16xf32>
    %115 = arith.addf %109, %114 : vector<16x16xf32>
    %c0_98 = arith.constant 0 : index
    %c1_99 = arith.constant 1 : index
    %116 = vector.load %arg15[%c0_98, %c1_99] : memref<22x22xf32, #tpu.memory_space<vmem>>, vector<16x16xf32>
    %117 = vector.extract_strided_slice %96 {offsets = [1, 1], sizes = [1, 1], strides = [1, 1]} : vector<49x2xf32> to vector<1x1xf32>
    %118 = vector.extract %117[0, 0] : f32 from vector<1x1xf32>
    %119 = vector.broadcast %118 : f32 to vector<16x16xf32>
    %120 = arith.mulf %116, %119 : vector<16x16xf32>
    %121 = arith.addf %115, %120 : vector<16x16xf32>
    %c0_100 = arith.constant 0 : index
    %c2_101 = arith.constant 2 : index
    %122 = vector.load %arg14[%c0_100, %c2_101] : memref<22x22xf32, #tpu.memory_space<vmem>>, vector<16x16xf32>
    %123 = vector.extract_strided_slice %96 {offsets = [2, 0], sizes = [1, 1], strides = [1, 1]} : vector<49x2xf32> to vector<1x1xf32>
    %124 = vector.extract %123[0, 0] : f32 from vector<1x1xf32>
    %125 = vector.broadcast %124 : f32 to vector<16x16xf32>
    %126 = arith.mulf %122, %125 : vector<16x16xf32>
    %127 = arith.addf %121, %126 : vector<16x16xf32>
    %c0_102 = arith.constant 0 : index
    %c2_103 = arith.constant 2 : index
    %128 = vector.load %arg15[%c0_102, %c2_103] : memref<22x22xf32, #tpu.memory_space<vmem>>, vector<16x16xf32>
    %129 = vector.extract_strided_slice %96 {offsets = [2, 1], sizes = [1, 1], strides = [1, 1]} : vector<49x2xf32> to vector<1x1xf32>
    %130 = vector.extract %129[0, 0] : f32 from vector<1x1xf32>
    %131 = vector.broadcast %130 : f32 to vector<16x16xf32>
    %132 = arith.mulf %128, %131 : vector<16x16xf32>
    %133 = arith.addf %127, %132 : vector<16x16xf32>
    %c0_104 = arith.constant 0 : index
    %c3_105 = arith.constant 3 : index
    %134 = vector.load %arg14[%c0_104, %c3_105] : memref<22x22xf32, #tpu.memory_space<vmem>>, vector<16x16xf32>
    %135 = vector.extract_strided_slice %96 {offsets = [3, 0], sizes = [1, 1], strides = [1, 1]} : vector<49x2xf32> to vector<1x1xf32>
    %136 = vector.extract %135[0, 0] : f32 from vector<1x1xf32>
    %137 = vector.broadcast %136 : f32 to vector<16x16xf32>
    %138 = arith.mulf %134, %137 : vector<16x16xf32>
    %139 = arith.addf %133, %138 : vector<16x16xf32>
    %c0_106 = arith.constant 0 : index
    %c3_107 = arith.constant 3 : index
    %140 = vector.load %arg15[%c0_106, %c3_107] : memref<22x22xf32, #tpu.memory_space<vmem>>, vector<16x16xf32>
    %141 = vector.extract_strided_slice %96 {offsets = [3, 1], sizes = [1, 1], strides = [1, 1]} : vector<49x2xf32> to vector<1x1xf32>
    %142 = vector.extract %141[0, 0] : f32 from vector<1x1xf32>
    %143 = vector.broadcast %142 : f32 to vector<16x16xf32>
    %144 = arith.mulf %140, %143 : vector<16x16xf32>
    %145 = arith.addf %139, %144 : vector<16x16xf32>
    %c0_108 = arith.constant 0 : index
    %c4_109 = arith.constant 4 : index
    %146 = vector.load %arg14[%c0_108, %c4_109] : memref<22x22xf32, #tpu.memory_space<vmem>>, vector<16x16xf32>
    %147 = vector.extract_strided_slice %96 {offsets = [4, 0], sizes = [1, 1], strides = [1, 1]} : vector<49x2xf32> to vector<1x1xf32>
    %148 = vector.extract %147[0, 0] : f32 from vector<1x1xf32>
    %149 = vector.broadcast %148 : f32 to vector<16x16xf32>
    %150 = arith.mulf %146, %149 : vector<16x16xf32>
    %151 = arith.addf %145, %150 : vector<16x16xf32>
    %c0_110 = arith.constant 0 : index
    %c4_111 = arith.constant 4 : index
    %152 = vector.load %arg15[%c0_110, %c4_111] : memref<22x22xf32, #tpu.memory_space<vmem>>, vector<16x16xf32>
    %153 = vector.extract_strided_slice %96 {offsets = [4, 1], sizes = [1, 1], strides = [1, 1]} : vector<49x2xf32> to vector<1x1xf32>
    %154 = vector.extract %153[0, 0] : f32 from vector<1x1xf32>
    %155 = vector.broadcast %154 : f32 to vector<16x16xf32>
    %156 = arith.mulf %152, %155 : vector<16x16xf32>
    %157 = arith.addf %151, %156 : vector<16x16xf32>
    %c0_112 = arith.constant 0 : index
    %c5 = arith.constant 5 : index
    %158 = vector.load %arg14[%c0_112, %c5] : memref<22x22xf32, #tpu.memory_space<vmem>>, vector<16x16xf32>
    %159 = vector.extract_strided_slice %96 {offsets = [5, 0], sizes = [1, 1], strides = [1, 1]} : vector<49x2xf32> to vector<1x1xf32>
    %160 = vector.extract %159[0, 0] : f32 from vector<1x1xf32>
    %161 = vector.broadcast %160 : f32 to vector<16x16xf32>
    %162 = arith.mulf %158, %161 : vector<16x16xf32>
    %163 = arith.addf %157, %162 : vector<16x16xf32>
    %c0_113 = arith.constant 0 : index
    %c5_114 = arith.constant 5 : index
    %164 = vector.load %arg15[%c0_113, %c5_114] : memref<22x22xf32, #tpu.memory_space<vmem>>, vector<16x16xf32>
    %165 = vector.extract_strided_slice %96 {offsets = [5, 1], sizes = [1, 1], strides = [1, 1]} : vector<49x2xf32> to vector<1x1xf32>
    %166 = vector.extract %165[0, 0] : f32 from vector<1x1xf32>
    %167 = vector.broadcast %166 : f32 to vector<16x16xf32>
    %168 = arith.mulf %164, %167 : vector<16x16xf32>
    %169 = arith.addf %163, %168 : vector<16x16xf32>
    %c0_115 = arith.constant 0 : index
    %c6 = arith.constant 6 : index
    %170 = vector.load %arg14[%c0_115, %c6] : memref<22x22xf32, #tpu.memory_space<vmem>>, vector<16x16xf32>
    %171 = vector.extract_strided_slice %96 {offsets = [6, 0], sizes = [1, 1], strides = [1, 1]} : vector<49x2xf32> to vector<1x1xf32>
    %172 = vector.extract %171[0, 0] : f32 from vector<1x1xf32>
    %173 = vector.broadcast %172 : f32 to vector<16x16xf32>
    %174 = arith.mulf %170, %173 : vector<16x16xf32>
    %175 = arith.addf %169, %174 : vector<16x16xf32>
    %c0_116 = arith.constant 0 : index
    %c6_117 = arith.constant 6 : index
    %176 = vector.load %arg15[%c0_116, %c6_117] : memref<22x22xf32, #tpu.memory_space<vmem>>, vector<16x16xf32>
    %177 = vector.extract_strided_slice %96 {offsets = [6, 1], sizes = [1, 1], strides = [1, 1]} : vector<49x2xf32> to vector<1x1xf32>
    %178 = vector.extract %177[0, 0] : f32 from vector<1x1xf32>
    %179 = vector.broadcast %178 : f32 to vector<16x16xf32>
    %180 = arith.mulf %176, %179 : vector<16x16xf32>
    %181 = arith.addf %175, %180 : vector<16x16xf32>
    %c1_118 = arith.constant 1 : index
    %c0_119 = arith.constant 0 : index
    %182 = vector.load %arg14[%c1_118, %c0_119] : memref<22x22xf32, #tpu.memory_space<vmem>>, vector<16x16xf32>
    %183 = vector.extract_strided_slice %96 {offsets = [7, 0], sizes = [1, 1], strides = [1, 1]} : vector<49x2xf32> to vector<1x1xf32>
    %184 = vector.extract %183[0, 0] : f32 from vector<1x1xf32>
    %185 = vector.broadcast %184 : f32 to vector<16x16xf32>
    %186 = arith.mulf %182, %185 : vector<16x16xf32>
    %187 = arith.addf %181, %186 : vector<16x16xf32>
    %c1_120 = arith.constant 1 : index
    %c0_121 = arith.constant 0 : index
    %188 = vector.load %arg15[%c1_120, %c0_121] : memref<22x22xf32, #tpu.memory_space<vmem>>, vector<16x16xf32>
    %189 = vector.extract_strided_slice %96 {offsets = [7, 1], sizes = [1, 1], strides = [1, 1]} : vector<49x2xf32> to vector<1x1xf32>
    %190 = vector.extract %189[0, 0] : f32 from vector<1x1xf32>
    %191 = vector.broadcast %190 : f32 to vector<16x16xf32>
    %192 = arith.mulf %188, %191 : vector<16x16xf32>
    %193 = arith.addf %187, %192 : vector<16x16xf32>
    %c1_122 = arith.constant 1 : index
    %c1_123 = arith.constant 1 : index
    %194 = vector.load %arg14[%c1_122, %c1_123] : memref<22x22xf32, #tpu.memory_space<vmem>>, vector<16x16xf32>
    %195 = vector.extract_strided_slice %96 {offsets = [8, 0], sizes = [1, 1], strides = [1, 1]} : vector<49x2xf32> to vector<1x1xf32>
    %196 = vector.extract %195[0, 0] : f32 from vector<1x1xf32>
    %197 = vector.broadcast %196 : f32 to vector<16x16xf32>
    %198 = arith.mulf %194, %197 : vector<16x16xf32>
    %199 = arith.addf %193, %198 : vector<16x16xf32>
    %c1_124 = arith.constant 1 : index
    %c1_125 = arith.constant 1 : index
    %200 = vector.load %arg15[%c1_124, %c1_125] : memref<22x22xf32, #tpu.memory_space<vmem>>, vector<16x16xf32>
    %201 = vector.extract_strided_slice %96 {offsets = [8, 1], sizes = [1, 1], strides = [1, 1]} : vector<49x2xf32> to vector<1x1xf32>
    %202 = vector.extract %201[0, 0] : f32 from vector<1x1xf32>
    %203 = vector.broadcast %202 : f32 to vector<16x16xf32>
    %204 = arith.mulf %200, %203 : vector<16x16xf32>
    %205 = arith.addf %199, %204 : vector<16x16xf32>
    %c1_126 = arith.constant 1 : index
    %c2_127 = arith.constant 2 : index
    %206 = vector.load %arg14[%c1_126, %c2_127] : memref<22x22xf32, #tpu.memory_space<vmem>>, vector<16x16xf32>
    %207 = vector.extract_strided_slice %96 {offsets = [9, 0], sizes = [1, 1], strides = [1, 1]} : vector<49x2xf32> to vector<1x1xf32>
    %208 = vector.extract %207[0, 0] : f32 from vector<1x1xf32>
    %209 = vector.broadcast %208 : f32 to vector<16x16xf32>
    %210 = arith.mulf %206, %209 : vector<16x16xf32>
    %211 = arith.addf %205, %210 : vector<16x16xf32>
    %c1_128 = arith.constant 1 : index
    %c2_129 = arith.constant 2 : index
    %212 = vector.load %arg15[%c1_128, %c2_129] : memref<22x22xf32, #tpu.memory_space<vmem>>, vector<16x16xf32>
    %213 = vector.extract_strided_slice %96 {offsets = [9, 1], sizes = [1, 1], strides = [1, 1]} : vector<49x2xf32> to vector<1x1xf32>
    %214 = vector.extract %213[0, 0] : f32 from vector<1x1xf32>
    %215 = vector.broadcast %214 : f32 to vector<16x16xf32>
    %216 = arith.mulf %212, %215 : vector<16x16xf32>
    %217 = arith.addf %211, %216 : vector<16x16xf32>
    %c1_130 = arith.constant 1 : index
    %c3_131 = arith.constant 3 : index
    %218 = vector.load %arg14[%c1_130, %c3_131] : memref<22x22xf32, #tpu.memory_space<vmem>>, vector<16x16xf32>
    %219 = vector.extract_strided_slice %96 {offsets = [10, 0], sizes = [1, 1], strides = [1, 1]} : vector<49x2xf32> to vector<1x1xf32>
    %220 = vector.extract %219[0, 0] : f32 from vector<1x1xf32>
    %221 = vector.broadcast %220 : f32 to vector<16x16xf32>
    %222 = arith.mulf %218, %221 : vector<16x16xf32>
    %223 = arith.addf %217, %222 : vector<16x16xf32>
    %c1_132 = arith.constant 1 : index
    %c3_133 = arith.constant 3 : index
    %224 = vector.load %arg15[%c1_132, %c3_133] : memref<22x22xf32, #tpu.memory_space<vmem>>, vector<16x16xf32>
    %225 = vector.extract_strided_slice %96 {offsets = [10, 1], sizes = [1, 1], strides = [1, 1]} : vector<49x2xf32> to vector<1x1xf32>
    %226 = vector.extract %225[0, 0] : f32 from vector<1x1xf32>
    %227 = vector.broadcast %226 : f32 to vector<16x16xf32>
    %228 = arith.mulf %224, %227 : vector<16x16xf32>
    %229 = arith.addf %223, %228 : vector<16x16xf32>
    %c1_134 = arith.constant 1 : index
    %c4_135 = arith.constant 4 : index
    %230 = vector.load %arg14[%c1_134, %c4_135] : memref<22x22xf32, #tpu.memory_space<vmem>>, vector<16x16xf32>
    %231 = vector.extract_strided_slice %96 {offsets = [11, 0], sizes = [1, 1], strides = [1, 1]} : vector<49x2xf32> to vector<1x1xf32>
    %232 = vector.extract %231[0, 0] : f32 from vector<1x1xf32>
    %233 = vector.broadcast %232 : f32 to vector<16x16xf32>
    %234 = arith.mulf %230, %233 : vector<16x16xf32>
    %235 = arith.addf %229, %234 : vector<16x16xf32>
    %c1_136 = arith.constant 1 : index
    %c4_137 = arith.constant 4 : index
    %236 = vector.load %arg15[%c1_136, %c4_137] : memref<22x22xf32, #tpu.memory_space<vmem>>, vector<16x16xf32>
    %237 = vector.extract_strided_slice %96 {offsets = [11, 1], sizes = [1, 1], strides = [1, 1]} : vector<49x2xf32> to vector<1x1xf32>
    %238 = vector.extract %237[0, 0] : f32 from vector<1x1xf32>
    %239 = vector.broadcast %238 : f32 to vector<16x16xf32>
    %240 = arith.mulf %236, %239 : vector<16x16xf32>
    %241 = arith.addf %235, %240 : vector<16x16xf32>
    %c1_138 = arith.constant 1 : index
    %c5_139 = arith.constant 5 : index
    %242 = vector.load %arg14[%c1_138, %c5_139] : memref<22x22xf32, #tpu.memory_space<vmem>>, vector<16x16xf32>
    %243 = vector.extract_strided_slice %96 {offsets = [12, 0], sizes = [1, 1], strides = [1, 1]} : vector<49x2xf32> to vector<1x1xf32>
    %244 = vector.extract %243[0, 0] : f32 from vector<1x1xf32>
    %245 = vector.broadcast %244 : f32 to vector<16x16xf32>
    %246 = arith.mulf %242, %245 : vector<16x16xf32>
    %247 = arith.addf %241, %246 : vector<16x16xf32>
    %c1_140 = arith.constant 1 : index
    %c5_141 = arith.constant 5 : index
    %248 = vector.load %arg15[%c1_140, %c5_141] : memref<22x22xf32, #tpu.memory_space<vmem>>, vector<16x16xf32>
    %249 = vector.extract_strided_slice %96 {offsets = [12, 1], sizes = [1, 1], strides = [1, 1]} : vector<49x2xf32> to vector<1x1xf32>
    %250 = vector.extract %249[0, 0] : f32 from vector<1x1xf32>
    %251 = vector.broadcast %250 : f32 to vector<16x16xf32>
    %252 = arith.mulf %248, %251 : vector<16x16xf32>
    %253 = arith.addf %247, %252 : vector<16x16xf32>
    %c1_142 = arith.constant 1 : index
    %c6_143 = arith.constant 6 : index
    %254 = vector.load %arg14[%c1_142, %c6_143] : memref<22x22xf32, #tpu.memory_space<vmem>>, vector<16x16xf32>
    %255 = vector.extract_strided_slice %96 {offsets = [13, 0], sizes = [1, 1], strides = [1, 1]} : vector<49x2xf32> to vector<1x1xf32>
    %256 = vector.extract %255[0, 0] : f32 from vector<1x1xf32>
    %257 = vector.broadcast %256 : f32 to vector<16x16xf32>
    %258 = arith.mulf %254, %257 : vector<16x16xf32>
    %259 = arith.addf %253, %258 : vector<16x16xf32>
    %c1_144 = arith.constant 1 : index
    %c6_145 = arith.constant 6 : index
    %260 = vector.load %arg15[%c1_144, %c6_145] : memref<22x22xf32, #tpu.memory_space<vmem>>, vector<16x16xf32>
    %261 = vector.extract_strided_slice %96 {offsets = [13, 1], sizes = [1, 1], strides = [1, 1]} : vector<49x2xf32> to vector<1x1xf32>
    %262 = vector.extract %261[0, 0] : f32 from vector<1x1xf32>
    %263 = vector.broadcast %262 : f32 to vector<16x16xf32>
    %264 = arith.mulf %260, %263 : vector<16x16xf32>
    %265 = arith.addf %259, %264 : vector<16x16xf32>
    %c2_146 = arith.constant 2 : index
    %c0_147 = arith.constant 0 : index
    %266 = vector.load %arg14[%c2_146, %c0_147] : memref<22x22xf32, #tpu.memory_space<vmem>>, vector<16x16xf32>
    %267 = vector.extract_strided_slice %96 {offsets = [14, 0], sizes = [1, 1], strides = [1, 1]} : vector<49x2xf32> to vector<1x1xf32>
    %268 = vector.extract %267[0, 0] : f32 from vector<1x1xf32>
    %269 = vector.broadcast %268 : f32 to vector<16x16xf32>
    %270 = arith.mulf %266, %269 : vector<16x16xf32>
    %271 = arith.addf %265, %270 : vector<16x16xf32>
    %c2_148 = arith.constant 2 : index
    %c0_149 = arith.constant 0 : index
    %272 = vector.load %arg15[%c2_148, %c0_149] : memref<22x22xf32, #tpu.memory_space<vmem>>, vector<16x16xf32>
    %273 = vector.extract_strided_slice %96 {offsets = [14, 1], sizes = [1, 1], strides = [1, 1]} : vector<49x2xf32> to vector<1x1xf32>
    %274 = vector.extract %273[0, 0] : f32 from vector<1x1xf32>
    %275 = vector.broadcast %274 : f32 to vector<16x16xf32>
    %276 = arith.mulf %272, %275 : vector<16x16xf32>
    %277 = arith.addf %271, %276 : vector<16x16xf32>
    %c2_150 = arith.constant 2 : index
    %c1_151 = arith.constant 1 : index
    %278 = vector.load %arg14[%c2_150, %c1_151] : memref<22x22xf32, #tpu.memory_space<vmem>>, vector<16x16xf32>
    %279 = vector.extract_strided_slice %96 {offsets = [15, 0], sizes = [1, 1], strides = [1, 1]} : vector<49x2xf32> to vector<1x1xf32>
    %280 = vector.extract %279[0, 0] : f32 from vector<1x1xf32>
    %281 = vector.broadcast %280 : f32 to vector<16x16xf32>
    %282 = arith.mulf %278, %281 : vector<16x16xf32>
    %283 = arith.addf %277, %282 : vector<16x16xf32>
    %c2_152 = arith.constant 2 : index
    %c1_153 = arith.constant 1 : index
    %284 = vector.load %arg15[%c2_152, %c1_153] : memref<22x22xf32, #tpu.memory_space<vmem>>, vector<16x16xf32>
    %285 = vector.extract_strided_slice %96 {offsets = [15, 1], sizes = [1, 1], strides = [1, 1]} : vector<49x2xf32> to vector<1x1xf32>
    %286 = vector.extract %285[0, 0] : f32 from vector<1x1xf32>
    %287 = vector.broadcast %286 : f32 to vector<16x16xf32>
    %288 = arith.mulf %284, %287 : vector<16x16xf32>
    %289 = arith.addf %283, %288 : vector<16x16xf32>
    %c2_154 = arith.constant 2 : index
    %c2_155 = arith.constant 2 : index
    %290 = vector.load %arg14[%c2_154, %c2_155] : memref<22x22xf32, #tpu.memory_space<vmem>>, vector<16x16xf32>
    %291 = vector.extract_strided_slice %96 {offsets = [16, 0], sizes = [1, 1], strides = [1, 1]} : vector<49x2xf32> to vector<1x1xf32>
    %292 = vector.extract %291[0, 0] : f32 from vector<1x1xf32>
    %293 = vector.broadcast %292 : f32 to vector<16x16xf32>
    %294 = arith.mulf %290, %293 : vector<16x16xf32>
    %295 = arith.addf %289, %294 : vector<16x16xf32>
    %c2_156 = arith.constant 2 : index
    %c2_157 = arith.constant 2 : index
    %296 = vector.load %arg15[%c2_156, %c2_157] : memref<22x22xf32, #tpu.memory_space<vmem>>, vector<16x16xf32>
    %297 = vector.extract_strided_slice %96 {offsets = [16, 1], sizes = [1, 1], strides = [1, 1]} : vector<49x2xf32> to vector<1x1xf32>
    %298 = vector.extract %297[0, 0] : f32 from vector<1x1xf32>
    %299 = vector.broadcast %298 : f32 to vector<16x16xf32>
    %300 = arith.mulf %296, %299 : vector<16x16xf32>
    %301 = arith.addf %295, %300 : vector<16x16xf32>
    %c2_158 = arith.constant 2 : index
    %c3_159 = arith.constant 3 : index
    %302 = vector.load %arg14[%c2_158, %c3_159] : memref<22x22xf32, #tpu.memory_space<vmem>>, vector<16x16xf32>
    %303 = vector.extract_strided_slice %96 {offsets = [17, 0], sizes = [1, 1], strides = [1, 1]} : vector<49x2xf32> to vector<1x1xf32>
    %304 = vector.extract %303[0, 0] : f32 from vector<1x1xf32>
    %305 = vector.broadcast %304 : f32 to vector<16x16xf32>
    %306 = arith.mulf %302, %305 : vector<16x16xf32>
    %307 = arith.addf %301, %306 : vector<16x16xf32>
    %c2_160 = arith.constant 2 : index
    %c3_161 = arith.constant 3 : index
    %308 = vector.load %arg15[%c2_160, %c3_161] : memref<22x22xf32, #tpu.memory_space<vmem>>, vector<16x16xf32>
    %309 = vector.extract_strided_slice %96 {offsets = [17, 1], sizes = [1, 1], strides = [1, 1]} : vector<49x2xf32> to vector<1x1xf32>
    %310 = vector.extract %309[0, 0] : f32 from vector<1x1xf32>
    %311 = vector.broadcast %310 : f32 to vector<16x16xf32>
    %312 = arith.mulf %308, %311 : vector<16x16xf32>
    %313 = arith.addf %307, %312 : vector<16x16xf32>
    %c2_162 = arith.constant 2 : index
    %c4_163 = arith.constant 4 : index
    %314 = vector.load %arg14[%c2_162, %c4_163] : memref<22x22xf32, #tpu.memory_space<vmem>>, vector<16x16xf32>
    %315 = vector.extract_strided_slice %96 {offsets = [18, 0], sizes = [1, 1], strides = [1, 1]} : vector<49x2xf32> to vector<1x1xf32>
    %316 = vector.extract %315[0, 0] : f32 from vector<1x1xf32>
    %317 = vector.broadcast %316 : f32 to vector<16x16xf32>
    %318 = arith.mulf %314, %317 : vector<16x16xf32>
    %319 = arith.addf %313, %318 : vector<16x16xf32>
    %c2_164 = arith.constant 2 : index
    %c4_165 = arith.constant 4 : index
    %320 = vector.load %arg15[%c2_164, %c4_165] : memref<22x22xf32, #tpu.memory_space<vmem>>, vector<16x16xf32>
    %321 = vector.extract_strided_slice %96 {offsets = [18, 1], sizes = [1, 1], strides = [1, 1]} : vector<49x2xf32> to vector<1x1xf32>
    %322 = vector.extract %321[0, 0] : f32 from vector<1x1xf32>
    %323 = vector.broadcast %322 : f32 to vector<16x16xf32>
    %324 = arith.mulf %320, %323 : vector<16x16xf32>
    %325 = arith.addf %319, %324 : vector<16x16xf32>
    %c2_166 = arith.constant 2 : index
    %c5_167 = arith.constant 5 : index
    %326 = vector.load %arg14[%c2_166, %c5_167] : memref<22x22xf32, #tpu.memory_space<vmem>>, vector<16x16xf32>
    %327 = vector.extract_strided_slice %96 {offsets = [19, 0], sizes = [1, 1], strides = [1, 1]} : vector<49x2xf32> to vector<1x1xf32>
    %328 = vector.extract %327[0, 0] : f32 from vector<1x1xf32>
    %329 = vector.broadcast %328 : f32 to vector<16x16xf32>
    %330 = arith.mulf %326, %329 : vector<16x16xf32>
    %331 = arith.addf %325, %330 : vector<16x16xf32>
    %c2_168 = arith.constant 2 : index
    %c5_169 = arith.constant 5 : index
    %332 = vector.load %arg15[%c2_168, %c5_169] : memref<22x22xf32, #tpu.memory_space<vmem>>, vector<16x16xf32>
    %333 = vector.extract_strided_slice %96 {offsets = [19, 1], sizes = [1, 1], strides = [1, 1]} : vector<49x2xf32> to vector<1x1xf32>
    %334 = vector.extract %333[0, 0] : f32 from vector<1x1xf32>
    %335 = vector.broadcast %334 : f32 to vector<16x16xf32>
    %336 = arith.mulf %332, %335 : vector<16x16xf32>
    %337 = arith.addf %331, %336 : vector<16x16xf32>
    %c2_170 = arith.constant 2 : index
    %c6_171 = arith.constant 6 : index
    %338 = vector.load %arg14[%c2_170, %c6_171] : memref<22x22xf32, #tpu.memory_space<vmem>>, vector<16x16xf32>
    %339 = vector.extract_strided_slice %96 {offsets = [20, 0], sizes = [1, 1], strides = [1, 1]} : vector<49x2xf32> to vector<1x1xf32>
    %340 = vector.extract %339[0, 0] : f32 from vector<1x1xf32>
    %341 = vector.broadcast %340 : f32 to vector<16x16xf32>
    %342 = arith.mulf %338, %341 : vector<16x16xf32>
    %343 = arith.addf %337, %342 : vector<16x16xf32>
    %c2_172 = arith.constant 2 : index
    %c6_173 = arith.constant 6 : index
    %344 = vector.load %arg15[%c2_172, %c6_173] : memref<22x22xf32, #tpu.memory_space<vmem>>, vector<16x16xf32>
    %345 = vector.extract_strided_slice %96 {offsets = [20, 1], sizes = [1, 1], strides = [1, 1]} : vector<49x2xf32> to vector<1x1xf32>
    %346 = vector.extract %345[0, 0] : f32 from vector<1x1xf32>
    %347 = vector.broadcast %346 : f32 to vector<16x16xf32>
    %348 = arith.mulf %344, %347 : vector<16x16xf32>
    %349 = arith.addf %343, %348 : vector<16x16xf32>
    %c3_174 = arith.constant 3 : index
    %c0_175 = arith.constant 0 : index
    %350 = vector.load %arg14[%c3_174, %c0_175] : memref<22x22xf32, #tpu.memory_space<vmem>>, vector<16x16xf32>
    %351 = vector.extract_strided_slice %96 {offsets = [21, 0], sizes = [1, 1], strides = [1, 1]} : vector<49x2xf32> to vector<1x1xf32>
    %352 = vector.extract %351[0, 0] : f32 from vector<1x1xf32>
    %353 = vector.broadcast %352 : f32 to vector<16x16xf32>
    %354 = arith.mulf %350, %353 : vector<16x16xf32>
    %355 = arith.addf %349, %354 : vector<16x16xf32>
    %c3_176 = arith.constant 3 : index
    %c0_177 = arith.constant 0 : index
    %356 = vector.load %arg15[%c3_176, %c0_177] : memref<22x22xf32, #tpu.memory_space<vmem>>, vector<16x16xf32>
    %357 = vector.extract_strided_slice %96 {offsets = [21, 1], sizes = [1, 1], strides = [1, 1]} : vector<49x2xf32> to vector<1x1xf32>
    %358 = vector.extract %357[0, 0] : f32 from vector<1x1xf32>
    %359 = vector.broadcast %358 : f32 to vector<16x16xf32>
    %360 = arith.mulf %356, %359 : vector<16x16xf32>
    %361 = arith.addf %355, %360 : vector<16x16xf32>
    %c3_178 = arith.constant 3 : index
    %c1_179 = arith.constant 1 : index
    %362 = vector.load %arg14[%c3_178, %c1_179] : memref<22x22xf32, #tpu.memory_space<vmem>>, vector<16x16xf32>
    %363 = vector.extract_strided_slice %96 {offsets = [22, 0], sizes = [1, 1], strides = [1, 1]} : vector<49x2xf32> to vector<1x1xf32>
    %364 = vector.extract %363[0, 0] : f32 from vector<1x1xf32>
    %365 = vector.broadcast %364 : f32 to vector<16x16xf32>
    %366 = arith.mulf %362, %365 : vector<16x16xf32>
    %367 = arith.addf %361, %366 : vector<16x16xf32>
    %c3_180 = arith.constant 3 : index
    %c1_181 = arith.constant 1 : index
    %368 = vector.load %arg15[%c3_180, %c1_181] : memref<22x22xf32, #tpu.memory_space<vmem>>, vector<16x16xf32>
    %369 = vector.extract_strided_slice %96 {offsets = [22, 1], sizes = [1, 1], strides = [1, 1]} : vector<49x2xf32> to vector<1x1xf32>
    %370 = vector.extract %369[0, 0] : f32 from vector<1x1xf32>
    %371 = vector.broadcast %370 : f32 to vector<16x16xf32>
    %372 = arith.mulf %368, %371 : vector<16x16xf32>
    %373 = arith.addf %367, %372 : vector<16x16xf32>
    %c3_182 = arith.constant 3 : index
    %c2_183 = arith.constant 2 : index
    %374 = vector.load %arg14[%c3_182, %c2_183] : memref<22x22xf32, #tpu.memory_space<vmem>>, vector<16x16xf32>
    %375 = vector.extract_strided_slice %96 {offsets = [23, 0], sizes = [1, 1], strides = [1, 1]} : vector<49x2xf32> to vector<1x1xf32>
    %376 = vector.extract %375[0, 0] : f32 from vector<1x1xf32>
    %377 = vector.broadcast %376 : f32 to vector<16x16xf32>
    %378 = arith.mulf %374, %377 : vector<16x16xf32>
    %379 = arith.addf %373, %378 : vector<16x16xf32>
    %c3_184 = arith.constant 3 : index
    %c2_185 = arith.constant 2 : index
    %380 = vector.load %arg15[%c3_184, %c2_185] : memref<22x22xf32, #tpu.memory_space<vmem>>, vector<16x16xf32>
    %381 = vector.extract_strided_slice %96 {offsets = [23, 1], sizes = [1, 1], strides = [1, 1]} : vector<49x2xf32> to vector<1x1xf32>
    %382 = vector.extract %381[0, 0] : f32 from vector<1x1xf32>
    %383 = vector.broadcast %382 : f32 to vector<16x16xf32>
    %384 = arith.mulf %380, %383 : vector<16x16xf32>
    %385 = arith.addf %379, %384 : vector<16x16xf32>
    %c3_186 = arith.constant 3 : index
    %c3_187 = arith.constant 3 : index
    %386 = vector.load %arg14[%c3_186, %c3_187] : memref<22x22xf32, #tpu.memory_space<vmem>>, vector<16x16xf32>
    %387 = vector.extract_strided_slice %96 {offsets = [24, 0], sizes = [1, 1], strides = [1, 1]} : vector<49x2xf32> to vector<1x1xf32>
    %388 = vector.extract %387[0, 0] : f32 from vector<1x1xf32>
    %389 = vector.broadcast %388 : f32 to vector<16x16xf32>
    %390 = arith.mulf %386, %389 : vector<16x16xf32>
    %391 = arith.addf %385, %390 : vector<16x16xf32>
    %c3_188 = arith.constant 3 : index
    %c3_189 = arith.constant 3 : index
    %392 = vector.load %arg15[%c3_188, %c3_189] : memref<22x22xf32, #tpu.memory_space<vmem>>, vector<16x16xf32>
    %393 = vector.extract_strided_slice %96 {offsets = [24, 1], sizes = [1, 1], strides = [1, 1]} : vector<49x2xf32> to vector<1x1xf32>
    %394 = vector.extract %393[0, 0] : f32 from vector<1x1xf32>
    %395 = vector.broadcast %394 : f32 to vector<16x16xf32>
    %396 = arith.mulf %392, %395 : vector<16x16xf32>
    %397 = arith.addf %391, %396 : vector<16x16xf32>
    %c3_190 = arith.constant 3 : index
    %c4_191 = arith.constant 4 : index
    %398 = vector.load %arg14[%c3_190, %c4_191] : memref<22x22xf32, #tpu.memory_space<vmem>>, vector<16x16xf32>
    %399 = vector.extract_strided_slice %96 {offsets = [25, 0], sizes = [1, 1], strides = [1, 1]} : vector<49x2xf32> to vector<1x1xf32>
    %400 = vector.extract %399[0, 0] : f32 from vector<1x1xf32>
    %401 = vector.broadcast %400 : f32 to vector<16x16xf32>
    %402 = arith.mulf %398, %401 : vector<16x16xf32>
    %403 = arith.addf %397, %402 : vector<16x16xf32>
    %c3_192 = arith.constant 3 : index
    %c4_193 = arith.constant 4 : index
    %404 = vector.load %arg15[%c3_192, %c4_193] : memref<22x22xf32, #tpu.memory_space<vmem>>, vector<16x16xf32>
    %405 = vector.extract_strided_slice %96 {offsets = [25, 1], sizes = [1, 1], strides = [1, 1]} : vector<49x2xf32> to vector<1x1xf32>
    %406 = vector.extract %405[0, 0] : f32 from vector<1x1xf32>
    %407 = vector.broadcast %406 : f32 to vector<16x16xf32>
    %408 = arith.mulf %404, %407 : vector<16x16xf32>
    %409 = arith.addf %403, %408 : vector<16x16xf32>
    %c3_194 = arith.constant 3 : index
    %c5_195 = arith.constant 5 : index
    %410 = vector.load %arg14[%c3_194, %c5_195] : memref<22x22xf32, #tpu.memory_space<vmem>>, vector<16x16xf32>
    %411 = vector.extract_strided_slice %96 {offsets = [26, 0], sizes = [1, 1], strides = [1, 1]} : vector<49x2xf32> to vector<1x1xf32>
    %412 = vector.extract %411[0, 0] : f32 from vector<1x1xf32>
    %413 = vector.broadcast %412 : f32 to vector<16x16xf32>
    %414 = arith.mulf %410, %413 : vector<16x16xf32>
    %415 = arith.addf %409, %414 : vector<16x16xf32>
    %c3_196 = arith.constant 3 : index
    %c5_197 = arith.constant 5 : index
    %416 = vector.load %arg15[%c3_196, %c5_197] : memref<22x22xf32, #tpu.memory_space<vmem>>, vector<16x16xf32>
    %417 = vector.extract_strided_slice %96 {offsets = [26, 1], sizes = [1, 1], strides = [1, 1]} : vector<49x2xf32> to vector<1x1xf32>
    %418 = vector.extract %417[0, 0] : f32 from vector<1x1xf32>
    %419 = vector.broadcast %418 : f32 to vector<16x16xf32>
    %420 = arith.mulf %416, %419 : vector<16x16xf32>
    %421 = arith.addf %415, %420 : vector<16x16xf32>
    %c3_198 = arith.constant 3 : index
    %c6_199 = arith.constant 6 : index
    %422 = vector.load %arg14[%c3_198, %c6_199] : memref<22x22xf32, #tpu.memory_space<vmem>>, vector<16x16xf32>
    %423 = vector.extract_strided_slice %96 {offsets = [27, 0], sizes = [1, 1], strides = [1, 1]} : vector<49x2xf32> to vector<1x1xf32>
    %424 = vector.extract %423[0, 0] : f32 from vector<1x1xf32>
    %425 = vector.broadcast %424 : f32 to vector<16x16xf32>
    %426 = arith.mulf %422, %425 : vector<16x16xf32>
    %427 = arith.addf %421, %426 : vector<16x16xf32>
    %c3_200 = arith.constant 3 : index
    %c6_201 = arith.constant 6 : index
    %428 = vector.load %arg15[%c3_200, %c6_201] : memref<22x22xf32, #tpu.memory_space<vmem>>, vector<16x16xf32>
    %429 = vector.extract_strided_slice %96 {offsets = [27, 1], sizes = [1, 1], strides = [1, 1]} : vector<49x2xf32> to vector<1x1xf32>
    %430 = vector.extract %429[0, 0] : f32 from vector<1x1xf32>
    %431 = vector.broadcast %430 : f32 to vector<16x16xf32>
    %432 = arith.mulf %428, %431 : vector<16x16xf32>
    %433 = arith.addf %427, %432 : vector<16x16xf32>
    %c4_202 = arith.constant 4 : index
    %c0_203 = arith.constant 0 : index
    %434 = vector.load %arg14[%c4_202, %c0_203] : memref<22x22xf32, #tpu.memory_space<vmem>>, vector<16x16xf32>
    %435 = vector.extract_strided_slice %96 {offsets = [28, 0], sizes = [1, 1], strides = [1, 1]} : vector<49x2xf32> to vector<1x1xf32>
    %436 = vector.extract %435[0, 0] : f32 from vector<1x1xf32>
    %437 = vector.broadcast %436 : f32 to vector<16x16xf32>
    %438 = arith.mulf %434, %437 : vector<16x16xf32>
    %439 = arith.addf %433, %438 : vector<16x16xf32>
    %c4_204 = arith.constant 4 : index
    %c0_205 = arith.constant 0 : index
    %440 = vector.load %arg15[%c4_204, %c0_205] : memref<22x22xf32, #tpu.memory_space<vmem>>, vector<16x16xf32>
    %441 = vector.extract_strided_slice %96 {offsets = [28, 1], sizes = [1, 1], strides = [1, 1]} : vector<49x2xf32> to vector<1x1xf32>
    %442 = vector.extract %441[0, 0] : f32 from vector<1x1xf32>
    %443 = vector.broadcast %442 : f32 to vector<16x16xf32>
    %444 = arith.mulf %440, %443 : vector<16x16xf32>
    %445 = arith.addf %439, %444 : vector<16x16xf32>
    %c4_206 = arith.constant 4 : index
    %c1_207 = arith.constant 1 : index
    %446 = vector.load %arg14[%c4_206, %c1_207] : memref<22x22xf32, #tpu.memory_space<vmem>>, vector<16x16xf32>
    %447 = vector.extract_strided_slice %96 {offsets = [29, 0], sizes = [1, 1], strides = [1, 1]} : vector<49x2xf32> to vector<1x1xf32>
    %448 = vector.extract %447[0, 0] : f32 from vector<1x1xf32>
    %449 = vector.broadcast %448 : f32 to vector<16x16xf32>
    %450 = arith.mulf %446, %449 : vector<16x16xf32>
    %451 = arith.addf %445, %450 : vector<16x16xf32>
    %c4_208 = arith.constant 4 : index
    %c1_209 = arith.constant 1 : index
    %452 = vector.load %arg15[%c4_208, %c1_209] : memref<22x22xf32, #tpu.memory_space<vmem>>, vector<16x16xf32>
    %453 = vector.extract_strided_slice %96 {offsets = [29, 1], sizes = [1, 1], strides = [1, 1]} : vector<49x2xf32> to vector<1x1xf32>
    %454 = vector.extract %453[0, 0] : f32 from vector<1x1xf32>
    %455 = vector.broadcast %454 : f32 to vector<16x16xf32>
    %456 = arith.mulf %452, %455 : vector<16x16xf32>
    %457 = arith.addf %451, %456 : vector<16x16xf32>
    %c4_210 = arith.constant 4 : index
    %c2_211 = arith.constant 2 : index
    %458 = vector.load %arg14[%c4_210, %c2_211] : memref<22x22xf32, #tpu.memory_space<vmem>>, vector<16x16xf32>
    %459 = vector.extract_strided_slice %96 {offsets = [30, 0], sizes = [1, 1], strides = [1, 1]} : vector<49x2xf32> to vector<1x1xf32>
    %460 = vector.extract %459[0, 0] : f32 from vector<1x1xf32>
    %461 = vector.broadcast %460 : f32 to vector<16x16xf32>
    %462 = arith.mulf %458, %461 : vector<16x16xf32>
    %463 = arith.addf %457, %462 : vector<16x16xf32>
    %c4_212 = arith.constant 4 : index
    %c2_213 = arith.constant 2 : index
    %464 = vector.load %arg15[%c4_212, %c2_213] : memref<22x22xf32, #tpu.memory_space<vmem>>, vector<16x16xf32>
    %465 = vector.extract_strided_slice %96 {offsets = [30, 1], sizes = [1, 1], strides = [1, 1]} : vector<49x2xf32> to vector<1x1xf32>
    %466 = vector.extract %465[0, 0] : f32 from vector<1x1xf32>
    %467 = vector.broadcast %466 : f32 to vector<16x16xf32>
    %468 = arith.mulf %464, %467 : vector<16x16xf32>
    %469 = arith.addf %463, %468 : vector<16x16xf32>
    %c4_214 = arith.constant 4 : index
    %c3_215 = arith.constant 3 : index
    %470 = vector.load %arg14[%c4_214, %c3_215] : memref<22x22xf32, #tpu.memory_space<vmem>>, vector<16x16xf32>
    %471 = vector.extract_strided_slice %96 {offsets = [31, 0], sizes = [1, 1], strides = [1, 1]} : vector<49x2xf32> to vector<1x1xf32>
    %472 = vector.extract %471[0, 0] : f32 from vector<1x1xf32>
    %473 = vector.broadcast %472 : f32 to vector<16x16xf32>
    %474 = arith.mulf %470, %473 : vector<16x16xf32>
    %475 = arith.addf %469, %474 : vector<16x16xf32>
    %c4_216 = arith.constant 4 : index
    %c3_217 = arith.constant 3 : index
    %476 = vector.load %arg15[%c4_216, %c3_217] : memref<22x22xf32, #tpu.memory_space<vmem>>, vector<16x16xf32>
    %477 = vector.extract_strided_slice %96 {offsets = [31, 1], sizes = [1, 1], strides = [1, 1]} : vector<49x2xf32> to vector<1x1xf32>
    %478 = vector.extract %477[0, 0] : f32 from vector<1x1xf32>
    %479 = vector.broadcast %478 : f32 to vector<16x16xf32>
    %480 = arith.mulf %476, %479 : vector<16x16xf32>
    %481 = arith.addf %475, %480 : vector<16x16xf32>
    %c4_218 = arith.constant 4 : index
    %c4_219 = arith.constant 4 : index
    %482 = vector.load %arg14[%c4_218, %c4_219] : memref<22x22xf32, #tpu.memory_space<vmem>>, vector<16x16xf32>
    %483 = vector.extract_strided_slice %96 {offsets = [32, 0], sizes = [1, 1], strides = [1, 1]} : vector<49x2xf32> to vector<1x1xf32>
    %484 = vector.extract %483[0, 0] : f32 from vector<1x1xf32>
    %485 = vector.broadcast %484 : f32 to vector<16x16xf32>
    %486 = arith.mulf %482, %485 : vector<16x16xf32>
    %487 = arith.addf %481, %486 : vector<16x16xf32>
    %c4_220 = arith.constant 4 : index
    %c4_221 = arith.constant 4 : index
    %488 = vector.load %arg15[%c4_220, %c4_221] : memref<22x22xf32, #tpu.memory_space<vmem>>, vector<16x16xf32>
    %489 = vector.extract_strided_slice %96 {offsets = [32, 1], sizes = [1, 1], strides = [1, 1]} : vector<49x2xf32> to vector<1x1xf32>
    %490 = vector.extract %489[0, 0] : f32 from vector<1x1xf32>
    %491 = vector.broadcast %490 : f32 to vector<16x16xf32>
    %492 = arith.mulf %488, %491 : vector<16x16xf32>
    %493 = arith.addf %487, %492 : vector<16x16xf32>
    %c4_222 = arith.constant 4 : index
    %c5_223 = arith.constant 5 : index
    %494 = vector.load %arg14[%c4_222, %c5_223] : memref<22x22xf32, #tpu.memory_space<vmem>>, vector<16x16xf32>
    %495 = vector.extract_strided_slice %96 {offsets = [33, 0], sizes = [1, 1], strides = [1, 1]} : vector<49x2xf32> to vector<1x1xf32>
    %496 = vector.extract %495[0, 0] : f32 from vector<1x1xf32>
    %497 = vector.broadcast %496 : f32 to vector<16x16xf32>
    %498 = arith.mulf %494, %497 : vector<16x16xf32>
    %499 = arith.addf %493, %498 : vector<16x16xf32>
    %c4_224 = arith.constant 4 : index
    %c5_225 = arith.constant 5 : index
    %500 = vector.load %arg15[%c4_224, %c5_225] : memref<22x22xf32, #tpu.memory_space<vmem>>, vector<16x16xf32>
    %501 = vector.extract_strided_slice %96 {offsets = [33, 1], sizes = [1, 1], strides = [1, 1]} : vector<49x2xf32> to vector<1x1xf32>
    %502 = vector.extract %501[0, 0] : f32 from vector<1x1xf32>
    %503 = vector.broadcast %502 : f32 to vector<16x16xf32>
    %504 = arith.mulf %500, %503 : vector<16x16xf32>
    %505 = arith.addf %499, %504 : vector<16x16xf32>
    %c4_226 = arith.constant 4 : index
    %c6_227 = arith.constant 6 : index
    %506 = vector.load %arg14[%c4_226, %c6_227] : memref<22x22xf32, #tpu.memory_space<vmem>>, vector<16x16xf32>
    %507 = vector.extract_strided_slice %96 {offsets = [34, 0], sizes = [1, 1], strides = [1, 1]} : vector<49x2xf32> to vector<1x1xf32>
    %508 = vector.extract %507[0, 0] : f32 from vector<1x1xf32>
    %509 = vector.broadcast %508 : f32 to vector<16x16xf32>
    %510 = arith.mulf %506, %509 : vector<16x16xf32>
    %511 = arith.addf %505, %510 : vector<16x16xf32>
    %c4_228 = arith.constant 4 : index
    %c6_229 = arith.constant 6 : index
    %512 = vector.load %arg15[%c4_228, %c6_229] : memref<22x22xf32, #tpu.memory_space<vmem>>, vector<16x16xf32>
    %513 = vector.extract_strided_slice %96 {offsets = [34, 1], sizes = [1, 1], strides = [1, 1]} : vector<49x2xf32> to vector<1x1xf32>
    %514 = vector.extract %513[0, 0] : f32 from vector<1x1xf32>
    %515 = vector.broadcast %514 : f32 to vector<16x16xf32>
    %516 = arith.mulf %512, %515 : vector<16x16xf32>
    %517 = arith.addf %511, %516 : vector<16x16xf32>
    %c5_230 = arith.constant 5 : index
    %c0_231 = arith.constant 0 : index
    %518 = vector.load %arg14[%c5_230, %c0_231] : memref<22x22xf32, #tpu.memory_space<vmem>>, vector<16x16xf32>
    %519 = vector.extract_strided_slice %96 {offsets = [35, 0], sizes = [1, 1], strides = [1, 1]} : vector<49x2xf32> to vector<1x1xf32>
    %520 = vector.extract %519[0, 0] : f32 from vector<1x1xf32>
    %521 = vector.broadcast %520 : f32 to vector<16x16xf32>
    %522 = arith.mulf %518, %521 : vector<16x16xf32>
    %523 = arith.addf %517, %522 : vector<16x16xf32>
    %c5_232 = arith.constant 5 : index
    %c0_233 = arith.constant 0 : index
    %524 = vector.load %arg15[%c5_232, %c0_233] : memref<22x22xf32, #tpu.memory_space<vmem>>, vector<16x16xf32>
    %525 = vector.extract_strided_slice %96 {offsets = [35, 1], sizes = [1, 1], strides = [1, 1]} : vector<49x2xf32> to vector<1x1xf32>
    %526 = vector.extract %525[0, 0] : f32 from vector<1x1xf32>
    %527 = vector.broadcast %526 : f32 to vector<16x16xf32>
    %528 = arith.mulf %524, %527 : vector<16x16xf32>
    %529 = arith.addf %523, %528 : vector<16x16xf32>
    %c5_234 = arith.constant 5 : index
    %c1_235 = arith.constant 1 : index
    %530 = vector.load %arg14[%c5_234, %c1_235] : memref<22x22xf32, #tpu.memory_space<vmem>>, vector<16x16xf32>
    %531 = vector.extract_strided_slice %96 {offsets = [36, 0], sizes = [1, 1], strides = [1, 1]} : vector<49x2xf32> to vector<1x1xf32>
    %532 = vector.extract %531[0, 0] : f32 from vector<1x1xf32>
    %533 = vector.broadcast %532 : f32 to vector<16x16xf32>
    %534 = arith.mulf %530, %533 : vector<16x16xf32>
    %535 = arith.addf %529, %534 : vector<16x16xf32>
    %c5_236 = arith.constant 5 : index
    %c1_237 = arith.constant 1 : index
    %536 = vector.load %arg15[%c5_236, %c1_237] : memref<22x22xf32, #tpu.memory_space<vmem>>, vector<16x16xf32>
    %537 = vector.extract_strided_slice %96 {offsets = [36, 1], sizes = [1, 1], strides = [1, 1]} : vector<49x2xf32> to vector<1x1xf32>
    %538 = vector.extract %537[0, 0] : f32 from vector<1x1xf32>
    %539 = vector.broadcast %538 : f32 to vector<16x16xf32>
    %540 = arith.mulf %536, %539 : vector<16x16xf32>
    %541 = arith.addf %535, %540 : vector<16x16xf32>
    %c5_238 = arith.constant 5 : index
    %c2_239 = arith.constant 2 : index
    %542 = vector.load %arg14[%c5_238, %c2_239] : memref<22x22xf32, #tpu.memory_space<vmem>>, vector<16x16xf32>
    %543 = vector.extract_strided_slice %96 {offsets = [37, 0], sizes = [1, 1], strides = [1, 1]} : vector<49x2xf32> to vector<1x1xf32>
    %544 = vector.extract %543[0, 0] : f32 from vector<1x1xf32>
    %545 = vector.broadcast %544 : f32 to vector<16x16xf32>
    %546 = arith.mulf %542, %545 : vector<16x16xf32>
    %547 = arith.addf %541, %546 : vector<16x16xf32>
    %c5_240 = arith.constant 5 : index
    %c2_241 = arith.constant 2 : index
    %548 = vector.load %arg15[%c5_240, %c2_241] : memref<22x22xf32, #tpu.memory_space<vmem>>, vector<16x16xf32>
    %549 = vector.extract_strided_slice %96 {offsets = [37, 1], sizes = [1, 1], strides = [1, 1]} : vector<49x2xf32> to vector<1x1xf32>
    %550 = vector.extract %549[0, 0] : f32 from vector<1x1xf32>
    %551 = vector.broadcast %550 : f32 to vector<16x16xf32>
    %552 = arith.mulf %548, %551 : vector<16x16xf32>
    %553 = arith.addf %547, %552 : vector<16x16xf32>
    %c5_242 = arith.constant 5 : index
    %c3_243 = arith.constant 3 : index
    %554 = vector.load %arg14[%c5_242, %c3_243] : memref<22x22xf32, #tpu.memory_space<vmem>>, vector<16x16xf32>
    %555 = vector.extract_strided_slice %96 {offsets = [38, 0], sizes = [1, 1], strides = [1, 1]} : vector<49x2xf32> to vector<1x1xf32>
    %556 = vector.extract %555[0, 0] : f32 from vector<1x1xf32>
    %557 = vector.broadcast %556 : f32 to vector<16x16xf32>
    %558 = arith.mulf %554, %557 : vector<16x16xf32>
    %559 = arith.addf %553, %558 : vector<16x16xf32>
    %c5_244 = arith.constant 5 : index
    %c3_245 = arith.constant 3 : index
    %560 = vector.load %arg15[%c5_244, %c3_245] : memref<22x22xf32, #tpu.memory_space<vmem>>, vector<16x16xf32>
    %561 = vector.extract_strided_slice %96 {offsets = [38, 1], sizes = [1, 1], strides = [1, 1]} : vector<49x2xf32> to vector<1x1xf32>
    %562 = vector.extract %561[0, 0] : f32 from vector<1x1xf32>
    %563 = vector.broadcast %562 : f32 to vector<16x16xf32>
    %564 = arith.mulf %560, %563 : vector<16x16xf32>
    %565 = arith.addf %559, %564 : vector<16x16xf32>
    %c5_246 = arith.constant 5 : index
    %c4_247 = arith.constant 4 : index
    %566 = vector.load %arg14[%c5_246, %c4_247] : memref<22x22xf32, #tpu.memory_space<vmem>>, vector<16x16xf32>
    %567 = vector.extract_strided_slice %96 {offsets = [39, 0], sizes = [1, 1], strides = [1, 1]} : vector<49x2xf32> to vector<1x1xf32>
    %568 = vector.extract %567[0, 0] : f32 from vector<1x1xf32>
    %569 = vector.broadcast %568 : f32 to vector<16x16xf32>
    %570 = arith.mulf %566, %569 : vector<16x16xf32>
    %571 = arith.addf %565, %570 : vector<16x16xf32>
    %c5_248 = arith.constant 5 : index
    %c4_249 = arith.constant 4 : index
    %572 = vector.load %arg15[%c5_248, %c4_249] : memref<22x22xf32, #tpu.memory_space<vmem>>, vector<16x16xf32>
    %573 = vector.extract_strided_slice %96 {offsets = [39, 1], sizes = [1, 1], strides = [1, 1]} : vector<49x2xf32> to vector<1x1xf32>
    %574 = vector.extract %573[0, 0] : f32 from vector<1x1xf32>
    %575 = vector.broadcast %574 : f32 to vector<16x16xf32>
    %576 = arith.mulf %572, %575 : vector<16x16xf32>
    %577 = arith.addf %571, %576 : vector<16x16xf32>
    %c5_250 = arith.constant 5 : index
    %c5_251 = arith.constant 5 : index
    %578 = vector.load %arg14[%c5_250, %c5_251] : memref<22x22xf32, #tpu.memory_space<vmem>>, vector<16x16xf32>
    %579 = vector.extract_strided_slice %96 {offsets = [40, 0], sizes = [1, 1], strides = [1, 1]} : vector<49x2xf32> to vector<1x1xf32>
    %580 = vector.extract %579[0, 0] : f32 from vector<1x1xf32>
    %581 = vector.broadcast %580 : f32 to vector<16x16xf32>
    %582 = arith.mulf %578, %581 : vector<16x16xf32>
    %583 = arith.addf %577, %582 : vector<16x16xf32>
    %c5_252 = arith.constant 5 : index
    %c5_253 = arith.constant 5 : index
    %584 = vector.load %arg15[%c5_252, %c5_253] : memref<22x22xf32, #tpu.memory_space<vmem>>, vector<16x16xf32>
    %585 = vector.extract_strided_slice %96 {offsets = [40, 1], sizes = [1, 1], strides = [1, 1]} : vector<49x2xf32> to vector<1x1xf32>
    %586 = vector.extract %585[0, 0] : f32 from vector<1x1xf32>
    %587 = vector.broadcast %586 : f32 to vector<16x16xf32>
    %588 = arith.mulf %584, %587 : vector<16x16xf32>
    %589 = arith.addf %583, %588 : vector<16x16xf32>
    %c5_254 = arith.constant 5 : index
    %c6_255 = arith.constant 6 : index
    %590 = vector.load %arg14[%c5_254, %c6_255] : memref<22x22xf32, #tpu.memory_space<vmem>>, vector<16x16xf32>
    %591 = vector.extract_strided_slice %96 {offsets = [41, 0], sizes = [1, 1], strides = [1, 1]} : vector<49x2xf32> to vector<1x1xf32>
    %592 = vector.extract %591[0, 0] : f32 from vector<1x1xf32>
    %593 = vector.broadcast %592 : f32 to vector<16x16xf32>
    %594 = arith.mulf %590, %593 : vector<16x16xf32>
    %595 = arith.addf %589, %594 : vector<16x16xf32>
    %c5_256 = arith.constant 5 : index
    %c6_257 = arith.constant 6 : index
    %596 = vector.load %arg15[%c5_256, %c6_257] : memref<22x22xf32, #tpu.memory_space<vmem>>, vector<16x16xf32>
    %597 = vector.extract_strided_slice %96 {offsets = [41, 1], sizes = [1, 1], strides = [1, 1]} : vector<49x2xf32> to vector<1x1xf32>
    %598 = vector.extract %597[0, 0] : f32 from vector<1x1xf32>
    %599 = vector.broadcast %598 : f32 to vector<16x16xf32>
    %600 = arith.mulf %596, %599 : vector<16x16xf32>
    %601 = arith.addf %595, %600 : vector<16x16xf32>
    %c6_258 = arith.constant 6 : index
    %c0_259 = arith.constant 0 : index
    %602 = vector.load %arg14[%c6_258, %c0_259] : memref<22x22xf32, #tpu.memory_space<vmem>>, vector<16x16xf32>
    %603 = vector.extract_strided_slice %96 {offsets = [42, 0], sizes = [1, 1], strides = [1, 1]} : vector<49x2xf32> to vector<1x1xf32>
    %604 = vector.extract %603[0, 0] : f32 from vector<1x1xf32>
    %605 = vector.broadcast %604 : f32 to vector<16x16xf32>
    %606 = arith.mulf %602, %605 : vector<16x16xf32>
    %607 = arith.addf %601, %606 : vector<16x16xf32>
    %c6_260 = arith.constant 6 : index
    %c0_261 = arith.constant 0 : index
    %608 = vector.load %arg15[%c6_260, %c0_261] : memref<22x22xf32, #tpu.memory_space<vmem>>, vector<16x16xf32>
    %609 = vector.extract_strided_slice %96 {offsets = [42, 1], sizes = [1, 1], strides = [1, 1]} : vector<49x2xf32> to vector<1x1xf32>
    %610 = vector.extract %609[0, 0] : f32 from vector<1x1xf32>
    %611 = vector.broadcast %610 : f32 to vector<16x16xf32>
    %612 = arith.mulf %608, %611 : vector<16x16xf32>
    %613 = arith.addf %607, %612 : vector<16x16xf32>
    %c6_262 = arith.constant 6 : index
    %c1_263 = arith.constant 1 : index
    %614 = vector.load %arg14[%c6_262, %c1_263] : memref<22x22xf32, #tpu.memory_space<vmem>>, vector<16x16xf32>
    %615 = vector.extract_strided_slice %96 {offsets = [43, 0], sizes = [1, 1], strides = [1, 1]} : vector<49x2xf32> to vector<1x1xf32>
    %616 = vector.extract %615[0, 0] : f32 from vector<1x1xf32>
    %617 = vector.broadcast %616 : f32 to vector<16x16xf32>
    %618 = arith.mulf %614, %617 : vector<16x16xf32>
    %619 = arith.addf %613, %618 : vector<16x16xf32>
    %c6_264 = arith.constant 6 : index
    %c1_265 = arith.constant 1 : index
    %620 = vector.load %arg15[%c6_264, %c1_265] : memref<22x22xf32, #tpu.memory_space<vmem>>, vector<16x16xf32>
    %621 = vector.extract_strided_slice %96 {offsets = [43, 1], sizes = [1, 1], strides = [1, 1]} : vector<49x2xf32> to vector<1x1xf32>
    %622 = vector.extract %621[0, 0] : f32 from vector<1x1xf32>
    %623 = vector.broadcast %622 : f32 to vector<16x16xf32>
    %624 = arith.mulf %620, %623 : vector<16x16xf32>
    %625 = arith.addf %619, %624 : vector<16x16xf32>
    %c6_266 = arith.constant 6 : index
    %c2_267 = arith.constant 2 : index
    %626 = vector.load %arg14[%c6_266, %c2_267] : memref<22x22xf32, #tpu.memory_space<vmem>>, vector<16x16xf32>
    %627 = vector.extract_strided_slice %96 {offsets = [44, 0], sizes = [1, 1], strides = [1, 1]} : vector<49x2xf32> to vector<1x1xf32>
    %628 = vector.extract %627[0, 0] : f32 from vector<1x1xf32>
    %629 = vector.broadcast %628 : f32 to vector<16x16xf32>
    %630 = arith.mulf %626, %629 : vector<16x16xf32>
    %631 = arith.addf %625, %630 : vector<16x16xf32>
    %c6_268 = arith.constant 6 : index
    %c2_269 = arith.constant 2 : index
    %632 = vector.load %arg15[%c6_268, %c2_269] : memref<22x22xf32, #tpu.memory_space<vmem>>, vector<16x16xf32>
    %633 = vector.extract_strided_slice %96 {offsets = [44, 1], sizes = [1, 1], strides = [1, 1]} : vector<49x2xf32> to vector<1x1xf32>
    %634 = vector.extract %633[0, 0] : f32 from vector<1x1xf32>
    %635 = vector.broadcast %634 : f32 to vector<16x16xf32>
    %636 = arith.mulf %632, %635 : vector<16x16xf32>
    %637 = arith.addf %631, %636 : vector<16x16xf32>
    %c6_270 = arith.constant 6 : index
    %c3_271 = arith.constant 3 : index
    %638 = vector.load %arg14[%c6_270, %c3_271] : memref<22x22xf32, #tpu.memory_space<vmem>>, vector<16x16xf32>
    %639 = vector.extract_strided_slice %96 {offsets = [45, 0], sizes = [1, 1], strides = [1, 1]} : vector<49x2xf32> to vector<1x1xf32>
    %640 = vector.extract %639[0, 0] : f32 from vector<1x1xf32>
    %641 = vector.broadcast %640 : f32 to vector<16x16xf32>
    %642 = arith.mulf %638, %641 : vector<16x16xf32>
    %643 = arith.addf %637, %642 : vector<16x16xf32>
    %c6_272 = arith.constant 6 : index
    %c3_273 = arith.constant 3 : index
    %644 = vector.load %arg15[%c6_272, %c3_273] : memref<22x22xf32, #tpu.memory_space<vmem>>, vector<16x16xf32>
    %645 = vector.extract_strided_slice %96 {offsets = [45, 1], sizes = [1, 1], strides = [1, 1]} : vector<49x2xf32> to vector<1x1xf32>
    %646 = vector.extract %645[0, 0] : f32 from vector<1x1xf32>
    %647 = vector.broadcast %646 : f32 to vector<16x16xf32>
    %648 = arith.mulf %644, %647 : vector<16x16xf32>
    %649 = arith.addf %643, %648 : vector<16x16xf32>
    %c6_274 = arith.constant 6 : index
    %c4_275 = arith.constant 4 : index
    %650 = vector.load %arg14[%c6_274, %c4_275] : memref<22x22xf32, #tpu.memory_space<vmem>>, vector<16x16xf32>
    %651 = vector.extract_strided_slice %96 {offsets = [46, 0], sizes = [1, 1], strides = [1, 1]} : vector<49x2xf32> to vector<1x1xf32>
    %652 = vector.extract %651[0, 0] : f32 from vector<1x1xf32>
    %653 = vector.broadcast %652 : f32 to vector<16x16xf32>
    %654 = arith.mulf %650, %653 : vector<16x16xf32>
    %655 = arith.addf %649, %654 : vector<16x16xf32>
    %c6_276 = arith.constant 6 : index
    %c4_277 = arith.constant 4 : index
    %656 = vector.load %arg15[%c6_276, %c4_277] : memref<22x22xf32, #tpu.memory_space<vmem>>, vector<16x16xf32>
    %657 = vector.extract_strided_slice %96 {offsets = [46, 1], sizes = [1, 1], strides = [1, 1]} : vector<49x2xf32> to vector<1x1xf32>
    %658 = vector.extract %657[0, 0] : f32 from vector<1x1xf32>
    %659 = vector.broadcast %658 : f32 to vector<16x16xf32>
    %660 = arith.mulf %656, %659 : vector<16x16xf32>
    %661 = arith.addf %655, %660 : vector<16x16xf32>
    %c6_278 = arith.constant 6 : index
    %c5_279 = arith.constant 5 : index
    %662 = vector.load %arg14[%c6_278, %c5_279] : memref<22x22xf32, #tpu.memory_space<vmem>>, vector<16x16xf32>
    %663 = vector.extract_strided_slice %96 {offsets = [47, 0], sizes = [1, 1], strides = [1, 1]} : vector<49x2xf32> to vector<1x1xf32>
    %664 = vector.extract %663[0, 0] : f32 from vector<1x1xf32>
    %665 = vector.broadcast %664 : f32 to vector<16x16xf32>
    %666 = arith.mulf %662, %665 : vector<16x16xf32>
    %667 = arith.addf %661, %666 : vector<16x16xf32>
    %c6_280 = arith.constant 6 : index
    %c5_281 = arith.constant 5 : index
    %668 = vector.load %arg15[%c6_280, %c5_281] : memref<22x22xf32, #tpu.memory_space<vmem>>, vector<16x16xf32>
    %669 = vector.extract_strided_slice %96 {offsets = [47, 1], sizes = [1, 1], strides = [1, 1]} : vector<49x2xf32> to vector<1x1xf32>
    %670 = vector.extract %669[0, 0] : f32 from vector<1x1xf32>
    %671 = vector.broadcast %670 : f32 to vector<16x16xf32>
    %672 = arith.mulf %668, %671 : vector<16x16xf32>
    %673 = arith.addf %667, %672 : vector<16x16xf32>
    %c6_282 = arith.constant 6 : index
    %c6_283 = arith.constant 6 : index
    %674 = vector.load %arg14[%c6_282, %c6_283] : memref<22x22xf32, #tpu.memory_space<vmem>>, vector<16x16xf32>
    %675 = vector.extract_strided_slice %96 {offsets = [48, 0], sizes = [1, 1], strides = [1, 1]} : vector<49x2xf32> to vector<1x1xf32>
    %676 = vector.extract %675[0, 0] : f32 from vector<1x1xf32>
    %677 = vector.broadcast %676 : f32 to vector<16x16xf32>
    %678 = arith.mulf %674, %677 : vector<16x16xf32>
    %679 = arith.addf %673, %678 : vector<16x16xf32>
    %c6_284 = arith.constant 6 : index
    %c6_285 = arith.constant 6 : index
    %680 = vector.load %arg15[%c6_284, %c6_285] : memref<22x22xf32, #tpu.memory_space<vmem>>, vector<16x16xf32>
    %681 = vector.extract_strided_slice %96 {offsets = [48, 1], sizes = [1, 1], strides = [1, 1]} : vector<49x2xf32> to vector<1x1xf32>
    %682 = vector.extract %681[0, 0] : f32 from vector<1x1xf32>
    %683 = vector.broadcast %682 : f32 to vector<16x16xf32>
    %684 = arith.mulf %680, %683 : vector<16x16xf32>
    %685 = arith.addf %679, %684 : vector<16x16xf32>
    %cst_286 = arith.constant 0.000000e+00 : f32
    %686 = vector.broadcast %cst_286 : f32 to vector<16x16xf32>
    %687 = arith.subf %686, %685 : vector<16x16xf32>
    %688 = math.exp %687 : vector<16x16xf32>
    %cst_287 = arith.constant 1.000000e+00 : f32
    %689 = vector.broadcast %cst_287 : f32 to vector<16x16xf32>
    %690 = arith.addf %689, %688 : vector<16x16xf32>
    %691 = tpu.reciprocal %690 {approx = true} : vector<16x16xf32> -> vector<16x16xf32>
    %692 = vector.shape_cast %691 : vector<16x16xf32> to vector<16x16x1xf32>
    %693 = vector.broadcast %692 : vector<16x16x1xf32> to vector<16x16x8xf32>
    %694 = arith.mulf %85, %693 : vector<16x16x8xf32>
    %cst_288 = arith.constant 0.000000e+00 : f32
    %695 = vector.broadcast %cst_288 : f32 to vector<1x18x8xf32>
    %cst_289 = arith.constant 0.000000e+00 : f32
    %696 = vector.broadcast %cst_289 : f32 to vector<16x1x8xf32>
    %c0_290 = arith.constant 0 : index
    %c7_291 = arith.constant 7 : index
    %c0_292 = arith.constant 0 : index
    %697 = vector.load %arg12[%c0_290, %c7_291, %c0_292] : memref<18x32x8xf32, #tpu.memory_space<vmem>>, vector<1x18x8xf32>
    tpu.vector_store %arg12[%c0_290, %c7_291, %c0_292], %695 {strides = array<i32>} : memref<18x32x8xf32, #tpu.memory_space<vmem>>, vector<1x18x8xf32>,
    %c17_293 = arith.constant 17 : index
    %c7_294 = arith.constant 7 : index
    %c0_295 = arith.constant 0 : index
    %698 = vector.load %arg12[%c17_293, %c7_294, %c0_295] : memref<18x32x8xf32, #tpu.memory_space<vmem>>, vector<1x18x8xf32>
    tpu.vector_store %arg12[%c17_293, %c7_294, %c0_295], %695 {strides = array<i32>} : memref<18x32x8xf32, #tpu.memory_space<vmem>>, vector<1x18x8xf32>,
    %c1_296 = arith.constant 1 : index
    %c7_297 = arith.constant 7 : index
    %c0_298 = arith.constant 0 : index
    %699 = vector.load %arg12[%c1_296, %c7_297, %c0_298] : memref<18x32x8xf32, #tpu.memory_space<vmem>>, vector<16x1x8xf32>
    tpu.vector_store %arg12[%c1_296, %c7_297, %c0_298], %696 {strides = array<i32>} : memref<18x32x8xf32, #tpu.memory_space<vmem>>, vector<16x1x8xf32>,
    %c1_299 = arith.constant 1 : index
    %c24_300 = arith.constant 24 : index
    %c0_301 = arith.constant 0 : index
    %700 = vector.load %arg12[%c1_299, %c24_300, %c0_301] : memref<18x32x8xf32, #tpu.memory_space<vmem>>, vector<16x1x8xf32>
    tpu.vector_store %arg12[%c1_299, %c24_300, %c0_301], %696 {strides = array<i32>} : memref<18x32x8xf32, #tpu.memory_space<vmem>>, vector<16x1x8xf32>,
    %c1_302 = arith.constant 1 : index
    %c8_303 = arith.constant 8 : index
    %c0_304 = arith.constant 0 : index
    %701 = vector.load %arg12[%c1_302, %c8_303, %c0_304] : memref<18x32x8xf32, #tpu.memory_space<vmem>>, vector<16x16x8xf32>
    tpu.vector_store %arg12[%c1_302, %c8_303, %c0_304], %694 {strides = array<i32>} : memref<18x32x8xf32, #tpu.memory_space<vmem>>, vector<16x16x8xf32>,
    %c0_305 = arith.constant 0 : index
    %c7_306 = arith.constant 7 : index
    %c0_307 = arith.constant 0 : index
    %702 = vector.load %arg12[%c0_305, %c7_306, %c0_307] : memref<18x32x8xf32, #tpu.memory_space<vmem>>, vector<16x16x8xf32>
    %703 = vector.shape_cast %702 : vector<16x16x8xf32> to vector<256x8xf32>
    %704 = arith.truncf %703 : vector<256x8xf32> to vector<256x8xbf16>
    %c0_308 = arith.constant 0 : index
    %c0_309 = arith.constant 0 : index
    %705 = vector.load %arg13[%c0_308, %c0_309] : memref<256x72xbf16, #tpu.memory_space<vmem>>, vector<256x8xbf16>
    tpu.vector_store %arg13[%c0_308, %c0_309], %704 {strides = array<i32>} : memref<256x72xbf16, #tpu.memory_space<vmem>>, vector<256x8xbf16>,
    %c0_310 = arith.constant 0 : index
    %c8_311 = arith.constant 8 : index
    %c0_312 = arith.constant 0 : index
    %706 = vector.load %arg12[%c0_310, %c8_311, %c0_312] : memref<18x32x8xf32, #tpu.memory_space<vmem>>, vector<16x16x8xf32>
    %707 = vector.shape_cast %706 : vector<16x16x8xf32> to vector<256x8xf32>
    %708 = arith.truncf %707 : vector<256x8xf32> to vector<256x8xbf16>
    %c0_313 = arith.constant 0 : index
    %c8_314 = arith.constant 8 : index
    %709 = vector.load %arg13[%c0_313, %c8_314] : memref<256x72xbf16, #tpu.memory_space<vmem>>, vector<256x8xbf16>
    tpu.vector_store %arg13[%c0_313, %c8_314], %708 {strides = array<i32>} : memref<256x72xbf16, #tpu.memory_space<vmem>>, vector<256x8xbf16>,
    %c0_315 = arith.constant 0 : index
    %c9_316 = arith.constant 9 : index
    %c0_317 = arith.constant 0 : index
    %710 = vector.load %arg12[%c0_315, %c9_316, %c0_317] : memref<18x32x8xf32, #tpu.memory_space<vmem>>, vector<16x16x8xf32>
    %711 = vector.shape_cast %710 : vector<16x16x8xf32> to vector<256x8xf32>
    %712 = arith.truncf %711 : vector<256x8xf32> to vector<256x8xbf16>
    %c0_318 = arith.constant 0 : index
    %c16_319 = arith.constant 16 : index
    %713 = vector.load %arg13[%c0_318, %c16_319] : memref<256x72xbf16, #tpu.memory_space<vmem>>, vector<256x8xbf16>
    tpu.vector_store %arg13[%c0_318, %c16_319], %712 {strides = array<i32>} : memref<256x72xbf16, #tpu.memory_space<vmem>>, vector<256x8xbf16>,
    %c1_320 = arith.constant 1 : index
    %c7_321 = arith.constant 7 : index
    %c0_322 = arith.constant 0 : index
    %714 = vector.load %arg12[%c1_320, %c7_321, %c0_322] : memref<18x32x8xf32, #tpu.memory_space<vmem>>, vector<16x16x8xf32>
    %715 = vector.shape_cast %714 : vector<16x16x8xf32> to vector<256x8xf32>
    %716 = arith.truncf %715 : vector<256x8xf32> to vector<256x8xbf16>
    %c0_323 = arith.constant 0 : index
    %c24_324 = arith.constant 24 : index
    %717 = vector.load %arg13[%c0_323, %c24_324] : memref<256x72xbf16, #tpu.memory_space<vmem>>, vector<256x8xbf16>
    tpu.vector_store %arg13[%c0_323, %c24_324], %716 {strides = array<i32>} : memref<256x72xbf16, #tpu.memory_space<vmem>>, vector<256x8xbf16>,
    %c1_325 = arith.constant 1 : index
    %c8_326 = arith.constant 8 : index
    %c0_327 = arith.constant 0 : index
    %718 = vector.load %arg12[%c1_325, %c8_326, %c0_327] : memref<18x32x8xf32, #tpu.memory_space<vmem>>, vector<16x16x8xf32>
    %719 = vector.shape_cast %718 : vector<16x16x8xf32> to vector<256x8xf32>
    %720 = arith.truncf %719 : vector<256x8xf32> to vector<256x8xbf16>
    %c0_328 = arith.constant 0 : index
    %c32_329 = arith.constant 32 : index
    %721 = vector.load %arg13[%c0_328, %c32_329] : memref<256x72xbf16, #tpu.memory_space<vmem>>, vector<256x8xbf16>
    tpu.vector_store %arg13[%c0_328, %c32_329], %720 {strides = array<i32>} : memref<256x72xbf16, #tpu.memory_space<vmem>>, vector<256x8xbf16>,
    %c1_330 = arith.constant 1 : index
    %c9_331 = arith.constant 9 : index
    %c0_332 = arith.constant 0 : index
    %722 = vector.load %arg12[%c1_330, %c9_331, %c0_332] : memref<18x32x8xf32, #tpu.memory_space<vmem>>, vector<16x16x8xf32>
    %723 = vector.shape_cast %722 : vector<16x16x8xf32> to vector<256x8xf32>
    %724 = arith.truncf %723 : vector<256x8xf32> to vector<256x8xbf16>
    %c0_333 = arith.constant 0 : index
    %c40 = arith.constant 40 : index
    %725 = vector.load %arg13[%c0_333, %c40] : memref<256x72xbf16, #tpu.memory_space<vmem>>, vector<256x8xbf16>
    tpu.vector_store %arg13[%c0_333, %c40], %724 {strides = array<i32>} : memref<256x72xbf16, #tpu.memory_space<vmem>>, vector<256x8xbf16>,
    %c2_334 = arith.constant 2 : index
    %c7_335 = arith.constant 7 : index
    %c0_336 = arith.constant 0 : index
    %726 = vector.load %arg12[%c2_334, %c7_335, %c0_336] : memref<18x32x8xf32, #tpu.memory_space<vmem>>, vector<16x16x8xf32>
    %727 = vector.shape_cast %726 : vector<16x16x8xf32> to vector<256x8xf32>
    %728 = arith.truncf %727 : vector<256x8xf32> to vector<256x8xbf16>
    %c0_337 = arith.constant 0 : index
    %c48 = arith.constant 48 : index
    %729 = vector.load %arg13[%c0_337, %c48] : memref<256x72xbf16, #tpu.memory_space<vmem>>, vector<256x8xbf16>
    tpu.vector_store %arg13[%c0_337, %c48], %728 {strides = array<i32>} : memref<256x72xbf16, #tpu.memory_space<vmem>>, vector<256x8xbf16>,
    %c2_338 = arith.constant 2 : index
    %c8_339 = arith.constant 8 : index
    %c0_340 = arith.constant 0 : index
    %730 = vector.load %arg12[%c2_338, %c8_339, %c0_340] : memref<18x32x8xf32, #tpu.memory_space<vmem>>, vector<16x16x8xf32>
    %731 = vector.shape_cast %730 : vector<16x16x8xf32> to vector<256x8xf32>
    %732 = arith.truncf %731 : vector<256x8xf32> to vector<256x8xbf16>
    %c0_341 = arith.constant 0 : index
    %c56 = arith.constant 56 : index
    %733 = vector.load %arg13[%c0_341, %c56] : memref<256x72xbf16, #tpu.memory_space<vmem>>, vector<256x8xbf16>
    tpu.vector_store %arg13[%c0_341, %c56], %732 {strides = array<i32>} : memref<256x72xbf16, #tpu.memory_space<vmem>>, vector<256x8xbf16>,
    %c2_342 = arith.constant 2 : index
    %c9_343 = arith.constant 9 : index
    %c0_344 = arith.constant 0 : index
    %734 = vector.load %arg12[%c2_342, %c9_343, %c0_344] : memref<18x32x8xf32, #tpu.memory_space<vmem>>, vector<16x16x8xf32>
    %735 = vector.shape_cast %734 : vector<16x16x8xf32> to vector<256x8xf32>
    %736 = arith.truncf %735 : vector<256x8xf32> to vector<256x8xbf16>
    %c0_345 = arith.constant 0 : index
    %c64 = arith.constant 64 : index
    %737 = vector.load %arg13[%c0_345, %c64] : memref<256x72xbf16, #tpu.memory_space<vmem>>, vector<256x8xbf16>
    tpu.vector_store %arg13[%c0_345, %c64], %736 {strides = array<i32>} : memref<256x72xbf16, #tpu.memory_space<vmem>>, vector<256x8xbf16>,
    %c0_346 = arith.constant 0 : index
    %c0_347 = arith.constant 0 : index
    %738 = vector.load %arg13[%c0_346, %c0_347] : memref<256x72xbf16, #tpu.memory_space<vmem>>, vector<256x72xbf16>
    %c0_348 = arith.constant 0 : index
    %c0_349 = arith.constant 0 : index
    %739 = vector.load %arg5[%c0_348, %c0_349] : memref<72x8xbf16, #tpu.memory_space<vmem>>, vector<72x8xbf16>
    %cst_350 = arith.constant dense<0.000000e+00> : vector<256x8xf32>
    %740 = tpu.matmul %738, %739, %cst_350 {dimension_numbers = #tpu.dot_dimension_numbers<[1], [0], [0], [1], [0, 0, 1, 1], [], []>} : vector<256x72xbf16>, vector<72x8xbf16>, vector<256x8xf32> -> vector<256x8xf32>
    %c0_351 = arith.constant 0 : index
    %c0_352 = arith.constant 0 : index
    %741 = vector.load %arg6[%c0_351, %c0_352] : memref<1x8xf32, #tpu.memory_space<vmem>>, vector<1x8xf32>
    %742 = vector.broadcast %741 : vector<1x8xf32> to vector<256x8xf32>
    %743 = arith.mulf %740, %742 : vector<256x8xf32>
    %c0_353 = arith.constant 0 : index
    %c0_354 = arith.constant 0 : index
    %744 = vector.load %arg7[%c0_353, %c0_354] : memref<1x8xf32, #tpu.memory_space<vmem>>, vector<1x8xf32>
    %745 = vector.broadcast %744 : vector<1x8xf32> to vector<256x8xf32>
    %746 = arith.addf %743, %745 : vector<256x8xf32>
    %cst_355 = arith.constant 0.00999999977 : f32
    %747 = vector.broadcast %cst_355 : f32 to vector<256x8xf32>
    %748 = arith.mulf %747, %746 : vector<256x8xf32>
    %749 = arith.maximumf %746, %748 : vector<256x8xf32>
    %c0_356 = arith.constant 0 : index
    %c0_357 = arith.constant 0 : index
    %c0_358 = arith.constant 0 : index
    %c0_359 = arith.constant 0 : index
    %750 = vector.load %arg11[%c0_356, %c0_357, %c0_358, %c0_359] : memref<1x16x16x8xf32, #tpu.memory_space<vmem>>, vector<1x16x16x8xf32>
    %751 = vector.shape_cast %750 : vector<1x16x16x8xf32> to vector<16x16x8xf32>
    %752 = vector.shape_cast %749 : vector<256x8xf32> to vector<16x16x8xf32>
    %753 = arith.addf %751, %752 : vector<16x16x8xf32>
    %c0_360 = arith.constant 0 : index
    %c0_361 = arith.constant 0 : index
    %c0_362 = arith.constant 0 : index
    %c0_363 = arith.constant 0 : index
    %754 = vector.load %arg11[%c0_360, %c0_361, %c0_362, %c0_363] : memref<1x16x16x8xf32, #tpu.memory_space<vmem>>, vector<1x16x16x8xf32>
    %755 = vector.shape_cast %754 : vector<1x16x16x8xf32> to vector<16x16x8xf32>
    %756 = vector.shape_cast %753 : vector<16x16x8xf32> to vector<1x16x16x8xf32>
    tpu.vector_store %arg11[%c0_360, %c0_361, %c0_362, %c0_363], %756 {strides = array<i32>} : memref<1x16x16x8xf32, #tpu.memory_space<vmem>>, vector<1x16x16x8xf32>,
    return
  }
  func.func @transform_0(%arg0: i32) -> (i32, i32, i32, i32) {
    %c0_i32 = arith.constant 0 : i32
    %c0_i32_0 = arith.constant 0 : i32
    %c0_i32_1 = arith.constant 0 : i32
    %c0_i32_2 = arith.constant 0 : i32
    return %arg0, %c0_i32, %c0_i32_0, %c0_i32_1 : i32, i32, i32, i32
  }
  func.func @transform_1(%arg0: i32) -> (i32, i32) {
    %c0_i32 = arith.constant 0 : i32
    %c0_i32_0 = arith.constant 0 : i32
    %c0_i32_1 = arith.constant 0 : i32
    return %c0_i32, %c0_i32_0 : i32, i32
  }
  func.func @transform_2(%arg0: i32) -> (i32, i32) {
    %c0_i32 = arith.constant 0 : i32
    %c0_i32_0 = arith.constant 0 : i32
    %c0_i32_1 = arith.constant 0 : i32
    return %c0_i32, %c0_i32_0 : i32, i32
  }
  func.func @transform_3(%arg0: i32) -> (i32, i32) {
    %c0_i32 = arith.constant 0 : i32
    %c0_i32_0 = arith.constant 0 : i32
    %c0_i32_1 = arith.constant 0 : i32
    return %c0_i32, %c0_i32_0 : i32, i32
  }
  func.func @transform_4(%arg0: i32) -> (i32, i32) {
    %c0_i32 = arith.constant 0 : i32
    %c0_i32_0 = arith.constant 0 : i32
    %c0_i32_1 = arith.constant 0 : i32
    return %c0_i32, %c0_i32_0 : i32, i32
  }
  func.func @transform_5(%arg0: i32) -> (i32, i32) {
    %c0_i32 = arith.constant 0 : i32
    %c0_i32_0 = arith.constant 0 : i32
    %c0_i32_1 = arith.constant 0 : i32
    return %c0_i32, %c0_i32_0 : i32, i32
  }
  func.func @transform_6(%arg0: i32) -> (i32, i32) {
    %c0_i32 = arith.constant 0 : i32
    %c0_i32_0 = arith.constant 0 : i32
    %c0_i32_1 = arith.constant 0 : i32
    return %c0_i32, %c0_i32_0 : i32, i32
  }
  func.func @transform_7(%arg0: i32) -> (i32, i32) {
    %c0_i32 = arith.constant 0 : i32
    %c0_i32_0 = arith.constant 0 : i32
    %c0_i32_1 = arith.constant 0 : i32
    return %c0_i32, %c0_i32_0 : i32, i32
  }
  func.func @transform_8(%arg0: i32) -> (i32, i32) {
    %c0_i32 = arith.constant 0 : i32
    %c0_i32_0 = arith.constant 0 : i32
    %c0_i32_1 = arith.constant 0 : i32
    return %c0_i32, %c0_i32_0 : i32, i32
  }
  func.func @transform_9(%arg0: i32) -> (i32, i32) {
    %c0_i32 = arith.constant 0 : i32
    %c0_i32_0 = arith.constant 0 : i32
    %c0_i32_1 = arith.constant 0 : i32
    return %c0_i32, %c0_i32_0 : i32, i32
  }
  func.func @transform_10(%arg0: i32) -> (i32, i32, i32, i32) {
    %c0_i32 = arith.constant 0 : i32
    %c0_i32_0 = arith.constant 0 : i32
    %c0_i32_1 = arith.constant 0 : i32
    %c0_i32_2 = arith.constant 0 : i32
    return %arg0, %c0_i32, %c0_i32_0, %c0_i32_1 : i32, i32, i32, i32
  }
}

</mosaic_0001>

<bundles_post_ra>
// kernel: tpu_custom_call.1
= control target key start
LH: loop header
LB: loop body
LE: loop exit
PB: predicated region body
PF: predicated region fallthrough
CT: control target
= control target key end

     0   :  { %s10584_s13 = smov 0   ;;  %s14852_s0 = inlined_call_operand.vmem [shape: f32[2,16,16,4], index: 0, kind: input, shape index: {}]   ;;  %s14853_s1 = inlined_call_operand.vmem [shape: bf16[36,8], index: 1, kind: input, shape index: {}]   ;;  %s14854_s2 = inlined_call_operand.vmem [shape: f32[1,8], index: 2, kind: input, shape index: {}]   ;;  %s14855_s3 = inlined_call_operand.vmem [shape: f32[1,8], index: 3, kind: input, shape index: {}]   ;;  %s14856_s4 = inlined_call_operand.vmem [shape: bf16[72,8], index: 4, kind: input, shape index: {}]   ;;  %s14857_s5 = inlined_call_operand.vmem [shape: f32[1,8], index: 5, kind: input, shape index: {}]   ;;  %s14858_s6 = inlined_call_operand.vmem [shape: f32[1,8], index: 6, kind: input, shape index: {}]   ;;  %s14859_s7 = inlined_call_operand.vmem [shape: f32[8,4], index: 7, kind: input, shape index: {}]   ;;  %s14860_s8 = inlined_call_operand.vmem [shape: f32[4,8], index: 8, kind: input, shape index: {}]   ;;  %s14861_s9 = inlined_call_operand.vmem [shape: f32[49,2], index: 9, kind: input, shape index: {}]   ;;  %s14862_s10 = inlined_call_operand.vmem [shape: f32[2,16,16,8], index: 10, kind: output, shape index: {}]  }
   0x1   :  { %14938 = sst [smem:[#allocation105_spill]] %s14852_s0 }
   0x2   :  { %14939 = sst [smem:[#allocation106_spill]] %s14853_s1 }
   0x3   :  { %14940 = sst [smem:[#allocation107_spill]] %s14854_s2 }
   0x4   :  { %14941 = sst [smem:[#allocation108_spill]] %s14855_s3 }
   0x5   :  { %14942 = sst [smem:[#allocation109_spill]] %s14856_s4 }
   0x6   :  { %14943 = sst [smem:[#allocation110_spill]] %s14857_s5 }
   0x7   :  { %14944 = sst [smem:[#allocation111_spill]] %s14858_s6 }
   0x8   :  { %14945 = sst [smem:[#allocation112_spill]] %s14859_s7 }
   0x9   :  { %14946 = sst [smem:[#allocation113_spill]] %s14860_s8 }
   0xa   :  { %14947 = sst [smem:[#allocation114_spill]] %s14861_s9 }
   0xb   :  { %14948 = sst [smem:[#allocation115_spill]] %s14862_s10 }
   0xc LB: > { %14949 = sst [smem:[#allocation6_spill]] %s10507_s13  ;;  %s8839_s14 = sadd.s32 4294967295, %s10507_s13   ;;  %s10507_s13 = sphi %s10584_s13, %s20_s13  }
   0xd   : > { %p8843_p0 = scmp.ge.s32.totalorder %s10507_s13, 1  ;;  %p312_p1 = scmp.lt.s32.totalorder %s10507_s13, 3 }
   0xf   : > { %p313_p2 = pnand %p8843_p0, %p312_p1 }
  0x11   : > { %316 = sbr.rel (%p313_p2) target bundleno = 3732 (0xe94), region = 60 }
  0x16   : > { %vm361_vm0 = vcmask 64512   ;;  %p350_p3 = scmp.lt.s32.totalorder %s8839_s14, 1  ;;  %vm364_vm1 = vcmask 58368   ;;  %v14863_v0 = vmov 0.0   ;;  %vm371_vm2 = vcmask 57344   ;;  %s14950_s0 = sld [smem:[#allocation105_spill]] }
  0x17   : > { %362 = vst.msk [vmem:[#allocation2 + $0x7] sm:$0xff] %vm361_vm0, %v14863_v0  ;;  %363 = vst.msk [vmem:[#allocation2 + $0xf] sm:$0xff] %vm361_vm0, %v14863_v0  ;;  %vm436_vm3 = vcmask 31744   ;;  %s10510_s19 = smov 4   ;;  %vm629_vm4 = vcmask 27648   ;;  %s14884_s20 = smov 8  }
  0x18   : > { %367 = vst.msk [vmem:[#allocation2 + $0x227] sm:$0xff] %vm361_vm0, %v14863_v0  ;;  %368 = vst.msk [vmem:[#allocation2 + $0x22f] sm:$0xff] %vm361_vm0, %v14863_v0  ;;  %s15188_s14 = smov (!%p350_p3, %s8839_s14), 1  ;;  %s10512_s21 = smov 12   ;;  %vm886_vm5 = vcmask 60448   ;;  %vm2900_vm6 = vcmask 1041408  }
  0x19   : > { %365 = vst.msk [vmem:[#allocation2 + $0x17] sm:$0x3] %vm364_vm1, %v14863_v0  ;;  %369 = vst.msk [vmem:[#allocation2 + $0x237] sm:$0x3] %vm364_vm1, %v14863_v0  ;;  %s9505_s15 = sshll.u32 %s15188_s14, 8  ;;  %s14882_s22 = smov 16  }
  0x1a   : > { %388 = vst.msk [vmem:[#allocation2 + $0x38] sm:$0x1] %vm371_vm2, %v14863_v0  ;;  %372 = vst.msk [vmem:[#allocation2 + $0x27] sm:$0x1] %vm371_vm2, %v14863_v0  ;;  %s10514_s23 = smov 20   ;;  %s14880_s24 = smov 24  }
  0x1b   : > { %373 = vst.msk [vmem:[#allocation2 + $0x47] sm:$0x1] %vm371_vm2, %v14863_v0  ;;  %374 = vst.msk [vmem:[#allocation2 + $0x67] sm:$0x1] %vm371_vm2, %v14863_v0  ;;  %s10516_s25 = smov 28   ;;  %s14951_s1 = sld [smem:[#allocation106_spill]] }
  0x1c   : > { %375 = vst.msk [vmem:[#allocation2 + $0x87] sm:$0x1] %vm371_vm2, %v14863_v0  ;;  %376 = vst.msk [vmem:[#allocation2 + $0xa7] sm:$0x1] %vm371_vm2, %v14863_v0  ;;  %s10676_s18 = scalar_lea.vmem %s14950_s0, %s9505_s15  ;;  %s14878_s30 = smov 32   ;;  %vm1143_vm7 = vcmask 93248  }
  0x1d   : > { %377 = vst.msk [vmem:[#allocation2 + $0xc7] sm:$0x1] %vm371_vm2, %v14863_v0  ;;  %378 = vst.msk [vmem:[#allocation2 + $0xe7] sm:$0x1] %vm371_vm2, %v14863_v0  ;;  %v404_v1 = vld [vmem:[%s10676_s18] sm:$0xff]  ;;  %v405_v2 = vld [vmem:[%s10676_s18 + $0x8] sm:$0xff] }
  0x1e   : > { %379 = vst.msk [vmem:[#allocation2 + $0x107] sm:$0x1] %vm371_vm2, %v14863_v0  ;;  %380 = vst.msk [vmem:[#allocation2 + $0x127] sm:$0x1] %vm371_vm2, %v14863_v0  ;;  %v406_v3 = vld [vmem:[%s10676_s18 + $0x10] sm:$0xff]  ;;  %v407_v4 = vld [vmem:[%s10676_s18 + $0x18] sm:$0xff] }
  0x1f   : > { %381 = vst.msk [vmem:[#allocation2 + $0x147] sm:$0x1] %vm371_vm2, %v14863_v0  ;;  %382 = vst.msk [vmem:[#allocation2 + $0x167] sm:$0x1] %vm371_vm2, %v14863_v0  ;;  %v408_v5 = vld [vmem:[%s10676_s18 + $0x20] sm:$0xff]  ;;  %v409_v6 = vld [vmem:[%s10676_s18 + $0x28] sm:$0xff] }
  0x20   : > { %383 = vst.msk [vmem:[#allocation2 + $0x187] sm:$0x1] %vm371_vm2, %v14863_v0  ;;  %384 = vst.msk [vmem:[#allocation2 + $0x1a7] sm:$0x1] %vm371_vm2, %v14863_v0  ;;  %v662_v7 = vld [vmem:[#allocation2 + $0x8] sm:$0xff]  ;;  %v663_v8 = vld [vmem:[#allocation2 + $0x10] sm:$0xff] }
  0x21   : > { %385 = vst.msk [vmem:[#allocation2 + $0x1c7] sm:$0x1] %vm371_vm2, %v14863_v0  ;;  %386 = vst.msk [vmem:[#allocation2 + $0x1e7] sm:$0x1] %vm371_vm2, %v14863_v0  ;;  %v410_v9 = vld [vmem:[%s10676_s18 + $0x30] sm:$0xff]  ;;  %v9539_v10 = vpack.c.bf16 %v662_v7, %v662_v7  ;;  %v411_v11 = vld [vmem:[%s10676_s18 + $0x38] sm:$0xff]  ;;  %v9540_v17 = vpack.c.bf16 %v663_v8, %v663_v8 }
  0x22   : > { %387 = vst.msk [vmem:[#allocation2 + $0x207] sm:$0x1] %vm371_vm2, %v14863_v0  ;;  %389 = vst.msk [vmem:[#allocation2 + $0x58] sm:$0x1] %vm371_vm2, %v14863_v0  ;;  %v412_v12 = vld [vmem:[%s10676_s18 + $0x40] sm:$0xff]  ;;  %v413_v13 = vld [vmem:[%s10676_s18 + $0x48] sm:$0xff] }
  0x23   : > { %390 = vst.msk [vmem:[#allocation2 + $0x78] sm:$0x1] %vm371_vm2, %v14863_v0  ;;  %391 = vst.msk [vmem:[#allocation2 + $0x98] sm:$0x1] %vm371_vm2, %v14863_v0  ;;  %v414_v14 = vld [vmem:[%s10676_s18 + $0x50] sm:$0xff]  ;;  %v415_v15 = vld [vmem:[%s10676_s18 + $0x58] sm:$0xff]  ;;  %790 = vrot.lane.b32.xlu0 %v9539_v10, %s10510_s19 }
  0x24   : > { %392 = vst.msk [vmem:[#allocation2 + $0xb8] sm:$0x1] %vm371_vm2, %v14863_v0  ;;  %393 = vst.msk [vmem:[#allocation2 + $0xd8] sm:$0x1] %vm371_vm2, %v14863_v0  ;;  %v416_v16 = vld [vmem:[%s10676_s18 + $0x60] sm:$0xff]  ;;  %v417_v18 = vld [vmem:[%s10676_s18 + $0x68] sm:$0xff] }
  0x25   : > { %394 = vst.msk [vmem:[#allocation2 + $0xf8] sm:$0x1] %vm371_vm2, %v14863_v0  ;;  %395 = vst.msk [vmem:[#allocation2 + $0x118] sm:$0x1] %vm371_vm2, %v14863_v0  ;;  %v418_v19 = vld [vmem:[%s10676_s18 + $0x70] sm:$0xff]  ;;  %v419_v20 = vld [vmem:[%s10676_s18 + $0x78] sm:$0xff] }
  0x26   : > { %396 = vst.msk [vmem:[#allocation2 + $0x138] sm:$0x1] %vm371_vm2, %v14863_v0  ;;  %397 = vst.msk [vmem:[#allocation2 + $0x158] sm:$0x1] %vm371_vm2, %v14863_v0  ;;  %v420_v21 = vld [vmem:[%s10676_s18 + $0x80] sm:$0xff]  ;;  %v421_v22 = vld [vmem:[%s10676_s18 + $0x88] sm:$0xff] }
  0x27   : > { %398 = vst.msk [vmem:[#allocation2 + $0x178] sm:$0x1] %vm371_vm2, %v14863_v0  ;;  %399 = vst.msk [vmem:[#allocation2 + $0x198] sm:$0x1] %vm371_vm2, %v14863_v0  ;;  %v422_v23 = vld [vmem:[%s10676_s18 + $0x90] sm:$0xff]  ;;  %v423_v24 = vld [vmem:[%s10676_s18 + $0x98] sm:$0xff]  ;;  %792 = vrot.lane.b32.xlu0 %v9540_v17, %s10510_s19 }
  0x28   : > { %400 = vst.msk [vmem:[#allocation2 + $0x1b8] sm:$0x1] %vm371_vm2, %v14863_v0  ;;  %401 = vst.msk [vmem:[#allocation2 + $0x1d8] sm:$0x1] %vm371_vm2, %v14863_v0  ;;  %v424_v25 = vld [vmem:[%s10676_s18 + $0xa0] sm:$0xff]  ;;  %v425_v26 = vld [vmem:[%s10676_s18 + $0xa8] sm:$0xff] }
  0x29   : > { %402 = vst.msk [vmem:[#allocation2 + $0x1f8] sm:$0x1] %vm371_vm2, %v14863_v0  ;;  %403 = vst.msk [vmem:[#allocation2 + $0x218] sm:$0x1] %vm371_vm2, %v14863_v0  ;;  %v426_v33 = vld [vmem:[%s10676_s18 + $0xb0] sm:$0xff]  ;;  %v427_v34 = vld [vmem:[%s10676_s18 + $0xb8] sm:$0xff] }
  0x2a   : > { %437 = vst.msk [vmem:[#allocation2 + $0x28] sm:$0xff] %vm436_vm3, %v404_v1  ;;  %438 = vst.msk [vmem:[#allocation2 + $0x30] sm:$0xff] %vm436_vm3, %v405_v2  ;;  %v428_v41 = vld [vmem:[%s10676_s18 + $0xc0] sm:$0xff]  ;;  %v429_v42 = vld [vmem:[%s10676_s18 + $0xc8] sm:$0xff]  ;;  %vm1400_vm8 = vcmask 126048   ;;  %vm1657_vm9 = vcmask 158848  }
  0x2b   : > { %439 = vst.msk [vmem:[#allocation2 + $0x48] sm:$0xff] %vm436_vm3, %v406_v3  ;;  %440 = vst.msk [vmem:[#allocation2 + $0x50] sm:$0xff] %vm436_vm3, %v407_v4  ;;  %v430_v43 = vld [vmem:[%s10676_s18 + $0xd0] sm:$0xff]  ;;  %v431_v45 = vld [vmem:[%s10676_s18 + $0xd8] sm:$0xff]  ;;  %vm1914_vm10 = vcmask 191648   ;;  %vm2172_vm11 = vcmask 224448  }
  0x2c   : > { %441 = vst.msk [vmem:[#allocation2 + $0x68] sm:$0xff] %vm436_vm3, %v408_v5  ;;  %442 = vst.msk [vmem:[#allocation2 + $0x70] sm:$0xff] %vm436_vm3, %v409_v6  ;;  %v432_v46 = vld [vmem:[%s10676_s18 + $0xe0] sm:$0xff]  ;;  %v433_v47 = vld [vmem:[%s10676_s18 + $0xe8] sm:$0xff]  ;;  %vm2429_vm12 = vcmask 257248   ;;  %vm2686_vm13 = vcmask 290048  }
  0x2d   : > { %443 = vst.msk [vmem:[#allocation2 + $0x88] sm:$0xff] %vm436_vm3, %v410_v9  ;;  %444 = vst.msk [vmem:[#allocation2 + $0x90] sm:$0xff] %vm436_vm3, %v411_v11  ;;  %v10764_v50 = vld [vmem:[#allocation2 + $0x11] sm:$0xff]  ;;  %v10804_v1 = vld [vmem:[#allocation2 + $0x9] sm:$0xff]  ;;  %vm6096_vm14 = vcmask 60416   ;;  %vm2851_vm15 = vcmask 293888  }
  0x2e   : > { %445 = vst.msk [vmem:[#allocation2 + $0xa8] sm:$0xff] %vm436_vm3, %v412_v12  ;;  %446 = vst.msk [vmem:[#allocation2 + $0xb0] sm:$0xff] %vm436_vm3, %v413_v13  ;;  %v469_v11 = vld [vmem:[#allocation2 + $0x7] sm:$0xff]  ;;  %v470_v12 = vld [vmem:[#allocation2 + $0xf] sm:$0xff]  ;;  %s14952_s2 = sld [smem:[#allocation107_spill]] }
  0x2f   : > { %447 = vst.msk [vmem:[#allocation2 + $0xc8] sm:$0xff] %vm436_vm3, %v414_v14  ;;  %448 = vst.msk [vmem:[#allocation2 + $0xd0] sm:$0xff] %vm436_vm3, %v415_v15  ;;  %v9507_v15 = vpack.c.bf16 %v469_v11, %v469_v11  ;;  %s14953_s3 = sld [smem:[#allocation108_spill]] }
  0x30   : > { %449 = vst.msk [vmem:[#allocation2 + $0xe8] sm:$0xff] %vm436_vm3, %v416_v16  ;;  %450 = vst.msk [vmem:[#allocation2 + $0xf0] sm:$0xff] %vm436_vm3, %v417_v18  ;;  %v9508_v16 = vpack.c.bf16 %v470_v12, %v470_v12  ;;  %s14954_s10 = sld [smem:[#allocation115_spill]] }
  0x31   : > { %451 = vst.msk [vmem:[#allocation2 + $0x108] sm:$0xff] %vm436_vm3, %v418_v19  ;;  %452 = vst.msk [vmem:[#allocation2 + $0x110] sm:$0xff] %vm436_vm3, %v419_v20  ;;  %v664_v27 = vld [vmem:[#allocation2 + $0x28] sm:$0xff]  ;;  %v665_v28 = vld [vmem:[#allocation2 + $0x30] sm:$0xff]  ;;  %s14956_s7 = sld [smem:[#allocation112_spill]] }
  0x32   : > { %453 = vst.msk [vmem:[#allocation2 + $0x128] sm:$0xff] %vm436_vm3, %v420_v21  ;;  %454 = vst.msk [vmem:[#allocation2 + $0x130] sm:$0xff] %vm436_vm3, %v421_v22  ;;  %v666_v29 = vld [vmem:[#allocation2 + $0x48] sm:$0xff]  ;;  %v10723_v30 = vpack.c.bf16 %v664_v27, %v664_v27  ;;  %v10732_v35 = vpack.c.bf16 %v665_v28, %v665_v28  ;;  %v667_v36 = vld [vmem:[#allocation2 + $0x50] sm:$0xff]  ;;  %s14957_s8 = sld [smem:[#allocation113_spill]] }
  0x33   : > { %455 = vst.msk [vmem:[#allocation2 + $0x148] sm:$0xff] %vm436_vm3, %v422_v23  ;;  %456 = vst.msk [vmem:[#allocation2 + $0x150] sm:$0xff] %vm436_vm3, %v423_v24  ;;  %v10726_v31 = vpack.c.bf16 %v666_v29, %v666_v29  ;;  %v668_v32 = vld [vmem:[#allocation2 + $0x68] sm:$0xff]  ;;  %v10742_v39 = vpack.c.bf16 %v667_v36, %v667_v36  ;;  %v669_v40 = vld [vmem:[#allocation2 + $0x70] sm:$0xff]  ;;  %s14958_s9 = sld [smem:[#allocation114_spill]] }
  0x34   : > { %457 = vst.msk [vmem:[#allocation2 + $0x168] sm:$0xff] %vm436_vm3, %v424_v25  ;;  %458 = vst.msk [vmem:[#allocation2 + $0x170] sm:$0xff] %vm436_vm3, %v425_v26  ;;  %794 = vrot.lane.b32.xlu1 %v10723_v30, %s10510_s19  ;;  %v10738_v37 = vpack.c.bf16 %v668_v32, %v668_v32  ;;  %v670_v38 = vld [vmem:[#allocation2 + $0x88] sm:$0xff]  ;;  %v10762_v49 = vpack.c.bf16 %v669_v40, %v669_v40  ;;  %v10766_v51 = vld [vmem:[#allocation2 + $0x31] sm:$0xff] }
  0x35   : > { %459 = vst.msk [vmem:[#allocation2 + $0x188] sm:$0xff] %vm436_vm3, %v426_v33  ;;  %460 = vst.msk [vmem:[#allocation2 + $0x190] sm:$0xff] %vm436_vm3, %v427_v34  ;;  %798 = vrot.lane.b32.xlu0 %v10726_v31, %s10510_s19  ;;  %v10749_v44 = vpack.c.bf16 %v670_v38, %v670_v38  ;;  %v672_v48 = vld [vmem:[#allocation2 + $0xa8] sm:$0xff]  ;;  %v671_v52 = vld [vmem:[#allocation2 + $0x90] sm:$0xff] }
  0x36   : > { %461 = vst.msk [vmem:[#allocation2 + $0x1a8] sm:$0xff] %vm436_vm3, %v428_v41  ;;  %462 = vst.msk [vmem:[#allocation2 + $0x1b0] sm:$0xff] %vm436_vm3, %v429_v42  ;;  %v10770_v53 = vld [vmem:[#allocation2 + $0x51] sm:$0xff]  ;;  %v10776_v54 = vpack.c.bf16 %v672_v48, %v672_v48  ;;  %v674_v57 = vld [vmem:[#allocation2 + $0xc8] sm:$0xff]  ;;  %v10792_v59 = vpack.c.bf16 %v671_v52, %v671_v52  ;;  %s11712_s28 = scalar_lea.vmem %s14954_s10, %s9505_s15 }
  0x37   : > { %463 = vst.msk [vmem:[#allocation2 + $0x1c8] sm:$0xff] %vm436_vm3, %v430_v43  ;;  %464 = vst.msk [vmem:[#allocation2 + $0x1d0] sm:$0xff] %vm436_vm3, %v431_v45  ;;  %v10778_v55 = vld [vmem:[#allocation2 + $0x71] sm:$0xff]  ;;  %v9551_v62 = vpack.c.bf16 %v674_v57, %v674_v57  ;;  %v10802_v63 = vld [vmem:[#allocation2 + $0xe8] sm:$0xff]  ;;  %14955 = sst [smem:[#allocation7_spill]] %s11712_s28 }
  0x38   : > { %796 = vrot.lane.b32.xlu1 %v10732_v35, %s10510_s19  ;;  %465 = vst.msk [vmem:[#allocation2 + $0x1e8] sm:$0xff] %vm436_vm3, %v432_v46  ;;  %466 = vst.msk [vmem:[#allocation2 + $0x1f0] sm:$0xff] %vm436_vm3, %v433_v47  ;;  %v10780_v56 = vld [vmem:[#allocation2 + $0x91] sm:$0xff]  ;;  %v1176_v3 = vld [vmem:[#allocation2 + $0x27] sm:$0xff]  ;;  %v9553_v20 = vpack.c.bf16 %v10802_v63, %v10802_v63 }
  0x39   : > { %802 = vrot.lane.b32.xlu0 %v10738_v37, %s10510_s19  ;;  %5868 = vst.msk [vmem:[#allocation2 + $0x17] sm:$0x3] %vm364_vm1, %v14863_v0  ;;  %v10784_v58 = vld [vmem:[#allocation2 + $0xb1] sm:$0xff]  ;;  %v1178_v5 = vld [vmem:[#allocation2 + $0x47] sm:$0xff]  ;;  %v10812_v7 = vpack.c.bf16 %v1176_v3, %v1176_v3 }
  0x3a   : > { %5888 = vst.msk [vmem:[#allocation2 + $0x38] sm:$0x1] %vm371_vm2, %v14863_v0  ;;  %5889 = vst.msk [vmem:[#allocation2 + $0x58] sm:$0x1] %vm371_vm2, %v14863_v0  ;;  %v10794_v60 = vld [vmem:[#allocation2 + $0xd1] sm:$0xff]  ;;  %v10816_v9 = vpack.c.bf16 %v1178_v5, %v1178_v5  ;;  %v10822_v13 = vld [vmem:[#allocation2 + $0x108] sm:$0xff] }
  0x3b   : > { %5890 = vst.msk [vmem:[#allocation2 + $0x78] sm:$0x1] %vm371_vm2, %v14863_v0  ;;  %5891 = vst.msk [vmem:[#allocation2 + $0x98] sm:$0x1] %vm371_vm2, %v14863_v0  ;;  %v673_v61 = vld [vmem:[#allocation2 + $0xb0] sm:$0xff]  ;;  %v1950_v17 = vld [vmem:[#allocation2 + $0x67] sm:$0xff]  ;;  %v9555_v63 = vpack.c.bf16 %v10822_v13, %v10822_v13 }
  0x3c   : > { %800 = vrot.lane.b32.xlu1 %v10742_v39, %s10510_s19  ;;  %5892 = vst.msk [vmem:[#allocation2 + $0xb8] sm:$0x1] %vm371_vm2, %v14863_v0  ;;  %5893 = vst.msk [vmem:[#allocation2 + $0xd8] sm:$0x1] %vm371_vm2, %v14863_v0  ;;  %v10806_v2 = vld [vmem:[#allocation2 + $0xd0] sm:$0xff]  ;;  %v10810_v6 = vpack.c.bf16 %v673_v61, %v673_v61  ;;  %v477_v19 = vld [vmem:[#allocation2 + $0x87] sm:$0xff]  ;;  %v10839_v21 = vpack.c.bf16 %v1950_v17, %v1950_v17 }
  0x3d   : > { %806 = vrot.lane.b32.xlu0 %v10749_v44, %s10510_s19  ;;  %v1177_v4 = vld [vmem:[#allocation2 + $0x2f] sm:$0xff]  ;;  %5872 = vst.msk [vmem:[#allocation2 + $0x27] sm:$0x1] %vm371_vm2, %v14863_v0  ;;  %5873 = vst.msk [vmem:[#allocation2 + $0x47] sm:$0x1] %vm371_vm2, %v14863_v0  ;;  %v10843_v23 = vpack.c.bf16 %v477_v19, %v477_v19  ;;  %v479_v25 = vld [vmem:[#allocation2 + $0xa7] sm:$0xff]  ;;  %v9552_v38 = vpack.c.bf16 %v10806_v2, %v10806_v2 }
  0x3e   : > { %v10814_v8 = vpack.c.bf16 %v1177_v4, %v1177_v4  ;;  %v1179_v10 = vld [vmem:[#allocation2 + $0x4f] sm:$0xff]  ;;  %5866 = vst.msk [vmem:[#allocation2 + $0x7] sm:$0xff] %vm361_vm0, %v14863_v0  ;;  %5867 = vst.msk [vmem:[#allocation2 + $0xf] sm:$0xff] %vm361_vm0, %v14863_v0  ;;  %v10855_v29 = vpack.c.bf16 %v479_v25, %v479_v25  ;;  %v481_v33 = vld [vmem:[#allocation2 + $0xc7] sm:$0xff] }
  0x3f   : > { %v10824_v14 = vpack.c.bf16 %v1179_v10, %v1179_v10  ;;  %v1951_v18 = vld [vmem:[#allocation2 + $0x6f] sm:$0xff]  ;;  %632 = vst.msk [vmem:[#allocation3 + $0x8] sm:$0xf] %vm629_vm4, %v10812_v7  ;;  %634 = vst.msk [vmem:[#allocation3 + $0x10] sm:$0xf] %vm629_vm4, %v10816_v9  ;;  %v483_v36 = vld [vmem:[#allocation2 + $0xe7] sm:$0xff]  ;;  %v10871_v40 = vpack.c.bf16 %v481_v33, %v481_v33 }
  0x40   : > { %804 = vrot.lane.b32.xlu1 %v10762_v49, %s10510_s19  ;;  %633 = vst.msk [vmem:[#allocation3 + $0xc] sm:$0xf] %vm629_vm4, %v10814_v8  ;;  %v10841_v22 = vpack.c.bf16 %v1951_v18, %v1951_v18  ;;  %v478_v24 = vld [vmem:[#allocation2 + $0x8f] sm:$0xff]  ;;  %630 = vst.msk [vmem:[#allocation3] sm:$0xf] %vm629_vm4, %v9507_v15  ;;  %v10875_v42 = vpack.c.bf16 %v483_v36, %v483_v36  ;;  %v485_v45 = vld [vmem:[#allocation2 + $0x107] sm:$0xff] }
  0x41   : > { %810 = vrot.lane.b32.xlu0 %v10776_v54, %s10510_s19  ;;  %v480_v26 = vld [vmem:[#allocation2 + $0xaf] sm:$0xff]  ;;  %5874 = vst.msk [vmem:[#allocation2 + $0x67] sm:$0x1] %vm371_vm2, %v14863_v0  ;;  %5875 = vst.msk [vmem:[#allocation2 + $0x87] sm:$0x1] %vm371_vm2, %v14863_v0  ;;  %v10853_v28 = vpack.c.bf16 %v478_v24, %v478_v24  ;;  %v10889_v52 = vpack.c.bf16 %v485_v45, %v485_v45  ;;  %v487_v61 = vld [vmem:[#allocation2 + $0x127] sm:$0xff] }
  0x42   : > { %v677_v27 = vld [vmem:[#allocation2 + $0xf0] sm:$0xff]  ;;  %631 = vst.msk [vmem:[#allocation3 + $0x4] sm:$0xf] %vm629_vm4, %v9508_v16  ;;  %635 = vst.msk [vmem:[#allocation3 + $0x14] sm:$0xf] %vm629_vm4, %v10824_v14  ;;  %v10857_v32 = vpack.c.bf16 %v480_v26, %v480_v26  ;;  %v680_v47 = vld [vmem:[#allocation2 + $0x128] sm:$0xff]  ;;  %v10904_v2 = vpack.c.bf16 %v487_v61, %v487_v61 }
  0x43   : > { %v482_v34 = vld [vmem:[#allocation2 + $0xcf] sm:$0xff]  ;;  %5876 = vst.msk [vmem:[#allocation2 + $0xa7] sm:$0x1] %vm371_vm2, %v14863_v0  ;;  %5877 = vst.msk [vmem:[#allocation2 + $0xc7] sm:$0x1] %vm371_vm2, %v14863_v0  ;;  %v489_v4 = vld [vmem:[#allocation2 + $0x147] sm:$0xff]  ;;  %v9554_v10 = vpack.c.bf16 %v677_v27, %v677_v27  ;;  %v9557_v15 = vpack.c.bf16 %v680_v47, %v680_v47 }
  0x44   : > { %808 = vrot.lane.b32.xlu1 %v10792_v59, %s10510_s19  ;;  %636 = vst.msk [vmem:[#allocation3 + $0x18] sm:$0xf] %vm629_vm4, %v10839_v21  ;;  %637 = vst.msk [vmem:[#allocation3 + $0x1c] sm:$0xf] %vm629_vm4, %v10841_v22  ;;  %v10873_v41 = vpack.c.bf16 %v482_v34, %v482_v34  ;;  %v484_v43 = vld [vmem:[#allocation2 + $0xef] sm:$0xff]  ;;  %v10921_v11 = vpack.c.bf16 %v489_v4, %v489_v4  ;;  %v491_v17 = vld [vmem:[#allocation2 + $0x167] sm:$0xff] }
  0x45   : > { %814 = vrot.lane.b32.xlu0 %v9551_v62, %s10510_s19  ;;  %638 = vst.msk [vmem:[#allocation3 + $0x20] sm:$0xf] %vm629_vm4, %v10843_v23  ;;  %v486_v46 = vld [vmem:[#allocation2 + $0x10f] sm:$0xff]  ;;  %639 = vst.msk [vmem:[#allocation3 + $0x24] sm:$0xf] %vm629_vm4, %v10853_v28  ;;  %v10887_v48 = vpack.c.bf16 %v484_v43, %v484_v43  ;;  %v493_v33 = vld [vmem:[#allocation2 + $0x187] sm:$0xff] }
  0x46   : > { %5878 = vst.msk [vmem:[#allocation2 + $0xe7] sm:$0x1] %vm371_vm2, %v14863_v0  ;;  %v10891_v57 = vpack.c.bf16 %v486_v46, %v486_v46  ;;  %v488_v62 = vld [vmem:[#allocation2 + $0x12f] sm:$0xff]  ;;  %5879 = vst.msk [vmem:[#allocation2 + $0x107] sm:$0x1] %vm371_vm2, %v14863_v0  ;;  %v495_v61 = vld [vmem:[#allocation2 + $0x1a7] sm:$0xff] }
  0x47   : > { %640 = vst.msk [vmem:[#allocation3 + $0x28] sm:$0xf] %vm629_vm4, %v10855_v29  ;;  %641 = vst.msk [vmem:[#allocation3 + $0x2c] sm:$0xf] %vm629_vm4, %v10857_v32  ;;  %v10906_v3 = vpack.c.bf16 %v488_v62, %v488_v62  ;;  %v490_v5 = vld [vmem:[#allocation2 + $0x14f] sm:$0xff]  ;;  %v9533_v4 = vpack.c.bf16 %v495_v61, %v495_v61 }
  0x48   : > { %812 = vrot.lane.b32.xlu1 %v10810_v6, %s10510_s19  ;;  %642 = vst.msk [vmem:[#allocation3 + $0x30] sm:$0xf] %vm629_vm4, %v10871_v40  ;;  %643 = vst.msk [vmem:[#allocation3 + $0x34] sm:$0xf] %vm629_vm4, %v10873_v41  ;;  %v10923_v12 = vpack.c.bf16 %v490_v5, %v490_v5  ;;  %v679_v13 = vld [vmem:[#allocation2 + $0x110] sm:$0xff]  ;;  %v682_v16 = vld [vmem:[#allocation2 + $0x148] sm:$0xff] }
  0x49   : > { %818 = vrot.lane.b32.xlu0 %v9553_v20, %s10510_s19  ;;  %644 = vst.msk [vmem:[#allocation3 + $0x38] sm:$0xf] %vm629_vm4, %v10875_v42  ;;  %645 = vst.msk [vmem:[#allocation3 + $0x3c] sm:$0xf] %vm629_vm4, %v10887_v48  ;;  %v492_v18 = vld [vmem:[#allocation2 + $0x16f] sm:$0xff]  ;;  %v9556_v19 = vpack.c.bf16 %v679_v13, %v679_v13  ;;  %v10933_v20 = vpack.c.bf16 %v491_v17, %v491_v17  ;;  %v9559_v26 = vpack.c.bf16 %v682_v16, %v682_v16  ;;  %v497_v16 = vld [vmem:[#allocation2 + $0x1c7] sm:$0xff] }
  0x4a   : > { %5880 = vst.msk [vmem:[#allocation2 + $0x127] sm:$0x1] %vm371_vm2, %v14863_v0  ;;  %5881 = vst.msk [vmem:[#allocation2 + $0x147] sm:$0x1] %vm371_vm2, %v14863_v0  ;;  %v10935_v24 = vpack.c.bf16 %v492_v18, %v492_v18  ;;  %v681_v25 = vld [vmem:[#allocation2 + $0x130] sm:$0xff]  ;;  %v684_v27 = vld [vmem:[#allocation2 + $0x168] sm:$0xff] }
  0x4b   : > { %646 = vst.msk [vmem:[#allocation3 + $0x40] sm:$0xf] %vm629_vm4, %v10889_v52  ;;  %647 = vst.msk [vmem:[#allocation3 + $0x44] sm:$0xf] %vm629_vm4, %v10891_v57  ;;  %v494_v34 = vld [vmem:[#allocation2 + $0x18f] sm:$0xff]  ;;  %v9558_v36 = vpack.c.bf16 %v681_v25, %v681_v25  ;;  %v9561_v46 = vpack.c.bf16 %v684_v27, %v684_v27 }
  0x4c   : > { %816 = vrot.lane.b32.xlu1 %v9552_v38, %s10510_s19  ;;  %648 = vst.msk [vmem:[#allocation3 + $0x48] sm:$0xf] %vm629_vm4, %v10904_v2  ;;  %649 = vst.msk [vmem:[#allocation3 + $0x4c] sm:$0xf] %vm629_vm4, %v10906_v3  ;;  %v9531_v38 = vpack.c.bf16 %v493_v33, %v493_v33  ;;  %v9532_v43 = vpack.c.bf16 %v494_v34, %v494_v34  ;;  %v683_v45 = vld [vmem:[#allocation2 + $0x150] sm:$0xff]  ;;  %v686_v47 = vld [vmem:[#allocation2 + $0x188] sm:$0xff] }
  0x4d   : > { %822 = vrot.lane.b32.xlu0 %v9555_v63, %s10510_s19  ;;  %650 = vst.msk [vmem:[#allocation3 + $0x50] sm:$0xf] %vm629_vm4, %v10921_v11  ;;  %651 = vst.msk [vmem:[#allocation3 + $0x54] sm:$0xf] %vm629_vm4, %v10923_v12  ;;  %v496_v62 = vld [vmem:[#allocation2 + $0x1af] sm:$0xff]  ;;  %v9560_v63 = vpack.c.bf16 %v683_v45, %v683_v45  ;;  %v9563_v13 = vpack.c.bf16 %v686_v47, %v686_v47  ;;  %v499_v34 = vld [vmem:[#allocation2 + $0x1e7] sm:$0xff] }
  0x4e   : > { %652 = vst.msk [vmem:[#allocation3 + $0x58] sm:$0xf] %vm629_vm4, %v10933_v20  ;;  %653 = vst.msk [vmem:[#allocation3 + $0x5c] sm:$0xf] %vm629_vm4, %v10935_v24  ;;  %v9534_v5 = vpack.c.bf16 %v496_v62, %v496_v62  ;;  %v498_v17 = vld [vmem:[#allocation2 + $0x1cf] sm:$0xff] }
  0x4f   : > { %654 = vst.msk [vmem:[#allocation3 + $0x60] sm:$0xf] %vm629_vm4, %v9531_v38  ;;  %655 = vst.msk [vmem:[#allocation3 + $0x64] sm:$0xf] %vm629_vm4, %v9532_v43  ;;  %v9536_v25 = vpack.c.bf16 %v498_v17, %v498_v17  ;;  %v690_v33 = vld [vmem:[#allocation2 + $0x1c8] sm:$0xff]  ;;  %v9537_v43 = vpack.c.bf16 %v499_v34, %v499_v34 }
  0x50   : > { %820 = vrot.lane.b32.xlu1 %v9554_v10, %s10510_s19  ;;  %v685_v10 = vld [vmem:[#allocation2 + $0x170] sm:$0xff]  ;;  %656 = vst.msk [vmem:[#allocation3 + $0x68] sm:$0xf] %vm629_vm4, %v9533_v4  ;;  %657 = vst.msk [vmem:[#allocation3 + $0x6c] sm:$0xf] %vm629_vm4, %v9534_v5  ;;  %v9567_v47 = vpack.c.bf16 %v690_v33, %v690_v33  ;;  %v692_v61 = vld [vmem:[#allocation2 + $0x1e8] sm:$0xff] }
  0x51   : > { %826 = vrot.lane.b32.xlu0 %v9557_v15, %s10510_s19  ;;  %v688_v15 = vld [vmem:[#allocation2 + $0x1a8] sm:$0xff]  ;;  %v9562_v18 = vpack.c.bf16 %v685_v10, %v685_v10  ;;  %659 = vst.msk [vmem:[#allocation3 + $0x74] sm:$0xf] %vm629_vm4, %v9536_v25  ;;  %660 = vst.msk [vmem:[#allocation3 + $0x78] sm:$0xf] %vm629_vm4, %v9537_v43  ;;  %v9569_v4 = vpack.c.bf16 %v692_v61, %v692_v61  ;;  %v693_v10 = vld [vmem:[#allocation2 + $0x1f0] sm:$0xff]  ;;  %v11002_v43 = vpack.c.bf16 %v10780_v56, %v10780_v56 }
  0x52   : > { %v9565_v27 = vpack.c.bf16 %v688_v15, %v688_v15  ;;  %v921_v15 = vld [vmem:[#allocation2 + $0x29] sm:$0xff]  ;;  %v11022_v56 = vpack.c.bf16 %v10794_v60, %v10794_v60  ;;  %v934_v61 = vld [vmem:[#allocation2 + $0xf1] sm:$0xff] }
  0x53   : > { %v9573_v17 = vpack.c.bf16 %v921_v15, %v921_v15  ;;  %v927_v33 = vld [vmem:[#allocation2 + $0x89] sm:$0xff]  ;;  %v11088_v15 = vld [vmem:[#allocation2 + $0x111] sm:$0xff] }
  0x54   : > { %824 = vrot.lane.b32.xlu1 %v9556_v19, %s10510_s19  ;;  %v9535_v19 = vpack.c.bf16 %v497_v16, %v497_v16  ;;  %v9570_v16 = vpack.c.bf16 %v693_v10, %v693_v10  ;;  %v10986_v34 = vpack.c.bf16 %v927_v33, %v927_v33  ;;  %5895 = vst.msk [vmem:[#allocation2 + $0x118] sm:$0x1] %vm371_vm2, %v14863_v0 }
  0x55   : > { %830 = vrot.lane.b32.xlu0 %v9559_v26, %s10510_s19  ;;  %v687_v26 = vld [vmem:[#allocation2 + $0x190] sm:$0xff] }
  0x56   : > { %658 = vst.msk [vmem:[#allocation3 + $0x70] sm:$0xf] %vm629_vm4, %v9535_v19  ;;  %v9564_v38 = vpack.c.bf16 %v687_v26, %v687_v26  ;;  %v9572_v19 = vpack.c.bf16 %v10764_v50, %v10764_v50  ;;  %v925_v26 = vld [vmem:[#allocation2 + $0x69] sm:$0xff]  ;;  %v10982_v50 = vpack.c.bf16 %v10770_v53, %v10770_v53 }
  0x57   : > { %v931_v53 = vld [vmem:[#allocation2 + $0xc9] sm:$0xff] }
  0x58   : > { %828 = vrot.lane.b32.xlu1 %v9558_v36, %s10510_s19  ;;  %v500_v36 = vld [vmem:[#allocation2 + $0x1ef] sm:$0xff] }
  0x59   : > { %834 = vrot.lane.b32.xlu0 %v9561_v46, %s10510_s19  ;;  %v9538_v45 = vpack.c.bf16 %v500_v36, %v500_v36  ;;  %v689_v46 = vld [vmem:[#allocation2 + $0x1b0] sm:$0xff] }
  0x5a   : > { %v9566_v62 = vpack.c.bf16 %v689_v46, %v689_v46  ;;  %v929_v36 = vld [vmem:[#allocation2 + $0xa9] sm:$0xff]  ;;  %v11012_v46 = vpack.c.bf16 %v10784_v58, %v10784_v58  ;;  %v11028_v58 = vpack.c.bf16 %v934_v61, %v934_v61 }
  0x5b   : > { %661 = vst.msk [vmem:[#allocation3 + $0x7c] sm:$0xf] %vm629_vm4, %v9538_v45  ;;  %v11006_v45 = vpack.c.bf16 %v931_v53, %v931_v53  ;;  %vm3428_vm4 = vcmask 1043456  }
  0x5c   : > { %832 = vrot.lane.b32.xlu1 %v9560_v63, %s10510_s19  ;;  %v691_v63 = vld [vmem:[#allocation2 + $0x1d0] sm:$0xff] }
  0x5d   : > { %838 = vrot.lane.b32.xlu0 %v9563_v13, %s10510_s19  ;;  %v9568_v5 = vpack.c.bf16 %v691_v63, %v691_v63  ;;  %v9571_v13 = vpack.c.bf16 %v10804_v1, %v10804_v1  ;;  %v9574_v1 = vpack.c.bf16 %v10766_v51, %v10766_v51  ;;  %v10992_v51 = vpack.c.bf16 %v10778_v55, %v10778_v55  ;;  %v933_v55 = vld [vmem:[#allocation2 + $0xe9] sm:$0xff] }
  0x5e   : > { %v10443_v63 = vld [vmem:[%s14951_s1 + $0x10] ss:$0 sps:$4 sm:$0x33]  }
  0x5f   : > { %10217 = vmatprep.subr.msk.bf16.mxu0 %vm2900_vm6, %v10443_v63 }
  0x60   : > { %836 = vrot.lane.b32.xlu1 %v9562_v18, %s10510_s19  ;;  %v923_v18 = vld [vmem:[#allocation2 + $0x49] sm:$0xff] }
  0x61   : > { %842 = vrot.lane.b32.xlu0 %v9565_v27, %s10510_s19  ;;  %v10970_v25 = vpack.c.bf16 %v923_v18, %v923_v18  ;;  %v10977_v27 = vpack.c.bf16 %v925_v26, %v925_v26 }
  0x64   : > { %840 = vrot.lane.b32.xlu1 %v9564_v38, %s10510_s19  ;;  %v10996_v38 = vpack.c.bf16 %v929_v36, %v929_v36 }
  0x65   : > { %846 = vrot.lane.b32.xlu0 %v9567_v47, %s10510_s19  ;;  %v11016_v47 = vpack.c.bf16 %v933_v55, %v933_v55 }
  0x68   : > { %844 = vrot.lane.b32.xlu1 %v9566_v62, %s10510_s19 }
  0x69   : > { %850 = vrot.lane.b32.xlu0 %v9569_v4, %s10510_s19 }
  0x6c   : > { %848 = vrot.lane.b32.xlu1 %v9568_v5, %s10510_s19  ;;  %v11075_v5 = vld [vmem:[#allocation2 + $0xf1] sm:$0xff] }
  0x6d   : > { %1047 = vrot.lane.b32.xlu0 %v9571_v13, %s14884_s20  ;;  %5894 = vst.msk [vmem:[#allocation2 + $0xf8] sm:$0x1] %vm371_vm2, %v14863_v0 }
  0x70   : > { %852 = vrot.lane.b32.xlu1 %v9570_v16, %s10510_s19 }
  0x71   : > { %1051 = vrot.lane.b32.xlu0 %v9573_v17, %s14884_s20 }
  0x74   : > { %1049 = vrot.lane.b32.xlu1 %v9572_v19, %s14884_s20 }
  0x75   : > { %1055 = vrot.lane.b32.xlu0 %v10970_v25, %s14884_s20 }
  0x78   : > { %1053 = vrot.lane.b32.xlu1 %v9574_v1, %s14884_s20 }
  0x79   : > { %1059 = vrot.lane.b32.xlu0 %v10977_v27, %s14884_s20 }
  0x7c   : > { %1057 = vrot.lane.b32.xlu1 %v10982_v50, %s14884_s20 }
  0x7d   : > { %1063 = vrot.lane.b32.xlu0 %v10986_v34, %s14884_s20 }
  0x80   : > { %1061 = vrot.lane.b32.xlu1 %v10992_v51, %s14884_s20 }
  0x81   : > { %1067 = vrot.lane.b32.xlu0 %v10996_v38, %s14884_s20 }
  0x84   : > { %1065 = vrot.lane.b32.xlu1 %v11002_v43, %s14884_s20 }
  0x85   : > { %1071 = vrot.lane.b32.xlu0 %v11006_v45, %s14884_s20 }
  0x88   : > { %1069 = vrot.lane.b32.xlu1 %v11012_v46, %s14884_s20 }
  0x89   : > { %1075 = vrot.lane.b32.xlu0 %v11016_v47, %s14884_s20 }
  0x8c   : > { %1073 = vrot.lane.b32.xlu1 %v11022_v56, %s14884_s20 }
  0x8d   : > { %1304 = vrot.lane.b32.xlu0 %v10812_v7, %s10512_s21 }
  0x90   : > { %1077 = vrot.lane.b32.xlu1 %v11028_v58, %s14884_s20 }
  0x91   : > { %1308 = vrot.lane.b32.xlu0 %v10816_v9, %s10512_s21 }
  0x94   : > { %1306 = vrot.lane.b32.xlu1 %v10814_v8, %s10512_s21 }
  0x95   : > { %1561 = vrot.lane.b32.xlu0 %v10723_v30, %s14882_s22  ;;  %v791_v60 = vpop.permute.xlu0 %790 }
  0x96   : > { %887 = vst.msk [vmem:[#allocation3] sm:$0xf] %vm886_vm5, %v791_v60 }
  0x98   : > { %1310 = vrot.lane.b32.xlu1 %v10824_v14, %s10512_s21 }
  0x99   : > { %1565 = vrot.lane.b32.xlu0 %v10726_v31, %s14882_s22  ;;  %v793_v30 = vpop.permute.xlu0 %792 }
  0x9a   : > { %888 = vst.msk [vmem:[#allocation3 + $0x4] sm:$0xf] %vm886_vm5, %v793_v30 }
  0x9c   : > { %1563 = vrot.lane.b32.xlu1 %v10732_v35, %s14882_s22 }
  0x9d   : > { %1818 = vrot.lane.b32.xlu0 %v9573_v17, %s10514_s23  ;;  %v10445_v17 = vld [vmem:[%s14951_s1] sm:$0xff]  }
  0xa0   : > { %1567 = vrot.lane.b32.xlu1 %v10742_v39, %s14882_s22 }
  0xa1   : > { %1822 = vrot.lane.b32.xlu0 %v10970_v25, %s10514_s23 }
  0xa4   : > { %1820 = vrot.lane.b32.xlu1 %v9574_v1, %s10514_s23 }
  0xa5   : > { %2076 = vrot.lane.b32.xlu0 %v10816_v9, %s14880_s24 }
  0xa6   : > { %v795_v7 = vpop.permute.xlu1 %794 }
  0xa7   : > { %889 = vst.msk [vmem:[#allocation3 + $0x8] sm:$0xf] %vm886_vm5, %v795_v7  ;;  %v799_v35 = vpop.permute.xlu0 %798 }
  0xa8   : > { %1824 = vrot.lane.b32.xlu1 %v10982_v50, %s10514_s23  ;;  %891 = vst.msk [vmem:[#allocation3 + $0x10] sm:$0xf] %vm886_vm5, %v799_v35 }
  0xa9   : > { %2080 = vrot.lane.b32.xlu0 %v10839_v21, %s14880_s24 }
  0xaa   : > { %v797_v8 = vpop.permute.xlu1 %796 }
  0xab   : > { %890 = vst.msk [vmem:[#allocation3 + $0xc] sm:$0xf] %vm886_vm5, %v797_v8  ;;  %v803_v62 = vpop.permute.xlu0 %802 }
  0xac   : > { %2078 = vrot.lane.b32.xlu1 %v10824_v14, %s14880_s24  ;;  %893 = vst.msk [vmem:[#allocation3 + $0x18] sm:$0xf] %vm886_vm5, %v803_v62  ;;  %v2902_v14 = vsel %vm2900_vm6, %v10443_v63, 0  ;;  %vm3760_vm6 = vcmask 154712  }
  0xad   : > { %2333 = vrot.lane.b32.xlu0 %v10726_v31, %s10516_s25  ;;  %10128 = vmatpush3.bf16.msra.mxu0 %v2902_v14  ;;  %v10444_v31 = vld [vmem:[%s14951_s1 + $0x8] sm:$0xff]   ;;  %v1442_v14 = vld [vmem:[#allocation2 + $0xb0] sm:$0xff] }
  0xae   : > { %v801_v9 = vpop.permute.xlu1 %800  ;;  %10129 = vmatprep.subr.bf16.mxu0 %v10444_v31 }
  0xaf   : > { %892 = vst.msk [vmem:[#allocation3 + $0x14] sm:$0xf] %vm886_vm5, %v801_v9  ;;  %v807_v4 = vpop.permute.xlu0 %806 }
  0xb0   : > { %2082 = vrot.lane.b32.xlu1 %v10841_v22, %s14880_s24  ;;  %895 = vst.msk [vmem:[#allocation3 + $0x20] sm:$0xf] %vm886_vm5, %v807_v4 }
  0xb1   : > { %2337 = vrot.lane.b32.xlu0 %v10738_v37, %s10516_s25  ;;  %10130 = vmatpush3.bf16.msra.mxu0 %v10444_v31 }
  0xb2   : > { %v805_v10 = vpop.permute.xlu1 %804  ;;  %10131 = vmatprep.subr.bf16.mxu0 %v10445_v17 }
  0xb3   : > { %894 = vst.msk [vmem:[#allocation3 + $0x1c] sm:$0xf] %vm886_vm5, %v805_v10  ;;  %v811_v13 = vpop.permute.xlu0 %810 }
  0xb4   : > { %2335 = vrot.lane.b32.xlu1 %v10742_v39, %s10516_s25  ;;  %897 = vst.msk [vmem:[#allocation3 + $0x28] sm:$0xf] %vm886_vm5, %v811_v13  ;;  %v9644_v13 = vpack.c.bf16 %v1442_v14, %v1442_v14 }
  0xb5   : > { %2590 = vrot.lane.b32.xlu0 %v10970_v25, %s14878_s30  ;;  %10132 = vmatpush3.bf16.msra.mxu0 %v10445_v17  ;;  %v1444_v17 = vld [vmem:[#allocation2 + $0xd0] sm:$0xff] }
  0xb6   : > { %v809_v16 = vpop.permute.xlu1 %808  ;;  %10165 = vmatprep.subr.mxu0 %v14863_v0 }
  0xb7   : > { %896 = vst.msk [vmem:[#allocation3 + $0x24] sm:$0xf] %vm886_vm5, %v809_v16  ;;  %v815_v39 = vpop.permute.xlu0 %814 }
  0xb8   : > { %2339 = vrot.lane.b32.xlu1 %v10762_v49, %s10516_s25  ;;  %899 = vst.msk [vmem:[#allocation3 + $0x30] sm:$0xf] %vm886_vm5, %v815_v39 }
  0xb9   : > { %2594 = vrot.lane.b32.xlu0 %v10977_v27, %s14878_s30 }
  0xba   : > { %v813_v18 = vpop.permute.xlu1 %812 }
  0xbb   : > { %898 = vst.msk [vmem:[#allocation3 + $0x2c] sm:$0xf] %vm886_vm5, %v813_v18  ;;  %v819_v19 = vpop.permute.xlu0 %818 }
  0xbc   : > { %2592 = vrot.lane.b32.xlu1 %v10982_v50, %s14878_s30  ;;  %901 = vst.msk [vmem:[#allocation3 + $0x38] sm:$0xf] %vm886_vm5, %v819_v19 }
  0xbd   : > { %1312 = vrot.lane.b32.xlu0 %v10839_v21, %s10512_s21 }
  0xbe   : > { %v817_v25 = vpop.permute.xlu1 %816 }
  0xbf   : > { %900 = vst.msk [vmem:[#allocation3 + $0x34] sm:$0xf] %vm886_vm5, %v817_v25  ;;  %v823_v26 = vpop.permute.xlu0 %822 }
  0xc0   : > { %2596 = vrot.lane.b32.xlu1 %v10992_v51, %s14878_s30  ;;  %903 = vst.msk [vmem:[#allocation3 + $0x40] sm:$0xf] %vm886_vm5, %v823_v26 }
  0xc1   : > { %1316 = vrot.lane.b32.xlu0 %v10843_v23, %s10512_s21 }
  0xc2   : > { %v821_v1 = vpop.permute.xlu1 %820 }
  0xc3   : > { %902 = vst.msk [vmem:[#allocation3 + $0x3c] sm:$0xf] %vm886_vm5, %v821_v1  ;;  %v827_v33 = vpop.permute.xlu0 %826 }
  0xc4   : > { %1314 = vrot.lane.b32.xlu1 %v10841_v22, %s10512_s21  ;;  %905 = vst.msk [vmem:[#allocation3 + $0x48] sm:$0xf] %vm886_vm5, %v827_v33 }
  0xc5   : > { %1569 = vrot.lane.b32.xlu0 %v10738_v37, %s14882_s22  ;;  %v11132_v37 = vld [vmem:[#allocation2 + $0x131] sm:$0xff] }
  0xc6   : > { %v825_v21 = vpop.permute.xlu1 %824  ;;  %5896 = vst.msk [vmem:[#allocation2 + $0x138] sm:$0x1] %vm371_vm2, %v14863_v0 }
  0xc7   : > { %904 = vst.msk [vmem:[#allocation3 + $0x44] sm:$0xf] %vm886_vm5, %v825_v21  ;;  %v831_v50 = vpop.permute.xlu0 %830 }
  0xc8   : > { %1318 = vrot.lane.b32.xlu1 %v10853_v28, %s10512_s21  ;;  %907 = vst.msk [vmem:[#allocation3 + $0x50] sm:$0xf] %vm886_vm5, %v831_v50  ;;  %v2215_v50 = vld [vmem:[#allocation2 + $0xe8] sm:$0xff] }
  0xc9   : > { %1573 = vrot.lane.b32.xlu0 %v10749_v44, %s14882_s22 }
  0xca   : > { %v829_v36 = vpop.permute.xlu1 %828 }
  0xcb   : > { %906 = vst.msk [vmem:[#allocation3 + $0x4c] sm:$0xf] %vm886_vm5, %v829_v36  ;;  %v835_v22 = vpop.permute.xlu0 %834 }
  0xcc   : > { %1571 = vrot.lane.b32.xlu1 %v10762_v49, %s14882_s22  ;;  %909 = vst.msk [vmem:[#allocation3 + $0x58] sm:$0xf] %vm886_vm5, %v835_v22  ;;  %v9741_v22 = vpack.c.bf16 %v2215_v50, %v2215_v50 }
  0xcd   : > { %1826 = vrot.lane.b32.xlu0 %v10977_v27, %s10514_s23 }
  0xce   : > { %v833_v53 = vpop.permute.xlu1 %832 }
  0xcf   : > { %908 = vst.msk [vmem:[#allocation3 + $0x54] sm:$0xf] %vm886_vm5, %v833_v53  ;;  %v839_v55 = vpop.permute.xlu0 %838 }
  0xd0   : > { %1575 = vrot.lane.b32.xlu1 %v10792_v59, %s14882_s22  ;;  %911 = vst.msk [vmem:[#allocation3 + $0x60] sm:$0xf] %vm886_vm5, %v839_v55  ;;  %v2216_v55 = vld [vmem:[#allocation2 + $0xf0] sm:$0xff] }
  0xd1   : > { %1830 = vrot.lane.b32.xlu0 %v10986_v34, %s10514_s23 }
  0xd2   : > { %v837_v49 = vpop.permute.xlu1 %836 }
  0xd3   : > { %910 = vst.msk [vmem:[#allocation3 + $0x5c] sm:$0xf] %vm886_vm5, %v837_v49  ;;  %v843_v27 = vpop.permute.xlu0 %842  ;;  %v11241_v49 = vld [vmem:[#allocation2 + $0x167] sm:$0xff] }
  0xd4   : > { %1828 = vrot.lane.b32.xlu1 %v10992_v51, %s10514_s23  ;;  %913 = vst.msk [vmem:[#allocation3 + $0x68] sm:$0xf] %vm886_vm5, %v843_v27  ;;  %v9742_v27 = vpack.c.bf16 %v2216_v55, %v2216_v55 }
  0xd5   : > { %2084 = vrot.lane.b32.xlu0 %v10843_v23, %s14880_s24  ;;  %5882 = vst.msk [vmem:[#allocation2 + $0x167] sm:$0x1] %vm371_vm2, %v14863_v0 }
  0xd6   : > { %v841_v61 = vpop.permute.xlu1 %840 }
  0xd7   : > { %912 = vst.msk [vmem:[#allocation3 + $0x64] sm:$0xf] %vm886_vm5, %v841_v61  ;;  %v847_v60 = vpop.permute.xlu0 %846 }
  0xd8   : > { %1832 = vrot.lane.b32.xlu1 %v11002_v43, %s10514_s23  ;;  %915 = vst.msk [vmem:[#allocation3 + $0x70] sm:$0xf] %vm886_vm5, %v847_v60  ;;  %v11249_v60 = vld [vmem:[#allocation2 + $0x187] sm:$0xff] }
  0xd9   : > { %2088 = vrot.lane.b32.xlu0 %v10855_v29, %s14880_s24  ;;  %5883 = vst.msk [vmem:[#allocation2 + $0x187] sm:$0x1] %vm371_vm2, %v14863_v0 }
  0xda   : > { %v845_v30 = vpop.permute.xlu1 %844 }
  0xdb   : > { %914 = vst.msk [vmem:[#allocation3 + $0x6c] sm:$0xf] %vm886_vm5, %v845_v30  ;;  %v851_v51 = vpop.permute.xlu0 %850 }
  0xdc   : > { %2086 = vrot.lane.b32.xlu1 %v10853_v28, %s14880_s24  ;;  %917 = vst.msk [vmem:[#allocation3 + $0x78] sm:$0xf] %vm886_vm5, %v851_v51 }
  0xdd   : > { %2341 = vrot.lane.b32.xlu0 %v10749_v44, %s10516_s25 }
  0xde   : > { %v849_v23 = vpop.permute.xlu1 %848 }
  0xdf   : > { %916 = vst.msk [vmem:[#allocation3 + $0x74] sm:$0xf] %vm886_vm5, %v849_v23  ;;  %v1048_v7 = vpop.permute.xlu0 %1047 }
  0xe0   : > { %2090 = vrot.lane.b32.xlu1 %v10857_v32, %s14880_s24  ;;  %1144 = vst.msk [vmem:[#allocation3] sm:$0xf] %vm1143_vm7, %v1048_v7 }
  0xe1   : > { %2345 = vrot.lane.b32.xlu0 %v10776_v54, %s10516_s25 }
  0xe2   : > { %v853_v35 = vpop.permute.xlu1 %852 }
  0xe3   : > { %918 = vst.msk [vmem:[#allocation3 + $0x7c] sm:$0xf] %vm886_vm5, %v853_v35  ;;  %v1052_v28 = vpop.permute.xlu0 %1051  ;;  %vm3582_vm5 = vcmask 177152  }
  0xe4   : > { %2343 = vrot.lane.b32.xlu1 %v10792_v59, %s10516_s25  ;;  %1146 = vst.msk [vmem:[#allocation3 + $0x8] sm:$0xf] %vm1143_vm7, %v1052_v28  ;;  %v11276_v28 = vld [vmem:[#allocation2 + $0x191] sm:$0xff] }
  0xe5   : > { %2598 = vrot.lane.b32.xlu0 %v10986_v34, %s14878_s30  ;;  %v11184_v34 = vld [vmem:[#allocation2 + $0x151] sm:$0xff]  ;;  %5899 = vst.msk [vmem:[#allocation2 + $0x198] sm:$0x1] %vm371_vm2, %v14863_v0 }
  0xe6   : > { %v1050_v44 = vpop.permute.xlu1 %1049  ;;  %5897 = vst.msk [vmem:[#allocation2 + $0x158] sm:$0x1] %vm371_vm2, %v14863_v0 }
  0xe7   : > { %1145 = vst.msk [vmem:[#allocation3 + $0x4] sm:$0xf] %vm1143_vm7, %v1050_v44  ;;  %v1056_v8 = vpop.permute.xlu0 %1055 }
  0xe8   : > { %2347 = vrot.lane.b32.xlu1 %v10810_v6, %s10516_s25  ;;  %1148 = vst.msk [vmem:[#allocation3 + $0x10] sm:$0xf] %vm1143_vm7, %v1056_v8  ;;  %v1441_v6 = vld [vmem:[#allocation2 + $0xa8] sm:$0xff] }
  0xe9   : > { %2602 = vrot.lane.b32.xlu0 %v10996_v38, %s14878_s30  ;;  %v9643_v63 = vpack.c.bf16 %v1441_v6, %v1441_v6  ;;  %v1702_v8 = vld [vmem:[#allocation2 + $0xe9] sm:$0xff] }
  0xea   : > { %v1054_v54 = vpop.permute.xlu1 %1053  ;;  %v9679_v6 = vpack.c.bf16 %v1702_v8, %v1702_v8  ;;  %v1451_v8 = vld [vmem:[#allocation2 + $0x148] sm:$0xff] }
  0xeb   : > { %1147 = vst.msk [vmem:[#allocation3 + $0xc] sm:$0xf] %vm1143_vm7, %v1054_v54  ;;  %v1060_v59 = vpop.permute.xlu0 %1059  ;;  %v1448_v54 = vld [vmem:[#allocation2 + $0x110] sm:$0xff] }
  0xec   : > { %2600 = vrot.lane.b32.xlu1 %v11002_v43, %s14878_s30  ;;  %1150 = vst.msk [vmem:[#allocation3 + $0x18] sm:$0xf] %vm1143_vm7, %v1060_v59 }
  0xed   : > { %1320 = vrot.lane.b32.xlu0 %v10855_v29, %s10512_s21  ;;  %v1443_v29 = vld [vmem:[#allocation2 + $0xc8] sm:$0xff] }
  0xee   : > { %v1058_v62 = vpop.permute.xlu1 %1057  ;;  %v9645_v31 = vpack.c.bf16 %v1443_v29, %v1443_v29 }
  0xef   : > { %1149 = vst.msk [vmem:[#allocation3 + $0x14] sm:$0xf] %vm1143_vm7, %v1058_v62  ;;  %v1064_v9 = vpop.permute.xlu0 %1063  ;;  %v5936_v62 = vld [vmem:[#allocation2 + $0x7] sm:$0xff] }
  0xf0   : > { %2604 = vrot.lane.b32.xlu1 %v11012_v46, %s14878_s30  ;;  %1152 = vst.msk [vmem:[#allocation3 + $0x20] sm:$0xf] %vm1143_vm7, %v1064_v9  ;;  %v1704_v9 = vld [vmem:[#allocation2 + $0x109] sm:$0xff]  ;;  %v9795_v29 = vpack.c.bf16 %v5936_v62, %v5936_v62 }
  0xf1   : > { %1324 = vrot.lane.b32.xlu0 %v10871_v40, %s10512_s21 }
  0xf2   : > { %v1062_v43 = vpop.permute.xlu1 %1061 }
  0xf3   : > { %1151 = vst.msk [vmem:[#allocation3 + $0x1c] sm:$0xf] %vm1143_vm7, %v1062_v43  ;;  %v1068_v4 = vpop.permute.xlu0 %1067  ;;  %v9650_v43 = vpack.c.bf16 %v1448_v54, %v1448_v54 }
  0xf4   : > { %1322 = vrot.lane.b32.xlu1 %v10857_v32, %s10512_s21  ;;  %1154 = vst.msk [vmem:[#allocation3 + $0x28] sm:$0xf] %vm1143_vm7, %v1068_v4  ;;  %v9646_v32 = vpack.c.bf16 %v1444_v17, %v1444_v17  ;;  %v11289_v4 = vld [vmem:[#allocation2 + $0x1a7] sm:$0xff] }
  0xf5   : > { %1577 = vrot.lane.b32.xlu0 %v9643_v63, %s14882_s22  ;;  %5884 = vst.msk [vmem:[#allocation2 + $0x1a7] sm:$0x1] %vm371_vm2, %v14863_v0 }
  0xf6   : > { %v1066_v10 = vpop.permute.xlu1 %1065 }
  0xf7   : > { %1153 = vst.msk [vmem:[#allocation3 + $0x24] sm:$0xf] %vm1143_vm7, %v1066_v10  ;;  %v1072_v16 = vpop.permute.xlu0 %1071  ;;  %v11292_v10 = vpack.c.bf16 %v1704_v9, %v1704_v9  ;;  %v1708_v9 = vld [vmem:[#allocation2 + $0x149] sm:$0xff] }
  0xf8   : > { %1326 = vrot.lane.b32.xlu1 %v10873_v41, %s10512_s21  ;;  %1156 = vst.msk [vmem:[#allocation3 + $0x30] sm:$0xf] %vm1143_vm7, %v1072_v16  ;;  %v9680_v16 = vpack.c.bf16 %v11075_v5, %v11075_v5 }
  0xf9   : > { %1581 = vrot.lane.b32.xlu0 %v9645_v31, %s14882_s22 }
  0xfa   : > { %v1070_v39 = vpop.permute.xlu1 %1069 }
  0xfb   : > { %1155 = vst.msk [vmem:[#allocation3 + $0x2c] sm:$0xf] %vm1143_vm7, %v1070_v39  ;;  %v1076_v18 = vpop.permute.xlu0 %1075 }
  0xfc   : > { %1579 = vrot.lane.b32.xlu1 %v9644_v13, %s14882_s22  ;;  %1158 = vst.msk [vmem:[#allocation3 + $0x38] sm:$0xf] %vm1143_vm7, %v1076_v18  ;;  %v5937_v13 = vld [vmem:[#allocation2 + $0xf] sm:$0xff]  ;;  %v11308_v18 = vpack.c.bf16 %v11088_v15, %v11088_v15 }
  0xfd   : > { %1834 = vrot.lane.b32.xlu0 %v10996_v38, %s10514_s23  ;;  %v11220_v38 = vld [vmem:[#allocation2 + $0x171] sm:$0xff] }
  0xfe   : > { %v1074_v19 = vpop.permute.xlu1 %1073  ;;  %5898 = vst.msk [vmem:[#allocation2 + $0x178] sm:$0x1] %vm371_vm2, %v14863_v0 }
  0xff   : > { %1157 = vst.msk [vmem:[#allocation3 + $0x34] sm:$0xf] %vm1143_vm7, %v1074_v19  ;;  %v1305_v25 = vpop.permute.xlu0 %1304 }
 0x100   : > { %1583 = vrot.lane.b32.xlu1 %v9646_v32, %s14882_s22  ;;  %1401 = vst.msk [vmem:[#allocation3] sm:$0xf] %vm1400_vm8, %v1305_v25 }
 0x101   : > { %1838 = vrot.lane.b32.xlu0 %v11006_v45, %s10514_s23 }
 0x102   : > { %v1078_v26 = vpop.permute.xlu1 %1077 }
 0x103   : > { %1159 = vst.msk [vmem:[#allocation3 + $0x3c] sm:$0xf] %vm1143_vm7, %v1078_v26  ;;  %v1309_v1 = vpop.permute.xlu0 %1308 }
 0x104   : > { %1836 = vrot.lane.b32.xlu1 %v11012_v46, %s10514_s23  ;;  %1403 = vst.msk [vmem:[#allocation3 + $0x8] sm:$0xf] %vm1400_vm8, %v1309_v1 }
 0x105   : > { %2092 = vrot.lane.b32.xlu0 %v10871_v40, %s14880_s24 }
 0x106   : > { %v1307_v33 = vpop.permute.xlu1 %1306 }
 0x107   : > { %1402 = vst.msk [vmem:[#allocation3 + $0x4] sm:$0xf] %vm1400_vm8, %v1307_v33  ;;  %v1562_v21 = vpop.permute.xlu0 %1561 }
 0x108   : > { %1840 = vrot.lane.b32.xlu1 %v11022_v56, %s10514_s23  ;;  %1658 = vst.msk [vmem:[#allocation3] sm:$0xf] %vm1657_vm9, %v1562_v21 }
 0x109   : > { %2096 = vrot.lane.b32.xlu0 %v10875_v42, %s14880_s24 }
 0x10a   : > { %v1311_v46 = vpop.permute.xlu1 %1310 }
 0x10b   : > { %1404 = vst.msk [vmem:[#allocation3 + $0xc] sm:$0xf] %vm1400_vm8, %v1311_v46  ;;  %v1566_v40 = vpop.permute.xlu0 %1565  ;;  %v11326_v46 = vld [vmem:[#allocation2 + $0x1b1] sm:$0xff] }
 0x10c   : > { %2094 = vrot.lane.b32.xlu1 %v10873_v41, %s14880_s24  ;;  %1660 = vst.msk [vmem:[#allocation3 + $0x8] sm:$0xf] %vm1657_vm9, %v1566_v40 }
 0x10d   : > { %2349 = vrot.lane.b32.xlu0 %v9645_v31, %s10516_s25  ;;  %5900 = vst.msk [vmem:[#allocation2 + $0x1b8] sm:$0x1] %vm371_vm2, %v14863_v0 }
 0x10e   : > { %v1564_v36 = vpop.permute.xlu1 %1563 }
 0x10f   : > { %1659 = vst.msk [vmem:[#allocation3 + $0x4] sm:$0xf] %vm1657_vm9, %v1564_v36  ;;  %v1819_v53 = vpop.permute.xlu0 %1818  ;;  %v2220_v36 = vld [vmem:[#allocation2 + $0x130] sm:$0xff] }
 0x110   : > { %2098 = vrot.lane.b32.xlu1 %v10887_v48, %s14880_s24  ;;  %1915 = vst.msk [vmem:[#allocation3] sm:$0xf] %vm1914_vm10, %v1819_v53  ;;  %v2476_v53 = vld [vmem:[#allocation2 + $0x129] sm:$0xff]  ;;  %v9746_v55 = vpack.c.bf16 %v2220_v36, %v2220_v36 }
 0x111   : > { %2353 = vrot.lane.b32.xlu0 %v9741_v22, %s10516_s25 }
 0x112   : > { %v1568_v41 = vpop.permute.xlu1 %1567 }
 0x113   : > { %1661 = vst.msk [vmem:[#allocation3 + $0xc] sm:$0xf] %vm1657_vm9, %v1568_v41  ;;  %v1823_v61 = vpop.permute.xlu0 %1822 }
 0x114   : > { %2351 = vrot.lane.b32.xlu1 %v9646_v32, %s10516_s25  ;;  %1917 = vst.msk [vmem:[#allocation3 + $0x8] sm:$0xf] %vm1914_vm10, %v1823_v61  ;;  %v9796_v32 = vpack.c.bf16 %v5937_v13, %v5937_v13  ;;  %v9777_v61 = vpack.c.bf16 %v2476_v53, %v2476_v53  ;;  %v11464_v53 = vpack.c.bf16 %v11220_v38, %v11220_v38 }
 0x115   : > { %2606 = vrot.lane.b32.xlu0 %v11006_v45, %s14878_s30 }
 0x116   : > { %v1821_v30 = vpop.permute.xlu1 %1820 }
 0x117   : > { %1916 = vst.msk [vmem:[#allocation3 + $0x4] sm:$0xf] %vm1914_vm10, %v1821_v30  ;;  %v2077_v51 = vpop.permute.xlu0 %2076 }
 0x118   : > { %2355 = vrot.lane.b32.xlu1 %v9742_v27, %s10516_s25  ;;  %2173 = vst.msk [vmem:[#allocation3] sm:$0xf] %vm2172_vm11, %v2077_v51 }
 0x119   : > { %2610 = vrot.lane.b32.xlu0 %v11016_v47, %s14878_s30 }
 0x11a   : > { %v1825_v23 = vpop.permute.xlu1 %1824 }
 0x11b   : > { %1918 = vst.msk [vmem:[#allocation3 + $0xc] sm:$0xf] %vm1914_vm10, %v1825_v23  ;;  %v2081_v45 = vpop.permute.xlu0 %2080  ;;  %v11350_v23 = vpack.c.bf16 %v11132_v37, %v11132_v37 }
 0x11c   : > { %2608 = vrot.lane.b32.xlu1 %v11022_v56, %s14878_s30  ;;  %2175 = vst.msk [vmem:[#allocation3 + $0x8] sm:$0xf] %vm2172_vm11, %v2081_v45  ;;  %v1447_v56 = vld [vmem:[#allocation2 + $0x108] sm:$0xff] }
 0x11d   : > { %1328 = vrot.lane.b32.xlu0 %v10875_v42, %s10512_s21 }
 0x11e   : > { %v2079_v7 = vpop.permute.xlu1 %2078 }
 0x11f   : > { %2174 = vst.msk [vmem:[#allocation3 + $0x4] sm:$0xf] %vm2172_vm11, %v2079_v7  ;;  %v2334_v35 = vpop.permute.xlu0 %2333  ;;  %v11353_v7 = vld [vmem:[#allocation2 + $0x1c7] sm:$0xff] }
 0x120   : > { %2612 = vrot.lane.b32.xlu1 %v11028_v58, %s14878_s30  ;;  %2430 = vst.msk [vmem:[#allocation3] sm:$0xf] %vm2429_vm12, %v2334_v35  ;;  %v9649_v58 = vpack.c.bf16 %v1447_v56, %v1447_v56 }
 0x121   : > { %1332 = vrot.lane.b32.xlu0 %v10889_v52, %s10512_s21  ;;  %5885 = vst.msk [vmem:[#allocation2 + $0x1c7] sm:$0x1] %vm371_vm2, %v14863_v0 }
 0x122   : > { %v2083_v47 = vpop.permute.xlu1 %2082 }
 0x123   : > { %2176 = vst.msk [vmem:[#allocation3 + $0xc] sm:$0xf] %vm2172_vm11, %v2083_v47  ;;  %v2338_v42 = vpop.permute.xlu0 %2337 }
 0x124   : > { %1330 = vrot.lane.b32.xlu1 %v10887_v48, %s10512_s21  ;;  %2432 = vst.msk [vmem:[#allocation3 + $0x8] sm:$0xf] %vm2429_vm12, %v2338_v42 }
 0x125   : > { %1585 = vrot.lane.b32.xlu0 %v9741_v22, %s14882_s22 }
 0x126   : > { %v2336_v44 = vpop.permute.xlu1 %2335 }
 0x127   : > { %2431 = vst.msk [vmem:[#allocation3 + $0x4] sm:$0xf] %vm2429_vm12, %v2336_v44  ;;  %v2591_v48 = vpop.permute.xlu0 %2590 }
 0x128   : > { %1334 = vrot.lane.b32.xlu1 %v10891_v57, %s10512_s21  ;;  %2687 = vst.msk [vmem:[#allocation3] sm:$0xf] %vm2686_vm13, %v2591_v48 }
 0x129   : > { %1589 = vrot.lane.b32.xlu0 %v9649_v58, %s14882_s22 }
 0x12a   : > { %v2340_v59 = vpop.permute.xlu1 %2339 }
 0x12b   : > { %2433 = vst.msk [vmem:[#allocation3 + $0xc] sm:$0xf] %vm2429_vm12, %v2340_v59  ;;  %v2595_v63 = vpop.permute.xlu0 %2594  ;;  %v9653_v59 = vpack.c.bf16 %v1451_v8, %v1451_v8 }
 0x12c   : > { %1587 = vrot.lane.b32.xlu1 %v9742_v27, %s14882_s22  ;;  %2689 = vst.msk [vmem:[#allocation3 + $0x8] sm:$0xf] %vm2686_vm13, %v2595_v63 }
 0x12d   : > { %1842 = vrot.lane.b32.xlu0 %v9679_v6, %s10514_s23 }
 0x12e   : > { %v2593_v14 = vpop.permute.xlu1 %2592 }
 0x12f   : > { %2688 = vst.msk [vmem:[#allocation3 + $0x4] sm:$0xf] %vm2686_vm13, %v2593_v14  ;;  %v2719_v31 = vld [vmem:[#allocation3] sm:$0xf]  ;;  %v1313_v17 = vpop.permute.xlu0 %1312 }
 0x130   : > { %1591 = vrot.lane.b32.xlu1 %v9650_v43, %s14882_s22  ;;  %6097 = vst.msk [vmem:[#allocation3] sm:$0xf] %vm6096_vm14, %v9795_v29  ;;  %v11393_v29 = vld [vmem:[#allocation2 + $0x1e7] sm:$0xff] }
 0x131   : > { %1405 = vst.msk [vmem:[#allocation3 + $0x10] sm:$0xf] %vm1400_vm8, %v1313_v17  ;;  %1846 = vrot.lane.b32.xlu0 %v11292_v10, %s10514_s23 }
 0x132   : > { %v2597_v39 = vpop.permute.xlu1 %2596  ;;  %5886 = vst.msk [vmem:[#allocation2 + $0x1e7] sm:$0x1] %vm371_vm2, %v14863_v0 }
 0x133   : > { %2690 = vst.msk [vmem:[#allocation3 + $0xc] sm:$0xf] %vm2686_vm13, %v2597_v39  ;;  %v1317_v19 = vpop.permute.xlu0 %1316  ;;  %v11412_v39 = vpack.c.bf16 %v11184_v34, %v11184_v34  ;;  %v2223_v34 = vld [vmem:[#allocation2 + $0x168] sm:$0xff] }
 0x134   : > { %1844 = vrot.lane.b32.xlu1 %v9680_v16, %s10514_s23  ;;  %1407 = vst.msk [vmem:[#allocation3 + $0x18] sm:$0xf] %vm1400_vm8, %v1317_v19 }
 0x135   : > { %2100 = vrot.lane.b32.xlu0 %v10889_v52, %s14880_s24  ;;  %v2219_v52 = vld [vmem:[#allocation2 + $0x128] sm:$0xff] }
 0x136   : > { %v2720_v5 = vld [vmem:[#allocation3 + $0x4] sm:$0xf]  ;;  %v1315_v25 = vpop.permute.xlu1 %1314  ;;  %v9745_v40 = vpack.c.bf16 %v2219_v52, %v2219_v52 }
 0x137   : > { %6098 = vst.msk [vmem:[#allocation3 + $0x4] sm:$0xf] %vm6096_vm14, %v9796_v32  ;;  %v9136_v26 = vcombine.low %v2719_v31, %v2720_v5  ;;  %v1570_v1 = vpop.permute.xlu0 %1569  ;;  %v11396_v31 = vpack.c.bf16 %v1708_v9, %v1708_v9  ;;  %v1712_v9 = vld [vmem:[#allocation2 + $0x189] sm:$0xff] }
 0x138   : > { %1406 = vst.msk [vmem:[#allocation3 + $0x14] sm:$0xf] %vm1400_vm8, %v1315_v25  ;;  %1848 = vrot.lane.b32.xlu1 %v11308_v18, %s10514_s23 }
 0x139   : > { %10133 = vmatprep.mubr.msk.bf16.mxu0 %vm2851_vm15, %v9136_v26  ;;  %1662 = vst.msk [vmem:[#allocation3 + $0x10] sm:$0xf] %vm1657_vm9, %v1570_v1  ;;  %2104 = vrot.lane.b32.xlu0 %v10904_v2, %s14880_s24  ;;  %v11430_v1 = vpack.c.bf16 %v2223_v34, %v2223_v34 }
 0x13a   : > { %v1319_v15 = vpop.permute.xlu1 %1318  ;;  %v10446_v33 = vld [vmem:[#allocation3 + $0x8] sm:$0xff]  }
 0x13b   : > { %1408 = vst.msk [vmem:[#allocation3 + $0x1c] sm:$0xf] %vm1400_vm8, %v1319_v15  ;;  %10134 = vmatmul.mubr.msk.bf16.vlgmr.msra.gmra.mxu0 %vm2851_vm15, %v10446_v33  ;;  %v1574_v21 = vpop.permute.xlu0 %1573  ;;  %v2480_v33 = vld [vmem:[#allocation2 + $0x169] sm:$0xff] }
 0x13c   : > { %2102 = vrot.lane.b32.xlu1 %v10891_v57, %s14880_s24  ;;  %1664 = vst.msk [vmem:[#allocation3 + $0x18] sm:$0xf] %vm1657_vm9, %v1574_v21 }
 0x13d   : > { %2357 = vrot.lane.b32.xlu0 %v9649_v58, %s10516_s25 }
 0x13e   : > { %v1572_v50 = vpop.permute.xlu1 %1571 }
 0x13f   : > { %1663 = vst.msk [vmem:[#allocation3 + $0x14] sm:$0xf] %vm1657_vm9, %v1572_v50  ;;  %v1827_v57 = vpop.permute.xlu0 %1826  ;;  %v11447_v50 = vpack.c.bf16 %v2480_v33, %v2480_v33  ;;  %v11556_v33 = vld [vmem:[#allocation2 + $0x229] sm:$0xff] }
 0x140   : > { %2106 = vrot.lane.b32.xlu1 %v10906_v3, %s14880_s24  ;;  %1919 = vst.msk [vmem:[#allocation3 + $0x10] sm:$0xf] %vm1914_vm10, %v1827_v57  ;;  %v435_v57 = vld [vmem:[%s10676_s18 + $0xf8] sm:$0xff] }
 0x141   : > { %2361 = vrot.lane.b32.xlu0 %v9745_v40, %s10516_s25  ;;  %468 = vst.msk [vmem:[#allocation2 + $0x210] sm:$0xff] %vm436_vm3, %v435_v57 }
 0x142   : > { %v1576_v22 = vpop.permute.xlu1 %1575 }
 0x143   : > { %1665 = vst.msk [vmem:[#allocation3 + $0x1c] sm:$0xf] %vm1657_vm9, %v1576_v22  ;;  %v1831_v41 = vpop.permute.xlu0 %1830 }
 0x144   : > { %2359 = vrot.lane.b32.xlu1 %v9650_v43, %s10516_s25  ;;  %1921 = vst.msk [vmem:[#allocation3 + $0x18] sm:$0xf] %vm1914_vm10, %v1831_v41 }
 0x145   : > { %2614 = vrot.lane.b32.xlu0 %v11292_v10, %s14878_s30 }
 0x146   : > { %v1829_v27 = vpop.permute.xlu1 %1828 }
 0x147   : > { %1920 = vst.msk [vmem:[#allocation3 + $0x14] sm:$0xf] %vm1914_vm10, %v1829_v27  ;;  %v2085_v30 = vpop.permute.xlu0 %2084 }
 0x148   : > { %2363 = vrot.lane.b32.xlu1 %v9746_v55, %s10516_s25  ;;  %2177 = vst.msk [vmem:[#allocation3 + $0x10] sm:$0xf] %vm2172_vm11, %v2085_v30  ;;  %v9623_v30 = vpack.c.bf16 %v11241_v49, %v11241_v49 }
 0x149   : > { %2618 = vrot.lane.b32.xlu0 %v9777_v61, %s14878_s30 }
 0x14a   : > { %v1833_v51 = vpop.permute.xlu1 %1832 }
 0x14b   : > { %1922 = vst.msk [vmem:[#allocation3 + $0x1c] sm:$0xf] %vm1914_vm10, %v1833_v51  ;;  %v2089_v45 = vpop.permute.xlu0 %2088 }
 0x14c   : > { %2616 = vrot.lane.b32.xlu1 %v11308_v18, %s14878_s30  ;;  %2179 = vst.msk [vmem:[#allocation3 + $0x18] sm:$0xf] %vm2172_vm11, %v2089_v45 }
 0x14d   : > { %1079 = vrot.lane.b32.xlu0 %v11292_v10, %s14884_s20 }
 0x14e   : > { %v2087_v35 = vpop.permute.xlu1 %2086 }
 0x14f   : > { %2178 = vst.msk [vmem:[#allocation3 + $0x14] sm:$0xf] %vm2172_vm11, %v2087_v35  ;;  %v2342_v47 = vpop.permute.xlu0 %2341  ;;  %v9625_v35 = vpack.c.bf16 %v11249_v60, %v11249_v60 }
 0x150   : > { %2620 = vrot.lane.b32.xlu1 %v11350_v23, %s14878_s30  ;;  %2434 = vst.msk [vmem:[#allocation3 + $0x10] sm:$0xf] %vm2429_vm12, %v2342_v47 }
 0x151   : > { %1083 = vrot.lane.b32.xlu0 %v9777_v61, %s14884_s20 }
 0x152   : > { %v2091_v37 = vpop.permute.xlu1 %2090 }
 0x153   : > { %2180 = vst.msk [vmem:[#allocation3 + $0x1c] sm:$0xf] %vm2172_vm11, %v2091_v37  ;;  %v2346_v56 = vpop.permute.xlu0 %2345  ;;  %v1199_v37 = vld [vmem:[#allocation2 + $0x18f] sm:$0xff] }
 0x154   : > { %1081 = vrot.lane.b32.xlu1 %v11308_v18, %s14884_s20  ;;  %2436 = vst.msk [vmem:[#allocation3 + $0x18] sm:$0xf] %vm2429_vm12, %v2346_v56 }
 0x155   : > { %1336 = vrot.lane.b32.xlu0 %v10904_v2, %s10512_s21  ;;  %v11380_v2 = vld [vmem:[#allocation2 + $0x1d1] sm:$0xff] }
 0x156   : > { %v2344_v42 = vpop.permute.xlu1 %2343  ;;  %5901 = vst.msk [vmem:[#allocation2 + $0x1d8] sm:$0x1] %vm371_vm2, %v14863_v0 }
 0x157   : > { %2435 = vst.msk [vmem:[#allocation3 + $0x14] sm:$0xf] %vm2429_vm12, %v2344_v42  ;;  %v2599_v44 = vpop.permute.xlu0 %2598  ;;  %v1455_v42 = vld [vmem:[#allocation2 + $0x188] sm:$0xff] }
 0x158   : > { %1085 = vrot.lane.b32.xlu1 %v11350_v23, %s14884_s20  ;;  %2691 = vst.msk [vmem:[#allocation3 + $0x10] sm:$0xf] %vm2686_vm13, %v2599_v44  ;;  %v9626_v44 = vpack.c.bf16 %v1199_v37, %v1199_v37  ;;  %v1203_v37 = vld [vmem:[#allocation2 + $0x1cf] sm:$0xff] }
 0x159   : > { %1340 = vrot.lane.b32.xlu0 %v10921_v11, %s10512_s21 }
 0x15a   : > { %v2348_v58 = vpop.permute.xlu1 %2347 }
 0x15b   : > { %2437 = vst.msk [vmem:[#allocation3 + $0x1c] sm:$0xf] %vm2429_vm12, %v2348_v58  ;;  %v2603_v48 = vpop.permute.xlu0 %2602 }
 0x15c   : > { %1338 = vrot.lane.b32.xlu1 %v10906_v3, %s10512_s21  ;;  %2693 = vst.msk [vmem:[#allocation3 + $0x18] sm:$0xf] %vm2686_vm13, %v2603_v48  ;;  %v1452_v3 = vld [vmem:[#allocation2 + $0x150] sm:$0xff]  ;;  %v9657_v48 = vpack.c.bf16 %v1455_v42, %v1455_v42 }
 0x15d   : > { %1593 = vrot.lane.b32.xlu0 %v9745_v40, %s14882_s22  ;;  %v9654_v43 = vpack.c.bf16 %v1452_v3, %v1452_v3  ;;  %v434_v40 = vld [vmem:[%s10676_s18 + $0xf0] sm:$0xff]  ;;  %s14886_s18 = smov 127  }
 0x15e   : > { %v2601_v54 = vpop.permute.xlu1 %2600  ;;  %467 = vst.msk [vmem:[#allocation2 + $0x208] sm:$0xff] %vm436_vm3, %v434_v40  ;;  %v2484_v40 = vld [vmem:[#allocation2 + $0x1a9] sm:$0xff] }
 0x15f   : > { %2692 = vst.msk [vmem:[#allocation3 + $0x14] sm:$0xf] %vm2686_vm13, %v2601_v54  ;;  %v1321_v62 = vpop.permute.xlu0 %1320  ;;  %v11499_v54 = vld [vmem:[#allocation2 + $0x211] sm:$0xff] }
 0x160   : > { %1342 = vrot.lane.b32.xlu1 %v10923_v12, %s10512_s21  ;;  %1409 = vst.msk [vmem:[#allocation3 + $0x20] sm:$0xf] %vm1400_vm8, %v1321_v62  ;;  %v1456_v62 = vld [vmem:[#allocation2 + $0x190] sm:$0xff] }
 0x161   : > { %1597 = vrot.lane.b32.xlu0 %v9653_v59, %s14882_s22  ;;  %5903 = vst.msk [vmem:[#allocation2 + $0x218] sm:$0x1] %vm371_vm2, %v14863_v0 }
 0x162   : > { %v2605_v6 = vpop.permute.xlu1 %2604 }
 0x163   : > { %2694 = vst.msk [vmem:[#allocation3 + $0x1c] sm:$0xf] %vm2686_vm13, %v2605_v6  ;;  %v1325_v63 = vpop.permute.xlu0 %1324 }
 0x164   : > { %1595 = vrot.lane.b32.xlu1 %v9746_v55, %s14882_s22  ;;  %1411 = vst.msk [vmem:[#allocation3 + $0x28] sm:$0xf] %vm1400_vm8, %v1325_v63 }
 0x165   : > { %1850 = vrot.lane.b32.xlu0 %v9777_v61, %s10514_s23  ;;  %v11469_v27 = vld [vmem:[#allocation2 + $0x207] sm:$0xff] }
 0x166   : > { %v1323_v14 = vpop.permute.xlu1 %1322  ;;  %v10447_v10 = vld [vmem:[#allocation3 + $0x10] sm:$0xff]   ;;  %5887 = vst.msk [vmem:[#allocation2 + $0x207] sm:$0x1] %vm371_vm2, %v14863_v0 }
 0x167   : > { %1410 = vst.msk [vmem:[#allocation3 + $0x24] sm:$0xf] %vm1400_vm8, %v1323_v14  ;;  %10137 = vmatprep.mubr.msk.bf16.mxu0 %vm2851_vm15, %v10447_v10  ;;  %v1578_v13 = vpop.permute.xlu0 %1577  ;;  %v11514_v10 = vpack.c.bf16 %v1712_v9, %v1712_v9 }
 0x168   : > { %1599 = vrot.lane.b32.xlu1 %v9654_v43, %s14882_s22  ;;  %1666 = vst.msk [vmem:[#allocation3 + $0x20] sm:$0xf] %vm1657_vm9, %v1578_v13 }
 0x169   : > { %1854 = vrot.lane.b32.xlu0 %v11396_v31, %s10514_s23 }
 0x16a   : > { %v1327_v16 = vpop.permute.xlu1 %1326  ;;  %v10448_v17 = vld [vmem:[#allocation3 + $0x18] sm:$0xff]  }
 0x16b   : > { %1412 = vst.msk [vmem:[#allocation3 + $0x2c] sm:$0xf] %vm1400_vm8, %v1327_v16  ;;  %10138 = vmatmul.mubr.msk.bf16.gmra.mxu0 %vm2851_vm15, %v10448_v17  ;;  %v1582_v32 = vpop.permute.xlu0 %1581  ;;  %v11526_v16 = vpack.c.bf16 %v11276_v28, %v11276_v28  ;;  %v1971_v28 = vld [vmem:[#allocation2 + $0x1af] sm:$0xff] }
 0x16c   : > { %1852 = vrot.lane.b32.xlu1 %v11350_v23, %s10514_s23  ;;  %1668 = vst.msk [vmem:[#allocation3 + $0x28] sm:$0xf] %vm1657_vm9, %v1582_v32  ;;  %v1197_v23 = vld [vmem:[#allocation2 + $0x16f] sm:$0xff]  ;;  %v11532_v32 = vpack.c.bf16 %v11289_v4, %v11289_v4  ;;  %v11542_v4 = vpack.c.bf16 %v1971_v28, %v1971_v28 }
 0x16d   : > { %2108 = vrot.lane.b32.xlu0 %v10921_v11, %s14880_s24  ;;  %v11427_v11 = vld [vmem:[#allocation2 + $0x1f1] sm:$0xff]  ;;  %v9624_v49 = vpack.c.bf16 %v1197_v23, %v1197_v23 }
 0x16e   : > { %v1580_v18 = vpop.permute.xlu1 %1579  ;;  %5902 = vst.msk [vmem:[#allocation2 + $0x1f8] sm:$0x1] %vm371_vm2, %v14863_v0  ;;  %vm3347_vm2 = vcmask 1040384  }
 0x16f   : > { %1667 = vst.msk [vmem:[#allocation3 + $0x24] sm:$0xf] %vm1657_vm9, %v1580_v18  ;;  %v1835_v19 = vpop.permute.xlu0 %1834 }
 0x170   : > { %1856 = vrot.lane.b32.xlu1 %v11412_v39, %s10514_s23  ;;  %1923 = vst.msk [vmem:[#allocation3 + $0x20] sm:$0xf] %vm1914_vm10, %v1835_v19 }
 0x171   : > { %2112 = vrot.lane.b32.xlu0 %v10933_v20, %s14880_s24  ;;  %v2224_v20 = vld [vmem:[#allocation2 + $0x170] sm:$0xff] }
 0x172   : > { %v1584_v5 = vpop.permute.xlu1 %1583  ;;  %v11442_v52 = vpack.c.bf16 %v2224_v20, %v2224_v20 }
 0x173   : > { %1669 = vst.msk [vmem:[#allocation3 + $0x2c] sm:$0xf] %vm1657_vm9, %v1584_v5  ;;  %v1839_v25 = vpop.permute.xlu0 %1838  ;;  %v2227_v5 = vld [vmem:[#allocation2 + $0x1a8] sm:$0xff] }
 0x174   : > { %2110 = vrot.lane.b32.xlu1 %v10923_v12, %s14880_s24  ;;  %1925 = vst.msk [vmem:[#allocation3 + $0x28] sm:$0xf] %vm1914_vm10, %v1839_v25  ;;  %v11545_v25 = vld [vmem:[#allocation2 + $0x227] sm:$0xff]  ;;  %v11552_v20 = vpack.c.bf16 %v2227_v5, %v2227_v5 }
 0x175   : > { %2365 = vrot.lane.b32.xlu0 %v9653_v59, %s10516_s25 }
 0x176   : > { %v1837_v26 = vpop.permute.xlu1 %1836 }
 0x177   : > { %1924 = vst.msk [vmem:[#allocation3 + $0x24] sm:$0xf] %vm1914_vm10, %v1837_v26  ;;  %v2093_v12 = vpop.permute.xlu0 %2092  ;;  %v11547_v26 = vld [vmem:[#allocation2 + $0x22f] sm:$0xff] }
 0x178   : > { %2114 = vrot.lane.b32.xlu1 %v10935_v24, %s14880_s24  ;;  %2181 = vst.msk [vmem:[#allocation3 + $0x20] sm:$0xf] %vm2172_vm11, %v2093_v12 }
 0x179   : > { %2369 = vrot.lane.b32.xlu0 %v11430_v1, %s10516_s25 }
 0x17a   : > { %v1841_v15 = vpop.permute.xlu1 %1840 }
 0x17b   : > { %1926 = vst.msk [vmem:[#allocation3 + $0x2c] sm:$0xf] %vm1914_vm10, %v1841_v15  ;;  %v2097_v21 = vpop.permute.xlu0 %2096  ;;  %v11554_v15 = vld [vmem:[#allocation2 + $0x230] sm:$0xff] }
 0x17c   : > { %2367 = vrot.lane.b32.xlu1 %v9654_v43, %s10516_s25  ;;  %2183 = vst.msk [vmem:[#allocation3 + $0x28] sm:$0xf] %vm2172_vm11, %v2097_v21  ;;  %v9658_v43 = vpack.c.bf16 %v1456_v62, %v1456_v62 }
 0x17d   : > { %2622 = vrot.lane.b32.xlu0 %v11396_v31, %s14878_s30 }
 0x17e   : > { %v2095_v24 = vpop.permute.xlu1 %2094 }
 0x17f   : > { %2182 = vst.msk [vmem:[#allocation3 + $0x24] sm:$0xf] %vm2172_vm11, %v2095_v24  ;;  %v2350_v36 = vpop.permute.xlu0 %2349  ;;  %v2228_v24 = vld [vmem:[#allocation2 + $0x1b0] sm:$0xff] }
 0x180   : > { %2371 = vrot.lane.b32.xlu1 %v11442_v52, %s10516_s25  ;;  %2438 = vst.msk [vmem:[#allocation3 + $0x20] sm:$0xf] %vm2429_vm12, %v2350_v36  ;;  %v9754_v57 = vpack.c.bf16 %v2228_v24, %v2228_v24 }
 0x181   : > { %2626 = vrot.lane.b32.xlu0 %v11447_v50, %s14878_s30 }
 0x182   : > { %v2099_v22 = vpop.permute.xlu1 %2098 }
 0x183   : > { %2184 = vst.msk [vmem:[#allocation3 + $0x2c] sm:$0xf] %vm2172_vm11, %v2099_v22  ;;  %v2354_v55 = vpop.permute.xlu0 %2353 }
 0x184   : > { %2624 = vrot.lane.b32.xlu1 %v11412_v39, %s14878_s30  ;;  %2440 = vst.msk [vmem:[#allocation3 + $0x28] sm:$0xf] %vm2429_vm12, %v2354_v55 }
 0x185   : > { %1087 = vrot.lane.b32.xlu0 %v11396_v31, %s14884_s20 }
 0x186   : > { %v2352_v41 = vpop.permute.xlu1 %2351 }
 0x187   : > { %2439 = vst.msk [vmem:[#allocation3 + $0x24] sm:$0xf] %vm2429_vm12, %v2352_v41  ;;  %v2607_v61 = vpop.permute.xlu0 %2606 }
 0x188   : > { %2628 = vrot.lane.b32.xlu1 %v11464_v53, %s14878_s30  ;;  %2695 = vst.msk [vmem:[#allocation3 + $0x20] sm:$0xf] %vm2686_vm13, %v2607_v61  ;;  %v9786_v61 = vpack.c.bf16 %v11326_v46, %v11326_v46 }
 0x189   : > { %1091 = vrot.lane.b32.xlu0 %v11447_v50, %s14884_s20 }
 0x18a   : > { %v2356_v38 = vpop.permute.xlu1 %2355 }
 0x18b   : > { %2441 = vst.msk [vmem:[#allocation3 + $0x2c] sm:$0xf] %vm2429_vm12, %v2356_v38  ;;  %v2611_v51 = vpop.permute.xlu0 %2610 }
 0x18c   : > { %1089 = vrot.lane.b32.xlu1 %v11412_v39, %s14884_s20  ;;  %2697 = vst.msk [vmem:[#allocation3 + $0x28] sm:$0xf] %vm2686_vm13, %v2611_v51 }
 0x18d   : > { %1344 = vrot.lane.b32.xlu0 %v9623_v30, %s10512_s21 }
 0x18e   : > { %v2609_v45 = vpop.permute.xlu1 %2608 }
 0x18f   : > { %2696 = vst.msk [vmem:[#allocation3 + $0x24] sm:$0xf] %vm2686_vm13, %v2609_v45  ;;  %v1329_v47 = vpop.permute.xlu0 %1328 }
 0x190   : > { %1093 = vrot.lane.b32.xlu1 %v11464_v53, %s14884_s20  ;;  %1413 = vst.msk [vmem:[#allocation3 + $0x30] sm:$0xf] %vm1400_vm8, %v1329_v47 }
 0x191   : > { %1348 = vrot.lane.b32.xlu0 %v9625_v35, %s10512_s21 }
 0x192   : > { %v2613_v56 = vpop.permute.xlu1 %2612 }
 0x193   : > { %2698 = vst.msk [vmem:[#allocation3 + $0x2c] sm:$0xf] %vm2686_vm13, %v2613_v56  ;;  %v1333_v60 = vpop.permute.xlu0 %1332 }
 0x194   : > { %1346 = vrot.lane.b32.xlu1 %v9624_v49, %s10512_s21  ;;  %1415 = vst.msk [vmem:[#allocation3 + $0x38] sm:$0xf] %vm1400_vm8, %v1333_v60  ;;  %v9629_v49 = vpack.c.bf16 %v11353_v7, %v11353_v7  ;;  %v9630_v7 = vpack.c.bf16 %v1203_v37, %v1203_v37 }
 0x195   : > { %1601 = vrot.lane.b32.xlu0 %v11430_v1, %s14882_s22  ;;  %v11549_v1 = vld [vmem:[#allocation2 + $0x228] sm:$0xff] }
 0x196   : > { %v1331_v58 = vpop.permute.xlu1 %1330  ;;  %v10449_v8 = vld [vmem:[#allocation3 + $0x20] sm:$0xff]   ;;  %5869 = vst.msk [vmem:[#allocation2 + $0x227] sm:$0xff] %vm361_vm0, %v14863_v0 }
 0x197   : > { %1414 = vst.msk [vmem:[#allocation3 + $0x34] sm:$0xf] %vm1400_vm8, %v1331_v58  ;;  %10141 = vmatprep.mubr.msk.bf16.mxu0 %vm2851_vm15, %v10449_v8  ;;  %v1586_v59 = vpop.permute.xlu0 %1585 }
 0x198   : > { %1350 = vrot.lane.b32.xlu1 %v9626_v44, %s10512_s21  ;;  %1670 = vst.msk [vmem:[#allocation3 + $0x30] sm:$0xf] %vm1657_vm9, %v1586_v59  ;;  %v1460_v59 = vld [vmem:[#allocation2 + $0x1d0] sm:$0xff] }
 0x199   : > { %1605 = vrot.lane.b32.xlu0 %v9657_v48, %s14882_s22 }
 0x19a   : > { %v1335_v3 = vpop.permute.xlu1 %1334  ;;  %v10450_v6 = vld [vmem:[#allocation3 + $0x28] sm:$0xff]  }
 0x19b   : > { %1416 = vst.msk [vmem:[#allocation3 + $0x3c] sm:$0xf] %vm1400_vm8, %v1335_v3  ;;  %10142 = vmatmul.mubr.msk.bf16.gmra.mxu0 %vm2851_vm15, %v10450_v6  ;;  %v1590_v63 = vpop.permute.xlu0 %1589  ;;  %v1716_v3 = vld [vmem:[#allocation2 + $0x1c9] sm:$0xff]  ;;  %v9662_v6 = vpack.c.bf16 %v1460_v59, %v1460_v59 }
 0x19c   : > { %1603 = vrot.lane.b32.xlu1 %v11442_v52, %s14882_s22  ;;  %1672 = vst.msk [vmem:[#allocation3 + $0x38] sm:$0xf] %vm1657_vm9, %v1590_v63  ;;  %v11558_v52 = vld [vmem:[#allocation2 + $0x231] sm:$0xff]  ;;  %v9693_v63 = vpack.c.bf16 %v1716_v3, %v1716_v3 }
 0x19d   : > { %1858 = vrot.lane.b32.xlu0 %v11447_v50, %s10514_s23  ;;  %5870 = vst.msk [vmem:[#allocation2 + $0x22f] sm:$0xff] %vm361_vm0, %v14863_v0 }
 0x19e   : > { %v1588_v14 = vpop.permute.xlu1 %1587  ;;  %5871 = vst.msk [vmem:[#allocation2 + $0x237] sm:$0x3] %vm364_vm1, %v14863_v0  ;;  %vm10518_vm1 = vmmov 0  }
 0x19f   : > { %1671 = vst.msk [vmem:[#allocation3 + $0x34] sm:$0xf] %vm1657_vm9, %v1588_v14  ;;  %v1843_v31 = vpop.permute.xlu0 %1842 }
 0x1a0   : > { %1607 = vrot.lane.b32.xlu1 %v9658_v43, %s14882_s22  ;;  %1927 = vst.msk [vmem:[#allocation3 + $0x30] sm:$0xf] %vm1914_vm10, %v1843_v31  ;;  %v9694_v31 = vpack.c.bf16 %v11380_v2, %v11380_v2  ;;  %v2231_v2 = vld [vmem:[#allocation2 + $0x1e8] sm:$0xff] }
 0x1a1   : > { %1862 = vrot.lane.b32.xlu0 %v11514_v10, %s10514_s23  ;;  %v11643_v5 = vpack.c.bf16 %v2231_v2, %v2231_v2 }
 0x1a2   : > { %v1592_v13 = vpop.permute.xlu1 %1591 }
 0x1a3   : > { %1673 = vst.msk [vmem:[#allocation3 + $0x3c] sm:$0xf] %vm1657_vm9, %v1592_v13  ;;  %v1847_v17 = vpop.permute.xlu0 %1846 }
 0x1a4   : > { %1860 = vrot.lane.b32.xlu1 %v11464_v53, %s10514_s23  ;;  %1929 = vst.msk [vmem:[#allocation3 + $0x38] sm:$0xf] %vm1914_vm10, %v1847_v17  ;;  %v9785_v53 = vpack.c.bf16 %v2484_v40, %v2484_v40  ;;  %v9725_v17 = vpack.c.bf16 %v11393_v29, %v11393_v29 }
 0x1a5   : > { %2116 = vrot.lane.b32.xlu0 %v9625_v35, %s14880_s24 }
 0x1a6   : > { %v1845_v39 = vpop.permute.xlu1 %1844 }
 0x1a7   : > { %1928 = vst.msk [vmem:[#allocation3 + $0x34] sm:$0xf] %vm1914_vm10, %v1845_v39  ;;  %v2101_v18 = vpop.permute.xlu0 %2100 }
 0x1a8   : > { %1864 = vrot.lane.b32.xlu1 %v11526_v16, %s10514_s23  ;;  %2185 = vst.msk [vmem:[#allocation3 + $0x30] sm:$0xf] %vm2172_vm11, %v2101_v18 }
 0x1a9   : > { %2120 = vrot.lane.b32.xlu0 %v11532_v32, %s14880_s24 }
 0x1aa   : > { %v1849_v19 = vpop.permute.xlu1 %1848 }
 0x1ab   : > { %1930 = vst.msk [vmem:[#allocation3 + $0x3c] sm:$0xf] %vm1914_vm10, %v1849_v19  ;;  %v2105_v34 = vpop.permute.xlu0 %2104 }
 0x1ac   : > { %2118 = vrot.lane.b32.xlu1 %v9626_v44, %s14880_s24  ;;  %2187 = vst.msk [vmem:[#allocation3 + $0x38] sm:$0xf] %vm2172_vm11, %v2105_v34  ;;  %v1459_v44 = vld [vmem:[#allocation2 + $0x1c8] sm:$0xff]  ;;  %v2232_v34 = vld [vmem:[#allocation2 + $0x1f0] sm:$0xff] }
 0x1ad   : > { %2373 = vrot.lane.b32.xlu0 %v9657_v48, %s10516_s25  ;;  %v9661_v8 = vpack.c.bf16 %v1459_v44, %v1459_v44 }
 0x1ae   : > { %v2103_v12 = vpop.permute.xlu1 %2102 }
 0x1af   : > { %2186 = vst.msk [vmem:[#allocation3 + $0x34] sm:$0xf] %vm2172_vm11, %v2103_v12  ;;  %v2358_v21 = vpop.permute.xlu0 %2357 }
 0x1b0   : > { %2122 = vrot.lane.b32.xlu1 %v11542_v4, %s14880_s24  ;;  %2442 = vst.msk [vmem:[#allocation3 + $0x30] sm:$0xf] %vm2429_vm12, %v2358_v21  ;;  %v11653_v21 = vpack.c.bf16 %v2232_v34, %v2232_v34 }
 0x1b1   : > { %2377 = vrot.lane.b32.xlu0 %v11552_v20, %s10516_s25 }
 0x1b2   : > { %v2107_v50 = vpop.permute.xlu1 %2106 }
 0x1b3   : > { %2188 = vst.msk [vmem:[#allocation3 + $0x3c] sm:$0xf] %vm2172_vm11, %v2107_v50  ;;  %v2362_v36 = vpop.permute.xlu0 %2361 }
 0x1b4   : > { %2375 = vrot.lane.b32.xlu1 %v9658_v43, %s10516_s25  ;;  %2444 = vst.msk [vmem:[#allocation3 + $0x38] sm:$0xf] %vm2429_vm12, %v2362_v36 }
 0x1b5   : > { %2630 = vrot.lane.b32.xlu0 %v11514_v10, %s14878_s30 }
 0x1b6   : > { %v2360_v22 = vpop.permute.xlu1 %2359 }
 0x1b7   : > { %2443 = vst.msk [vmem:[#allocation3 + $0x34] sm:$0xf] %vm2429_vm12, %v2360_v22  ;;  %v2615_v55 = vpop.permute.xlu0 %2614  ;;  %v11669_v22 = vpack.c.bf16 %v11427_v11, %v11427_v11  ;;  %v11680_v11 = vld [vmem:[%s14952_s2] ss:$0 sm:$0xff] }
 0x1b8   : > { %2379 = vrot.lane.b32.xlu1 %v9754_v57, %s10516_s25  ;;  %2699 = vst.msk [vmem:[#allocation3 + $0x30] sm:$0xf] %vm2686_vm13, %v2615_v55 }
 0x1b9   : > { %2634 = vrot.lane.b32.xlu0 %v9785_v53, %s14878_s30 }
 0x1ba   : > { %v2364_v41 = vpop.permute.xlu1 %2363 }
 0x1bb   : > { %2445 = vst.msk [vmem:[#allocation3 + $0x3c] sm:$0xf] %vm2429_vm12, %v2364_v41  ;;  %v2619_v38 = vpop.permute.xlu0 %2618 }
 0x1bc   : > { %2632 = vrot.lane.b32.xlu1 %v11526_v16, %s14878_s30  ;;  %2701 = vst.msk [vmem:[#allocation3 + $0x38] sm:$0xf] %vm2686_vm13, %v2619_v38 }
 0x1bd   : > { %1095 = vrot.lane.b32.xlu0 %v11514_v10, %s14884_s20 }
 0x1be   : > { %v2617_v30 = vpop.permute.xlu1 %2616 }
 0x1bf   : > { %2700 = vst.msk [vmem:[#allocation3 + $0x34] sm:$0xf] %vm2686_vm13, %v2617_v30  ;;  %v1080_v51 = vpop.permute.xlu0 %1079  ;;  %v11689_v30 = vld [vmem:[%s14953_s3] ss:$0 sm:$0xff] }
 0x1c0   : > { %2636 = vrot.lane.b32.xlu1 %v9786_v61, %s14878_s30  ;;  %1160 = vst.msk [vmem:[#allocation3 + $0x40] sm:$0xf] %vm1143_vm7, %v1080_v51 }
 0x1c1   : > { %1099 = vrot.lane.b32.xlu0 %v9785_v53, %s14884_s20 }
 0x1c2   : > { %v2621_v23 = vpop.permute.xlu1 %2620 }
 0x1c3   : > { %2702 = vst.msk [vmem:[#allocation3 + $0x3c] sm:$0xf] %vm2686_vm13, %v2621_v23  ;;  %v1084_v46 = vpop.permute.xlu0 %1083 }
 0x1c4   : > { %1097 = vrot.lane.b32.xlu1 %v11526_v16, %s14884_s20  ;;  %1162 = vst.msk [vmem:[#allocation3 + $0x48] sm:$0xf] %vm1143_vm7, %v1084_v46 }
 0x1c5   : > { %1352 = vrot.lane.b32.xlu0 %v11532_v32, %s10512_s21  ;;  %v1975_v32 = vld [vmem:[#allocation2 + $0x1ef] sm:$0xff] }
 0x1c6   : > { %v1082_v45 = vpop.permute.xlu1 %1081  ;;  %v10451_v35 = vld [vmem:[#allocation3 + $0x30] sm:$0xff]   ;;  %v11639_v28 = vpack.c.bf16 %v1975_v32, %v1975_v32 }
 0x1c7   : > { %1161 = vst.msk [vmem:[#allocation3 + $0x44] sm:$0xf] %vm1143_vm7, %v1082_v45  ;;  %10145 = vmatprep.mubr.msk.bf16.mxu0 %vm2851_vm15, %v10451_v35  ;;  %v1337_v47 = vpop.permute.xlu0 %1336 }
 0x1c8   : > { %1101 = vrot.lane.b32.xlu1 %v9786_v61, %s14884_s20  ;;  %1417 = vst.msk [vmem:[#allocation3 + $0x40] sm:$0xf] %vm1400_vm8, %v1337_v47 }
 0x1c9   : > { %1356 = vrot.lane.b32.xlu0 %v9629_v49, %s10512_s21 }
 0x1ca   : > { %v1086_v56 = vpop.permute.xlu1 %1085  ;;  %v10452_v42 = vld [vmem:[#allocation3 + $0x38] sm:$0xff]  }
 0x1cb   : > { %1163 = vst.msk [vmem:[#allocation3 + $0x4c] sm:$0xf] %vm1143_vm7, %v1086_v56  ;;  %10146 = vmatmul.mubr.msk.bf16.gmra.mxu0 %vm2851_vm15, %v10452_v42  ;;  %v1341_v60 = vpop.permute.xlu0 %1340 }
 0x1cc   : > { %1354 = vrot.lane.b32.xlu1 %v11542_v4, %s10512_s21  ;;  %1419 = vst.msk [vmem:[#allocation3 + $0x48] sm:$0xf] %vm1400_vm8, %v1341_v60 }
 0x1cd   : > { %1609 = vrot.lane.b32.xlu0 %v11552_v20, %s14882_s22  ;;  %v2488_v20 = vld [vmem:[#allocation2 + $0x1e9] sm:$0xff] }
 0x1ce   : > { %v1339_v58 = vpop.permute.xlu1 %1338  ;;  %v11657_v40 = vpack.c.bf16 %v2488_v20, %v2488_v20 }
 0x1cf   : > { %1418 = vst.msk [vmem:[#allocation3 + $0x44] sm:$0xf] %vm1400_vm8, %v1339_v58  ;;  %v1594_v48 = vpop.permute.xlu0 %1593 }
 0x1d0   : > { %1358 = vrot.lane.b32.xlu1 %v9630_v7, %s10512_s21  ;;  %1674 = vst.msk [vmem:[#allocation3 + $0x40] sm:$0xf] %vm1657_vm9, %v1594_v48 }
 0x1d1   : > { %1613 = vrot.lane.b32.xlu0 %v9661_v8, %s14882_s22 }
 0x1d2   : > { %v1343_v62 = vpop.permute.xlu1 %1342 }
 0x1d3   : > { %1420 = vst.msk [vmem:[#allocation3 + $0x4c] sm:$0xf] %vm1400_vm8, %v1343_v62  ;;  %v1598_v9 = vpop.permute.xlu0 %1597 }
 0x1d4   : > { %1611 = vrot.lane.b32.xlu1 %v9754_v57, %s14882_s22  ;;  %1676 = vst.msk [vmem:[#allocation3 + $0x48] sm:$0xf] %vm1657_vm9, %v1598_v9  ;;  %v1463_v9 = vld [vmem:[#allocation2 + $0x208] sm:$0xff] }
 0x1d5   : > { %1866 = vrot.lane.b32.xlu0 %v9785_v53, %s10514_s23 }
 0x1d6   : > { %v1596_v43 = vpop.permute.xlu1 %1595 }
 0x1d7   : > { %1675 = vst.msk [vmem:[#allocation3 + $0x44] sm:$0xf] %vm1657_vm9, %v1596_v43  ;;  %v1851_v14 = vpop.permute.xlu0 %1850 }
 0x1d8   : > { %1615 = vrot.lane.b32.xlu1 %v9662_v6, %s14882_s22  ;;  %1931 = vst.msk [vmem:[#allocation3 + $0x40] sm:$0xf] %vm1914_vm10, %v1851_v14 }
 0x1d9   : > { %1870 = vrot.lane.b32.xlu0 %v9693_v63, %s10514_s23 }
 0x1da   : > { %v1600_v10 = vpop.permute.xlu1 %1599 }
 0x1db   : > { %1677 = vst.msk [vmem:[#allocation3 + $0x4c] sm:$0xf] %vm1657_vm9, %v1600_v10  ;;  %v1855_v13 = vpop.permute.xlu0 %1854 }
 0x1dc   : > { %1868 = vrot.lane.b32.xlu1 %v9786_v61, %s10514_s23  ;;  %1933 = vst.msk [vmem:[#allocation3 + $0x48] sm:$0xf] %vm1914_vm10, %v1855_v13 }
 0x1dd   : > { %2124 = vrot.lane.b32.xlu0 %v9629_v49, %s14880_s24  ;;  %v11696_v49 = vpack.c.bf16 %v11469_v27, %v11469_v27  ;;  %v1207_v27 = vld [vmem:[#allocation2 + $0x20f] sm:$0xff] }
 0x1de   : > { %v1853_v16 = vpop.permute.xlu1 %1852  ;;  %v9634_v43 = vpack.c.bf16 %v1207_v27, %v1207_v27 }
 0x1df   : > { %1932 = vst.msk [vmem:[#allocation3 + $0x44] sm:$0xf] %vm1914_vm10, %v1853_v16  ;;  %v2109_v39 = vpop.permute.xlu0 %2108  ;;  %v9665_v16 = vpack.c.bf16 %v1463_v9, %v1463_v9 }
 0x1e0   : > { %1872 = vrot.lane.b32.xlu1 %v9694_v31, %s10514_s23  ;;  %2189 = vst.msk [vmem:[#allocation3 + $0x40] sm:$0xf] %vm2172_vm11, %v2109_v39 }
 0x1e1   : > { %2128 = vrot.lane.b32.xlu0 %v9725_v17, %s14880_s24 }
 0x1e2   : > { %v1857_v18 = vpop.permute.xlu1 %1856 }
 0x1e3   : > { %1934 = vst.msk [vmem:[#allocation3 + $0x4c] sm:$0xf] %vm1914_vm10, %v1857_v18  ;;  %v2113_v19 = vpop.permute.xlu0 %2112  ;;  %v1464_v18 = vld [vmem:[#allocation2 + $0x210] sm:$0xff] }
 0x1e4   : > { %2126 = vrot.lane.b32.xlu1 %v9630_v7, %s14880_s24  ;;  %2191 = vst.msk [vmem:[#allocation3 + $0x48] sm:$0xf] %vm2172_vm11, %v2113_v19  ;;  %v1720_v19 = vld [vmem:[#allocation2 + $0x209] sm:$0xff] }
 0x1e5   : > { %2381 = vrot.lane.b32.xlu0 %v9661_v8, %s10516_s25  ;;  %v9697_v34 = vpack.c.bf16 %v1720_v19, %v1720_v19 }
 0x1e6   : > { %v2111_v29 = vpop.permute.xlu1 %2110 }
 0x1e7   : > { %2190 = vst.msk [vmem:[#allocation3 + $0x44] sm:$0xf] %vm2172_vm11, %v2111_v29  ;;  %v2366_v4 = vpop.permute.xlu0 %2365  ;;  %v9666_v29 = vpack.c.bf16 %v1464_v18, %v1464_v18 }
 0x1e8   : > { %2130 = vrot.lane.b32.xlu1 %v11639_v28, %s14880_s24  ;;  %2446 = vst.msk [vmem:[#allocation3 + $0x40] sm:$0xf] %vm2429_vm12, %v2366_v4 }
 0x1e9   : > { %2385 = vrot.lane.b32.xlu0 %v11643_v5, %s10516_s25 }
 0x1ea   : > { %v2115_v12 = vpop.permute.xlu1 %2114 }
 0x1eb   : > { %2192 = vst.msk [vmem:[#allocation3 + $0x4c] sm:$0xf] %vm2172_vm11, %v2115_v12  ;;  %v2370_v24 = vpop.permute.xlu0 %2369 }
 0x1ec   : > { %2383 = vrot.lane.b32.xlu1 %v9662_v6, %s10516_s25  ;;  %2448 = vst.msk [vmem:[#allocation3 + $0x48] sm:$0xf] %vm2429_vm12, %v2370_v24 }
 0x1ed   : > { %2638 = vrot.lane.b32.xlu0 %v9693_v63, %s14878_s30 }
 0x1ee   : > { %v2368_v50 = vpop.permute.xlu1 %2367 }
 0x1ef   : > { %2447 = vst.msk [vmem:[#allocation3 + $0x44] sm:$0xf] %vm2429_vm12, %v2368_v50  ;;  %v2623_v57 = vpop.permute.xlu0 %2622 }
 0x1f0   : > { %2387 = vrot.lane.b32.xlu1 %v11653_v21, %s10516_s25  ;;  %2703 = vst.msk [vmem:[#allocation3 + $0x40] sm:$0xf] %vm2686_vm13, %v2623_v57 }
 0x1f1   : > { %2642 = vrot.lane.b32.xlu0 %v11657_v40, %s14878_s30 }
 0x1f2   : > { %v2372_v36 = vpop.permute.xlu1 %2371 }
 0x1f3   : > { %2449 = vst.msk [vmem:[#allocation3 + $0x4c] sm:$0xf] %vm2429_vm12, %v2372_v36  ;;  %v2627_v53 = vpop.permute.xlu0 %2626 }
 0x1f4   : > { %2640 = vrot.lane.b32.xlu1 %v9694_v31, %s14878_s30  ;;  %2705 = vst.msk [vmem:[#allocation3 + $0x48] sm:$0xf] %vm2686_vm13, %v2627_v53  ;;  %v9761_v53 = vpack.c.bf16 %v11549_v1, %v11549_v1 }
 0x1f5   : > { %1103 = vrot.lane.b32.xlu0 %v9693_v63, %s14884_s20 }
 0x1f6   : > { %v2625_v55 = vpop.permute.xlu1 %2624 }
 0x1f7   : > { %2704 = vst.msk [vmem:[#allocation3 + $0x44] sm:$0xf] %vm2686_vm13, %v2625_v55  ;;  %v1088_v41 = vpop.permute.xlu0 %1087 }
 0x1f8   : > { %2644 = vrot.lane.b32.xlu1 %v11669_v22, %s14878_s30  ;;  %1164 = vst.msk [vmem:[#allocation3 + $0x50] sm:$0xf] %vm1143_vm7, %v1088_v41 }
 0x1f9   : > { %1107 = vrot.lane.b32.xlu0 %v11657_v40, %s14884_s20 }
 0x1fa   : > { %v2629_v61 = vpop.permute.xlu1 %2628 }
 0x1fb   : > { %2706 = vst.msk [vmem:[#allocation3 + $0x4c] sm:$0xf] %vm2686_vm13, %v2629_v61  ;;  %v10135_v38 = vpop.f32.mrf.mxu0  ;;  %v1092_v51 = vpop.permute.xlu0 %1091 }
 0x1fc   : > { %1105 = vrot.lane.b32.xlu1 %v9694_v31, %s14884_s20  ;;  %v3074_v23 = vmul.f32 %v10135_v38, %v11680_v11  ;;  %1166 = vst.msk [vmem:[#allocation3 + $0x58] sm:$0xf] %vm1143_vm7, %v1092_v51  ;;  %v9793_v38 = vpack.c.bf16 %v11556_v33, %v11556_v33 }
 0x1fd   : > { %v2938_v45 = vpop.f32.mrf.mxu0  ;;  %1360 = vrot.lane.b32.xlu0 %v9725_v17, %s10512_s21 }
 0x1fe   : > { %v1090_v46 = vpop.permute.xlu1 %1089  ;;  %v10453_v35 = vld [vmem:[#allocation3 + $0x40] sm:$0xff]   ;;  %v3113_v47 = vadd.f32 %v11689_v30, %v3074_v23  ;;  %v3072_v37 = vmul.f32 %v11680_v11, %v2938_v45 }
 0x1ff   : > { %1165 = vst.msk [vmem:[#allocation3 + $0x54] sm:$0xf] %vm1143_vm7, %v1090_v46  ;;  %v10136_v56 = vpop.f32.mrf.mxu0  ;;  %10149 = vmatprep.mubr.msk.bf16.mxu0 %vm2851_vm15, %v10453_v35  ;;  %v1345_v42 = vpop.permute.xlu0 %1344  ;;  %v9794_v46 = vpack.c.bf16 %v11558_v52, %v11558_v52 }
 0x200   : > { %1109 = vrot.lane.b32.xlu1 %v11669_v22, %s14884_s20  ;;  %v3145_v44 = vmul.f32 0.01, %v3113_v47  ;;  %v3111_v7 = vadd.f32 %v11689_v30, %v3072_v37  ;;  %v3075_v60 = vmul.f32 %v10136_v56, %v11680_v11  ;;  %1421 = vst.msk [vmem:[#allocation3 + $0x50] sm:$0xf] %vm1400_vm8, %v1345_v42 }
 0x201   : > { %v2941_v8 = vpop.f32.mrf.mxu0  ;;  %1364 = vrot.lane.b32.xlu0 %v11696_v49, %s10512_s21 }
 0x202   : > { %v1094_v58 = vpop.permute.xlu1 %1093  ;;  %v10454_v48 = vld [vmem:[#allocation3 + $0x48] sm:$0xff]   ;;  %v11716_v59 = vmax.f32 %v3113_v47, %v3145_v44  ;;  %v3143_v62 = vmul.f32 0.01, %v3111_v7  ;;  %v3114_v3 = vadd.f32 %v11689_v30, %v3075_v60  ;;  %v3073_v6 = vmul.f32 %v11680_v11, %v2941_v8 }
 0x203   : > { %1167 = vst.msk [vmem:[#allocation3 + $0x5c] sm:$0xf] %vm1143_vm7, %v1094_v58  ;;  %10150 = vmatmul.mubr.msk.bf16.gmra.mxu0 %vm2851_vm15, %v10454_v48  ;;  %v1349_v63 = vpop.permute.xlu0 %1348 }
 0x204   : > { %1362 = vrot.lane.b32.xlu1 %v11639_v28, %s10512_s21  ;;  %3549 = vst.msk [vmem:[%s11712_s28 + $0x10] sm:$0xff] %vm361_vm0, %v11716_v59  ;;  %v11727_v14 = vmax.f32 %v3111_v7, %v3143_v62  ;;  %v3146_v10 = vmul.f32 0.01, %v3114_v3  ;;  %v3112_v31 = vadd.f32 %v11689_v30, %v3073_v6 }
 0x205   : > { %1423 = vst.msk [vmem:[#allocation3 + $0x58] sm:$0xf] %vm1400_vm8, %v1349_v63  ;;  %1617 = vrot.lane.b32.xlu0 %v11643_v5, %s14882_s22 }
 0x206   : > { %v1347_v13 = vpop.permute.xlu1 %1346  ;;  %3547 = vst.msk [vmem:[%s11712_s28] sm:$0xff] %vm361_vm0, %v11727_v14  ;;  %v11736_v17 = vmax.f32 %v3114_v3, %v3146_v10  ;;  %v3144_v39 = vmul.f32 0.01, %v3112_v31 }
 0x207   : > { %1422 = vst.msk [vmem:[#allocation3 + $0x54] sm:$0xf] %vm1400_vm8, %v1347_v13  ;;  %v1602_v32 = vpop.permute.xlu0 %1601 }
 0x208   : > { %1366 = vrot.lane.b32.xlu1 %v9634_v43, %s10512_s21  ;;  %3550 = vst.msk [vmem:[%s11712_s28 + $0x18] sm:$0xff] %vm361_vm0, %v11736_v17  ;;  %v11744_v2 = vmax.f32 %v3112_v31, %v3144_v39 }
 0x209   : > { %1678 = vst.msk [vmem:[#allocation3 + $0x50] sm:$0xf] %vm1657_vm9, %v1602_v32  ;;  %1621 = vrot.lane.b32.xlu0 %v9665_v16, %s14882_s22 }
 0x20a   : > { %v1351_v28 = vpop.permute.xlu1 %1350  ;;  %3548 = vst.msk [vmem:[%s11712_s28 + $0x8] sm:$0xff] %vm361_vm0, %v11744_v2 }
 0x20b   : > { %1424 = vst.msk [vmem:[#allocation3 + $0x5c] sm:$0xf] %vm1400_vm8, %v1351_v28  ;;  %v1606_v5 = vpop.permute.xlu0 %1605 }
 0x20c   : > { %1619 = vrot.lane.b32.xlu1 %v11653_v21, %s14882_s22  ;;  %1680 = vst.msk [vmem:[#allocation3 + $0x58] sm:$0xf] %vm1657_vm9, %v1606_v5  ;;  %v9698_v21 = vpack.c.bf16 %v11499_v54, %v11499_v54  ;;  %v9730_v54 = vpack.c.bf16 %v11547_v26, %v11547_v26  ;;  %v9762_v26 = vpack.c.bf16 %v11554_v15, %v11554_v15 }
 0x20d   : > { %1874 = vrot.lane.b32.xlu0 %v11657_v40, %s10514_s23  ;;  %v9729_v40 = vpack.c.bf16 %v11545_v25, %v11545_v25 }
 0x20e   : > { %v1604_v4 = vpop.permute.xlu1 %1603 }
 0x20f   : > { %1679 = vst.msk [vmem:[#allocation3 + $0x54] sm:$0xf] %vm1657_vm9, %v1604_v4  ;;  %v1859_v12 = vpop.permute.xlu0 %1858 }
 0x210   : > { %1623 = vrot.lane.b32.xlu1 %v9666_v29, %s14882_s22  ;;  %1935 = vst.msk [vmem:[#allocation3 + $0x50] sm:$0xf] %vm1914_vm10, %v1859_v12 }
 0x211   : > { %1878 = vrot.lane.b32.xlu0 %v9697_v34, %s10514_s23 }
 0x212   : > { %v1608_v20 = vpop.permute.xlu1 %1607 }
 0x213   : > { %1681 = vst.msk [vmem:[#allocation3 + $0x5c] sm:$0xf] %vm1657_vm9, %v1608_v20  ;;  %v1863_v24 = vpop.permute.xlu0 %1862 }
 0x214   : > { %1876 = vrot.lane.b32.xlu1 %v11669_v22, %s10514_s23  ;;  %1937 = vst.msk [vmem:[#allocation3 + $0x58] sm:$0xf] %vm1914_vm10, %v1863_v24 }
 0x215   : > { %2132 = vrot.lane.b32.xlu0 %v11696_v49, %s14880_s24 }
 0x216   : > { %v1861_v50 = vpop.permute.xlu1 %1860 }
 0x217   : > { %1936 = vst.msk [vmem:[#allocation3 + $0x54] sm:$0xf] %vm1914_vm10, %v1861_v50  ;;  %v2117_v57 = vpop.permute.xlu0 %2116 }
 0x218   : > { %1880 = vrot.lane.b32.xlu1 %v9698_v21, %s10514_s23  ;;  %2193 = vst.msk [vmem:[#allocation3 + $0x50] sm:$0xf] %vm2172_vm11, %v2117_v57 }
 0x219   : > { %2136 = vrot.lane.b32.xlu0 %v9729_v40, %s14880_s24 }
 0x21a   : > { %v1865_v36 = vpop.permute.xlu1 %1864 }
 0x21b   : > { %1938 = vst.msk [vmem:[#allocation3 + $0x5c] sm:$0xf] %vm1914_vm10, %v1865_v36  ;;  %v2121_v22 = vpop.permute.xlu0 %2120 }
 0x21c   : > { %2134 = vrot.lane.b32.xlu1 %v9634_v43, %s14880_s24  ;;  %2195 = vst.msk [vmem:[#allocation3 + $0x58] sm:$0xf] %vm2172_vm11, %v2121_v22 }
 0x21d   : > { %2389 = vrot.lane.b32.xlu0 %v9665_v16, %s10516_s25 }
 0x21e   : > { %v2119_v25 = vpop.permute.xlu1 %2118 }
 0x21f   : > { %2194 = vst.msk [vmem:[#allocation3 + $0x54] sm:$0xf] %vm2172_vm11, %v2119_v25  ;;  %v2374_v55 = vpop.permute.xlu0 %2373 }
 0x220   : > { %2138 = vrot.lane.b32.xlu1 %v9730_v54, %s14880_s24  ;;  %2450 = vst.msk [vmem:[#allocation3 + $0x50] sm:$0xf] %vm2429_vm12, %v2374_v55 }
 0x221   : > { %2393 = vrot.lane.b32.xlu0 %v9761_v53, %s10516_s25 }
 0x222   : > { %v2123_v41 = vpop.permute.xlu1 %2122 }
 0x223   : > { %2196 = vst.msk [vmem:[#allocation3 + $0x5c] sm:$0xf] %vm2172_vm11, %v2123_v41  ;;  %v2378_v61 = vpop.permute.xlu0 %2377 }
 0x224   : > { %2391 = vrot.lane.b32.xlu1 %v9666_v29, %s10516_s25  ;;  %2452 = vst.msk [vmem:[#allocation3 + $0x58] sm:$0xf] %vm2429_vm12, %v2378_v61 }
 0x225   : > { %2646 = vrot.lane.b32.xlu0 %v9697_v34, %s14878_s30 }
 0x226   : > { %v2376_v1 = vpop.permute.xlu1 %2375 }
 0x227   : > { %2451 = vst.msk [vmem:[#allocation3 + $0x54] sm:$0xf] %vm2429_vm12, %v2376_v1  ;;  %v2631_v51 = vpop.permute.xlu0 %2630 }
 0x228   : > { %2395 = vrot.lane.b32.xlu1 %v9762_v26, %s10516_s25  ;;  %2707 = vst.msk [vmem:[#allocation3 + $0x50] sm:$0xf] %vm2686_vm13, %v2631_v51 }
 0x229   : > { %2650 = vrot.lane.b32.xlu0 %v9793_v38, %s14878_s30 }
 0x22a   : > { %v2380_v23 = vpop.permute.xlu1 %2379 }
 0x22b   : > { %2453 = vst.msk [vmem:[#allocation3 + $0x5c] sm:$0xf] %vm2429_vm12, %v2380_v23  ;;  %v10139_v15 = vpop.f32.mrf.mxu0  ;;  %v2635_v45 = vpop.permute.xlu0 %2634 }
 0x22c   : > { %2648 = vrot.lane.b32.xlu1 %v9698_v21, %s14878_s30  ;;  %v3078_v33 = vmul.f32 %v10139_v15, %v11680_v11  ;;  %2709 = vst.msk [vmem:[#allocation3 + $0x58] sm:$0xf] %vm2686_vm13, %v2635_v45 }
 0x22d   : > { %v2954_v49 = vpop.f32.mrf.mxu0 }
 0x22e   : > { %v2633_v35 = vpop.permute.xlu1 %2632  ;;  %v3117_v47 = vadd.f32 %v11689_v30, %v3078_v33  ;;  %v3076_v37 = vmul.f32 %v11680_v11, %v2954_v49 }
 0x22f   : > { %2708 = vst.msk [vmem:[#allocation3 + $0x54] sm:$0xf] %vm2686_vm13, %v2633_v35  ;;  %v10140_v56 = vpop.f32.mrf.mxu0  ;;  %v1096_v42 = vpop.permute.xlu0 %1095 }
 0x230   : > { %2652 = vrot.lane.b32.xlu1 %v9794_v46, %s14878_s30  ;;  %v3149_v44 = vmul.f32 0.01, %v3117_v47  ;;  %v3115_v52 = vadd.f32 %v11689_v30, %v3076_v37  ;;  %v3079_v7 = vmul.f32 %v10140_v56, %v11680_v11  ;;  %1168 = vst.msk [vmem:[#allocation3 + $0x60] sm:$0xf] %vm1143_vm7, %v1096_v42 }
 0x231   : > { %v2957_v27 = vpop.f32.mrf.mxu0 }
 0x232   : > { %v2637_v60 = vpop.permute.xlu1 %2636  ;;  %v11811_v58 = vmax.f32 %v3117_v47, %v3149_v44  ;;  %v3147_v8 = vmul.f32 0.01, %v3115_v52  ;;  %v3118_v48 = vadd.f32 %v11689_v30, %v3079_v7  ;;  %v3077_v62 = vmul.f32 %v11680_v11, %v2957_v27 }
 0x233   : > { %2710 = vst.msk [vmem:[#allocation3 + $0x5c] sm:$0xf] %vm2686_vm13, %v2637_v60  ;;  %v1100_v3 = vpop.permute.xlu0 %1099 }
 0x234   : > { %3553 = vst.msk [vmem:[%s11712_s28 + $0x30] sm:$0xff] %vm361_vm0, %v11811_v58  ;;  %v11819_v6 = vmax.f32 %v3115_v52, %v3147_v8  ;;  %v3150_v9 = vmul.f32 0.01, %v3118_v48  ;;  %v3116_v43 = vadd.f32 %v11689_v30, %v3077_v62 }
 0x235   : > { %1170 = vst.msk [vmem:[#allocation3 + $0x68] sm:$0xf] %vm1143_vm7, %v1100_v3 }
 0x236   : > { %v1098_v63 = vpop.permute.xlu1 %1097  ;;  %v10455_v10 = vld [vmem:[#allocation3 + $0x50] sm:$0xff]   ;;  %3551 = vst.msk [vmem:[%s11712_s28 + $0x20] sm:$0xff] %vm361_vm0, %v11819_v6  ;;  %v11826_v31 = vmax.f32 %v3118_v48, %v3150_v9  ;;  %v3148_v13 = vmul.f32 0.01, %v3116_v43 }
 0x237   : > { %1169 = vst.msk [vmem:[#allocation3 + $0x64] sm:$0xf] %vm1143_vm7, %v1098_v63  ;;  %10153 = vmatprep.mubr.msk.bf16.mxu0 %vm2851_vm15, %v10455_v10  ;;  %v1353_v16 = vpop.permute.xlu0 %1352 }
 0x238   : > { %3554 = vst.msk [vmem:[%s11712_s28 + $0x38] sm:$0xff] %vm361_vm0, %v11826_v31  ;;  %v11834_v39 = vmax.f32 %v3116_v43, %v3148_v13 }
 0x239   : > { %1425 = vst.msk [vmem:[#allocation3 + $0x60] sm:$0xf] %vm1400_vm8, %v1353_v16 }
 0x23a   : > { %v1102_v32 = vpop.permute.xlu1 %1101  ;;  %v10456_v18 = vld [vmem:[#allocation3 + $0x58] sm:$0xff]   ;;  %3552 = vst.msk [vmem:[%s11712_s28 + $0x28] sm:$0xff] %vm361_vm0, %v11834_v39 }
 0x23b   : > { %1171 = vst.msk [vmem:[#allocation3 + $0x6c] sm:$0xf] %vm1143_vm7, %v1102_v32  ;;  %10154 = vmatmul.mubr.msk.bf16.gmra.mxu0 %vm2851_vm15, %v10456_v18  ;;  %v1357_v28 = vpop.permute.xlu0 %1356 }
 0x23c   : > { %1427 = vst.msk [vmem:[#allocation3 + $0x68] sm:$0xf] %vm1400_vm8, %v1357_v28 }
 0x23e   : > { %v1355_v19 = vpop.permute.xlu1 %1354 }
 0x23f   : > { %1426 = vst.msk [vmem:[#allocation3 + $0x64] sm:$0xf] %vm1400_vm8, %v1355_v19  ;;  %v1610_v29 = vpop.permute.xlu0 %1609 }
 0x240   : > { %1682 = vst.msk [vmem:[#allocation3 + $0x60] sm:$0xf] %vm1657_vm9, %v1610_v29 }
 0x242   : > { %v1359_v5 = vpop.permute.xlu1 %1358 }
 0x243   : > { %1428 = vst.msk [vmem:[#allocation3 + $0x6c] sm:$0xf] %vm1400_vm8, %v1359_v5  ;;  %v1614_v4 = vpop.permute.xlu0 %1613 }
 0x244   : > { %1684 = vst.msk [vmem:[#allocation3 + $0x68] sm:$0xf] %vm1657_vm9, %v1614_v4 }
 0x246   : > { %v1612_v34 = vpop.permute.xlu1 %1611 }
 0x247   : > { %1683 = vst.msk [vmem:[#allocation3 + $0x64] sm:$0xf] %vm1657_vm9, %v1612_v34  ;;  %v1867_v12 = vpop.permute.xlu0 %1866 }
 0x248   : > { %1939 = vst.msk [vmem:[#allocation3 + $0x60] sm:$0xf] %vm1914_vm10, %v1867_v12 }
 0x24a   : > { %v1616_v20 = vpop.permute.xlu1 %1615 }
 0x24b   : > { %1685 = vst.msk [vmem:[#allocation3 + $0x6c] sm:$0xf] %vm1657_vm9, %v1616_v20  ;;  %v1871_v21 = vpop.permute.xlu0 %1870 }
 0x24c   : > { %1941 = vst.msk [vmem:[#allocation3 + $0x68] sm:$0xf] %vm1914_vm10, %v1871_v21 }
 0x24e   : > { %v1869_v24 = vpop.permute.xlu1 %1868 }
 0x24f   : > { %1940 = vst.msk [vmem:[#allocation3 + $0x64] sm:$0xf] %vm1914_vm10, %v1869_v24  ;;  %v2125_v50 = vpop.permute.xlu0 %2124 }
 0x250   : > { %2197 = vst.msk [vmem:[#allocation3 + $0x60] sm:$0xf] %vm2172_vm11, %v2125_v50 }
 0x252   : > { %v1873_v40 = vpop.permute.xlu1 %1872 }
 0x253   : > { %1942 = vst.msk [vmem:[#allocation3 + $0x6c] sm:$0xf] %vm1914_vm10, %v1873_v40  ;;  %v2129_v57 = vpop.permute.xlu0 %2128 }
 0x254   : > { %2199 = vst.msk [vmem:[#allocation3 + $0x68] sm:$0xf] %vm2172_vm11, %v2129_v57 }
 0x256   : > { %v2127_v36 = vpop.permute.xlu1 %2126 }
 0x257   : > { %2198 = vst.msk [vmem:[#allocation3 + $0x64] sm:$0xf] %vm2172_vm11, %v2127_v36  ;;  %v2382_v54 = vpop.permute.xlu0 %2381 }
 0x258   : > { %2454 = vst.msk [vmem:[#allocation3 + $0x60] sm:$0xf] %vm2429_vm12, %v2382_v54 }
 0x25a   : > { %v2131_v22 = vpop.permute.xlu1 %2130 }
 0x25b   : > { %2200 = vst.msk [vmem:[#allocation3 + $0x6c] sm:$0xf] %vm2172_vm11, %v2131_v22  ;;  %v10143_v25 = vpop.f32.mrf.mxu0  ;;  %v2386_v53 = vpop.permute.xlu0 %2385 }
 0x25c   : > { %v3082_v55 = vmul.f32 %v10143_v25, %v11680_v11  ;;  %2456 = vst.msk [vmem:[#allocation3 + $0x68] sm:$0xf] %vm2429_vm12, %v2386_v53 }
 0x25d   : > { %v2970_v26 = vpop.f32.mrf.mxu0 }
 0x25e   : > { %v2384_v41 = vpop.permute.xlu1 %2383  ;;  %v3121_v61 = vadd.f32 %v11689_v30, %v3082_v55  ;;  %v3080_v1 = vmul.f32 %v11680_v11, %v2970_v26 }
 0x25f   : > { %2455 = vst.msk [vmem:[#allocation3 + $0x64] sm:$0xf] %vm2429_vm12, %v2384_v41  ;;  %v10144_v38 = vpop.f32.mrf.mxu0  ;;  %v2639_v51 = vpop.permute.xlu0 %2638 }
 0x260   : > { %v3153_v23 = vmul.f32 0.01, %v3121_v61  ;;  %v3119_v15 = vadd.f32 %v11689_v30, %v3080_v1  ;;  %v3083_v46 = vmul.f32 %v10144_v38, %v11680_v11  ;;  %2711 = vst.msk [vmem:[#allocation3 + $0x60] sm:$0xf] %vm2686_vm13, %v2639_v51 }
 0x261   : > { %v2973_v33 = vpop.f32.mrf.mxu0 }
 0x262   : > { %v2388_v45 = vpop.permute.xlu1 %2387  ;;  %v11865_v35 = vmax.f32 %v3121_v61, %v3153_v23  ;;  %v3151_v49 = vmul.f32 0.01, %v3119_v15  ;;  %v3122_v47 = vadd.f32 %v11689_v30, %v3083_v46  ;;  %v3081_v37 = vmul.f32 %v11680_v11, %v2973_v33 }
 0x263   : > { %2457 = vst.msk [vmem:[#allocation3 + $0x6c] sm:$0xf] %vm2429_vm12, %v2388_v45  ;;  %v2643_v56 = vpop.permute.xlu0 %2642 }
 0x264   : > { %3557 = vst.msk [vmem:[%s11712_s28 + $0x50] sm:$0xff] %vm361_vm0, %v11865_v35  ;;  %v11873_v42 = vmax.f32 %v3119_v15, %v3151_v49  ;;  %v3154_v44 = vmul.f32 0.01, %v3122_v47  ;;  %v3120_v52 = vadd.f32 %v11689_v30, %v3081_v37 }
 0x265   : > { %2713 = vst.msk [vmem:[#allocation3 + $0x68] sm:$0xf] %vm2686_vm13, %v2643_v56 }
 0x266   : > { %v2641_v7 = vpop.permute.xlu1 %2640  ;;  %3555 = vst.msk [vmem:[%s11712_s28 + $0x40] sm:$0xff] %vm361_vm0, %v11873_v42  ;;  %v11880_v60 = vmax.f32 %v3122_v47, %v3154_v44  ;;  %v3152_v27 = vmul.f32 0.01, %v3120_v52 }
 0x267   : > { %2712 = vst.msk [vmem:[#allocation3 + $0x64] sm:$0xf] %vm2686_vm13, %v2641_v7  ;;  %v1104_v8 = vpop.permute.xlu0 %1103 }
 0x268   : > { %3558 = vst.msk [vmem:[%s11712_s28 + $0x58] sm:$0xff] %vm361_vm0, %v11880_v60  ;;  %v11887_v48 = vmax.f32 %v3120_v52, %v3152_v27 }
 0x269   : > { %1172 = vst.msk [vmem:[#allocation3 + $0x70] sm:$0xf] %vm1143_vm7, %v1104_v8 }
 0x26a   : > { %v2645_v62 = vpop.permute.xlu1 %2644  ;;  %3556 = vst.msk [vmem:[%s11712_s28 + $0x48] sm:$0xff] %vm361_vm0, %v11887_v48 }
 0x26b   : > { %2714 = vst.msk [vmem:[#allocation3 + $0x6c] sm:$0xf] %vm2686_vm13, %v2645_v62  ;;  %v1108_v3 = vpop.permute.xlu0 %1107 }
 0x26c   : > { %1174 = vst.msk [vmem:[#allocation3 + $0x78] sm:$0xf] %vm1143_vm7, %v1108_v3 }
 0x26e   : > { %v1106_v9 = vpop.permute.xlu1 %1105  ;;  %v10457_v43 = vld [vmem:[#allocation3 + $0x60] sm:$0xff]  }
 0x26f   : > { %1173 = vst.msk [vmem:[#allocation3 + $0x74] sm:$0xf] %vm1143_vm7, %v1106_v9  ;;  %10157 = vmatprep.mubr.msk.bf16.mxu0 %vm2851_vm15, %v10457_v43  ;;  %v1361_v63 = vpop.permute.xlu0 %1360 }
 0x270   : > { %1429 = vst.msk [vmem:[#allocation3 + $0x70] sm:$0xf] %vm1400_vm8, %v1361_v63 }
 0x272   : > { %v1110_v10 = vpop.permute.xlu1 %1109  ;;  %v10458_v13 = vld [vmem:[#allocation3 + $0x68] sm:$0xff]  }
 0x273   : > { %1175 = vst.msk [vmem:[#allocation3 + $0x7c] sm:$0xf] %vm1143_vm7, %v1110_v10  ;;  %10158 = vmatmul.mubr.msk.bf16.gmra.mxu0 %vm2851_vm15, %v10458_v13  ;;  %v1365_v16 = vpop.permute.xlu0 %1364  ;;  %vm3897_vm7 = vcmask 1041409  }
 0x274   : > { %1431 = vst.msk [vmem:[#allocation3 + $0x78] sm:$0xf] %vm1400_vm8, %v1365_v16 }
 0x276   : > { %v1363_v32 = vpop.permute.xlu1 %1362 }
 0x277   : > { %1430 = vst.msk [vmem:[#allocation3 + $0x74] sm:$0xf] %vm1400_vm8, %v1363_v32  ;;  %v1618_v18 = vpop.permute.xlu0 %1617  ;;  %v3349_v32 = vld [vmem:[%s14956_s7] sm:$0xff] }
 0x278   : > { %1686 = vst.msk [vmem:[#allocation3 + $0x70] sm:$0xf] %vm1657_vm9, %v1618_v18  ;;  %10166 = vmatpush3.msra.mxu0 %v3349_v32  ;;  %v3282_v32 = vsel %vm361_vm0, %v11819_v6, -inf }
 0x279   : > { %10170 = vmatprep.subr.mxu0 %v14863_v0 }
 0x27a   : > { %v1367_v28 = vpop.permute.xlu1 %1366 }
 0x27b   : > { %1432 = vst.msk [vmem:[#allocation3 + $0x7c] sm:$0xf] %vm1400_vm8, %v1367_v28  ;;  %v1622_v19 = vpop.permute.xlu0 %1621  ;;  %vm3899_vm8 = vcmask 1042434  }
 0x27c   : > { %1688 = vst.msk [vmem:[#allocation3 + $0x78] sm:$0xf] %vm1657_vm9, %v1622_v19 }
 0x27e   : > { %v1620_v29 = vpop.permute.xlu1 %1619 }
 0x27f   : > { %1687 = vst.msk [vmem:[#allocation3 + $0x74] sm:$0xf] %vm1657_vm9, %v1620_v29  ;;  %v1875_v5 = vpop.permute.xlu0 %1874 }
 0x280   : > { %1943 = vst.msk [vmem:[#allocation3 + $0x70] sm:$0xf] %vm1914_vm10, %v1875_v5 }
 0x282   : > { %v1624_v4 = vpop.permute.xlu1 %1623 }
 0x283   : > { %1689 = vst.msk [vmem:[#allocation3 + $0x7c] sm:$0xf] %vm1657_vm9, %v1624_v4  ;;  %v1879_v34 = vpop.permute.xlu0 %1878  ;;  %vm3901_vm9 = vcmask 1043459  }
 0x284   : > { %1945 = vst.msk [vmem:[#allocation3 + $0x78] sm:$0xf] %vm1914_vm10, %v1879_v34 }
 0x286   : > { %v1877_v12 = vpop.permute.xlu1 %1876 }
 0x287   : > { %1944 = vst.msk [vmem:[#allocation3 + $0x74] sm:$0xf] %vm1914_vm10, %v1877_v12  ;;  %v2133_v20 = vpop.permute.xlu0 %2132 }
 0x288   : > { %2201 = vst.msk [vmem:[#allocation3 + $0x70] sm:$0xf] %vm2172_vm11, %v2133_v20 }
 0x28a   : > { %v1881_v21 = vpop.permute.xlu1 %1880 }
 0x28b   : > { %1946 = vst.msk [vmem:[#allocation3 + $0x7c] sm:$0xf] %vm1914_vm10, %v1881_v21  ;;  %v10147_v24 = vpop.f32.mrf.mxu0  ;;  %v2137_v50 = vpop.permute.xlu0 %2136  ;;  %vm3903_vm10 = vcmask 1044484  }
 0x28c   : > { %v3086_v40 = vmul.f32 %v10147_v24, %v11680_v11  ;;  %2203 = vst.msk [vmem:[#allocation3 + $0x78] sm:$0xf] %vm2172_vm11, %v2137_v50 }
 0x28d   : > { %v2986_v36 = vpop.f32.mrf.mxu0 }
 0x28e   : > { %v2135_v57 = vpop.permute.xlu1 %2134  ;;  %v3125_v54 = vadd.f32 %v11689_v30, %v3086_v40  ;;  %v3084_v22 = vmul.f32 %v11680_v11, %v2986_v36 }
 0x28f   : > { %2202 = vst.msk [vmem:[#allocation3 + $0x74] sm:$0xf] %vm2172_vm11, %v2135_v57  ;;  %v10148_v25 = vpop.f32.mrf.mxu0  ;;  %v2390_v53 = vpop.permute.xlu0 %2389 }
 0x290   : > { %v3157_v55 = vmul.f32 0.01, %v3125_v54  ;;  %v3123_v41 = vadd.f32 %v11689_v30, %v3084_v22  ;;  %v3087_v26 = vmul.f32 %v10148_v25, %v11680_v11  ;;  %2458 = vst.msk [vmem:[#allocation3 + $0x70] sm:$0xf] %vm2429_vm12, %v2390_v53 }
 0x291   : > { %v2989_v1 = vpop.f32.mrf.mxu0 }
 0x292   : > { %v2139_v61 = vpop.permute.xlu1 %2138  ;;  %v11919_v38 = vmax.f32 %v3125_v54, %v3157_v55  ;;  %v3155_v51 = vmul.f32 0.01, %v3123_v41  ;;  %v3126_v23 = vadd.f32 %v11689_v30, %v3087_v26  ;;  %v3085_v15 = vmul.f32 %v11680_v11, %v2989_v1 }
 0x293   : > { %2204 = vst.msk [vmem:[#allocation3 + $0x7c] sm:$0xf] %vm2172_vm11, %v2139_v61  ;;  %v2394_v46 = vpop.permute.xlu0 %2393  ;;  %vm3905_vm11 = vcmask 1045509  }
 0x294   : > { %3561 = vst.msk [vmem:[%s11712_s28 + $0x70] sm:$0xff] %vm361_vm0, %v11919_v38  ;;  %v11927_v45 = vmax.f32 %v3123_v41, %v3155_v51  ;;  %v3158_v33 = vmul.f32 0.01, %v3126_v23  ;;  %v3124_v49 = vadd.f32 %v11689_v30, %v3085_v15 }
 0x295   : > { %2460 = vst.msk [vmem:[#allocation3 + $0x78] sm:$0xf] %vm2429_vm12, %v2394_v46 }
 0x296   : > { %v2392_v47 = vpop.permute.xlu1 %2391  ;;  %3559 = vst.msk [vmem:[%s11712_s28 + $0x60] sm:$0xff] %vm361_vm0, %v11927_v45  ;;  %v11934_v37 = vmax.f32 %v3126_v23, %v3158_v33  ;;  %v3156_v56 = vmul.f32 0.01, %v3124_v49 }
 0x297   : > { %2459 = vst.msk [vmem:[#allocation3 + $0x74] sm:$0xf] %vm2429_vm12, %v2392_v47  ;;  %v2647_v44 = vpop.permute.xlu0 %2646 }
 0x298   : > { %3562 = vst.msk [vmem:[%s11712_s28 + $0x78] sm:$0xff] %vm361_vm0, %v11934_v37  ;;  %v11941_v52 = vmax.f32 %v3124_v49, %v3156_v56 }
 0x299   : > { %2715 = vst.msk [vmem:[#allocation3 + $0x70] sm:$0xf] %vm2686_vm13, %v2647_v44 }
 0x29a   : > { %v2396_v7 = vpop.permute.xlu1 %2395  ;;  %3560 = vst.msk [vmem:[%s11712_s28 + $0x68] sm:$0xff] %vm361_vm0, %v11941_v52 }
 0x29b   : > { %2461 = vst.msk [vmem:[#allocation3 + $0x7c] sm:$0xf] %vm2429_vm12, %v2396_v7  ;;  %v2651_v27 = vpop.permute.xlu0 %2650  ;;  %vm3907_vm12 = vcmask 1046534  }
 0x29c   : > { %2717 = vst.msk [vmem:[#allocation3 + $0x78] sm:$0xf] %vm2686_vm13, %v2651_v27 }
 0x29e   : > { %v2649_v8 = vpop.permute.xlu1 %2648 }
 0x29f   : > { %2716 = vst.msk [vmem:[#allocation3 + $0x74] sm:$0xf] %vm2686_vm13, %v2649_v8  ;;  %v3278_v8 = vsel %vm361_vm0, %v11727_v14, -inf }
 0x2a2   : > { %v2653_v62 = vpop.permute.xlu1 %2652 }
 0x2a3   : > { %2718 = vst.msk [vmem:[#allocation3 + $0x7c] sm:$0xf] %vm2686_vm13, %v2653_v62  ;;  %v3280_v62 = vsel %vm361_vm0, %v11716_v59, -inf  ;;  %vm3909_vm13 = vcmask 1047559  }
 0x2a6   : > { %v10459_v3 = vld [vmem:[#allocation3 + $0x70] sm:$0xff]  }
 0x2a7   : > { %10161 = vmatprep.mubr.msk.bf16.mxu0 %vm2851_vm15, %v10459_v3  ;;  %v3287_v3 = vmax.f32 %v3280_v62, %v3278_v8 }
 0x2aa   : > { %v10460_v9 = vld [vmem:[#allocation3 + $0x78] sm:$0xff]  }
 0x2ab   : > { %10162 = vmatmul.mubr.msk.bf16.gmra.mxu0 %vm2851_vm15, %v10460_v9  ;;  %v3281_v9 = vsel %vm361_vm0, %v11736_v17, -inf  ;;  %vm3920_vm15 = vcmask 154648  }
 0x2ac   : > { %10167 = vmatprep.mubr.msk.f32.mxu0 %vm10518_vm1, %v14863_v0 }
 0x2c3   : > { %v10151_v43 = vpop.f32.mrf.mxu0 }
 0x2c4   : > { %v3090_v63 = vmul.f32 %v10151_v43, %v11680_v11  ;;  %v3283_v43 = vmax.f32 %v3281_v9, %v3287_v3  ;;  %v3292_v9 = vsel %vm361_vm0, %v11887_v48, -inf }
 0x2c5   : > { %v3002_v10 = vpop.f32.mrf.mxu0 }
 0x2c6   : > { %v3129_v13 = vadd.f32 %v11689_v30, %v3090_v63  ;;  %v3088_v16 = vmul.f32 %v11680_v11, %v3002_v10  ;;  %v3279_v63 = vsel %vm361_vm0, %v11744_v2, -inf  ;;  %v3286_v10 = vsel %vm361_vm0, %v11811_v58, -inf }
 0x2c7   : > { %v10152_v18 = vpop.f32.mrf.mxu0 }
 0x2c8   : > { %v3161_v28 = vmul.f32 0.01, %v3129_v13  ;;  %v3127_v19 = vadd.f32 %v11689_v30, %v3088_v16  ;;  %v3091_v29 = vmul.f32 %v10152_v18, %v11680_v11  ;;  %v3208_v18 = vsel %vm361_vm0, %v11744_v2, 0.0 }
 0x2c9   : > { %v3005_v5 = vpop.f32.mrf.mxu0 }
 0x2ca   : > { %v11961_v4 = vmax.f32 %v3129_v13, %v3161_v28  ;;  %v3159_v34 = vmul.f32 0.01, %v3127_v19  ;;  %v3130_v12 = vadd.f32 %v11689_v30, %v3091_v29  ;;  %v3089_v20 = vmul.f32 %v11680_v11, %v3005_v5 }
 0x2cb   : > { %v3289_v13 = vmax.f32 %v3279_v63, %v3283_v43  ;;  %v3288_v29 = vsel %vm361_vm0, %v11826_v31, -inf }
 0x2cc   : > { %3565 = vst.msk [vmem:[%s11712_s28 + $0x90] sm:$0xff] %vm361_vm0, %v11961_v4  ;;  %v11968_v21 = vmax.f32 %v3127_v19, %v3159_v34  ;;  %v3162_v24 = vmul.f32 0.01, %v3130_v12  ;;  %v3128_v50 = vadd.f32 %v11689_v30, %v3089_v20  ;;  %v3207_v19 = vsel %vm361_vm0, %v11727_v14, 0.0 }
 0x2cd   : > { %v3285_v16 = vmax.f32 %v3286_v10, %v3289_v13  ;;  %v3209_v5 = vadd.f32 %v3208_v18, %v3207_v19  ;;  %v3284_v20 = vsel %vm361_vm0, %v11834_v39, -inf  ;;  %v3302_v13 = vsel %vm361_vm0, %v11919_v38, -inf }
 0x2ce   : > { %3563 = vst.msk [vmem:[%s11712_s28 + $0x80] sm:$0xff] %vm361_vm0, %v11968_v21  ;;  %v11974_v40 = vmax.f32 %v3130_v12, %v3162_v24  ;;  %v3160_v57 = vmul.f32 0.01, %v3128_v50  ;;  %v3210_v12 = vsel %vm361_vm0, %v11716_v59, 0.0 }
 0x2cf   : > { %v3295_v28 = vmax.f32 %v3282_v32, %v3285_v16  ;;  %v3211_v24 = vadd.f32 %v3210_v12, %v3209_v5  ;;  %v3222_v5 = vsel %vm361_vm0, %v11873_v42, 0.0 }
 0x2d0   : > { %3566 = vst.msk [vmem:[%s11712_s28 + $0x98] sm:$0xff] %vm361_vm0, %v11974_v40  ;;  %v11979_v36 = vmax.f32 %v3128_v50, %v3160_v57  ;;  %v3294_v50 = vsel %vm361_vm0, %v11865_v35, -inf }
 0x2d1   : > { %v3291_v34 = vmax.f32 %v3288_v29, %v3295_v28  ;;  %v3220_v29 = vsel %vm361_vm0, %v11826_v31, 0.0 }
 0x2d2   : > { %3564 = vst.msk [vmem:[%s11712_s28 + $0x88] sm:$0xff] %vm361_vm0, %v11979_v36 }
 0x2d3   : > { %v3297_v57 = vmax.f32 %v3284_v20, %v3291_v34 }
 0x2fb   : > { %v10155_v54 = vpop.f32.mrf.mxu0 }
 0x2fc   : > { %v3094_v22 = vmul.f32 %v10155_v54, %v11680_v11  ;;  %v3212_v54 = vsel %vm361_vm0, %v11736_v17, 0.0 }
 0x2fd   : > { %v3018_v25 = vpop.f32.mrf.mxu0 }
 0x2fe   : > { %v3133_v53 = vadd.f32 %v11689_v30, %v3094_v22  ;;  %v3092_v55 = vmul.f32 %v11680_v11, %v3018_v25  ;;  %v3214_v22 = vsel %vm361_vm0, %v11819_v6, 0.0  ;;  %v3213_v25 = vadd.f32 %v3212_v54, %v3211_v24 }
 0x2ff   : > { %v10156_v41 = vpop.f32.mrf.mxu0 }
 0x300   : > { %v3165_v26 = vmul.f32 0.01, %v3133_v53  ;;  %v3131_v61 = vadd.f32 %v11689_v30, %v3092_v55  ;;  %v3095_v1 = vmul.f32 %v10156_v41, %v11680_v11  ;;  %v3216_v55 = vsel %vm361_vm0, %v11834_v39, 0.0 }
 0x301   : > { %v3021_v51 = vpop.f32.mrf.mxu0  ;;  %v3290_v41 = vsel %vm361_vm0, %v11873_v42, -inf }
 0x302   : > { %v11991_v23 = vmax.f32 %v3133_v53, %v3165_v26  ;;  %v3163_v15 = vmul.f32 0.01, %v3131_v61  ;;  %v3134_v46 = vadd.f32 %v11689_v30, %v3095_v1  ;;  %v3093_v33 = vmul.f32 %v11680_v11, %v3021_v51 }
 0x303   : > { %v3293_v53 = vmax.f32 %v3294_v50, %v3297_v57  ;;  %v3215_v26 = vadd.f32 %v3214_v22, %v3213_v25  ;;  %v3224_v50 = vsel %vm361_vm0, %v11887_v48, 0.0  ;;  %v3298_v22 = vsel %vm361_vm0, %v11927_v45, -inf }
 0x304   : > { %3569 = vst.msk [vmem:[%s11712_s28 + $0xb0] sm:$0xff] %vm361_vm0, %v11991_v23  ;;  %v11998_v49 = vmax.f32 %v3131_v61, %v3163_v15  ;;  %v3166_v47 = vmul.f32 0.01, %v3134_v46  ;;  %v3132_v56 = vadd.f32 %v11689_v30, %v3093_v33  ;;  %v3296_v15 = vsel %vm361_vm0, %v11880_v60, -inf }
 0x305   : > { %v3217_v61 = vadd.f32 %v3216_v55, %v3215_v26  ;;  %v3303_v1 = vmax.f32 %v3290_v41, %v3293_v53 }
 0x306   : > { %3567 = vst.msk [vmem:[%s11712_s28 + $0xa0] sm:$0xff] %vm361_vm0, %v11998_v49  ;;  %v12004_v44 = vmax.f32 %v3134_v46, %v3166_v47  ;;  %v3164_v7 = vmul.f32 0.01, %v3132_v56  ;;  %v3218_v47 = vsel %vm361_vm0, %v11811_v58, 0.0 }
 0x307   : > { %v3219_v8 = vadd.f32 %v3218_v47, %v3217_v61  ;;  %v3299_v62 = vmax.f32 %v3296_v15, %v3303_v1  ;;  %v3226_v61 = vsel %vm361_vm0, %v11865_v35, 0.0  ;;  %v3300_v15 = vsel %vm361_vm0, %v11941_v52, -inf }
 0x308   : > { %3570 = vst.msk [vmem:[%s11712_s28 + $0xb8] sm:$0xff] %vm361_vm0, %v12004_v44  ;;  %v12009_v27 = vmax.f32 %v3132_v56, %v3164_v7 }
 0x309   : > { %v3305_v34 = vmax.f32 %v3292_v9, %v3299_v62  ;;  %v3221_v12 = vadd.f32 %v3220_v29, %v3219_v8 }
 0x30a   : > { %3568 = vst.msk [vmem:[%s11712_s28 + $0xa8] sm:$0xff] %vm361_vm0, %v12009_v27 }
 0x30b   : > { %v3223_v54 = vadd.f32 %v3222_v5, %v3221_v12  ;;  %v3308_v5 = vsel %vm361_vm0, %v11979_v36, -inf }
 0x30d   : > { %v3225_v55 = vadd.f32 %v3224_v50, %v3223_v54  ;;  %v3314_v54 = vsel %vm361_vm0, %v11998_v49, -inf }
 0x30f   : > { %v3227_v1 = vadd.f32 %v3226_v61, %v3225_v55  ;;  %v3246_v61 = vsel %vm361_vm0, %v11998_v49, 0.0 }
 0x333   : > { %v10159_v51 = vpop.f32.mrf.mxu0 }
 0x334   : > { %v3098_v46 = vmul.f32 %v10159_v51, %v11680_v11 }
 0x335   : > { %v3034_v33 = vpop.f32.mrf.mxu0 }
 0x336   : > { %v3137_v56 = vadd.f32 %v11689_v30, %v3098_v46  ;;  %v3096_v7 = vmul.f32 %v11680_v11, %v3034_v33  ;;  %v3228_v46 = vsel %vm361_vm0, %v11880_v60, 0.0  ;;  %v3230_v33 = vsel %vm361_vm0, %v11927_v45, 0.0 }
 0x337   : > { %v10160_v3 = vpop.f32.mrf.mxu0  ;;  %v3229_v47 = vadd.f32 %v3228_v46, %v3227_v1 }
 0x338   : > { %v3169_v43 = vmul.f32 0.01, %v3137_v56  ;;  %v3135_v63 = vadd.f32 %v11689_v30, %v3096_v7  ;;  %v3099_v10 = vmul.f32 %v10160_v3, %v11680_v11  ;;  %v3232_v7 = vsel %vm361_vm0, %v11941_v52, 0.0 }
 0x339   : > { %v3037_v16 = vpop.f32.mrf.mxu0  ;;  %v3231_v62 = vadd.f32 %v3230_v33, %v3229_v47  ;;  %v3316_v33 = vsel %vm361_vm0, %v12009_v27, -inf }
 0x33a   : > { %v12059_v32 = vmax.f32 %v3137_v56, %v3169_v43  ;;  %v3167_v18 = vmul.f32 0.01, %v3135_v63  ;;  %v3138_v28 = vadd.f32 %v11689_v30, %v3099_v10  ;;  %v3097_v19 = vmul.f32 %v11680_v11, %v3037_v16 }
 0x33b   : > { %v3301_v11 = vmax.f32 %v3302_v13, %v3305_v34  ;;  %v3310_v56 = vsel %vm361_vm0, %v11961_v4, -inf  ;;  %v3233_v9 = vadd.f32 %v3232_v7, %v3231_v62  ;;  %v3306_v43 = vsel %vm361_vm0, %v11968_v21, -inf }
 0x33c   : > { %3573 = vst.msk [vmem:[%s11712_s28 + $0xd0] sm:$0xff] %vm361_vm0, %v12059_v32  ;;  %v12070_v20 = vmax.f32 %v3135_v63, %v3167_v18  ;;  %v3170_v24 = vmul.f32 0.01, %v3138_v28  ;;  %v3136_v57 = vadd.f32 %v11689_v30, %v3097_v19  ;;  %v3304_v30 = vsel %vm361_vm0, %v11934_v37, -inf }
 0x33d   : > { %v3311_v41 = vmax.f32 %v3298_v22, %v3301_v11  ;;  %v3234_v63 = vsel %vm361_vm0, %v11919_v38, 0.0  ;;  %v3312_v16 = vsel %vm361_vm0, %v11974_v40, -inf  ;;  %v3236_v18 = vsel %vm361_vm0, %v11934_v37, 0.0 }
 0x33e   : > { %3571 = vst.msk [vmem:[%s11712_s28 + $0xc0] sm:$0xff] %vm361_vm0, %v12070_v20  ;;  %v12080_v25 = vmax.f32 %v3138_v28, %v3170_v24  ;;  %v3168_v53 = vmul.f32 0.01, %v3136_v57  ;;  %v3235_v13 = vadd.f32 %v3234_v63, %v3233_v9  ;;  %v3238_v28 = vsel %vm361_vm0, %v11968_v21, 0.0 }
 0x33f   : > { %v3307_v51 = vmax.f32 %v3304_v30, %v3311_v41  ;;  %v3240_v34 = vsel %vm361_vm0, %v11979_v36, 0.0  ;;  %v3318_v24 = vsel %vm361_vm0, %v11991_v23, -inf  ;;  %v3242_v22 = vsel %vm361_vm0, %v11961_v4, 0.0 }
 0x340   : > { %3574 = vst.msk [vmem:[%s11712_s28 + $0xd8] sm:$0xff] %vm361_vm0, %v12080_v25  ;;  %v12085_v26 = vmax.f32 %v3136_v57, %v3168_v53  ;;  %v3237_v29 = vadd.f32 %v3236_v18, %v3235_v13  ;;  %v3320_v41 = vsel %vm361_vm0, %v12004_v44, -inf  ;;  %v3244_v30 = vsel %vm361_vm0, %v11974_v40, 0.0 }
 0x341   : > { %v3313_v8 = vmax.f32 %v3300_v15, %v3307_v51  ;;  %v3248_v15 = vsel %vm361_vm0, %v12009_v27, 0.0  ;;  %v3322_v9 = vsel %vm361_vm0, %v12070_v20, -inf  ;;  %v3254_v63 = vsel %vm361_vm0, %v12070_v20, 0.0 }
 0x342   : > { %3572 = vst.msk [vmem:[%s11712_s28 + $0xc8] sm:$0xff] %vm361_vm0, %v12085_v26  ;;  %v3239_v12 = vadd.f32 %v3238_v28, %v3237_v29  ;;  %v3328_v18 = vsel %vm361_vm0, %v12080_v25, -inf  ;;  %v10494_v28 = vld [vmem:[%s14952_s2] ss:$0 sm:$0xff]  ;;  %v3256_v29 = vsel %vm361_vm0, %v12085_v26, 0.0 }
 0x343   : > { %v3309_v3 = vmax.f32 %v3310_v56, %v3313_v8  ;;  %v3326_v56 = vsel %vm361_vm0, %v12059_v32, -inf  ;;  %v3250_v8 = vsel %vm361_vm0, %v11991_v23, 0.0 }
 0x344   : > { %v3241_v11 = vadd.f32 %v3240_v34, %v3239_v12  ;;  %v10495_v12 = vld [vmem:[%s14953_s3] ss:$0 sm:$0xff] }
 0x345   : > { %v3319_v10 = vmax.f32 %v3306_v43, %v3309_v3  ;;  %v3252_v43 = vsel %vm361_vm0, %v12004_v44, 0.0 }
 0x346   : > { %v3243_v53 = vadd.f32 %v3242_v22, %v3241_v11 }
 0x347   : > { %v3315_v19 = vmax.f32 %v3312_v16, %v3319_v10 }
 0x348   : > { %v3245_v1 = vadd.f32 %v3244_v30, %v3243_v53 }
 0x349   : > { %v3321_v50 = vmax.f32 %v3308_v5, %v3315_v19 }
 0x34a   : > { %v3247_v46 = vadd.f32 %v3246_v61, %v3245_v1 }
 0x34b   : > { %v3317_v57 = vmax.f32 %v3318_v24, %v3321_v50 }
 0x34c   : > { %v3249_v47 = vadd.f32 %v3248_v15, %v3247_v46  ;;  %v3258_v46 = vsel %vm361_vm0, %v12059_v32, 0.0 }
 0x34d   : > { %v3327_v55 = vmax.f32 %v3314_v54, %v3317_v57  ;;  %v3324_v57 = vsel %vm361_vm0, %v12085_v26, -inf }
 0x34e   : > { %v3251_v3 = vadd.f32 %v3250_v8, %v3249_v47 }
 0x34f   : > { %v3323_v51 = vmax.f32 %v3320_v41, %v3327_v55 }
 0x350   : > { %v3253_v16 = vadd.f32 %v3252_v43, %v3251_v3 }
 0x351   : > { %v3329_v7 = vmax.f32 %v3316_v33, %v3323_v51 }
 0x352   : > { %v3255_v34 = vadd.f32 %v3254_v63, %v3253_v16  ;;  %v3260_v63 = vsel %vm361_vm0, %v12080_v25, 0.0 }
 0x353   : > { %v3325_v62 = vmax.f32 %v3326_v56, %v3329_v7 }
 0x354   : > { %v3257_v22 = vadd.f32 %v3256_v29, %v3255_v34 }
 0x355   : > { %v3335_v10 = vmax.f32 %v3322_v9, %v3325_v62 }
 0x356   : > { %v3259_v47 = vadd.f32 %v3258_v46, %v3257_v22 }
 0x357   : > { %v3331_v11 = vmax.f32 %v3328_v18, %v3335_v10 }
 0x358   : > { %v3261_v18 = vadd.f32 %v3260_v63, %v3259_v47  ;;  %v12206_v63 = vld [vmem:[%s14958_s9] sm:$0xff] }
 0x359   : > { %v3337_v33 = vmax.f32 %v3324_v57, %v3331_v11  ;;  %4230 = vrot.lane.b32.xlu1 %v12206_v63, %s14886_s18  ;;  %10219 = vpush %v12206_v63 }
 0x36b   : > { %v10163_v13 = vpop.f32.mrf.mxu0 }
 0x36c   : > { %v3102_v19 = vmul.f32 %v10494_v28, %v10163_v13 }
 0x36d   : > { %v3050_v5 = vpop.f32.mrf.mxu0 }
 0x36e   : > { %v3141_v24 = vadd.f32 %v10495_v12, %v3102_v19  ;;  %v3100_v50 = vmul.f32 %v10494_v28, %v3050_v5 }
 0x36f   : > { %v10164_v54 = vpop.f32.mrf.mxu0 }
 0x370   : > { %v3173_v53 = vmul.f32 0.01, %v3141_v24  ;;  %v3139_v55 = vadd.f32 %v10495_v12, %v3100_v50  ;;  %v3103_v41 = vmul.f32 %v10494_v28, %v10164_v54 }
 0x371   : > { %v3053_v30 = vpop.f32.mrf.mxu0 }
 0x372   : > { %v12156_v61 = vmax.f32 %v3141_v24, %v3173_v53  ;;  %v3171_v1 = vmul.f32 0.01, %v3139_v55  ;;  %v3142_v51 = vadd.f32 %v10495_v12, %v3103_v41  ;;  %v3101_v15 = vmul.f32 %v10494_v28, %v3053_v30 }
 0x374   : > { %v3334_v56 = vsel %vm361_vm0, %v12156_v61, -inf  ;;  %3577 = vst.msk [vmem:[%s11712_s28 + $0xf0] sm:$0xff] %vm361_vm0, %v12156_v61  ;;  %v12165_v7 = vmax.f32 %v3139_v55, %v3171_v1  ;;  %v3174_v8 = vmul.f32 0.01, %v3142_v51  ;;  %v3140_v3 = vadd.f32 %v10495_v12, %v3101_v15 }
 0x375   : > { %v3339_v62 = vmax.f32 %v3334_v56, %v3337_v33  ;;  %v3266_v11 = vsel %vm361_vm0, %v12156_v61, 0.0 }
 0x376   : > { %v3330_v9 = vsel %vm361_vm0, %v12165_v7, -inf  ;;  %3575 = vst.msk [vmem:[%s11712_s28 + $0xe0] sm:$0xff] %vm361_vm0, %v12165_v7  ;;  %v12172_v43 = vmax.f32 %v3142_v51, %v3174_v8  ;;  %v3262_v10 = vsel %vm361_vm0, %v12165_v7, 0.0  ;;  %v3172_v16 = vmul.f32 0.01, %v3140_v3 }
 0x377   : > { %v3333_v13 = vmax.f32 %v3330_v9, %v3339_v62  ;;  %v3263_v5 = vadd.f32 %v3262_v10, %v3261_v18  ;;  %v4238_v10 = vrot.slane %v12206_v63, 1  ;;  %v4300_v18 = vrot.slane %v12206_v63, 3 }
 0x378   : > { %v3336_v28 = vsel %vm361_vm0, %v12172_v43, -inf  ;;  %3578 = vst.msk [vmem:[%s11712_s28 + $0xf8] sm:$0xff] %vm361_vm0, %v12172_v43  ;;  %v12183_v29 = vmax.f32 %v3140_v3, %v3172_v16  ;;  %v3268_v22 = vsel %vm361_vm0, %v12172_v43, 0.0  ;;  %v3424_v3 = vld [vmem:[%s14957_s8] sm:$0xf]  ;;  %v4331_v16 = vrot.slane %v12206_v63, 4 }
 0x379   : > { %v3338_v19 = vmax.f32 %v3336_v28, %v3333_v13  ;;  %v4269_v13 = vrot.slane %v12206_v63, 2  ;;  %4253 = vrot.lane.b32.xlu1 %v4238_v10, %s14886_s18  ;;  %v4393_v28 = vrot.slane %v12206_v63, 6 }
 0x37a   : > { %v3264_v34 = vsel %vm361_vm0, %v12183_v29, 0.0  ;;  %v3332_v12 = vsel %vm361_vm0, %v12183_v29, -inf  ;;  %3576 = vst.msk [vmem:[%s11712_s28 + $0xe8] sm:$0xff] %vm361_vm0, %v12183_v29 }
 0x37b   : > { %v3265_v24 = vadd.f32 %v3264_v34, %v3263_v5  ;;  %v3340_v50 = vmax.f32 %v3338_v19, %v3332_v12  ;;  %4284 = vrot.lane.b32.xlu0 %v4269_v13, %s14886_s18  ;;  %v4362_v19 = vrot.slane %v12206_v63, 5  ;;  %v4426_v5 = vrot.slane %v12206_v63, 7  ;;  %v12239_v34 = vld [vmem:[%s14958_s9 + $0x8] sm:$0xff] }
 0x37c   : > { %v4504_v12 = vrot.slane %v12239_v34, 2 }
 0x37d   : > { %v3267_v57 = vadd.f32 %v3266_v11, %v3265_v24  ;;  %v3341_v54 = vrot.slane %v3340_v50, 4  ;;  %4315 = vrot.lane.b32.xlu1 %v4300_v18, %s14886_s18  ;;  %v4473_v24 = vrot.slane %v12239_v34, 1  ;;  %v4535_v11 = vrot.slane %v12239_v34, 3 }
 0x37f   : > { %v3269_v53 = vadd.f32 %v3268_v22, %v3267_v57  ;;  %v3342_v55 = vmax.f32 %v3340_v50, %v3341_v54  ;;  %4346 = vrot.lane.b32.xlu0 %v4331_v16, %s14886_s18  ;;  %v4566_v50 = vrot.slane %v12239_v34, 4  ;;  %v4630_v57 = vrot.slane %v12239_v34, 6 }
 0x380   : > { %v4597_v54 = vrot.slane %v12239_v34, 5  ;;  %v4647_v22 = vrot.slane %v12239_v34, 7 }
 0x381   : > { %v3270_v41 = vrot.slane %v3269_v53, 4  ;;  %v3343_v30 = vrot.slane %v3342_v55, 2  ;;  %4377 = vrot.lane.b32.xlu1 %v4362_v19, %s14886_s18 }
 0x383   : > { %v3271_v1 = vadd.f32 %v3270_v41, %v3269_v53  ;;  %v3344_v15 = vmax.f32 %v3342_v55, %v3343_v30  ;;  %4408 = vrot.lane.b32.xlu0 %v4393_v28, %s14886_s18  ;;  %v12274_v53 = vld [vmem:[%s14958_s9 + $0x10] sm:$0xff] }
 0x384   : > { %v4739_v55 = vrot.slane %v12274_v53, 2  ;;  %v4708_v41 = vrot.slane %v12274_v53, 1  ;;  %v4801_v30 = vrot.slane %v12274_v53, 4 }
 0x385   : > { %v3272_v51 = vrot.slane %v3271_v1, 2  ;;  %v3345_v47 = vrot.slane %v3344_v15, 1  ;;  %4435 = vrot.lane.b32.xlu1 %v4426_v5, %s14886_s18 }
 0x387   : > { %v3273_v46 = vadd.f32 %v3272_v51, %v3271_v1  ;;  %v3346_v62 = vmax.f32 %v3344_v15, %v3345_v47  ;;  %4457 = vrot.lane.b32.xlu0 %v12239_v34, %s14886_s18  ;;  %v4770_v1 = vrot.slane %v12274_v53, 3  ;;  %v4851_v51 = vrot.slane %v12274_v53, 6 }
 0x388   : > { %v4834_v15 = vrot.slane %v12274_v53, 5 }
 0x389   : > { %v3274_v33 = vrot.slane %v3273_v46, 1  ;;  %4488 = vrot.lane.b32.xlu1 %v4473_v24, %s14886_s18 }
 0x38a   : > { %s12714_s29 = spop %10219 }
 0x38b   : > { %v3275_v56 = vadd.f32 %v3274_v33, %v3273_v46  ;;  %4519 = vrot.lane.b32.xlu0 %v4504_v12, %s14886_s18  ;;  %v14871_v46 = vrot.slane %v12274_v53, 7  ;;  %v12309_v33 = vld [vmem:[%s14958_s9 + $0x18] sm:$0xff] }
 0x38c   : > { %v14869_v47 = vrot.slane %v12309_v33, 2 }
 0x38d   : > { %v3277_v8 = vmul.f32 0.00390625, %v3275_v56  ;;  %4550 = vrot.lane.b32.xlu1 %v4535_v11, %s14886_s18  ;;  %v14870_v56 = vrot.slane %v12309_v33, 1 }
 0x38f   : > { %v3348_v9 = vsel %vm3347_vm2, %v3277_v8, %v3346_v62  ;;  %4581 = vrot.lane.b32.xlu0 %v4566_v50, %s14886_s18  ;;  %v14865_v8 = vrot.slane %v12309_v33, 4  ;;  %v14868_v62 = vrot.slane %v12309_v33, 3  ;;  %vm6610_vm2 = vcmask 191616  }
 0x390   : > { %10168 = vmatmul.mubr.msk.f32.vlgmr.msra.gmra.mxu0 %vm361_vm0, %v3348_v9  ;;  %v14867_v9 = vrot.slane %v12309_v33, 5 }
 0x391   : > { %10171 = vmatpush3.msk.msra.mxu0 %vm3428_vm4, %v3424_v3  ;;  %10172 = vmatprep.mubr.msk.f32.mxu0 %vm10518_vm1, %v14863_v0  ;;  %v14866_v3 = vrot.slane %v12309_v33, 6  ;;  %v14872_v0 = vrot.slane %v12309_v33, 7  ;;  %vm6353_vm1 = vcmask 126016  }
 0x392   : > { %4612 = vrot.lane.b32.xlu1 %v4597_v54, %s14886_s18 }
 0x393   : > { %4639 = vrot.lane.b32.xlu0 %v4630_v57, %s14886_s18 }
 0x396   : > { %4662 = vrot.lane.b32.xlu1 %v4647_v22, %s14886_s18 }
 0x397   : > { %4692 = vrot.lane.b32.xlu0 %v12274_v53, %s14886_s18 }
 0x39a   : > { %4723 = vrot.lane.b32.xlu1 %v4708_v41, %s14886_s18 }
 0x39b   : > { %4754 = vrot.lane.b32.xlu0 %v4739_v55, %s14886_s18 }
 0x39e   : > { %4785 = vrot.lane.b32.xlu1 %v4770_v1, %s14886_s18 }
 0x39f   : > { %4816 = vrot.lane.b32.xlu0 %v4801_v30, %s14886_s18 }
 0x3a2   : > { %4843 = vrot.lane.b32.xlu1 %v4834_v15, %s14886_s18 }
 0x3a3   : > { %4866 = vrot.lane.b32.xlu0 %v4851_v51, %s14886_s18 }
 0x3a6   : > { %4897 = vrot.lane.b32.xlu1 %v14871_v46, %s14886_s18 }
 0x3a7   : > { %4927 = vrot.lane.b32.xlu0 %v12309_v33, %s14886_s18 }
 0x3aa   : > { %4958 = vrot.lane.b32.xlu1 %v14870_v56, %s14886_s18 }
 0x3ab   : > { %4989 = vrot.lane.b32.xlu0 %v14869_v47, %s14886_s18 }
 0x3ae   : > { %5020 = vrot.lane.b32.xlu1 %v14868_v62, %s14886_s18 }
 0x3af   : > { %5047 = vrot.lane.b32.xlu0 %v14865_v8, %s14886_s18  ;;  %v12344_v8 = vld [vmem:[%s14958_s9 + $0x20] sm:$0xff] }
 0x3b0   : > { %v14874_v56 = vrot.slane %v12344_v8, 3  ;;  %v5209_v46 = vrot.slane %v12344_v8, 2 }
 0x3b2   : > { %5070 = vrot.lane.b32.xlu1 %v14867_v9, %s14886_s18 }
 0x3b3   : > { %5101 = vrot.lane.b32.xlu0 %v14866_v3, %s14886_s18  ;;  %v14873_v3 = vrot.slane %v12344_v8, 1 }
 0x3b6   : > { %5132 = vrot.lane.b32.xlu1 %v14872_v0, %s14886_s18  ;;  %v14875_v0 = vrot.slane %v12344_v8, 5 }
 0x3b7   : > { %5162 = vrot.lane.b32.xlu0 %v12344_v8, %s14886_s18 }
 0x3ba   : > { %5193 = vrot.lane.b32.xlu1 %v14873_v3, %s14886_s18  ;;  %v14876_v3 = vrot.slane %v12344_v8, 4 }
 0x3bb   : > { %5224 = vrot.lane.b32.xlu0 %v5209_v46, %s14886_s18 }
 0x3be   : > { %5251 = vrot.lane.b32.xlu1 %v14874_v56, %s14886_s18 }
 0x3bf   : > { %5274 = vrot.lane.b32.xlu0 %v14876_v3, %s14886_s18 }
 0x3c2   : > { %5305 = vrot.lane.b32.xlu1 %v14875_v0, %s14886_s18 }
 0x450   : > { %v3419_v9 = vpop.f32.mrf.mxu0 }
 0x451   : > { %v3423_v62 = vmax.f32 %v3419_v9, 0.0  ;;  %v4285_v9 = vpop.permute.xlu0 %4284 }
 0x452   : > { %v10169_v47 = vpop.f32.mrf.mxu0 }
 0x453   : > { %10173 = vmatmul.mubr.msk.f32.vlgmr.msra.gmra.mxu0 %vm436_vm3, %v3423_v62  ;;  %v14877_v47 = vrot.slane %v12344_v8, 6  ;;  %v4231_v62 = vpop.permute.xlu1 %4230  ;;  %vm3579_vm3 = vcmask 179200  }
 0x454   : > { %10221 = vpush %v4231_v62 }
 0x455   : > { %5336 = vrot.lane.b32.xlu0 %v14877_v47, %s14886_s18  ;;  %10223 = vpush %v4238_v10  ;;  %v4347_v0 = vpop.permute.xlu0 %4346 }
 0x457   : > { %v4254_v56 = vpop.permute.xlu1 %4253 }
 0x458   : > { %10225 = vpush %v4254_v56  ;;  %v14960_v56 = vrot.slane %v12309_v33, 1 }
 0x459   : > { %10227 = vpush %v4269_v13  ;;  %v4409_v62 = vpop.permute.xlu0 %4408 }
 0x45a   : > { %10229 = vpush %v4285_v9 }
 0x45b   : > { %v4316_v3 = vpop.permute.xlu1 %4315  ;;  %10231 = vpush %v4300_v18 }
 0x45c   : > { %10233 = vpush %v4316_v3 }
 0x45d   : > { %10235 = vpush %v4331_v16  ;;  %v4458_v10 = vpop.permute.xlu0 %4457 }
 0x45e   : > { %10237 = vpush %v4347_v0 }
 0x45f   : > { %v4378_v47 = vpop.permute.xlu1 %4377  ;;  %10239 = vpush %v4362_v19 }
 0x460   : > { %10241 = vpush %v4378_v47  ;;  %v14962_v47 = vrot.slane %v12309_v33, 3 }
 0x461   : > { %10243 = vpush %v4393_v28  ;;  %v4520_v0 = vpop.permute.xlu0 %4519 }
 0x462   : > { %10245 = vpush %v4409_v62 }
 0x463   : > { %v4436_v13 = vpop.permute.xlu1 %4435  ;;  %10247 = vpush %v4426_v5 }
 0x464   : > { %10249 = vpush %v4436_v13  ;;  %v14965_v13 = vrot.slane %v12309_v33, 6 }
 0x465   : > { %10251 = vpush %v12239_v34  ;;  %v4582_v18 = vpop.permute.xlu0 %4581 }
 0x466   : > { %10253 = vpush %v4458_v10  ;;  %v14964_v10 = vrot.slane %v12309_v33, 5 }
 0x467   : > { %v4489_v16 = vpop.permute.xlu1 %4488  ;;  %10255 = vpush %v4473_v24 }
 0x468   : > { %10257 = vpush %v4489_v16 }
 0x469   : > { %10259 = vpush %v4504_v12  ;;  %v4640_v63 = vpop.permute.xlu0 %4639 }
 0x46a   : > { %10261 = vpush %v4520_v0 }
 0x46b   : > { %v4551_v28 = vpop.permute.xlu1 %4550  ;;  %10263 = vpush %v4535_v11 }
 0x46c   : > { %10265 = vpush %v4551_v28 }
 0x46d   : > { %10267 = vpush %v4566_v50  ;;  %v4693_v5 = vpop.permute.xlu0 %4692 }
 0x46e   : > { %10269 = vpush %v4582_v18  ;;  %v14966_v18 = vrot.slane %v12309_v33, 7 }
 0x46f   : > { %v4613_v19 = vpop.permute.xlu1 %4612  ;;  %10271 = vpush %v4597_v54 }
 0x470   : > { %10273 = vpush %v4613_v19 }
 0x471   : > { %10275 = vpush %v4630_v57  ;;  %v4755_v24 = vpop.permute.xlu0 %4754 }
 0x472   : > { %10277 = vpush %v4640_v63  ;;  %v14967_v63 = vrot.slane %v12344_v8, 1 }
 0x473   : > { %v4663_v12 = vpop.permute.xlu1 %4662  ;;  %10279 = vpush %v4647_v22 }
 0x474   : > { %10281 = vpush %v4663_v12  ;;  %v14968_v12 = vrot.slane %v12344_v8, 3 }
 0x475   : > { %10283 = vpush %v12274_v53  ;;  %v4817_v11 = vpop.permute.xlu0 %4816 }
 0x476   : > { %10285 = vpush %v4693_v5 }
 0x477   : > { %v4724_v50 = vpop.permute.xlu1 %4723  ;;  %10287 = vpush %v4708_v41  ;;  %v14959_v41 = vrot.slane %v12274_v53, 7  ;;  %v14963_v53 = vrot.slane %v12309_v33, 4 }
 0x478   : > { %10289 = vpush %v4724_v50 }
 0x479   : > { %10291 = vpush %v4739_v55  ;;  %v4867_v34 = vpop.permute.xlu0 %4866 }
 0x47a   : > { %10293 = vpush %v4755_v24  ;;  %v14969_v24 = vrot.slane %v12344_v8, 4 }
 0x47b   : > { %v4786_v57 = vpop.permute.xlu1 %4785  ;;  %10295 = vpush %v4770_v1 }
 0x47c   : > { %10297 = vpush %v4786_v57 }
 0x47d   : > { %10299 = vpush %v4801_v30  ;;  %v4928_v22 = vpop.permute.xlu0 %4927 }
 0x47e   : > { %10301 = vpush %v4817_v11  ;;  %v14970_v11 = vrot.slane %v12344_v8, 5 }
 0x47f   : > { %v4844_v54 = vpop.permute.xlu1 %4843  ;;  %10303 = vpush %v4834_v15  ;;  %v14961_v15 = vrot.slane %v12309_v33, 2 }
 0x480   : > { %10305 = vpush %v4844_v54 }
 0x481   : > { %10307 = vpush %v4851_v51  ;;  %v4990_v30 = vpop.permute.xlu0 %4989 }
 0x482   : > { %10309 = vpush %v4867_v34 }
 0x483   : > { %v4898_v55 = vpop.permute.xlu1 %4897  ;;  %10311 = vpush %v14959_v41 }
 0x484   : > { %10313 = vpush %v4898_v55 }
 0x485   : > { %10315 = vpush %v12309_v33  ;;  %v5048_v51 = vpop.permute.xlu0 %5047  ;;  %s12716_s11 = spop %10221 }
 0x486   : > { %10317 = vpush %v4928_v22  ;;  %s12722_s12 = spop %10223 }
 0x487   : > { %v4959_v1 = vpop.permute.xlu1 %4958  ;;  %10319 = vpush %v14960_v56  ;;  %15007 = sst [smem:[#allocation42_spill]] %s12722_s12 }
 0x488   : > { %10321 = vpush %v4959_v1 }
 0x489   : > { %10323 = vpush %v14961_v15  ;;  %v5102_v9 = vpop.permute.xlu0 %5101  ;;  %v3511_v15 = vlaneseq  ;;  %s12724_s16 = spop %10225 }
 0x48a   : > { %10325 = vpush %v4990_v30  ;;  %s12728_s17 = spop %10227 }
 0x48b   : > { %v5021_v3 = vpop.permute.xlu1 %5020  ;;  %10327 = vpush %v14962_v47  ;;  %15008 = sst [smem:[#allocation43_spill]] %s12728_s17  ;;  %s12730_s19 = spop %10229 }
 0x48c   : > { %10329 = vpush %v5021_v3  ;;  %s12734_s26 = spop %10231 }
 0x48d   : > { %10331 = vpush %v14963_v53  ;;  %v5163_v0 = vpop.permute.xlu0 %5162  ;;  %15009 = sst [smem:[#allocation44_spill]] %s12734_s26  ;;  %s12736_s27 = spop %10233 }
 0x48e   : > { %10333 = vpush %v5048_v51  ;;  %v12449_v51 = vshrl.u32 %v3511_v15, 7  ;;  %s12738_s14 = spop %10235 }
 0x48f   : > { %v5071_v62 = vpop.permute.xlu1 %5070  ;;  %10335 = vpush %v14964_v10  ;;  %15010 = sst [smem:[#allocation45_spill]] %s12738_s14  ;;  %s12740_s15 = spop %10237 }
 0x490   : > { %10337 = vpush %v5071_v62  ;;  %14972 = vst [vmem:[#allocation8_spill] sm:$0xff] %v12449_v51  ;;  %v12452_v3 = vsub.s32 0, %v12449_v51  ;;  %s12742_s21 = spop %10239 }
 0x491   : > { %10339 = vpush %v14965_v13  ;;  %v5225_v19 = vpop.permute.xlu0 %5224  ;;  %15011 = sst [smem:[#allocation46_spill]] %s12742_s21  ;;  %s12744_s23 = spop %10241 }
 0x492   : > { %10341 = vpush %v5102_v9  ;;  %14973 = vst [vmem:[#allocation9_spill] sm:$0xff] %v12452_v3  ;;  %s12746_s25 = spop %10243 }
 0x493   : > { %v5133_v16 = vpop.permute.xlu1 %5132  ;;  %10343 = vpush %v14966_v18  ;;  %15012 = sst [smem:[#allocation47_spill]] %s12746_s25  ;;  %s12748_s30 = spop %10245 }
 0x494   : > { %10345 = vpush %v5133_v16  ;;  %s12750_s24 = spop %10247 }
 0x495   : > { %10347 = vpush %v12344_v8  ;;  %v5275_v33 = vpop.permute.xlu0 %5274  ;;  %s12752_s22 = spop %10249 }
 0x496   : > { %10349 = vpush %v5163_v0  ;;  %s12754_s20 = spop %10251 }
 0x497   : > { %v5194_v28 = vpop.permute.xlu1 %5193  ;;  %10351 = vpush %v14967_v63  ;;  %15013 = sst [smem:[#allocation48_spill]] %s12754_s20  ;;  %s12756_s18 = spop %10253 }
 0x498   : > { %10353 = vpush %v5194_v28  ;;  %s12758_s0 = spop %10255 }
 0x499   : > { %10355 = vpush %v5209_v46  ;;  %v14971_v46 = vrot.slane %v12344_v8, 6  ;;  %15014 = sst [smem:[#allocation49_spill]] %s12758_s0  ;;  %s12761_s1 = spop %10257 }
 0x49a   : > { %10357 = vpush %v5225_v19  ;;  %s12763_s2 = spop %10259 }
 0x49b   : > { %v5252_v5 = vpop.permute.xlu1 %5251  ;;  %10359 = vpush %v14968_v12  ;;  %15015 = sst [smem:[#allocation50_spill]] %s12763_s2  ;;  %s12765_s3 = spop %10261 }
 0x49c   : > { %10361 = vpush %v5252_v5  ;;  %s12767_s7 = spop %10263 }
 0x49d   : > { %10363 = vpush %v14969_v24  ;;  %15016 = sst [smem:[#allocation51_spill]] %s12767_s7  ;;  %s12769_s8 = spop %10265 }
 0x49e   : > { %10365 = vpush %v5275_v33  ;;  %s12777_s10 = spop %10267 }
 0x49f   : > { %v5306_v50 = vpop.permute.xlu1 %5305  ;;  %10367 = vpush %v14970_v11  ;;  %15017 = sst [smem:[#allocation52_spill]] %s12777_s10  ;;  %s12779_s13 = spop %10269 }
 0x4a0   : > { %10369 = vpush %v5306_v50  ;;  %s12782_s28 = spop %10271 }
 0x4a1   : > { %10371 = vpush %v14971_v46  ;;  %15018 = sst [smem:[#allocation53_spill]] %s12782_s28  ;;  %s12789_s6 = spop %10273 }
 0x4a2   : > { %s12798_s5 = spop %10275 }
 0x4a3   : > { %s12806_s4 = spop %10277 }
 0x4a4   : > { %s12811_s9 = spop %10279 }
 0x4a5   : > { %15019 = sst [smem:[#allocation54_spill]] %s12811_s9  ;;  %s12817_s28 = spop %10281 }
 0x4a6   : > { %s12823_s9 = spop %10283 }
 0x4a7   : > { %15020 = sst [smem:[#allocation55_spill]] %s12823_s9  ;;  %s12828_s10 = spop %10285 }
 0x4a8   : > { %s12831_s7 = spop %10287 }
 0x4a9   : > { %15021 = sst [smem:[#allocation56_spill]] %s12831_s7  ;;  %s12833_s2 = spop %10289 }
 0x4aa   : > { %s12837_s9 = spop %10291 }
 0x4ab   : > { %15022 = sst [smem:[#allocation57_spill]] %s12837_s9  ;;  %s12839_s0 = spop %10293 }
 0x4ac   : > { %s12845_s20 = spop %10295 }
 0x4ad   : > { %15023 = sst [smem:[#allocation58_spill]] %s12845_s20  ;;  %s12857_s9 = spop %10297 }
 0x4ae   : > { %s12859_s7 = spop %10299 }
 0x4af   : > { %15024 = sst [smem:[#allocation59_spill]] %s12859_s7  ;;  %s12861_s25 = spop %10301 }
 0x4b0   : > { %s12864_s20 = spop %10303 }
 0x4b1   : > { %s12908_s7 = spop %10305 }
 0x4b2   : > { %s12913_s21 = spop %10307 }
 0x4b3   : > { %15028 = sst [smem:[#allocation61_spill]] %s12913_s21  ;;  %s12917_s14 = spop %10309 }
 0x4b4   : > { %15029 = sst [smem:[#allocation62_spill]] %s12917_s14  ;;  %s12919_s26 = spop %10311 }
 0x4b5   : > { %15030 = sst [smem:[#allocation63_spill]] %s12919_s26  ;;  %s12921_s17 = spop %10313 }
 0x4b6   : > { %15031 = sst [smem:[#allocation64_spill]] %s12921_s17  ;;  %s12923_s12 = spop %10315 }
 0x4b7   : > { %15032 = sst [smem:[#allocation65_spill]] %s12923_s12  ;;  %s12929_s21 = spop %10317 }
 0x4b8   : > { %s12941_s26 = spop %10319 }
 0x4b9   : > { %s12943_s17 = spop %10321 }
 0x4ba   : > { %s12945_s12 = spop %10323 }
 0x4bb   : > { %s12947_s14 = spop %10325 }
 0x4c7   : > { %v5337_v57 = vpop.permute.xlu0 %5336 }
 0x4c8   : > { %10373 = vpush %v5337_v57 }
 0x513   : > { %v3498_v34 = vpop.f32.mrf.mxu0 }
 0x514   : > { %v3503_v54 = vrot.slane %v3498_v34, 1 }
 0x515   : > { %v10174_v22 = vpop.f32.mrf.mxu0 }
 0x516   : > { %v3505_v55 = vadd.f32 %v3503_v54, %v3498_v34 }
 0x518   : > { %v3506_v41 = vsub.f32 0.0, %v3505_v55 }
 0x51a   : > { %v3507_v30 = vmul.f32 1.442695, %v3506_v41 }
 0x51c   : > { %10482 = vpow2.f32 %v3507_v30 }
 0x529   : > { %v10483_v1 = vpop.eup %10482 }
 0x52a   : > { %v3509_v56 = vadd.f32 1.0, %v10483_v1 }
 0x52c   : > { %10484 = vrcp.f32 %v3509_v56  ;;  %v14893_v56 = vrot.slane %v12344_v8, 7 }
 0x52e   : > { %10375 = vpush %v14893_v56 }
 0x539   : > { %v10485_v47 = vpop.eup %10484 }
 0x53a   : > { %v12455_v53 = vrot.slane %v10485_v47, %v12452_v3 }
 0x53c   : > { %v12459_v9 = vmul.f32 %v12455_v53, %v11744_v2  ;;  %v12463_v62 = vmul.f32 %v12455_v53, %v11727_v14  ;;  %v12471_v0 = vmul.f32 %v12455_v53, %v11819_v6  ;;  %v12475_v16 = vmul.f32 %v12455_v53, %v11716_v59 }
 0x53d   : > { %v12483_v18 = vmul.f32 %v12455_v53, %v11811_v58  ;;  %v12487_v6 = vmul.f32 %v12455_v53, %v11736_v17  ;;  %v12495_v63 = vmul.f32 %v12455_v53, %v11873_v42  ;;  %v12499_v58 = vmul.f32 %v12455_v53, %v11834_v39 }
 0x53e   : > { %14974 = vst [vmem:[#allocation10_spill] sm:$0xff] %v12459_v9  ;;  %14975 = vst [vmem:[#allocation11_spill] sm:$0xff] %v12463_v62  ;;  %v3590_v10 = vsel %vm361_vm0, %v12459_v9, 0.0  ;;  %v3587_v13 = vsel %vm361_vm0, %v12463_v62, 0.0  ;;  %v3599_v14 = vsel %vm361_vm0, %v12471_v0, 0.0  ;;  %v3593_v2 = vsel %vm361_vm0, %v12475_v16, 0.0 }
 0x53f   : > { %14976 = vst [vmem:[#allocation12_spill] sm:$0xff] %v12471_v0  ;;  %14977 = vst [vmem:[#allocation13_spill] sm:$0xff] %v12475_v16  ;;  %3591 = vadd.xlane.f32.xlu1 %v3590_v10  ;;  %3588 = vadd.xlane.f32.xlu0 %v3587_v13  ;;  %v3605_v59 = vsel %vm361_vm0, %v12483_v18, 0.0  ;;  %v3596_v28 = vsel %vm361_vm0, %v12487_v6, 0.0  ;;  %v3611_v17 = vsel %vm361_vm0, %v12495_v63, 0.0  ;;  %v3602_v19 = vsel %vm361_vm0, %v12499_v58, 0.0 }
 0x540   : > { %14978 = vst [vmem:[#allocation14_spill] sm:$0xff] %v12483_v18  ;;  %14979 = vst [vmem:[#allocation15_spill] sm:$0xff] %v12487_v6  ;;  %v12507_v5 = vmul.f32 %v12455_v53, %v11865_v35  ;;  %v12511_v42 = vmul.f32 %v12455_v53, %v11826_v31  ;;  %v12519_v33 = vmul.f32 %v12455_v53, %v11927_v45  ;;  %v15000_v10 = vmov 0.0  }
 0x541   : > { %14980 = vst [vmem:[#allocation16_spill] sm:$0xff] %v12495_v63  ;;  %14981 = vst [vmem:[#allocation17_spill] sm:$0xff] %v12499_v58  ;;  %v12523_v35 = vmul.f32 %v12455_v53, %v11887_v48  ;;  %v12531_v50 = vmul.f32 %v12455_v53, %v11919_v38  ;;  %v12535_v45 = vmul.f32 %v12455_v53, %v11880_v60 }
 0x542   : > { %14982 = vst [vmem:[#allocation18_spill] sm:$0xff] %v12507_v5  ;;  %14983 = vst [vmem:[#allocation19_spill] sm:$0xff] %v12511_v42  ;;  %v3617_v39 = vsel %vm361_vm0, %v12507_v5, 0.0  ;;  %v3608_v12 = vsel %vm361_vm0, %v12511_v42, 0.0  ;;  %v3623_v31 = vsel %vm361_vm0, %v12519_v33, 0.0  ;;  %v12543_v57 = vmul.f32 %v12455_v53, %v11968_v21 }
 0x543   : > { %3600 = vadd.xlane.f32.xlu1 %v3599_v14  ;;  %3594 = vadd.xlane.f32.xlu0 %v3593_v2  ;;  %14984 = vst [vmem:[#allocation20_spill] sm:$0xff] %v12519_v33  ;;  %14985 = vst [vmem:[#allocation21_spill] sm:$0xff] %v12523_v35  ;;  %v3614_v24 = vsel %vm361_vm0, %v12523_v35, 0.0  ;;  %v3629_v48 = vsel %vm361_vm0, %v12531_v50, 0.0  ;;  %v3620_v11 = vsel %vm361_vm0, %v12535_v45, 0.0  ;;  %v12547_v38 = vmul.f32 %v12455_v53, %v11941_v52 }
 0x544   : > { %14986 = vst [vmem:[#allocation22_spill] sm:$0xff] %v12531_v50  ;;  %14987 = vst [vmem:[#allocation23_spill] sm:$0xff] %v12535_v45  ;;  %v3635_v60 = vsel %vm361_vm0, %v12543_v57, 0.0  ;;  %v12555_v34 = vmul.f32 %v12455_v53, %v11961_v4  ;;  %v12559_v21 = vmul.f32 %v12455_v53, %v11934_v37  ;;  %v12567_v22 = vmul.f32 %v12455_v53, %v11998_v49 }
 0x545   : > { %14988 = vst [vmem:[#allocation24_spill] sm:$0xff] %v12543_v57  ;;  %14989 = vst [vmem:[#allocation25_spill] sm:$0xff] %v12547_v38  ;;  %v3626_v46 = vsel %vm361_vm0, %v12547_v38, 0.0  ;;  %v12571_v4 = vmul.f32 %v12455_v53, %v11979_v36  ;;  %v12579_v41 = vmul.f32 %v12455_v53, %v11991_v23  ;;  %v12583_v49 = vmul.f32 %v12455_v53, %v11974_v40 }
 0x546   : > { %14990 = vst [vmem:[#allocation26_spill] sm:$0xff] %v12555_v34  ;;  %14991 = vst [vmem:[#allocation27_spill] sm:$0xff] %v12559_v21  ;;  %v3641_v52 = vsel %vm361_vm0, %v12555_v34, 0.0  ;;  %v3632_v54 = vsel %vm361_vm0, %v12559_v21, 0.0  ;;  %v3647_v37 = vsel %vm361_vm0, %v12567_v22, 0.0  ;;  %v12587_v36 = vmul.f32 %v12455_v53, %v12070_v20 }
 0x547   : > { %3606 = vadd.xlane.f32.xlu1 %v3605_v59  ;;  %3597 = vadd.xlane.f32.xlu0 %v3596_v28  ;;  %14992 = vst [vmem:[#allocation28_spill] sm:$0xff] %v12567_v22  ;;  %14993 = vst [vmem:[#allocation29_spill] sm:$0xff] %v12571_v4  ;;  %v3638_v55 = vsel %vm361_vm0, %v12571_v4, 0.0  ;;  %v3653_v30 = vsel %vm361_vm0, %v12579_v41, 0.0  ;;  %v3644_v1 = vsel %vm361_vm0, %v12583_v49, 0.0  ;;  %v12595_v23 = vmul.f32 %v12455_v53, %v12009_v27 }
 0x548   : > { %14994 = vst [vmem:[#allocation30_spill] sm:$0xff] %v12579_v41  ;;  %14995 = vst [vmem:[#allocation31_spill] sm:$0xff] %v12583_v49  ;;  %v3659_v40 = vsel %vm361_vm0, %v12587_v36, 0.0  ;;  %v12606_v47 = vmul.f32 %v12455_v53, %v12059_v32  ;;  %v12610_v27 = vmul.f32 %v12455_v53, %v12004_v44  ;;  %v12622_v44 = vmul.f32 %v12455_v53, %v12165_v7 }
 0x549   : > { %14996 = vst [vmem:[#allocation32_spill] sm:$0xff] %v12587_v36  ;;  %14997 = vst [vmem:[#allocation33_spill] sm:$0xff] %v12595_v23  ;;  %v3650_v20 = vsel %vm361_vm0, %v12595_v23, 0.0  ;;  %v12626_v14 = vmul.f32 %v12455_v53, %v12085_v26  ;;  %v12634_v28 = vmul.f32 %v12455_v53, %v12156_v61  ;;  %v12638_v7 = vmul.f32 %v12455_v53, %v12080_v25 }
 0x54a   : > { %14998 = vst [vmem:[#allocation34_spill] sm:$0xff] %v12606_v47  ;;  %14999 = vst [vmem:[#allocation35_spill] sm:$0xff] %v12610_v27  ;;  %v3665_v13 = vsel %vm361_vm0, %v12606_v47, 0.0  ;;  %v3656_v32 = vsel %vm361_vm0, %v12610_v27, 0.0  ;;  %v3671_v2 = vsel %vm361_vm0, %v12622_v44, 0.0  ;;  %v3923_v61 = vsel %vm361_vm0, %v12463_v62, -inf }
 0x54b   : > { %3612 = vadd.xlane.f32.xlu1 %v3611_v17  ;;  %3603 = vadd.xlane.f32.xlu0 %v3602_v19  ;;  %3580 = vst.msk [vmem:[#allocation4] sm:$0xff] %vm3579_vm3, %v15000_v10  ;;  %3581 = vst.msk [vmem:[#allocation4 + $0x8] sm:$0xff] %vm3579_vm3, %v15000_v10  ;;  %v3662_v59 = vsel %vm361_vm0, %v12626_v14, 0.0  ;;  %v3677_v26 = vsel %vm361_vm0, %v12634_v28, 0.0  ;;  %v3668_v17 = vsel %vm361_vm0, %v12638_v7, 0.0  ;;  %v12646_v19 = vmul.f32 %v12455_v53, %v12183_v29 }
 0x54c   : > { %3584 = vst.msk [vmem:[#allocation5] sm:$0xff] %vm3579_vm3, %v15000_v10  ;;  %3585 = vst.msk [vmem:[#allocation5 + $0x8] sm:$0xff] %vm3579_vm3, %v15000_v10  ;;  %vm7381_vm3 = vcmask 388416  }
 0x54d   : > { %15001 = vst [vmem:[#allocation36_spill] sm:$0xff] %v12622_v44  ;;  %15002 = vst [vmem:[#allocation37_spill] sm:$0xff] %v12626_v14  ;;  %v3674_v25 = vsel %vm361_vm0, %v12646_v19, 0.0 }
 0x54e   : > { %15003 = vst [vmem:[#allocation38_spill] sm:$0xff] %v12634_v28  ;;  %15004 = vst [vmem:[#allocation39_spill] sm:$0xff] %v12638_v7 }
 0x54f   : > { %3618 = vadd.xlane.f32.xlu1 %v3617_v39  ;;  %3609 = vadd.xlane.f32.xlu0 %v3608_v12  ;;  %15005 = vst [vmem:[#allocation40_spill] sm:$0xff] %v12646_v19  ;;  %v12654_v39 = vmul.f32 %v12455_v53, %v12172_v43  ;;  %v3929_v12 = vsel %vm361_vm0, %v12475_v16, -inf  ;;  %v3941_v43 = vsel %vm361_vm0, %v12483_v18, -inf  ;;  %v3932_v53 = vsel %vm361_vm0, %v12487_v6, -inf  ;;  %3583 = vst.msk [vmem:[#allocation4 + $0x10] sm:$0x3f] %vm3582_vm5, %v15000_v10 }
 0x550   : > { %3586 = vst.msk [vmem:[#allocation5 + $0x10] sm:$0x3f] %vm3582_vm5, %v15000_v10  ;;  %v3983_v10 = vsel %vm361_vm0, %v12567_v22, -inf  ;;  %vm7638_vm5 = vcmask 454016  }
 0x551   : > { %15006 = vst [vmem:[#allocation41_spill] sm:$0xff] %v12654_v39  ;;  %v3680_v29 = vsel %vm361_vm0, %v12654_v39, 0.0 }
 0x553   : > { %3624 = vadd.xlane.f32.xlu1 %v3623_v31  ;;  %3615 = vadd.xlane.f32.xlu0 %v3614_v24  ;;  %v3935_v31 = vsel %vm361_vm0, %v12471_v0, -inf  ;;  %v3926_v24 = vsel %vm361_vm0, %v12459_v9, -inf }
 0x557   : > { %3630 = vadd.xlane.f32.xlu1 %v3629_v48  ;;  %3621 = vadd.xlane.f32.xlu0 %v3620_v11  ;;  %v3947_v48 = vsel %vm361_vm0, %v12495_v63, -inf  ;;  %v3938_v11 = vsel %vm361_vm0, %v12499_v58, -inf }
 0x55b   : > { %3636 = vadd.xlane.f32.xlu1 %v3635_v60  ;;  %3627 = vadd.xlane.f32.xlu0 %v3626_v46  ;;  %v3953_v60 = vsel %vm361_vm0, %v12507_v5, -inf  ;;  %v3944_v46 = vsel %vm361_vm0, %v12511_v42, -inf }
 0x55f   : > { %3642 = vadd.xlane.f32.xlu1 %v3641_v52  ;;  %3633 = vadd.xlane.f32.xlu0 %v3632_v54  ;;  %v3959_v52 = vsel %vm361_vm0, %v12519_v33, -inf  ;;  %v3950_v54 = vsel %vm361_vm0, %v12523_v35, -inf }
 0x563   : > { %3648 = vadd.xlane.f32.xlu1 %v3647_v37  ;;  %3639 = vadd.xlane.f32.xlu0 %v3638_v55  ;;  %v3965_v37 = vsel %vm361_vm0, %v12531_v50, -inf  ;;  %v3956_v55 = vsel %vm361_vm0, %v12535_v45, -inf }
 0x567   : > { %3654 = vadd.xlane.f32.xlu1 %v3653_v30  ;;  %3645 = vadd.xlane.f32.xlu0 %v3644_v1  ;;  %v3971_v30 = vsel %vm361_vm0, %v12543_v57, -inf  ;;  %v3962_v1 = vsel %vm361_vm0, %v12547_v38, -inf  ;;  %v14919_v57 = vstv %s12806_s4 }
 0x56b   : > { %3660 = vadd.xlane.f32.xlu1 %v3659_v40  ;;  %3651 = vadd.xlane.f32.xlu0 %v3650_v20  ;;  %v3977_v40 = vsel %vm361_vm0, %v12555_v34, -inf  ;;  %v3968_v20 = vsel %vm361_vm0, %v12559_v21, -inf }
 0x56f   : > { %3666 = vadd.xlane.f32.xlu1 %v3665_v13  ;;  %3657 = vadd.xlane.f32.xlu0 %v3656_v32  ;;  %v3974_v13 = vsel %vm361_vm0, %v12571_v4, -inf  ;;  %v3989_v32 = vsel %vm361_vm0, %v12579_v41, -inf  ;;  %v14920_v4 = vstv %s12908_s7 }
 0x573   : > { %3672 = vadd.xlane.f32.xlu1 %v3671_v2  ;;  %3663 = vadd.xlane.f32.xlu0 %v3662_v59  ;;  %v3980_v2 = vsel %vm361_vm0, %v12583_v49, -inf  ;;  %v3995_v59 = vsel %vm361_vm0, %v12587_v36, -inf }
 0x577   : > { %3678 = vadd.xlane.f32.xlu1 %v3677_v26  ;;  %3669 = vadd.xlane.f32.xlu0 %v3668_v17  ;;  %v3986_v26 = vsel %vm361_vm0, %v12595_v23, -inf  ;;  %v4001_v17 = vsel %vm361_vm0, %v12606_v47, -inf }
 0x57b   : > { %3924 = vmax.xlane.f32.xlu1 %v3923_v61  ;;  %3675 = vadd.xlane.f32.xlu0 %v3674_v25  ;;  %v3992_v61 = vsel %vm361_vm0, %v12610_v27, -inf  ;;  %v4007_v25 = vsel %vm361_vm0, %v12622_v44, -inf }
 0x57f   : > { %3930 = vmax.xlane.f32.xlu1 %v3929_v12  ;;  %3681 = vadd.xlane.f32.xlu0 %v3680_v29  ;;  %v3998_v12 = vsel %vm361_vm0, %v12626_v14, -inf  ;;  %v4013_v29 = vsel %vm361_vm0, %v12634_v28, -inf }
 0x583   : > { %3936 = vmax.xlane.f32.xlu1 %v3935_v31  ;;  %3927 = vmax.xlane.f32.xlu0 %v3926_v24  ;;  %v4004_v31 = vsel %vm361_vm0, %v12638_v7, -inf  ;;  %v4010_v24 = vsel %vm361_vm0, %v12646_v19, -inf }
 0x587   : > { %3942 = vmax.xlane.f32.xlu1 %v3941_v43  ;;  %3933 = vmax.xlane.f32.xlu0 %v3932_v53  ;;  %v4016_v43 = vsel %vm361_vm0, %v12654_v39, -inf }
 0x58b   : > { %3948 = vmax.xlane.f32.xlu1 %v3947_v48  ;;  %3939 = vmax.xlane.f32.xlu0 %v3938_v11 }
 0x58f   : > { %3954 = vmax.xlane.f32.xlu1 %v3953_v60  ;;  %3945 = vmax.xlane.f32.xlu0 %v3944_v46 }
 0x593   : > { %3960 = vmax.xlane.f32.xlu1 %v3959_v52  ;;  %3951 = vmax.xlane.f32.xlu0 %v3950_v54 }
 0x597   : > { %3966 = vmax.xlane.f32.xlu1 %v3965_v37  ;;  %3957 = vmax.xlane.f32.xlu0 %v3956_v55  ;;  %v3749_v55 = vand.u32 127, %v3511_v15 }
 0x59b   : > { %3972 = vmax.xlane.f32.xlu1 %v3971_v30  ;;  %3963 = vmax.xlane.f32.xlu0 %v3962_v1 }
 0x59f   : > { %3978 = vmax.xlane.f32.xlu1 %v3977_v40  ;;  %3969 = vmax.xlane.f32.xlu0 %v3968_v20  ;;  %v3755_v40 = vadd.s32 4294967285, %v3749_v55  ;;  %v3750_v20 = vadd.s32 4294967293, %v3749_v55 }
 0x5a3   : > { %3984 = vmax.xlane.f32.xlu1 %v3983_v10  ;;  %3975 = vmax.xlane.f32.xlu0 %v3974_v13 }
 0x5a7   : > { %3990 = vmax.xlane.f32.xlu1 %v3989_v32  ;;  %3981 = vmax.xlane.f32.xlu0 %v3980_v2  ;;  %v12772_v32 = vsub.s32 %v3755_v40, %v12449_v51 }
 0x5ab   : > { %3996 = vmax.xlane.f32.xlu1 %v3995_v59  ;;  %3987 = vmax.xlane.f32.xlu0 %v3986_v26  ;;  %v12775_v59 = vsub.s32 %v3750_v20, %v12449_v51 }
 0x5af   : > { %4002 = vmax.xlane.f32.xlu1 %v4001_v17  ;;  %3993 = vmax.xlane.f32.xlu0 %v3992_v61 }
 0x5b3   : > { %4008 = vmax.xlane.f32.xlu1 %v4007_v25  ;;  %3999 = vmax.xlane.f32.xlu0 %v3998_v12 }
 0x5b7   : > { %4014 = vmax.xlane.f32.xlu1 %v4013_v29  ;;  %4005 = vmax.xlane.f32.xlu0 %v4004_v31 }
 0x5bb   : > { %4011 = vmax.xlane.f32.xlu0 %v4010_v24 }
 0x5bf   : > { %4017 = vmax.xlane.f32.xlu0 %v4016_v43 }
 0x5c8   : > { %v3592_v53 = vpop.xlane.xlu1 %3591  ;;  %v3589_v48 = vpop.xlane.xlu0 %3588 }
 0x5c9   : > { %v3685_v2 = vmul.f32 0.125, %v3592_v53  ;;  %v3684_v26 = vmul.f32 0.125, %v3589_v48 }
 0x5cb   : > { %v3759_v48 = vrot.slane %v3685_v2, %v12772_v32 }
 0x5cc   : > { %v3601_v11 = vpop.xlane.xlu1 %3600  ;;  %v3595_v60 = vpop.xlane.xlu0 %3594 }
 0x5cd   : > { %v3686_v61 = vmul.f32 0.125, %v3595_v60  ;;  %v3688_v12 = vmul.f32 0.125, %v3601_v11 }
 0x5cf   : > { %v3765_v11 = vrot.slane %v3686_v61, %v12775_v59 }
 0x5d0   : > { %v3607_v46 = vpop.xlane.xlu1 %3606  ;;  %v3598_v52 = vpop.xlane.xlu0 %3597 }
 0x5d1   : > { %v3687_v15 = vmul.f32 0.125, %v3598_v52  ;;  %v3690_v43 = vmul.f32 0.125, %v3607_v46  ;;  %v3774_v46 = vrot.slane %v3688_v12, %v12775_v59 }
 0x5d3   : > { %v3769_v52 = vrot.slane %v3687_v15, %v12772_v32 }
 0x5d4   : > { %v3613_v54 = vpop.xlane.xlu1 %3612  ;;  %v3604_v37 = vpop.xlane.xlu0 %3603 }
 0x5d5   : > { %v3689_v17 = vmul.f32 0.125, %v3604_v37  ;;  %v3754_v37 = vrot.slane %v3684_v26, %v12775_v59  ;;  %v3692_v55 = vmul.f32 0.125, %v3613_v54  ;;  %v3783_v54 = vrot.slane %v3690_v43, %v12775_v59 }
 0x5d6   : > { %v3770_v26 = vsel %vm3760_vm6, %v3769_v52, %v3765_v11 }
 0x5d7   : > { %v3778_v60 = vrot.slane %v3689_v17, %v12772_v32  ;;  %v3761_v61 = vsel %vm3760_vm6, %v3759_v48, %v3754_v37 }
 0x5d8   : > { %v3619_v30 = vpop.xlane.xlu1 %3618  ;;  %v3610_v1 = vpop.xlane.xlu0 %3609  ;;  %v3898_v52 = vsel %vm3897_vm7, %v3770_v26, %v3761_v61 }
 0x5d9   : > { %v3691_v25 = vmul.f32 0.125, %v3610_v1  ;;  %v3694_v1 = vmul.f32 0.125, %v3619_v30 }
 0x5db   : > { %v3787_v40 = vrot.slane %v3691_v25, %v12772_v32  ;;  %v3792_v25 = vrot.slane %v3692_v55, %v12775_v59  ;;  %v3801_v12 = vrot.slane %v3694_v1, %v12775_v59 }
 0x5dc   : > { %v3625_v10 = vpop.xlane.xlu1 %3624  ;;  %v3616_v13 = vpop.xlane.xlu0 %3615 }
 0x5dd   : > { %v3693_v29 = vmul.f32 0.125, %v3616_v13  ;;  %v3696_v20 = vmul.f32 0.125, %v3625_v10  ;;  %v3779_v10 = vsel %vm3760_vm6, %v3778_v60, %v3774_v46 }
 0x5de   : > { %v3900_v60 = vsel %vm3899_vm8, %v3779_v10, %v3898_v52 }
 0x5df   : > { %v3796_v13 = vrot.slane %v3693_v29, %v12772_v32  ;;  %v3788_v29 = vsel %vm3760_vm6, %v3787_v40, %v3783_v54 }
 0x5e0   : > { %v3631_v31 = vpop.xlane.xlu1 %3630  ;;  %v3622_v24 = vpop.xlane.xlu0 %3621  ;;  %v3902_v1 = vsel %vm3901_vm9, %v3788_v29, %v3900_v60  ;;  %v14894_v29 = vstv %s12750_s24 }
 0x5e1   : > { %v3695_v53 = vmul.f32 0.125, %v3622_v24  ;;  %v3698_v24 = vmul.f32 0.125, %v3631_v31  ;;  %v3797_v48 = vsel %vm3760_vm6, %v3796_v13, %v3792_v25 }
 0x5e2   : > { %v3904_v46 = vsel %vm3903_vm10, %v3797_v48, %v3902_v1 }
 0x5e3   : > { %v3805_v17 = vrot.slane %v3695_v53, %v12772_v32  ;;  %v3810_v53 = vrot.slane %v3696_v20, %v12775_v59  ;;  %v3819_v20 = vrot.slane %v3698_v24, %v12775_v59 }
 0x5e4   : > { %v12793_v15 = vpop.xlane.xlu1 %3636  ;;  %v3628_v2 = vpop.xlane.xlu0 %3627 }
 0x5e5   : > { %v3697_v30 = vmul.f32 0.125, %v3628_v2  ;;  %v3806_v31 = vsel %vm3760_vm6, %v3805_v17, %v3801_v12  ;;  %v14895_v12 = vstv %s12714_s29 }
 0x5e6   : > { %v3906_v2 = vsel %vm3905_vm11, %v3806_v31, %v3904_v46 }
 0x5e7   : > { %v3814_v43 = vrot.slane %v3697_v30, %v12772_v32 }
 0x5e8   : > { %v3643_v37 = vpop.xlane.xlu1 %3642  ;;  %v3634_v55 = vpop.xlane.xlu0 %3633 }
 0x5e9   : > { %v3699_v11 = vmul.f32 0.125, %v3634_v55  ;;  %v3815_v40 = vsel %vm3760_vm6, %v3814_v43, %v3810_v53 }
 0x5ea   : > { %v3908_v17 = vsel %vm3907_vm12, %v3815_v40, %v3906_v2 }
 0x5eb   : > { %v3823_v13 = vrot.slane %v3699_v11, %v12772_v32 }
 0x5ec   : > { %v3649_v54 = vpop.xlane.xlu1 %3648  ;;  %v3640_v26 = vpop.xlane.xlu0 %3639 }
 0x5ed   : > { %v3824_v30 = vsel %vm3760_vm6, %v3823_v13, %v3819_v20  ;;  %v3701_v20 = vmul.f32 0.125, %v3640_v26  ;;  %v15025_v26 = vstv %s12798_s5 }
 0x5ee   : > { %v3910_v61 = vsel %vm3909_vm13, %v3824_v30, %v3908_v17  ;;  %v3702_v30 = vmul.f32 0.125, %v3643_v37 }
 0x5ef   : > { %3921 = vst.msk [vmem:[#allocation4 + $0x3] sm:$0xff] %vm3920_vm15, %v3910_v61  ;;  %v3832_v17 = vrot.slane %v3701_v20, %v12772_v32 }
 0x5f0   : > { %v3655_v25 = vpop.xlane.xlu1 %3654  ;;  %v3646_v10 = vpop.xlane.xlu0 %3645 }
 0x5f1   : > { %v3703_v40 = vmul.f32 0.125, %v3646_v10  ;;  %v3706_v46 = vmul.f32 0.125, %v3655_v25 }
 0x5f3   : > { %v3841_v44 = vrot.slane %v3703_v40, %v12772_v32  ;;  %v3855_v20 = vrot.slane %v3706_v46, %v12775_v59 }
 0x5f4   : > { %v3661_v24 = vpop.xlane.xlu1 %3660  ;;  %v3652_v43 = vpop.xlane.xlu0 %3651 }
 0x5f5   : > { %v3705_v13 = vmul.f32 0.125, %v3652_v43  ;;  %v3708_v47 = vmul.f32 0.125, %v3661_v24 }
 0x5f6   : > { %v12841_v52 = vld [vmem:[#allocation4] sm:$0xff] }
 0x5f7   : > { %v12843_v53 = vld [vmem:[#allocation4 + $0x1] sm:$0xff]  ;;  %v12850_v48 = vmul.f32 %v14895_v12, %v12841_v52  ;;  %v3704_v12 = vmul.f32 0.125, %v3649_v54  ;;  %v3850_v37 = vrot.slane %v3705_v13, %v12772_v32 }
 0x5f8   : > { %v12855_v55 = vmul.f32 %v14894_v29, %v12843_v53  ;;  %v3667_v60 = vpop.xlane.xlu1 %3666  ;;  %v3658_v31 = vpop.xlane.xlu0 %3657  ;;  %v12866_v2 = vld [vmem:[#allocation4 + $0x2] sm:$0xff]  ;;  %v3700_v29 = vmul.f32 0.125, %v12793_v15  ;;  %v3837_v15 = vrot.slane %v3702_v30, %v12775_v59 }
 0x5f9   : > { %v3707_v61 = vmul.f32 0.125, %v3658_v31  ;;  %v4832_v56 = vld [vmem:[#allocation4 + $0x3] sm:$0xff]  ;;  %v12874_v43 = vmul.f32 %v15025_v26, %v12866_v2  ;;  %v15026_v31 = vstv %s12864_s20  ;;  %v3710_v54 = vmul.f32 0.125, %v3667_v60 }
 0x5fa   : > { %v12880_v7 = vmul.f32 %v15026_v31, %v4832_v56  ;;  %v3846_v40 = vrot.slane %v3704_v12, %v12775_v59  ;;  %v3842_v56 = vsel %vm3760_vm6, %v3841_v44, %v3837_v15 }
 0x5fb   : > { %v3859_v25 = vrot.slane %v3707_v61, %v12772_v32  ;;  %v3864_v61 = vrot.slane %v3708_v47, %v12775_v59  ;;  %v3873_v12 = vrot.slane %v3710_v54, %v12775_v59 }
 0x5fc   : > { %v3673_v11 = vpop.xlane.xlu1 %3672  ;;  %v3664_v1 = vpop.xlane.xlu0 %3663  ;;  %15027 = vst [vmem:[#allocation60_spill] sm:$0xff] %v12880_v7 }
 0x5fd   : > { %v3709_v28 = vmul.f32 0.125, %v3664_v1  ;;  %v3828_v1 = vrot.slane %v3700_v29, %v12775_v59  ;;  %v3851_v29 = vsel %vm3760_vm6, %v3850_v37, %v3846_v40 }
 0x5ff   : > { %v3868_v26 = vrot.slane %v3709_v28, %v12772_v32  ;;  %v3833_v60 = vsel %vm3760_vm6, %v3832_v17, %v3828_v1  ;;  %v3860_v28 = vsel %vm3760_vm6, %v3859_v25, %v3855_v20 }
 0x600   : > { %v3679_v39 = vpop.xlane.xlu1 %3678  ;;  %v3670_v10 = vpop.xlane.xlu0 %3669  ;;  %v3911_v46 = vsel %vm3897_vm7, %v3842_v56, %v3833_v60 }
 0x601   : > { %v3711_v19 = vmul.f32 0.125, %v3670_v10  ;;  %v3712_v10 = vmul.f32 0.125, %v3673_v11  ;;  %v3714_v11 = vmul.f32 0.125, %v3679_v39  ;;  %v3912_v17 = vsel %vm3899_vm8, %v3851_v29, %v3911_v46 }
 0x602   : > { %v3913_v54 = vsel %vm3901_vm9, %v3860_v28, %v3912_v17 }
 0x603   : > { %v3877_v13 = vrot.slane %v3711_v19, %v12772_v32  ;;  %v3882_v44 = vrot.slane %v3712_v10, %v12775_v59  ;;  %v3869_v19 = vsel %vm3760_vm6, %v3868_v26, %v3864_v61  ;;  %v3891_v1 = vrot.slane %v3714_v11, %v12775_v59 }
 0x604   : > { %v12887_v36 = vpop.xlane.xlu1 %3924  ;;  %v3676_v24 = vpop.xlane.xlu0 %3675  ;;  %v3914_v39 = vsel %vm3903_vm10, %v3869_v19, %v3913_v54 }
 0x605   : > { %v3713_v30 = vmul.f32 0.125, %v3676_v24  ;;  %v3878_v47 = vsel %vm3760_vm6, %v3877_v13, %v3873_v12 }
 0x606   : > { %v3915_v10 = vsel %vm3905_vm11, %v3878_v47, %v3914_v39 }
 0x607   : > { %v3886_v31 = vrot.slane %v3713_v30, %v12772_v32 }
 0x608   : > { %v3931_v15 = vpop.xlane.xlu1 %3930  ;;  %v3682_v24 = vpop.xlane.xlu0 %3681 }
 0x609   : > { %v3715_v37 = vmul.f32 0.125, %v3682_v24  ;;  %v3887_v25 = vsel %vm3760_vm6, %v3886_v31, %v3882_v44  ;;  %v15033_v31 = vstv %s12714_s29  ;;  %v15034_v44 = vstv %s12750_s24  ;;  %s12950_s29 = spop %10327 }
 0x60a   : > { %v3916_v56 = vsel %vm3907_vm12, %v3887_v25, %v3915_v10  ;;  %15035 = sst [smem:[#allocation66_spill]] %s12950_s29  ;;  %v4063_v25 = vrot.slane %v3931_v15, %v12775_v59  ;;  %s12955_s24 = spop %10329 }
 0x60b   : > { %v3895_v40 = vrot.slane %v3715_v37, %v12772_v32  ;;  %s10332_s29 = spop %10331 }
 0x60c   : > { %v3937_v26 = vpop.xlane.xlu1 %3936  ;;  %v3928_v20 = vpop.xlane.xlu0 %3927 }
 0x60d   : > { %v3896_v13 = vsel %vm3760_vm6, %v3895_v40, %v3891_v1  ;;  %v4058_v39 = vrot.slane %v3928_v20, %v12772_v32 }
 0x60e   : > { %v3917_v30 = vsel %vm3909_vm13, %v3896_v13, %v3916_v56  ;;  %v4054_v13 = vrot.slane %v12887_v36, %v12775_v59 }
 0x60f   : > { %3922 = vst.msk [vmem:[#allocation4 + $0xb] sm:$0xff] %vm3920_vm15, %v3917_v30  ;;  %v4072_v30 = vrot.slane %v3937_v26, %v12775_v59 }
 0x610   : > { %v3943_v60 = vpop.xlane.xlu1 %3942  ;;  %v3934_v61 = vpop.xlane.xlu0 %3933  ;;  %v4059_v36 = vsel %vm3760_vm6, %v4058_v39, %v4054_v13 }
 0x611   : > { %v4067_v54 = vrot.slane %v3934_v61, %v12772_v32  ;;  %v4081_v15 = vrot.slane %v3943_v60, %v12775_v59 }
 0x613   : > { %v4068_v61 = vsel %vm3760_vm6, %v4067_v54, %v4063_v25 }
 0x614   : > { %v3949_v29 = vpop.xlane.xlu1 %3948  ;;  %v3940_v12 = vpop.xlane.xlu0 %3939 }
 0x615   : > { %v4076_v1 = vrot.slane %v3940_v12, %v12772_v32  ;;  %v4090_v26 = vrot.slane %v3949_v29, %v12775_v59 }
 0x616   : > { %v12925_v28 = vld [vmem:[#allocation4 + $0x8] sm:$0xff] }
 0x617   : > { %v12927_v11 = vld [vmem:[#allocation4 + $0x9] sm:$0xff]  ;;  %v12934_v46 = vmul.f32 %v15033_v31, %v12925_v28  ;;  %v4077_v54 = vsel %vm3760_vm6, %v4076_v1, %v4072_v30  ;;  %v15036_v1 = vstv %s12798_s5  ;;  %v15037_v30 = vstv %s12864_s20  ;;  %s15041_s5 = smov 127   ;;  %s10520_s20 = smov 126  }
 0x618   : > { %v12939_v19 = vmul.f32 %v15034_v44, %v12927_v11  ;;  %v3955_v24 = vpop.xlane.xlu1 %3954  ;;  %v3946_v17 = vpop.xlane.xlu0 %3945  ;;  %v12965_v12 = vld [vmem:[#allocation4 + $0xa] sm:$0xff] }
 0x619   : > { %v4085_v56 = vrot.slane %v3946_v17, %v12772_v32  ;;  %v12967_v44 = vld [vmem:[#allocation4 + $0xb] sm:$0xff]  ;;  %v5040_v17 = vstv %s10332_s29  ;;  %v4099_v41 = vrot.slane %v3955_v24, %v12775_v59  ;;  %v12987_v13 = vmul.f32 %v15036_v1, %v12965_v12 }
 0x61a   : > { %v12974_v14 = vld [vmem:[#allocation4 + $0xc] sm:$0xff]  ;;  %v12976_v60 = vld [vmem:[#allocation4 + $0x4] sm:$0xff]  ;;  %v12992_v23 = vmul.f32 %v15037_v30, %v12967_v44 }
 0x61b   : > { %v4086_v27 = vsel %vm3760_vm6, %v4085_v56, %v4081_v15  ;;  %v12997_v56 = vmul.f32 %v5040_v17, %v12974_v14  ;;  %v13000_v15 = vmul.f32 %v5040_v17, %v12976_v60 }
 0x61c   : > { %v3961_v47 = vpop.xlane.xlu1 %3960  ;;  %v3952_v37 = vpop.xlane.xlu0 %3951  ;;  %15038 = vst [vmem:[#allocation67_spill] sm:$0xff] %v12992_v23 }
 0x61d   : > { %v4094_v31 = vrot.slane %v3952_v37, %v12772_v32  ;;  %v4108_v39 = vrot.slane %v3961_v47, %v12775_v59  ;;  %15039 = vst [vmem:[#allocation68_spill] sm:$0xff] %v12997_v56  ;;  %15040 = vst [vmem:[#allocation69_spill] sm:$0xff] %v13000_v15 }
 0x61f   : > { %v4095_v29 = vsel %vm3760_vm6, %v4094_v31, %v4090_v26 }
 0x620   : > { %v3967_v40 = vpop.xlane.xlu1 %3966  ;;  %v3958_v10 = vpop.xlane.xlu0 %3957 }
 0x621   : > { %v4103_v20 = vrot.slane %v3958_v10, %v12772_v32  ;;  %v4195_v10 = vsel %vm3897_vm7, %v4068_v61, %v4059_v36 }
 0x622   : > { %v4196_v61 = vsel %vm3899_vm8, %v4077_v54, %v4195_v10  ;;  %v4117_v54 = vrot.slane %v3967_v40, %v12775_v59 }
 0x623   : > { %v4104_v24 = vsel %vm3760_vm6, %v4103_v20, %v4099_v41  ;;  %v4197_v47 = vsel %vm3901_vm9, %v4086_v27, %v4196_v61  ;;  %v4438_v61 = vstv %s12752_s22  ;;  %s10521_s22 = smov 125  }
 0x624   : > { %v12972_v25 = vpop.xlane.xlu1 %3972  ;;  %v3964_v37 = vpop.xlane.xlu0 %3963 }
 0x625   : > { %v4112_v22 = vrot.slane %v3964_v37, %v12772_v32  ;;  %v4198_v37 = vsel %vm3903_vm10, %v4095_v29, %v4197_v47  ;;  %v4233_v29 = vstv %s12716_s11  ;;  %s10334_s11 = spop %10333 }
 0x626   : > { %v4199_v20 = vsel %vm3905_vm11, %v4104_v24, %v4198_v37 }
 0x627   : > { %v4113_v31 = vsel %vm3760_vm6, %v4112_v22, %v4108_v39 }
 0x628   : > { %v3979_v36 = vpop.xlane.xlu1 %3978  ;;  %v3970_v26 = vpop.xlane.xlu0 %3969  ;;  %v4200_v17 = vsel %vm3907_vm12, %v4113_v31, %v4199_v20 }
 0x629   : > { %v4121_v41 = vrot.slane %v3970_v26, %v12772_v32  ;;  %v4256_v26 = vstv %s12724_s16  ;;  %v4135_v38 = vrot.slane %v3979_v36, %v12775_v59  ;;  %s10522_s16 = smov 124  }
 0x62b   : > { %v4122_v10 = vsel %vm3760_vm6, %v4121_v41, %v4117_v54 }
 0x62c   : > { %v4201_v27 = vsel %vm3909_vm13, %v4122_v10, %v4200_v17  ;;  %v3985_v1 = vpop.xlane.xlu1 %3984  ;;  %v3976_v22 = vpop.xlane.xlu0 %3975 }
 0x62d   : > { %4211 = vst.msk [vmem:[#allocation5 + $0x3] sm:$0xff] %vm3920_vm15, %v4201_v27  ;;  %v4130_v5 = vrot.slane %v3976_v22, %v12772_v32  ;;  %v4144_v63 = vrot.slane %v3985_v1, %v12775_v59 }
 0x630   : > { %v3991_v39 = vpop.xlane.xlu1 %3990  ;;  %v3982_v30 = vpop.xlane.xlu0 %3981 }
 0x631   : > { %v4153_v35 = vrot.slane %v3991_v39, %v12775_v59 }
 0x634   : > { %v13014_v40 = vld [vmem:[#allocation5] sm:$0xff]  ;;  %v3997_v24 = vpop.xlane.xlu1 %3996  ;;  %v3988_v31 = vpop.xlane.xlu0 %3987 }
 0x635   : > { %v13016_v47 = vld [vmem:[#allocation5 + $0x1] sm:$0xff]  ;;  %v4234_v37 = vmul.f32 %v4233_v29, %v13014_v40  ;;  %v4257_v41 = vmul.f32 %v4256_v26, %v13014_v40  ;;  %v4162_v18 = vrot.slane %v3997_v24, %v12775_v59 }
 0x636   : > { %v13021_v54 = vmul.f32 %v4438_v61, %v13016_v47  ;;  %v13028_v27 = vld [vmem:[#allocation5 + $0x2] sm:$0xff] }
 0x637   : > { %v13025_v20 = vadd.f32 %v4234_v37, %v12850_v48  ;;  %4261 = vrot.lane.b32.xlu0 %v4257_v41, %s15041_s5  ;;  %v13030_v34 = vld [vmem:[#allocation5 + $0x3] sm:$0xff]  ;;  %v13037_v50 = vmul.f32 %v14919_v57, %v13028_v27  ;;  %v4139_v48 = vrot.slane %v3982_v30, %v12772_v32  ;;  %v4148_v37 = vrot.slane %v3988_v31, %v12772_v32 }
 0x638   : > { %v3994_v17 = vpop.xlane.xlu0 %3993  ;;  %v4003_v10 = vpop.xlane.xlu1 %4002  ;;  %v13042_v21 = vmul.f32 %v14920_v4, %v13030_v34  ;;  %v4126_v4 = vrot.slane %v12972_v25, %v12775_v59 }
 0x639   : > { %v4157_v45 = vrot.slane %v3994_v17, %v12772_v32  ;;  %v4140_v30 = vsel %vm3760_vm6, %v4139_v48, %v4135_v38  ;;  %v4149_v36 = vsel %vm3760_vm6, %v4148_v37, %v4144_v63  ;;  %v4171_v1 = vrot.slane %v4003_v10, %v12775_v59 }
 0x63a   : > { %15042 = vst [vmem:[#allocation70_spill] sm:$0xff] %v13042_v21  ;;  %v4131_v17 = vsel %vm3760_vm6, %v4130_v5, %v4126_v4 }
 0x63b   : > { %v4202_v25 = vsel %vm3897_vm7, %v4140_v30, %v4131_v17  ;;  %v4287_v30 = vstv %s12730_s19  ;;  %s10523_s19 = smov 123   ;;  %vm8152_vm7 = vcmask 585216  }
 0x63c   : > { %v4000_v49 = vpop.xlane.xlu0 %3999  ;;  %v4009_v41 = vpop.xlane.xlu1 %4008  ;;  %v4203_v24 = vsel %vm3899_vm8, %v4149_v36, %v4202_v25  ;;  %v4288_v25 = vmul.f32 %v4287_v30, %v13014_v40  ;;  %vm8333_vm8 = vcmask 588800  }
 0x63d   : > { %v4166_v57 = vrot.slane %v4000_v49, %v12772_v32  ;;  %v4158_v49 = vsel %vm3760_vm6, %v4157_v45, %v4153_v35  ;;  %v4180_v39 = vrot.slane %v4009_v41, %v12775_v59 }
 0x63e   : > { %v4204_v5 = vsel %vm3901_vm9, %v4158_v49, %v4203_v24  ;;  %v4380_v24 = vstv %s12744_s23 }
 0x640   : > { %v4006_v33 = vpop.xlane.xlu0 %4005  ;;  %v4015_v38 = vpop.xlane.xlu1 %4014 }
 0x641   : > { %v4175_v31 = vrot.slane %v4006_v33, %v12772_v32  ;;  %v4167_v33 = vsel %vm3760_vm6, %v4166_v57, %v4162_v18  ;;  %v4189_v45 = vrot.slane %v4015_v38, %v12775_v59 }
 0x642   : > { %v4205_v35 = vsel %vm3903_vm10, %v4167_v33, %v4204_v5  ;;  %v4381_v5 = vmul.f32 %v4380_v24, %v13014_v40 }
 0x643   : > { %v4176_v63 = vsel %vm3760_vm6, %v4175_v31, %v4171_v1  ;;  %v4318_v1 = vstv %s12736_s27 }
 0x644   : > { %v4012_v22 = vpop.xlane.xlu0 %4011  ;;  %v4206_v37 = vsel %vm3905_vm11, %v4176_v63, %v4205_v35  ;;  %v4319_v49 = vmul.f32 %v4318_v1, %v13014_v40  ;;  %v5050_v63 = vstv %s10334_s11 }
 0x645   : > { %v4184_v42 = vrot.slane %v4012_v22, %v12772_v32 }
 0x647   : > { %v4185_v4 = vsel %vm3760_vm6, %v4184_v42, %v4180_v39 }
 0x648   : > { %v4018_v10 = vpop.xlane.xlu0 %4017  ;;  %v4207_v18 = vsel %vm3907_vm12, %v4185_v4, %v4206_v37 }
 0x649   : > { %v4193_v48 = vrot.slane %v4018_v10, %v12772_v32  ;;  %v15043_v10 = vstv %s12806_s4  ;;  %s10524_s4 = smov 122  }
 0x64b   : > { %v4194_v57 = vsel %vm3760_vm6, %v4193_v48, %v4189_v45  ;;  %v15044_v45 = vstv %s12908_s7  ;;  %vm7895_vm6 = vcmask 519616  }
 0x64c   : > { %v4208_v41 = vsel %vm3909_vm13, %v4194_v57, %v4207_v18  ;;  %v4411_v57 = vstv %s12748_s30 }
 0x64d   : > { %4212 = vst.msk [vmem:[#allocation5 + $0xb] sm:$0xff] %vm3920_vm15, %v4208_v41 }
 0x654   : > { %v4229_v42 = vld [vmem:[#allocation5 + $0x8] sm:$0xff] }
 0x655   : > { %v13078_v31 = vld [vmem:[#allocation5 + $0x9] sm:$0xff]  ;;  %v4235_v36 = vmul.f32 %v4233_v29, %v4229_v42  ;;  %v4289_v32 = vmul.f32 %v4287_v30, %v4229_v42  ;;  %v4258_v22 = vmul.f32 %v4256_v26, %v4229_v42  ;;  %v4349_v29 = vstv %s12740_s15 }
 0x656   : > { %v13081_v59 = vmul.f32 %v4438_v61, %v13078_v31  ;;  %v4320_v61 = vmul.f32 %v4318_v1, %v4229_v42  ;;  %v13094_v26 = vld [vmem:[#allocation5 + $0xa] sm:$0xff]  ;;  %v4350_v4 = vmul.f32 %v4349_v29, %v13014_v40  ;;  %v4413_v41 = vmul.f32 %v4411_v57, %v4229_v42 }
 0x657   : > { %v13084_v17 = vadd.f32 %v4235_v36, %v12934_v46  ;;  %4294 = vrot.lane.b32.xlu0 %v4289_v32, %s10520_s20  ;;  %4263 = vrot.lane.b32.xlu1 %v4258_v22, %s15041_s5  ;;  %v4351_v46 = vmul.f32 %v4349_v29, %v4229_v42  ;;  %v13096_v39 = vld [vmem:[#allocation5 + $0xb] sm:$0xff]  ;;  %v13110_v35 = vmul.f32 %v15043_v10, %v13094_v26  ;;  %v4460_v36 = vstv %s12756_s18 }
 0x658   : > { %v13098_v33 = vld [vmem:[#allocation5 + $0x4] sm:$0xff]  ;;  %v13100_v38 = vld [vmem:[#allocation5 + $0xc] sm:$0xff]  ;;  %v13115_v48 = vmul.f32 %v15044_v45, %v13096_v39  ;;  %v4382_v30 = vmul.f32 %v4380_v24, %v4229_v42  ;;  %v4462_v32 = vmul.f32 %v4460_v36, %v13078_v31  ;;  %v4412_v22 = vmul.f32 %v4411_v57, %v13014_v40 }
 0x659   : > { %v13118_v37 = vmul.f32 %v5050_v63, %v13100_v38  ;;  %v13121_v18 = vmul.f32 %v5050_v63, %v13098_v33  ;;  %v4491_v1 = vstv %s12761_s1  ;;  %v4461_v42 = vmul.f32 %v4460_v36, %v13016_v47  ;;  %s15048_s1 = sld [smem:[#allocation62_spill]] }
 0x65a   : > { %15045 = vst [vmem:[#allocation71_spill] sm:$0xff] %v13115_v48  ;;  %v4493_v40 = vmul.f32 %v4491_v1, %v13078_v31  ;;  %v4584_v63 = vstv %s12779_s13  ;;  %v4615_v10 = vstv %s12789_s6 }
 0x65b   : > { %4323 = vrot.lane.b32.xlu0 %v4319_v49, %s10521_s22  ;;  %4292 = vrot.lane.b32.xlu1 %v4288_v25, %s10520_s20  ;;  %15046 = vst [vmem:[#allocation72_spill] sm:$0xff] %v13118_v37  ;;  %15047 = vst [vmem:[#allocation73_spill] sm:$0xff] %v13121_v18  ;;  %v4492_v49 = vmul.f32 %v4491_v1, %v13016_v47  ;;  %v4522_v25 = vstv %s12765_s3  ;;  %v4616_v45 = vmul.f32 %v4615_v10, %v13016_v47  ;;  %s15049_s3 = sld [smem:[#allocation64_spill]] }
 0x65c   : > { %v4524_v29 = vmul.f32 %v4522_v25, %v13078_v31  ;;  %v4523_v24 = vmul.f32 %v4522_v25, %v13016_v47  ;;  %v4585_v57 = vmul.f32 %v4584_v63, %v13016_v47  ;;  %v4617_v36 = vmul.f32 %v4615_v10, %v13078_v31 }
 0x65d   : > { %v4726_v1 = vstv %s12833_s2 }
 0x65f   : > { %4356 = vrot.lane.b32.xlu0 %v4351_v46, %s10522_s16  ;;  %4325 = vrot.lane.b32.xlu1 %v4320_v61, %s10521_s22  ;;  %v4553_v46 = vstv %s12769_s8 }
 0x660   : > { %v4554_v61 = vmul.f32 %v4553_v46, %v13016_v47 }
 0x663   : > { %4385 = vrot.lane.b32.xlu0 %v4381_v5, %s10523_s19  ;;  %4354 = vrot.lane.b32.xlu1 %v4350_v4, %s10522_s16  ;;  %v4586_v5 = vmul.f32 %v4584_v63, %v13078_v31  ;;  %v4555_v4 = vmul.f32 %v4553_v46, %v13078_v31 }
 0x667   : > { %4418 = vrot.lane.b32.xlu0 %v4413_v41, %s10524_s4  ;;  %4387 = vrot.lane.b32.xlu1 %v4382_v30, %s10523_s19  ;;  %v4665_v41 = vstv %s12817_s28 }
 0x668   : > { %v4666_v30 = vmul.f32 %v4665_v41, %v13028_v27  ;;  %v4667_v47 = vmul.f32 %v4665_v41, %v13094_v26 }
 0x66b   : > { %4467 = vrot.lane.b32.xlu0 %v4462_v32, %s15041_s5  ;;  %4416 = vrot.lane.b32.xlu1 %v4412_v22, %s10524_s4  ;;  %v4695_v32 = vstv %s12828_s10 }
 0x66c   : > { %v4697_v22 = vmul.f32 %v4695_v32, %v13094_v26  ;;  %v4696_v31 = vmul.f32 %v4695_v32, %v13028_v27  ;;  %v4961_v32 = vstv %s12943_s17 }
 0x66f   : > { %4496 = vrot.lane.b32.xlu0 %v4492_v49, %s10520_s20  ;;  %4465 = vrot.lane.b32.xlu1 %v4461_v42, %s15041_s5  ;;  %v4727_v49 = vmul.f32 %v4726_v1, %v13028_v27  ;;  %v4757_v42 = vstv %s12839_s0  ;;  %s13211_s0 = spop %10335 }
 0x670   : > { %v4759_v25 = vmul.f32 %v4757_v42, %v13094_v26  ;;  %s10338_s2 = spop %10337 }
 0x671   : > { %s13218_s6 = spop %10339 }
 0x672   : > { %s10342_s7 = spop %10341 }
 0x673   : > { %4529 = vrot.lane.b32.xlu0 %v4524_v29, %s10521_s22  ;;  %4498 = vrot.lane.b32.xlu1 %v4493_v40, %s10520_s20  ;;  %v4728_v29 = vmul.f32 %v4726_v1, %v13094_v26  ;;  %v4788_v40 = vstv %s12857_s9  ;;  %v4992_v1 = vstv %s12947_s14  ;;  %s13222_s8 = spop %10343 }
 0x674   : > { %v4789_v46 = vmul.f32 %v4788_v40, %v13028_v27  ;;  %s10346_s9 = spop %10345 }
 0x675   : > { %s13228_s10 = spop %10347 }
 0x676   : > { %s10350_s13 = spop %10349 }
 0x677   : > { %4558 = vrot.lane.b32.xlu0 %v4554_v61, %s10522_s16  ;;  %4527 = vrot.lane.b32.xlu1 %v4523_v24, %s10521_s22  ;;  %v4758_v61 = vmul.f32 %v4757_v42, %v13028_v27  ;;  %v4819_v24 = vstv %s12861_s25  ;;  %v5023_v42 = vstv %s12955_s24  ;;  %s13234_s30 = spop %10351  ;;  %s15052_s24 = sld [smem:[#allocation42_spill]] }
 0x678   : > { %v4821_v63 = vmul.f32 %v4819_v24, %v13094_v26  ;;  %s10354_s28 = spop %10353 }
 0x679   : > { %s13240_s18 = spop %10355 }
 0x67a   : > { %s10358_s17 = spop %10357 }
 0x67b   : > { %4591 = vrot.lane.b32.xlu0 %v4586_v5, %s10523_s19  ;;  %4560 = vrot.lane.b32.xlu1 %v4555_v4, %s10522_s16  ;;  %v4790_v5 = vmul.f32 %v4788_v40, %v13094_v26  ;;  %v4869_v4 = vstv %s15048_s1  ;;  %v5073_v40 = vstv %s10338_s2  ;;  %s13244_s27 = spop %10359  ;;  %s15053_s1 = sld [smem:[#allocation43_spill]] }
 0x67c   : > { %v4871_v10 = vmul.f32 %v4869_v4, %v13096_v39  ;;  %v4870_v26 = vmul.f32 %v4869_v4, %v13030_v34  ;;  %s13248_s14 = spop %10361  ;;  %s15055_s2 = sld [smem:[#allocation45_spill]] }
 0x67d   : > { %s13252_s15 = spop %10363 }
 0x67f   : > { %4620 = vrot.lane.b32.xlu0 %v4616_v45, %s10524_s4  ;;  %4589 = vrot.lane.b32.xlu1 %v4585_v57, %s10523_s19  ;;  %v4820_v45 = vmul.f32 %v4819_v24, %v13028_v27  ;;  %v4900_v57 = vstv %s15049_s3  ;;  %s15054_s3 = sld [smem:[#allocation44_spill]] }
 0x680   : > { %v4901_v41 = vmul.f32 %v4900_v57, %v13030_v34  ;;  %v4902_v27 = vmul.f32 %v4900_v57, %v13096_v39 }
 0x683   : > { %4670 = vrot.lane.b32.xlu0 %v4666_v30, %s15041_s5  ;;  %4622 = vrot.lane.b32.xlu1 %v4617_v36, %s10524_s4  ;;  %v4930_v30 = vstv %s12929_s21  ;;  %s10366_s21 = spop %10365 }
 0x684   : > { %v4932_v36 = vmul.f32 %v4930_v30, %v13096_v39  ;;  %s13262_s23 = spop %10367 }
 0x685   : > { %s10370_s25 = spop %10369 }
 0x686   : > { %s13274_s29 = spop %10371 }
 0x687   : > { %4702 = vrot.lane.b32.xlu0 %v4697_v22, %s10520_s20  ;;  %4672 = vrot.lane.b32.xlu1 %v4667_v47, %s15041_s5  ;;  %v4962_v22 = vmul.f32 %v4961_v32, %v13030_v34  ;;  %v4931_v47 = vmul.f32 %v4930_v30, %v13030_v34  ;;  %s10374_s11 = spop %10373 }
 0x68b   : > { %4731 = vrot.lane.b32.xlu0 %v4727_v49, %s10521_s22  ;;  %4700 = vrot.lane.b32.xlu1 %v4696_v31, %s10520_s20  ;;  %v4994_v49 = vmul.f32 %v4992_v1, %v13096_v39  ;;  %v4963_v31 = vmul.f32 %v4961_v32, %v13096_v39 }
 0x68f   : > { %4764 = vrot.lane.b32.xlu0 %v4759_v25, %s10522_s16  ;;  %4733 = vrot.lane.b32.xlu1 %v4728_v29, %s10521_s22  ;;  %v5024_v25 = vmul.f32 %v5023_v42, %v13030_v34  ;;  %v4993_v29 = vmul.f32 %v4992_v1, %v13030_v34  ;;  %v5104_v34 = vstv %s10342_s7  ;;  %v5277_v1 = vstv %s10366_s21  ;;  %s15056_s7 = sld [smem:[#allocation46_spill]] }
 0x690   : > { %v5106_v24 = vmul.f32 %v5104_v34, %v13100_v38  ;;  %v5105_v4 = vmul.f32 %v5104_v34, %v13098_v33  ;;  %v5339_v34 = vstv %s10374_s11  ;;  %s15061_s21 = sld [smem:[#allocation51_spill]] }
 0x691   : > { %s15064_s11 = sld [smem:[#allocation54_spill]] }
 0x693   : > { %4793 = vrot.lane.b32.xlu0 %v4789_v46, %s10523_s19  ;;  %4762 = vrot.lane.b32.xlu1 %v4758_v61, %s10522_s16  ;;  %v5074_v46 = vmul.f32 %v5073_v40, %v13098_v33  ;;  %v5025_v61 = vmul.f32 %v5023_v42, %v13096_v39 }
 0x696   : > { %v4537_v62 = vstv %s15061_s21  ;;  %s15085_s21 = sld [smem:[#allocation66_spill]] }
 0x697   : > { %4826 = vrot.lane.b32.xlu0 %v4821_v63, %s10524_s4  ;;  %4795 = vrot.lane.b32.xlu1 %v4790_v5, %s10523_s19  ;;  %v5075_v63 = vmul.f32 %v5073_v40, %v13100_v38  ;;  %v5135_v5 = vstv %s10346_s9  ;;  %s15057_s9 = sld [smem:[#allocation47_spill]]  ;;  %v4538_v3 = vmul.f32 %v4537_v62, %v12843_v53  ;;  %v4649_v18 = vstv %s15064_s11 }
 0x698   : > { %v5136_v39 = vmul.f32 %v5135_v5, %v13098_v33  ;;  %v5137_v57 = vmul.f32 %v5135_v5, %v13100_v38 }
 0x69b   : > { %4876 = vrot.lane.b32.xlu0 %v4871_v10, %s15041_s5  ;;  %4824 = vrot.lane.b32.xlu1 %v4820_v45, %s10524_s4  ;;  %v5165_v10 = vstv %s10350_s13  ;;  %s15058_s13 = sld [smem:[#allocation48_spill]] }
 0x69c   : > { %v5167_v45 = vmul.f32 %v5165_v10, %v13100_v38  ;;  %v5166_v30 = vmul.f32 %v5165_v10, %v13098_v33 }
 0x69f   : > { %4905 = vrot.lane.b32.xlu0 %v4901_v41, %s10520_s20  ;;  %4874 = vrot.lane.b32.xlu1 %v4870_v26, %s15041_s5  ;;  %v5196_v41 = vstv %s10354_s28  ;;  %s15059_s28 = sld [smem:[#allocation49_spill]] }
 0x6a0   : > { %v5197_v26 = vmul.f32 %v5196_v41, %v13098_v33 }
 0x6a1   : > { %v4444_v0 = vstv %s15058_s13  ;;  %s15073_s13 = sld [smem:[#allocation61_spill]] }
 0x6a3   : > { %4937 = vrot.lane.b32.xlu0 %v4932_v36, %s10521_s22  ;;  %4907 = vrot.lane.b32.xlu1 %v4902_v27, %s10520_s20  ;;  %v5227_v36 = vstv %s10358_s17  ;;  %s15060_s17 = sld [smem:[#allocation50_spill]] }
 0x6a4   : > { %v5229_v32 = vmul.f32 %v5227_v36, %v13100_v38 }
 0x6a5   : > { %v4475_v16 = vstv %s15059_s28  ;;  %s15076_s28 = sld [smem:[#allocation63_spill]] }
 0x6a7   : > { %4966 = vrot.lane.b32.xlu0 %v4962_v22, %s10522_s16  ;;  %4935 = vrot.lane.b32.xlu1 %v4931_v47, %s10521_s22  ;;  %v5198_v22 = vmul.f32 %v5196_v41, %v13100_v38  ;;  %v13260_v47 = vld [vmem:[#allocation5 + $0xd] sm:$0xff]  ;;  %v5308_v38 = vstv %s10370_s25  ;;  %s15062_s25 = sld [smem:[#allocation52_spill]] }
 0x6a8   : > { %15050 = vst [vmem:[#allocation74_spill] sm:$0xff] %v13260_v47  ;;  %v5279_v42 = vmul.f32 %v5277_v1, %v13260_v47  ;;  %v5341_v5 = vmul.f32 %v5339_v34, %v13260_v47 }
 0x6a9   : > { %v13256_v27 = vpop.permute.xlu0 %4261  ;;  %v4506_v6 = vstv %s15060_s17  ;;  %s15078_s17 = sld [smem:[#allocation65_spill]] }
 0x6ab   : > { %4999 = vrot.lane.b32.xlu0 %v4994_v49, %s10523_s19  ;;  %4968 = vrot.lane.b32.xlu1 %v4963_v31, %s10522_s16 }
 0x6ad   : > { %v4568_v51 = vstv %s15062_s25 }
 0x6af   : > { %5028 = vrot.lane.b32.xlu0 %v5024_v25, %s10524_s4  ;;  %4997 = vrot.lane.b32.xlu1 %v4993_v29, %s10523_s19  ;;  %v5228_v25 = vmul.f32 %v5227_v36, %v13098_v33  ;;  %v13272_v29 = vld [vmem:[#allocation5 + $0x5] sm:$0xff] }
 0x6b0   : > { %15051 = vst [vmem:[#allocation75_spill] sm:$0xff] %v13272_v29  ;;  %v5278_v33 = vmul.f32 %v5277_v1, %v13272_v29  ;;  %v5340_v41 = vmul.f32 %v5339_v34, %v13272_v29  ;;  %v4302_v1 = vstv %s15054_s3  ;;  %s15066_s3 = sld [smem:[#allocation56_spill]] }
 0x6b3   : > { %5078 = vrot.lane.b32.xlu0 %v5074_v46, %s15041_s5  ;;  %5030 = vrot.lane.b32.xlu1 %v5025_v61, %s10524_s4  ;;  %v5309_v61 = vmul.f32 %v5308_v38, %v13272_v29 }
 0x6b6   : > { %v4710_v56 = vstv %s15066_s3 }
 0x6b7   : > { %5111 = vrot.lane.b32.xlu0 %v5106_v24, %s10520_s20  ;;  %5080 = vrot.lane.b32.xlu1 %v5075_v63, %s15041_s5  ;;  %v4711_v48 = vmul.f32 %v4710_v56, %v12866_v2 }
 0x6bb   : > { %5140 = vrot.lane.b32.xlu0 %v5136_v39, %s10521_s22  ;;  %5109 = vrot.lane.b32.xlu1 %v5105_v4, %s10520_s20  ;;  %v5310_v39 = vmul.f32 %v5308_v38, %v13260_v47  ;;  %v4240_v4 = vstv %s15052_s24  ;;  %v4304_v38 = vmul.f32 %v4302_v1, %v12925_v28  ;;  %s15063_s24 = sld [smem:[#allocation53_spill]] }
 0x6bf   : > { %5172 = vrot.lane.b32.xlu0 %v5167_v45, %s10522_s16  ;;  %5142 = vrot.lane.b32.xlu1 %v5137_v57, %s10521_s22  ;;  %v4241_v57 = vmul.f32 %v4240_v4, %v12841_v52 }
 0x6c3   : > { %5201 = vrot.lane.b32.xlu0 %v5197_v26, %s10523_s19  ;;  %5170 = vrot.lane.b32.xlu1 %v5166_v30, %s10522_s16  ;;  %v4271_v26 = vstv %s15053_s1  ;;  %s15065_s1 = sld [smem:[#allocation55_spill]] }
 0x6c7   : > { %5234 = vrot.lane.b32.xlu0 %v5229_v32, %s10524_s4  ;;  %5203 = vrot.lane.b32.xlu1 %v5198_v22, %s10523_s19  ;;  %v4272_v32 = vmul.f32 %v4271_v26, %v12841_v52  ;;  %v4242_v22 = vmul.f32 %v4240_v4, %v12925_v28  ;;  %v4303_v4 = vmul.f32 %v4302_v1, %v12841_v52 }
 0x6c9   : > { %v13266_v49 = vpop.permute.xlu1 %4263  ;;  %v13268_v31 = vpop.permute.xlu0 %4294  ;;  %v4679_v15 = vstv %s15065_s1 }
 0x6cb   : > { %5284 = vrot.lane.b32.xlu0 %v5279_v42, %s15041_s5  ;;  %5232 = vrot.lane.b32.xlu1 %v5228_v25, %s10524_s4 }
 0x6cd   : > { %v13278_v40 = vpop.permute.xlu1 %4292  ;;  %v13280_v46 = vpop.permute.xlu0 %4323 }
 0x6cf   : > { %5313 = vrot.lane.b32.xlu0 %v5309_v61, %s10520_s20  ;;  %5282 = vrot.lane.b32.xlu1 %v5278_v33, %s15041_s5  ;;  %v4273_v61 = vmul.f32 %v4271_v26, %v12925_v28  ;;  %v4333_v33 = vstv %s15055_s2  ;;  %s15067_s2 = sld [smem:[#allocation57_spill]] }
 0x6d1   : > { %v13286_v24 = vpop.permute.xlu1 %4325  ;;  %v13288_v63 = vpop.permute.xlu0 %4356 }
 0x6d3   : > { %5346 = vrot.lane.b32.xlu0 %v5341_v5, %s10521_s22  ;;  %5315 = vrot.lane.b32.xlu1 %v5310_v39, %s10520_s20  ;;  %v4334_v39 = vmul.f32 %v4333_v33, %v12841_v52 }
 0x6d5   : > { %v13295_v10 = vpop.permute.xlu1 %4354  ;;  %v13297_v45 = vpop.permute.xlu0 %4385  ;;  %v4741_v21 = vstv %s15067_s2 }
 0x6d7   : > { %4245 = vrot.lane.b32.xlu0 %v4241_v57, %s15041_s5  ;;  %5344 = vrot.lane.b32.xlu1 %v5340_v41, %s10521_s22  ;;  %v4364_v57 = vstv %s15056_s7  ;;  %s15068_s7 = sld [smem:[#allocation58_spill]] }
 0x6d9   : > { %v13304_v30 = vpop.permute.xlu1 %4387  ;;  %v13306_v36 = vpop.permute.xlu0 %4418 }
 0x6db   : > { %4276 = vrot.lane.b32.xlu0 %v4272_v32, %s10520_s20  ;;  %4247 = vrot.lane.b32.xlu1 %v4242_v22, %s15041_s5  ;;  %v4366_v32 = vmul.f32 %v4364_v57, %v12925_v28  ;;  %v4335_v22 = vmul.f32 %v4333_v33, %v12925_v28 }
 0x6dd   : > { %v13313_v42 = vpop.permute.xlu1 %4416  ;;  %v13315_v25 = vpop.permute.xlu0 %4467 }
 0x6df   : > { %4309 = vrot.lane.b32.xlu0 %v4304_v38, %s10521_s22  ;;  %4278 = vrot.lane.b32.xlu1 %v4273_v61, %s10520_s20  ;;  %v4395_v38 = vstv %s15057_s9  ;;  %s15070_s9 = sld [smem:[#allocation59_spill]] }
 0x6e1   : > { %v13322_v34 = vpop.permute.xlu1 %4465  ;;  %v13324_v5 = vpop.permute.xlu0 %4496 }
 0x6e3   : > { %4338 = vrot.lane.b32.xlu0 %v4334_v39, %s10522_s16  ;;  %4307 = vrot.lane.b32.xlu1 %v4303_v4, %s10521_s22  ;;  %v4396_v39 = vmul.f32 %v4395_v38, %v12841_v52  ;;  %v4365_v4 = vmul.f32 %v4364_v57, %v12841_v52 }
 0x6e5   : > { %v13331_v41 = vpop.permute.xlu1 %4498  ;;  %v13333_v26 = vpop.permute.xlu0 %4529 }
 0x6e7   : > { %4371 = vrot.lane.b32.xlu0 %v4366_v32, %s10523_s19  ;;  %4340 = vrot.lane.b32.xlu1 %v4335_v22, %s10522_s16  ;;  %v4445_v32 = vmul.f32 %v4444_v0, %v12843_v53  ;;  %v4397_v22 = vmul.f32 %v4395_v38, %v12925_v28 }
 0x6e9   : > { %v13340_v1 = vpop.permute.xlu1 %4527  ;;  %v13342_v61 = vpop.permute.xlu0 %4558 }
 0x6eb   : > { %4400 = vrot.lane.b32.xlu0 %v4396_v39, %s10524_s4  ;;  %4369 = vrot.lane.b32.xlu1 %v4365_v4, %s10523_s19  ;;  %v4477_v39 = vmul.f32 %v4475_v16, %v12927_v11  ;;  %v4446_v4 = vmul.f32 %v4444_v0, %v12927_v11 }
 0x6ed   : > { %v13349_v33 = vpop.permute.xlu1 %4560  ;;  %v13351_v58 = vpop.permute.xlu0 %4591 }
 0x6ef   : > { %4449 = vrot.lane.b32.xlu0 %v4445_v32, %s15041_s5  ;;  %4402 = vrot.lane.b32.xlu1 %v4397_v22, %s10524_s4  ;;  %v4507_v32 = vmul.f32 %v4506_v6, %v12843_v53  ;;  %v4476_v22 = vmul.f32 %v4475_v16, %v12843_v53 }
 0x6f1   : > { %v13358_v52 = vpop.permute.xlu1 %4589  ;;  %v13360_v57 = vpop.permute.xlu0 %4620 }
 0x6f3   : > { %4482 = vrot.lane.b32.xlu0 %v4477_v39, %s10520_s20  ;;  %4451 = vrot.lane.b32.xlu1 %v4446_v4, %s15041_s5  ;;  %v4539_v39 = vmul.f32 %v4537_v62, %v12927_v11  ;;  %v4508_v4 = vmul.f32 %v4506_v6, %v12927_v11  ;;  %v4599_v6 = vstv %s15063_s24 }
 0x6f4   : > { %v4600_v37 = vmul.f32 %v4599_v6, %v12843_v53 }
 0x6f5   : > { %v13367_v28 = vpop.permute.xlu1 %4622  ;;  %v13369_v38 = vpop.permute.xlu0 %4670 }
 0x6f7   : > { %4511 = vrot.lane.b32.xlu0 %v4507_v32, %s10521_s22  ;;  %4480 = vrot.lane.b32.xlu1 %v4476_v22, %s10520_s20  ;;  %v4569_v22 = vmul.f32 %v4568_v51, %v12843_v53 }
 0x6f9   : > { %v13376_v0 = vpop.permute.xlu1 %4672  ;;  %v13378_v9 = vpop.permute.xlu0 %4702 }
 0x6fb   : > { %4544 = vrot.lane.b32.xlu0 %v4539_v39, %s10522_s16  ;;  %4513 = vrot.lane.b32.xlu1 %v4508_v4, %s10521_s22  ;;  %v4601_v39 = vmul.f32 %v4599_v6, %v12927_v11  ;;  %v4570_v4 = vmul.f32 %v4568_v51, %v12927_v11 }
 0x6fd   : > { %v13385_v16 = vpop.permute.xlu1 %4700  ;;  %v13387_v32 = vpop.permute.xlu0 %4731 }
 0x6ff   : > { %4573 = vrot.lane.b32.xlu0 %v4569_v22, %s10523_s19  ;;  %4542 = vrot.lane.b32.xlu1 %v4538_v3, %s10522_s16  ;;  %v4651_v3 = vmul.f32 %v4649_v18, %v12965_v12 }
 0x701   : > { %v13394_v47 = vpop.permute.xlu1 %4733  ;;  %v13396_v29 = vpop.permute.xlu0 %4764 }
 0x703   : > { %4606 = vrot.lane.b32.xlu0 %v4601_v39, %s10524_s4  ;;  %4575 = vrot.lane.b32.xlu1 %v4570_v4, %s10523_s19  ;;  %v4680_v39 = vmul.f32 %v4679_v15, %v12866_v2  ;;  %v4650_v4 = vmul.f32 %v4649_v18, %v12866_v2 }
 0x705   : > { %v13403_v62 = vpop.permute.xlu1 %4762  ;;  %v13405_v22 = vpop.permute.xlu0 %4793 }
 0x707   : > { %4656 = vrot.lane.b32.xlu0 %v4651_v3, %s15041_s5  ;;  %4604 = vrot.lane.b32.xlu1 %v4600_v37, %s10524_s4  ;;  %v4712_v37 = vmul.f32 %v4710_v56, %v12965_v12  ;;  %v4681_v3 = vmul.f32 %v4679_v15, %v12965_v12 }
 0x709   : > { %v13412_v51 = vpop.permute.xlu1 %4795  ;;  %v13414_v11 = vpop.permute.xlu0 %4826 }
 0x70b   : > { %4684 = vrot.lane.b32.xlu0 %v4680_v39, %s10520_s20  ;;  %4654 = vrot.lane.b32.xlu1 %v4650_v4, %s15041_s5  ;;  %v4742_v4 = vmul.f32 %v4741_v21, %v12866_v2 }
 0x70d   : > { %v13421_v53 = vpop.permute.xlu1 %4824  ;;  %v13423_v6 = vpop.permute.xlu0 %4876 }
 0x70e   : > { %15069 = vst [vmem:[#allocation76_spill] sm:$0xff] %v13423_v6  ;;  %v4772_v6 = vstv %s15068_s7 }
 0x70f   : > { %4717 = vrot.lane.b32.xlu0 %v4712_v37, %s10521_s22  ;;  %4686 = vrot.lane.b32.xlu1 %v4681_v3, %s10520_s20  ;;  %v4743_v37 = vmul.f32 %v4741_v21, %v12965_v12  ;;  %v4774_v3 = vmul.f32 %v4772_v6, %v12965_v12 }
 0x711   : > { %v13430_v18 = vpop.permute.xlu1 %4874  ;;  %v13432_v39 = vpop.permute.xlu0 %4905 }
 0x712   : > { %15071 = vst [vmem:[#allocation77_spill] sm:$0xff] %v13430_v18  ;;  %15072 = vst [vmem:[#allocation78_spill] sm:$0xff] %v13432_v39  ;;  %v4803_v18 = vstv %s15070_s9 }
 0x713   : > { %4746 = vrot.lane.b32.xlu0 %v4742_v4, %s10522_s16  ;;  %4715 = vrot.lane.b32.xlu1 %v4711_v48, %s10521_s22  ;;  %v10496_v48 = vld [vmem:[#allocation4 + $0x2] sm:$0xff] }
 0x714   : > { %v4773_v4 = vmul.f32 %v10496_v48, %v4772_v6  ;;  %v4804_v39 = vmul.f32 %v10496_v48, %v4803_v18  ;;  %v4884_v6 = vstv %s15076_s28 }
 0x715   : > { %v13439_v15 = vpop.permute.xlu1 %4907  ;;  %v13441_v7 = vpop.permute.xlu0 %4937 }
 0x716   : > { %15074 = vst [vmem:[#allocation79_spill] sm:$0xff] %v13439_v15  ;;  %15075 = vst [vmem:[#allocation80_spill] sm:$0xff] %v13441_v7  ;;  %v4853_v15 = vstv %s15073_s13 }
 0x717   : > { %4748 = vrot.lane.b32.xlu1 %v4743_v37, %s10522_s16  ;;  %4779 = vrot.lane.b32.xlu0 %v4774_v3, %s10523_s19  ;;  %v4805_v37 = vmul.f32 %v4803_v18, %v12965_v12  ;;  %v10497_v3 = vld [vmem:[#allocation4 + $0x3] sm:$0xff] }
 0x718   : > { %v4854_v23 = vmul.f32 %v10497_v3, %v4853_v15 }
 0x719   : > { %v13448_v2 = vpop.permute.xlu1 %4935  ;;  %v13450_v56 = vpop.permute.xlu0 %4966 }
 0x71a   : > { %15077 = vst [vmem:[#allocation81_spill] sm:$0xff] %v13450_v56 }
 0x71b   : > { %4777 = vrot.lane.b32.xlu1 %v4773_v4, %s10523_s19  ;;  %4808 = vrot.lane.b32.xlu0 %v4804_v39, %s10524_s4  ;;  %v4855_v39 = vmul.f32 %v4853_v15, %v12967_v44  ;;  %v4886_v4 = vmul.f32 %v4884_v6, %v12967_v44  ;;  %v4945_v15 = vstv %s12941_s26 }
 0x71d   : > { %v13455_v21 = vpop.permute.xlu1 %4968  ;;  %v13457_v7 = vpop.permute.xlu0 %4999 }
 0x71e   : > { %15079 = vst [vmem:[#allocation82_spill] sm:$0xff] %v13455_v21  ;;  %15080 = vst [vmem:[#allocation83_spill] sm:$0xff] %v13457_v7  ;;  %v4914_v7 = vstv %s15078_s17 }
 0x71f   : > { %4810 = vrot.lane.b32.xlu1 %v4805_v37, %s10524_s4  ;;  %4858 = vrot.lane.b32.xlu0 %v4854_v23, %s15041_s5  ;;  %v4885_v23 = vmul.f32 %v10497_v3, %v4884_v6  ;;  %v4915_v37 = vmul.f32 %v10497_v3, %v4914_v7 }
 0x721   : > { %v13463_v48 = vpop.permute.xlu1 %4997  ;;  %v13465_v56 = vpop.permute.xlu0 %5028 }
 0x722   : > { %15081 = vst [vmem:[#allocation84_spill] sm:$0xff] %v13463_v48  ;;  %15082 = vst [vmem:[#allocation85_spill] sm:$0xff] %v13465_v56 }
 0x723   : > { %4860 = vrot.lane.b32.xlu1 %v4855_v39, %s15041_s5  ;;  %4891 = vrot.lane.b32.xlu0 %v4886_v4, %s10520_s20  ;;  %v4916_v39 = vmul.f32 %v4914_v7, %v12967_v44  ;;  %v4947_v4 = vmul.f32 %v4945_v15, %v12967_v44  ;;  %v5007_v7 = vstv %s15085_s21  ;;  %s10526_s21 = smov 48  }
 0x725   : > { %v13472_v12 = vpop.permute.xlu1 %5030  ;;  %v13474_v18 = vpop.permute.xlu0 %5078 }
 0x726   : > { %15083 = vst [vmem:[#allocation86_spill] sm:$0xff] %v13472_v12  ;;  %15084 = vst [vmem:[#allocation87_spill] sm:$0xff] %v13474_v18  ;;  %v4976_v12 = vstv %s12945_s12  ;;  %s10376_s12 = spop %10375 }
 0x727   : > { %4889 = vrot.lane.b32.xlu1 %v4885_v23, %s10520_s20  ;;  %4919 = vrot.lane.b32.xlu0 %v4915_v37, %s10521_s22  ;;  %v4946_v37 = vmul.f32 %v10497_v3, %v4945_v15  ;;  %v4977_v18 = vmul.f32 %v10497_v3, %v4976_v12 }
 0x729   : > { %v13479_v56 = vpop.permute.xlu1 %5080  ;;  %v13481_v48 = vpop.permute.xlu0 %5111 }
 0x72a   : > { %15086 = vst [vmem:[#allocation88_spill] sm:$0xff] %v13479_v56  ;;  %15087 = vst [vmem:[#allocation89_spill] sm:$0xff] %v13481_v48 }
 0x72b   : > { %4921 = vrot.lane.b32.xlu1 %v4916_v39, %s10521_s22  ;;  %4952 = vrot.lane.b32.xlu0 %v4947_v4, %s10522_s16  ;;  %v4978_v39 = vmul.f32 %v4976_v12, %v12967_v44  ;;  %v5009_v4 = vmul.f32 %v5007_v7, %v12967_v44 }
 0x72d   : > { %v13488_v6 = vpop.permute.xlu1 %5109  ;;  %v13490_v23 = vpop.permute.xlu0 %5140 }
 0x72e   : > { %15088 = vst [vmem:[#allocation90_spill] sm:$0xff] %v13488_v6  ;;  %15089 = vst [vmem:[#allocation91_spill] sm:$0xff] %v13490_v23  ;;  %v5057_v6 = vstv %s13211_s0  ;;  %v5088_v23 = vstv %s13218_s6  ;;  %s15135_s6 = sld [smem:[#allocation114_spill]] }
 0x72f   : > { %4950 = vrot.lane.b32.xlu1 %v4946_v37, %s10522_s16  ;;  %4981 = vrot.lane.b32.xlu0 %v4977_v18, %s10523_s19  ;;  %v5008_v18 = vmul.f32 %v10497_v3, %v5007_v7  ;;  %s15182_s0 = sld [smem:[#allocation109_spill]] }
 0x731   : > { %v13495_v48 = vpop.permute.xlu1 %5142  ;;  %v13497_v56 = vpop.permute.xlu0 %5172 }
 0x732   : > { %15090 = vst [vmem:[#allocation92_spill] sm:$0xff] %v13495_v48  ;;  %15091 = vst [vmem:[#allocation93_spill] sm:$0xff] %v13497_v56  ;;  %v5059_v48 = vmul.f32 %v5057_v6, %v12974_v14  ;;  %v5292_v56 = vstv %s13262_s23 }
 0x733   : > { %4983 = vrot.lane.b32.xlu1 %v4978_v39, %s10523_s19  ;;  %5014 = vrot.lane.b32.xlu0 %v5009_v4, %s10524_s4  ;;  %v5058_v39 = vmul.f32 %v5057_v6, %v12976_v60  ;;  %v5089_v4 = vmul.f32 %v5088_v23, %v12976_v60 }
 0x735   : > { %v13504_v15 = vpop.permute.xlu1 %5170  ;;  %v13506_v37 = vpop.permute.xlu0 %5201 }
 0x736   : > { %15092 = vst [vmem:[#allocation94_spill] sm:$0xff] %v13504_v15  ;;  %15093 = vst [vmem:[#allocation95_spill] sm:$0xff] %v13506_v37  ;;  %v5119_v15 = vstv %s13222_s8  ;;  %v13553_v37 = vld [vmem:[#allocation4 + $0x5] sm:$0xff] }
 0x737   : > { %5012 = vrot.lane.b32.xlu1 %v5008_v18, %s10524_s4  ;;  %5064 = vrot.lane.b32.xlu0 %v5059_v48, %s15041_s5  ;;  %v5090_v48 = vmul.f32 %v5088_v23, %v12974_v14  ;;  %v5121_v18 = vmul.f32 %v5119_v15, %v12974_v14 }
 0x739   : > { %v13512_v12 = vpop.permute.xlu1 %5203  ;;  %v13514_v44 = vpop.permute.xlu0 %5234 }
 0x73a   : > { %15094 = vst [vmem:[#allocation96_spill] sm:$0xff] %v13512_v12  ;;  %15095 = vst [vmem:[#allocation97_spill] sm:$0xff] %v13514_v44  ;;  %v5149_v44 = vstv %s13228_s10 }
 0x73b   : > { %5062 = vrot.lane.b32.xlu1 %v5058_v39, %s15041_s5  ;;  %5093 = vrot.lane.b32.xlu0 %v5089_v4, %s10520_s20  ;;  %v5120_v39 = vmul.f32 %v5119_v15, %v12976_v60  ;;  %v5150_v4 = vmul.f32 %v5149_v44, %v12976_v60 }
 0x73d   : > { %v13521_v3 = vpop.permute.xlu1 %5232  ;;  %v13523_v7 = vpop.permute.xlu0 %5284 }
 0x73e   : > { %15096 = vst [vmem:[#allocation98_spill] sm:$0xff] %v13521_v3  ;;  %15097 = vst [vmem:[#allocation99_spill] sm:$0xff] %v13523_v7  ;;  %v5180_v7 = vstv %s13234_s30 }
 0x73f   : > { %5095 = vrot.lane.b32.xlu1 %v5090_v48, %s10520_s20  ;;  %5126 = vrot.lane.b32.xlu0 %v5121_v18, %s10521_s22  ;;  %v5151_v48 = vmul.f32 %v5149_v44, %v12974_v14  ;;  %v5182_v18 = vmul.f32 %v5180_v7, %v12974_v14 }
 0x741   : > { %v13530_v6 = vpop.permute.xlu1 %5282  ;;  %v13532_v12 = vpop.permute.xlu0 %5313 }
 0x742   : > { %15098 = vst [vmem:[#allocation100_spill] sm:$0xff] %v13530_v6  ;;  %15099 = vst [vmem:[#allocation101_spill] sm:$0xff] %v13532_v12  ;;  %v5211_v6 = vstv %s13240_s18 }
 0x743   : > { %5124 = vrot.lane.b32.xlu1 %v5120_v39, %s10521_s22  ;;  %5154 = vrot.lane.b32.xlu0 %v5150_v4, %s10522_s16  ;;  %v5181_v39 = vmul.f32 %v5180_v7, %v12976_v60  ;;  %v5212_v4 = vmul.f32 %v5211_v6, %v12976_v60  ;;  %v13561_v60 = vld [vmem:[#allocation4 + $0xd] sm:$0xff] }
 0x745   : > { %v13539_v23 = vpop.permute.xlu1 %5315  ;;  %v13541_v3 = vpop.permute.xlu0 %5346 }
 0x746   : > { %15100 = vst [vmem:[#allocation102_spill] sm:$0xff] %v13539_v23  ;;  %15101 = vst [vmem:[#allocation103_spill] sm:$0xff] %v13541_v3  ;;  %v5261_v23 = vstv %s13252_s15  ;;  %s10528_s15 = smov 64  }
 0x747   : > { %5156 = vrot.lane.b32.xlu1 %v5151_v48, %s10522_s16  ;;  %5187 = vrot.lane.b32.xlu0 %v5182_v18, %s10523_s19  ;;  %v5262_v7 = vmul.f32 %v5261_v23, %v13553_v37 }
 0x749   : > { %v13548_v15 = vpop.permute.xlu1 %5344  ;;  %v4246_v12 = vpop.permute.xlu0 %4245 }
 0x74a   : > { %15102 = vst [vmem:[#allocation104_spill] sm:$0xff] %v13548_v15  ;;  %v4251_v44 = vadd.f32 %v4246_v12, %v13025_v20  ;;  %v10498_v15 = vld [vmem:[#allocation4 + $0xc] sm:$0xff] }
 0x74b   : > { %5185 = vrot.lane.b32.xlu1 %v5181_v39, %s10523_s19  ;;  %5216 = vrot.lane.b32.xlu0 %v5212_v4, %s10524_s4  ;;  %v5213_v3 = vmul.f32 %v10498_v15, %v5211_v6  ;;  %v5263_v4 = vmul.f32 %v5261_v23, %v13561_v60  ;;  %v5294_v6 = vmul.f32 %v5292_v56, %v13561_v60  ;;  %v5323_v15 = vstv %s13274_s29 }
 0x74c   : > { %v4267_v14 = vadd.f32 %v13256_v27, %v4251_v44  ;;  %v5354_v23 = vstv %s10376_s12 }
 0x74d   : > { %v4248_v48 = vpop.permute.xlu1 %4247  ;;  %v4277_v18 = vpop.permute.xlu0 %4276 }
 0x74e   : > { %v4252_v21 = vadd.f32 %v4248_v48, %v13084_v17  ;;  %v4282_v12 = vadd.f32 %v4277_v18, %v4267_v14  ;;  %v5324_v14 = vmul.f32 %v5323_v15, %v13553_v37 }
 0x74f   : > { %5218 = vrot.lane.b32.xlu1 %v5213_v3, %s10524_s4  ;;  %5266 = vrot.lane.b32.xlu0 %v5262_v7, %s15041_s5 }
 0x750   : > { %v4268_v20 = vadd.f32 %v13266_v49, %v4252_v21  ;;  %v4298_v17 = vadd.f32 %v13278_v40, %v4282_v12  ;;  %v5293_v21 = vmul.f32 %v5292_v56, %v13553_v37  ;;  %v5356_v40 = vmul.f32 %v5354_v23, %v13561_v60 }
 0x751   : > { %v4279_v27 = vpop.permute.xlu1 %4278  ;;  %v4310_v39 = vpop.permute.xlu0 %4309 }
 0x752   : > { %v4283_v44 = vadd.f32 %v4279_v27, %v4268_v20 }
 0x753   : > { %5268 = vrot.lane.b32.xlu1 %v5263_v4, %s15041_s5  ;;  %5299 = vrot.lane.b32.xlu0 %v5294_v6, %s10520_s20  ;;  %v5325_v4 = vmul.f32 %v5323_v15, %v13561_v60 }
 0x754   : > { %v4299_v3 = vadd.f32 %v13268_v31, %v4283_v44 }
 0x755   : > { %v4308_v48 = vpop.permute.xlu1 %4307  ;;  %v4339_v49 = vpop.permute.xlu0 %4338 }
 0x756   : > { %v4314_v18 = vadd.f32 %v4310_v39, %v4299_v3  ;;  %v4313_v7 = vadd.f32 %v4308_v48, %v4298_v17 }
 0x757   : > { %5297 = vrot.lane.b32.xlu1 %v5293_v21, %s10520_s20  ;;  %5328 = vrot.lane.b32.xlu0 %v5324_v14, %s10521_s22 }
 0x758   : > { %v4330_v20 = vadd.f32 %v13286_v24, %v4314_v18  ;;  %v4329_v27 = vadd.f32 %v13280_v46, %v4313_v7  ;;  %v5355_v24 = vmul.f32 %v5354_v23, %v13553_v37 }
 0x759   : > { %v4341_v31 = vpop.permute.xlu1 %4340  ;;  %v4372_v12 = vpop.permute.xlu0 %4371 }
 0x75a   : > { %v4344_v56 = vadd.f32 %v4339_v49, %v4329_v27  ;;  %v4345_v6 = vadd.f32 %v4341_v31, %v4330_v20 }
 0x75b   : > { %5330 = vrot.lane.b32.xlu1 %v5325_v4, %s10521_s22  ;;  %5361 = vrot.lane.b32.xlu0 %v5356_v40, %s10522_s16 }
 0x75c   : > { %v4360_v39 = vadd.f32 %v13295_v10, %v4344_v56  ;;  %v4361_v44 = vadd.f32 %v13288_v63, %v4345_v6  ;;  %v15103_v10 = vrot.slane %v12344_v8, 7 }
 0x75d   : > { %v4370_v17 = vpop.permute.xlu1 %4369  ;;  %v4401_v46 = vpop.permute.xlu0 %4400 }
 0x75e   : > { %v4376_v3 = vadd.f32 %v4372_v12, %v4361_v44  ;;  %v4375_v48 = vadd.f32 %v4370_v17, %v4360_v39 }
 0x75f   : > { %5359 = vrot.lane.b32.xlu1 %v5355_v24, %s10522_s16 }
 0x760   : > { %v4392_v15 = vadd.f32 %v13304_v30, %v4376_v3  ;;  %v4391_v49 = vadd.f32 %v13297_v45, %v4375_v48 }
 0x761   : > { %v4403_v21 = vpop.permute.xlu1 %4402  ;;  %v4450_v14 = vpop.permute.xlu0 %4449 }
 0x762   : > { %v4406_v18 = vadd.f32 %v4401_v46, %v4391_v49  ;;  %v4407_v7 = vadd.f32 %v4403_v21, %v4392_v15 }
 0x763   : > { %5367 = vrot.lane.b32.xlu1 %v15103_v10, %s15041_s5 }
 0x764   : > { %v4422_v63 = vadd.f32 %v13313_v42, %v4406_v18  ;;  %v4423_v23 = vadd.f32 %v13306_v36, %v4407_v7 }
 0x765   : > { %v4452_v20 = vpop.permute.xlu1 %4451  ;;  %v4483_v27 = vpop.permute.xlu0 %4482 }
 0x766   : > { %v4431_v40 = vadd.f32 %v12855_v55, %v4422_v63  ;;  %v4432_v30 = vadd.f32 %v12939_v19, %v4423_v23 }
 0x768   : > { %v4441_v45 = vadd.f32 %v13021_v54, %v4431_v40  ;;  %v4442_v31 = vadd.f32 %v13081_v59, %v4432_v30 }
 0x769   : > { %v4481_v12 = vpop.permute.xlu1 %4480  ;;  %v4512_v4 = vpop.permute.xlu0 %4511 }
 0x76a   : > { %v4455_v56 = vadd.f32 %v4450_v14, %v4441_v45  ;;  %v4456_v6 = vadd.f32 %v4452_v20, %v4442_v31 }
 0x76c   : > { %v4471_v8 = vadd.f32 %v13322_v34, %v4455_v56  ;;  %v4472_v42 = vadd.f32 %v13315_v25, %v4456_v6 }
 0x76d   : > { %v4514_v39 = vpop.permute.xlu1 %4513  ;;  %v4545_v36 = vpop.permute.xlu0 %4544 }
 0x76e   : > { %v4487_v44 = vadd.f32 %v4483_v27, %v4472_v42  ;;  %v4486_v24 = vadd.f32 %v4481_v12, %v4471_v8 }
 0x770   : > { %v4503_v55 = vadd.f32 %v13331_v41, %v4487_v44  ;;  %v4502_v19 = vadd.f32 %v13324_v5, %v4486_v24 }
 0x771   : > { %v4543_v17 = vpop.permute.xlu1 %4542  ;;  %v4574_v54 = vpop.permute.xlu0 %4573 }
 0x772   : > { %v4517_v46 = vadd.f32 %v4512_v4, %v4502_v19  ;;  %v4518_v59 = vadd.f32 %v4514_v39, %v4503_v55 }
 0x774   : > { %v4533_v3 = vadd.f32 %v13340_v1, %v4517_v46  ;;  %v4534_v48 = vadd.f32 %v13333_v26, %v4518_v59 }
 0x775   : > { %v4576_v15 = vpop.permute.xlu1 %4575  ;;  %v4607_v34 = vpop.permute.xlu0 %4606 }
 0x776   : > { %v4549_v49 = vadd.f32 %v4545_v36, %v4534_v48  ;;  %v4548_v25 = vadd.f32 %v4543_v17, %v4533_v3 }
 0x778   : > { %v4565_v21 = vadd.f32 %v13349_v33, %v4549_v49  ;;  %v4564_v14 = vadd.f32 %v13342_v61, %v4548_v25 }
 0x779   : > { %v4605_v18 = vpop.permute.xlu1 %4604  ;;  %v4657_v41 = vpop.permute.xlu0 %4656 }
 0x77a   : > { %v4579_v7 = vadd.f32 %v4574_v54, %v4564_v14  ;;  %v4580_v5 = vadd.f32 %v4576_v15, %v4565_v21 }
 0x77c   : > { %v4595_v10 = vadd.f32 %v13358_v52, %v4579_v7  ;;  %v4596_v63 = vadd.f32 %v13351_v58, %v4580_v5  ;;  %v15106_v7 = vld [vmem:[#allocation71_spill] sm:$0xff] }
 0x77d   : > { %v4655_v23 = vpop.permute.xlu1 %4654  ;;  %v4685_v1 = vpop.permute.xlu0 %4684 }
 0x77e   : > { %v4611_v20 = vadd.f32 %v4607_v34, %v4596_v63  ;;  %v4610_v26 = vadd.f32 %v4605_v18, %v4595_v10  ;;  %v15107_v10 = vld [vmem:[#allocation70_spill] sm:$0xff] }
 0x780   : > { %v4627_v27 = vadd.f32 %v13367_v28, %v4611_v20  ;;  %v4626_v40 = vadd.f32 %v13360_v57, %v4610_v26  ;;  %v15108_v20 = vld [vmem:[#allocation76_spill] sm:$0xff] }
 0x781   : > { %v4687_v30 = vpop.permute.xlu1 %4686  ;;  %v4718_v33 = vpop.permute.xlu0 %4717 }
 0x782   : > { %v4636_v61 = vadd.f32 %v12987_v13, %v4627_v27  ;;  %v4635_v45 = vadd.f32 %v12874_v43, %v4626_v40  ;;  %v15109_v27 = vld [vmem:[#allocation77_spill] sm:$0xff] }
 0x784   : > { %v4646_v31 = vadd.f32 %v13110_v35, %v4636_v61  ;;  %v4645_v52 = vadd.f32 %v13037_v50, %v4635_v45  ;;  %v15110_v61 = vld [vmem:[#allocation79_spill] sm:$0xff] }
 0x785   : > { %v4716_v12 = vpop.permute.xlu1 %4715  ;;  %v4747_v58 = vpop.permute.xlu0 %4746 }
 0x786   : > { %v4661_v4 = vadd.f32 %v4657_v41, %v4646_v31  ;;  %v4660_v56 = vadd.f32 %v4655_v23, %v4645_v52  ;;  %v15111_v31 = vld [vmem:[#allocation78_spill] sm:$0xff] }
 0x788   : > { %v4677_v6 = vadd.f32 %v13376_v0, %v4661_v4  ;;  %v4676_v28 = vadd.f32 %v13369_v38, %v4660_v56  ;;  %v15112_v56 = vld [vmem:[#allocation80_spill] sm:$0xff] }
 0x789   : > { %v4749_v8 = vpop.permute.xlu1 %4748  ;;  %v4780_v57 = vpop.permute.xlu0 %4779 }
 0x78a   : > { %v4690_v42 = vadd.f32 %v4685_v1, %v4676_v28  ;;  %v4691_v39 = vadd.f32 %v4687_v30, %v4677_v6 }
 0x78c   : > { %v4706_v13 = vadd.f32 %v13385_v16, %v4690_v42  ;;  %v4707_v43 = vadd.f32 %v13378_v9, %v4691_v39 }
 0x78d   : > { %v4778_v36 = vpop.permute.xlu1 %4777  ;;  %v4809_v35 = vpop.permute.xlu0 %4808 }
 0x78e   : > { %v4722_v44 = vadd.f32 %v4718_v33, %v4707_v43  ;;  %v4721_v50 = vadd.f32 %v4716_v12, %v4706_v13  ;;  %v15113_v13 = vld [vmem:[#allocation81_spill] sm:$0xff] }
 0x790   : > { %v4738_v24 = vadd.f32 %v13394_v47, %v4722_v44  ;;  %v4737_v55 = vadd.f32 %v13387_v32, %v4721_v50 }
 0x791   : > { %v4811_v19 = vpop.permute.xlu1 %4810  ;;  %v4859_v0 = vpop.permute.xlu0 %4858 }
 0x792   : > { %v4752_v17 = vadd.f32 %v4747_v58, %v4737_v55  ;;  %v4753_v38 = vadd.f32 %v4749_v8, %v4738_v24 }
 0x794   : > { %v4768_v54 = vadd.f32 %v13403_v62, %v4752_v17  ;;  %v4769_v46 = vadd.f32 %v13396_v29, %v4753_v38  ;;  %v15104_v62 = vld [vmem:[#allocation67_spill] sm:$0xff]  ;;  %v15105_v29 = vld [vmem:[#allocation60_spill] sm:$0xff]  ;;  %v15116_v17 = vld [vmem:[#allocation84_spill] sm:$0xff] }
 0x795   : > { %v4861_v59 = vpop.permute.xlu1 %4860  ;;  %v4892_v16 = vpop.permute.xlu0 %4891 }
 0x796   : > { %v4784_v3 = vadd.f32 %v4780_v57, %v4769_v46  ;;  %v4783_v9 = vadd.f32 %v4778_v36, %v4768_v54  ;;  %v15114_v36 = vld [vmem:[#allocation82_spill] sm:$0xff] }
 0x798   : > { %v4800_v48 = vadd.f32 %v13412_v51, %v4784_v3  ;;  %v4799_v15 = vadd.f32 %v13405_v22, %v4783_v9  ;;  %v15118_v3 = vld [vmem:[#allocation85_spill] sm:$0xff] }
 0x799   : > { %v4890_v34 = vpop.permute.xlu1 %4889  ;;  %v4920_v32 = vpop.permute.xlu0 %4919 }
 0x79a   : > { %v4814_v47 = vadd.f32 %v4809_v35, %v4799_v15  ;;  %v4815_v49 = vadd.f32 %v4811_v19, %v4800_v48  ;;  %v15115_v19 = vld [vmem:[#allocation83_spill] sm:$0xff] }
 0x79c   : > { %v4830_v25 = vadd.f32 %v13421_v53, %v4814_v47  ;;  %v4831_v21 = vadd.f32 %v13414_v11, %v4815_v49  ;;  %v15120_v49 = vld [vmem:[#allocation69_spill] sm:$0xff] }
 0x79d   : > { %v4922_v14 = vpop.permute.xlu1 %4921  ;;  %v4953_v51 = vpop.permute.xlu0 %4952 }
 0x79e   : > { %v4840_v18 = vadd.f32 %v15104_v62, %v4831_v21  ;;  %v4839_v41 = vadd.f32 %v15105_v29, %v4830_v25  ;;  %v15121_v25 = vld [vmem:[#allocation72_spill] sm:$0xff] }
 0x7a0   : > { %v4850_v5 = vadd.f32 %v15106_v7, %v4840_v18  ;;  %v4849_v63 = vadd.f32 %v15107_v10, %v4839_v41 }
 0x7a1   : > { %v4951_v23 = vpop.permute.xlu1 %4950  ;;  %v4982_v33 = vpop.permute.xlu0 %4981 }
 0x7a2   : > { %v4864_v22 = vadd.f32 %v4859_v0, %v4849_v63  ;;  %v4865_v1 = vadd.f32 %v4861_v59, %v4850_v5  ;;  %v15123_v5 = vld [vmem:[#allocation87_spill] sm:$0xff]  ;;  %v15124_v63 = vld [vmem:[#allocation88_spill] sm:$0xff] }
 0x7a4   : > { %v4881_v26 = vadd.f32 %v15108_v20, %v4865_v1  ;;  %v4880_v40 = vadd.f32 %v15109_v27, %v4864_v22  ;;  %v15125_v20 = vld [vmem:[#allocation89_spill] sm:$0xff]  ;;  %v15126_v27 = vld [vmem:[#allocation90_spill] sm:$0xff] }
 0x7a5   : > { %v4984_v53 = vpop.permute.xlu1 %4983  ;;  %v5015_v8 = vpop.permute.xlu0 %5014 }
 0x7a6   : > { %v4896_v30 = vadd.f32 %v4892_v16, %v4881_v26  ;;  %v4895_v11 = vadd.f32 %v4890_v34, %v4880_v40  ;;  %v15119_v34 = vld [vmem:[#allocation68_spill] sm:$0xff] }
 0x7a8   : > { %v4912_v45 = vadd.f32 %v15110_v61, %v4896_v30  ;;  %v4911_v52 = vadd.f32 %v15111_v31, %v4895_v11  ;;  %v15127_v61 = vld [vmem:[#allocation91_spill] sm:$0xff]  ;;  %v15128_v31 = vld [vmem:[#allocation92_spill] sm:$0xff] }
 0x7a9   : > { %v5013_v12 = vpop.permute.xlu1 %5012  ;;  %v5065_v55 = vpop.permute.xlu0 %5064 }
 0x7aa   : > { %v4925_v58 = vadd.f32 %v4920_v32, %v4911_v52  ;;  %v4926_v4 = vadd.f32 %v4922_v14, %v4912_v45  ;;  %v15122_v14 = vld [vmem:[#allocation73_spill] sm:$0xff] }
 0x7ac   : > { %v4942_v6 = vadd.f32 %v15112_v56, %v4926_v4  ;;  %v4941_v28 = vadd.f32 %v13448_v2, %v4925_v58  ;;  %v15117_v2 = vld [vmem:[#allocation86_spill] sm:$0xff] }
 0x7ad   : > { %v5063_v57 = vpop.permute.xlu1 %5062  ;;  %v5094_v48 = vpop.permute.xlu0 %5093 }
 0x7ae   : > { %v4957_v42 = vadd.f32 %v4953_v51, %v4942_v6  ;;  %v4956_v39 = vadd.f32 %v4951_v23, %v4941_v28  ;;  %v15129_v6 = vld [vmem:[#allocation93_spill] sm:$0xff] }
 0x7b0   : > { %v4972_v43 = vadd.f32 %v15113_v13, %v4956_v39  ;;  %v4973_v35 = vadd.f32 %v15114_v36, %v4957_v42 }
 0x7b1   : > { %v5096_v44 = vpop.permute.xlu1 %5095  ;;  %v5127_v7 = vpop.permute.xlu0 %5126 }
 0x7b2   : > { %v4987_v50 = vadd.f32 %v4982_v33, %v4972_v43  ;;  %v4988_v24 = vadd.f32 %v4984_v53, %v4973_v35  ;;  %v15131_v43 = vld [vmem:[#allocation95_spill] sm:$0xff]  ;;  %v15132_v35 = vld [vmem:[#allocation96_spill] sm:$0xff] }
 0x7b4   : > { %v5004_v0 = vadd.f32 %v15115_v19, %v4988_v24  ;;  %v5003_v38 = vadd.f32 %v15116_v17, %v4987_v50  ;;  %v5244_v50 = vstv %s13244_s27  ;;  %v15133_v17 = vld [vmem:[#allocation98_spill] sm:$0xff] }
 0x7b5   : > { %v5125_v54 = vpop.permute.xlu1 %5124  ;;  %v5155_v53 = vpop.permute.xlu0 %5154 }
 0x7b6   : > { %v5019_v46 = vadd.f32 %v5015_v8, %v5004_v0  ;;  %v5018_v59 = vadd.f32 %v5013_v12, %v5003_v38  ;;  %v15130_v8 = vld [vmem:[#allocation94_spill] sm:$0xff] }
 0x7b8   : > { %v5035_v16 = vadd.f32 %v15117_v2, %v5019_v46  ;;  %v5034_v9 = vadd.f32 %v15118_v3, %v5018_v59  ;;  %v5245_v59 = vmul.f32 %v5244_v50, %v13553_v37  ;;  %v5246_v2 = vmul.f32 %v5244_v50, %v13561_v60 }
 0x7b9   : > { %v5157_v15 = vpop.permute.xlu1 %5156  ;;  %v5188_v56 = vpop.permute.xlu0 %5187  ;;  %v5254_v3 = vstv %s13248_s14 }
 0x7ba   : > { %v5044_v47 = vadd.f32 %v15119_v34, %v5035_v16  ;;  %v5043_v32 = vadd.f32 %v15120_v49, %v5034_v9  ;;  %v13673_v16 = vld [vmem:[%s15135_s6 + $0x28] sm:$0xff] }
 0x7bc   : > { %v5054_v21 = vadd.f32 %v15121_v25, %v5044_v47  ;;  %v5053_v62 = vadd.f32 %v15122_v14, %v5043_v32  ;;  %v15137_v47 = vld [vmem:[#allocation74_spill] sm:$0xff] }
 0x7bd   : > { %v5186_v18 = vpop.permute.xlu1 %5185  ;;  %v5217_v24 = vpop.permute.xlu0 %5216  ;;  %v5256_v49 = vmul.f32 %v5254_v3, %v15137_v47 }
 0x7be   : > { %v5069_v29 = vadd.f32 %v5065_v55, %v5054_v21  ;;  %v5068_v41 = vadd.f32 %v5063_v57, %v5053_v62 }
 0x7c0   : > { %v5084_v10 = vadd.f32 %v15123_v5, %v5068_v41  ;;  %v5085_v51 = vadd.f32 %v15124_v63, %v5069_v29 }
 0x7c1   : > { %v5219_v23 = vpop.permute.xlu1 %5218  ;;  %v13693_v5 = vpop.permute.xlu0 %5266 }
 0x7c2   : > { %v5099_v22 = vadd.f32 %v5094_v48, %v5084_v10  ;;  %v5100_v1 = vadd.f32 %v5096_v44, %v5085_v51 }
 0x7c4   : > { %v5116_v26 = vadd.f32 %v15125_v20, %v5100_v1  ;;  %v5115_v40 = vadd.f32 %v15126_v27, %v5099_v22  ;;  %v5413_v1 = vrot.slane %v13673_v16, 1 }
 0x7c5   : > { %v13651_v30 = vpop.permute.xlu1 %5268  ;;  %v13695_v10 = vpop.permute.xlu0 %5299 }
 0x7c6   : > { %v5131_v11 = vadd.f32 %v5127_v7, %v5116_v26  ;;  %v5130_v33 = vadd.f32 %v5125_v54, %v5115_v40  ;;  %v15134_v54 = vld [vmem:[#allocation97_spill] sm:$0xff] }
 0x7c8   : > { %v5146_v45 = vadd.f32 %v15127_v61, %v5130_v33  ;;  %v5147_v52 = vadd.f32 %v15128_v31, %v5131_v11 }
 0x7c9   : > { %v13655_v12 = vpop.permute.xlu1 %5297  ;;  %v13697_v63 = vpop.permute.xlu0 %5328 }
 0x7ca   : > { %v5160_v58 = vadd.f32 %v5155_v53, %v5146_v45  ;;  %v5161_v4 = vadd.f32 %v5157_v15, %v5147_v52  ;;  %v15136_v15 = vld [vmem:[#allocation75_spill] sm:$0xff] }
 0x7cb   : > { %v5255_v34 = vmul.f32 %v5254_v3, %v15136_v15 }
 0x7cc   : > { %v5177_v28 = vadd.f32 %v15129_v6, %v5161_v4  ;;  %v5176_v57 = vadd.f32 %v15130_v8, %v5160_v58  ;;  %v5446_v58 = vrot.slane %v13673_v16, 2  ;;  %v10500_v6 = vld [vmem:[#allocation5 + $0xd] sm:$0xff]  ;;  %v5463_v8 = vrot.slane %v13673_v16, 3 }
 0x7cd   : > { %v13659_v42 = vpop.permute.xlu1 %5330  ;;  %v13699_v51 = vpop.permute.xlu0 %5361 }
 0x7ce   : > { %v5192_v39 = vadd.f32 %v5188_v56, %v5177_v28  ;;  %v5191_v13 = vadd.f32 %v5186_v18, %v5176_v57  ;;  %v5494_v57 = vrot.slane %v13673_v16, 4 }
 0x7d0   : > { %v5207_v36 = vadd.f32 %v15131_v43, %v5191_v13  ;;  %v5208_v44 = vadd.f32 %v15132_v35, %v5192_v39  ;;  %v5525_v39 = vrot.slane %v13673_v16, 5  ;;  %v5556_v13 = vrot.slane %v13673_v16, 6 }
 0x7d1   : > { %v13664_v55 = vpop.permute.xlu1 %5359  ;;  %v5587_v43 = vrot.slane %v13673_v16, 7 }
 0x7d2   : > { %v5222_v19 = vadd.f32 %v5217_v24, %v5207_v36  ;;  %v5223_v0 = vadd.f32 %v5219_v23, %v5208_v44  ;;  %v4219_v36 = vld [vmem:[%s15135_s6 + $0x30] sm:$0x1] }
 0x7d4   : > { %v5238_v38 = vadd.f32 %v15133_v17, %v5222_v19  ;;  %v5239_v46 = vadd.f32 %v15134_v54, %v5223_v0 }
 0x7d5   : > { %v5368_v9 = vpop.permute.xlu1 %5367 }
 0x7d6   : > { %v5247_v48 = vadd.f32 %v5245_v59, %v5238_v38  ;;  %v5248_v32 = vadd.f32 %v5246_v2, %v5239_v46  ;;  %10377 = vpush %v5368_v9  ;;  %v15139_v9 = vld [vmem:[#allocation100_spill] sm:$0xff] }
 0x7d7   : > { %10379 = vpush %v13673_v16 }
 0x7d8   : > { %v13679_v25 = vadd.f32 %v5255_v34, %v5247_v48  ;;  %v13681_v21 = vadd.f32 %v5256_v49, %v5248_v32  ;;  %v15140_v49 = vld [vmem:[#allocation102_spill] sm:$0xff]  ;;  %v15141_v32 = vld [vmem:[#allocation101_spill] sm:$0xff] }
 0x7da   : > { %v5273_v46 = vadd.f32 %v13651_v30, %v13681_v21  ;;  %v5272_v59 = vadd.f32 %v13693_v5, %v13679_v25 }
 0x7dc   : > { %v5288_v48 = vadd.f32 %v15139_v9, %v5272_v59 }
 0x807   : > { %s10378_s8 = spop %10377 }
 0x808   : > { %v5370_v14 = vstv %s10378_s8  ;;  %s10380_s10 = spop %10379 }
 0x809   : > { %v5371_v62 = vmul.f32 %v5370_v14, %v15136_v15  ;;  %v5372_v18 = vmul.f32 %v5370_v14, %v15137_v47  ;;  %v5384_v29 = vstv %s10380_s10  ;;  %s10527_s10 = smov 56  }
 0x80a   : > { %v5385_v41 = vmul.f32 %v5384_v29, %v13553_v37  ;;  %v5386_v7 = vmul.f32 %v5384_v29, %v13561_v60  ;;  %v15143_v29 = vld [vmem:[#allocation104_spill] sm:$0xff] }
 0x80b   : > { %5377 = vrot.lane.b32.xlu1 %v5372_v18, %s10522_s16  ;;  %5375 = vrot.lane.b32.xlu0 %v5371_v62, %s10522_s16  ;;  %v15142_v62 = vld [vmem:[#allocation103_spill] sm:$0xff] }
 0x80f   : > { %5391 = vrot.lane.b32.xlu1 %v5386_v7, %s10523_s19  ;;  %5389 = vrot.lane.b32.xlu0 %v5385_v41, %s10523_s19 }
 0x813   : > { %5397 = vrot.lane.b32.xlu0 %v13673_v16, %s15041_s5  ;;  %v15138_v16 = vld [vmem:[#allocation99_spill] sm:$0xff] }
 0x814   : > { %v5289_v3 = vadd.f32 %v15138_v16, %v5273_v46 }
 0x816   : > { %v5304_v34 = vadd.f32 %v13695_v10, %v5289_v3 }
 0x818   : > { %v5320_v30 = vadd.f32 %v15140_v49, %v5304_v34 }
 0x81a   : > { %v5335_v25 = vadd.f32 %v13659_v42, %v5320_v30 }
 0x81c   : > { %v5351_v18 = vadd.f32 %v15142_v62, %v5335_v25 }
 0x81e   : > { %v5366_v7 = vadd.f32 %v13699_v51, %v5351_v18  ;;  %v13763_v51 = vld [vmem:[#allocation4 + $0xe] sm:$0xff] }
 0x87d   : > { %v13701_v23 = vpop.permute.xlu0 %5375  ;;  %v13715_v61 = vpop.permute.xlu1 %5377 }
 0x87e   : > { %v5382_v10 = vadd.f32 %v13715_v61, %v5366_v7  ;;  %v13769_v61 = vld [vmem:[#allocation5 + $0x6] sm:$0xff]  ;;  %v6386_v7 = vld [vmem:[#allocation2 + $0x9] sm:$0xff] }
 0x881   : > { %v13703_v22 = vpop.permute.xlu0 %5389  ;;  %v13717_v45 = vpop.permute.xlu1 %5391 }
 0x885   : > { %v5398_v20 = vpop.permute.xlu0 %5397 }
 0x886   : > { %10381 = vpush %v5398_v20 }
 0x887   : > { %10383 = vpush %v5413_v1 }
 0x8b7   : > { %s10382_s30 = spop %10381 }
 0x8b8   : > { %v5400_v26 = vstv %s10382_s30  ;;  %s10384_s18 = spop %10383 }
 0x8b9   : > { %v5401_v27 = vmul.f32 %v5400_v26, %v15136_v15  ;;  %v5402_v40 = vmul.f32 %v5400_v26, %v15137_v47  ;;  %v5415_v53 = vstv %s10384_s18  ;;  %v5303_v47 = vadd.f32 %v13655_v12, %v5288_v48 }
 0x8ba   : > { %v5416_v11 = vmul.f32 %v5415_v53, %v13553_v37  ;;  %v5417_v33 = vmul.f32 %v5415_v53, %v13561_v60  ;;  %v10499_v60 = vld [vmem:[#allocation5 + $0x5] sm:$0xff] }
 0x8bb   : > { %5407 = vrot.lane.b32.xlu0 %v5402_v40, %s10523_s19  ;;  %5405 = vrot.lane.b32.xlu1 %v5401_v27, %s10523_s19  ;;  %v5319_v21 = vadd.f32 %v15141_v32, %v5303_v47 }
 0x8bd   : > { %v5334_v14 = vadd.f32 %v13697_v63, %v5319_v21 }
 0x8bf   : > { %5422 = vrot.lane.b32.xlu0 %v5417_v33, %s10524_s4  ;;  %5420 = vrot.lane.b32.xlu1 %v5416_v11, %s10524_s4  ;;  %v5350_v41 = vadd.f32 %v15143_v29, %v5334_v14  ;;  %v13765_v11 = vld [vmem:[#allocation4 + $0x6] sm:$0xff] }
 0x8c0   : > { %v6129_v29 = vld [vmem:[#allocation2 + $0x8] sm:$0xff] }
 0x8c1   : > { %v5365_v5 = vadd.f32 %v13664_v55, %v5350_v41  ;;  %v6130_v41 = vld [vmem:[#allocation2 + $0x10] sm:$0xff] }
 0x8c3   : > { %5428 = vrot.lane.b32.xlu1 %v5413_v1, %s15041_s5  ;;  %v5381_v12 = vadd.f32 %v13701_v23, %v5365_v5  ;;  %v5396_v1 = vadd.f32 %v13717_v45, %v5382_v10  ;;  %v13771_v45 = vld [vmem:[#allocation5 + $0xe] sm:$0xff]  ;;  %v9827_v5 = vpack.c.bf16 %v6129_v29, %v6129_v29  ;;  %v9828_v10 = vpack.c.bf16 %v6130_v41, %v6130_v41  ;;  %v15146_v41 = vld [vmem:[#allocation9_spill] sm:$0xff] }
 0x8c5   : > { %v5395_v20 = vadd.f32 %v13703_v22, %v5381_v12  ;;  %v6387_v12 = vld [vmem:[#allocation2 + $0x11] sm:$0xff] }
 0x92d   : > { %v13719_v31 = vpop.permute.xlu1 %5405  ;;  %v5408_v35 = vpop.permute.xlu0 %5407 }
 0x92e   : > { %v5412_v26 = vadd.f32 %v5408_v35, %v5396_v1  ;;  %v5411_v42 = vadd.f32 %v13719_v31, %v5395_v20  ;;  %v9859_v1 = vpack.c.bf16 %v6386_v7, %v6386_v7  ;;  %v9860_v20 = vpack.c.bf16 %v6387_v12, %v6387_v12 }
 0x931   : > { %v13721_v52 = vpop.permute.xlu1 %5420  ;;  %v5423_v44 = vpop.permute.xlu0 %5422 }
 0x932   : > { %v5427_v63 = vadd.f32 %v5423_v44, %v5412_v26  ;;  %v5426_v27 = vadd.f32 %v13721_v52, %v5411_v42 }
 0x935   : > { %v5429_v4 = vpop.permute.xlu1 %5428 }
 0x936   : > { %10385 = vpush %v5429_v4 }
 0x937   : > { %10387 = vpush %v5446_v58 }
 0x967   : > { %s10386_s27 = spop %10385 }
 0x968   : > { %v5431_v37 = vstv %s10386_s27  ;;  %s10388_s23 = spop %10387 }
 0x969   : > { %v5432_v56 = vmul.f32 %v10499_v60, %v5431_v37  ;;  %v5433_v28 = vmul.f32 %v10500_v6, %v5431_v37  ;;  %v5448_v40 = vstv %s10388_s23 }
 0x96a   : > { %v5450_v23 = vmul.f32 %v5448_v40, %v13763_v51  ;;  %v5449_v33 = vmul.f32 %v5448_v40, %v13765_v11 }
 0x96b   : > { %5438 = vrot.lane.b32.xlu1 %v5433_v28, %s10524_s4  ;;  %5436 = vrot.lane.b32.xlu0 %v5432_v56, %s10524_s4 }
 0x96f   : > { %5478 = vrot.lane.b32.xlu1 %v5463_v8, %s15041_s5  ;;  %5455 = vrot.lane.b32.xlu0 %v5446_v58, %s15041_s5 }
 0x973   : > { %5509 = vrot.lane.b32.xlu1 %v5494_v57, %s15041_s5 }
 0x977   : > { %5540 = vrot.lane.b32.xlu1 %v5525_v39, %s15041_s5 }
 0x97b   : > { %5571 = vrot.lane.b32.xlu1 %v5556_v13, %s15041_s5 }
 0x97f   : > { %5602 = vrot.lane.b32.xlu1 %v5587_v43, %s15041_s5 }
 0x983   : > { %5632 = vrot.lane.b32.xlu1 %v4219_v36, %s15041_s5 }
 0x9dd   : > { %v5439_v50 = vpop.permute.xlu1 %5438  ;;  %v5437_v24 = vpop.permute.xlu0 %5436 }
 0x9de   : > { %v5443_v53 = vadd.f32 %v5439_v50, %v5427_v63  ;;  %v5442_v55 = vadd.f32 %v5437_v24, %v5426_v27 }
 0x9e0   : > { %v5452_v22 = vadd.f32 %v5450_v23, %v5443_v53  ;;  %v5451_v52 = vadd.f32 %v5449_v33, %v5442_v55 }
 0x9e1   : > { %v5479_v19 = vpop.permute.xlu1 %5478  ;;  %v5456_v0 = vpop.permute.xlu0 %5455 }
 0x9e2   : > { %10389 = vpush %v5456_v0 }
 0x9e3   : > { %10391 = vpush %v5463_v8 }
 0x9e4   : > { %10393 = vpush %v5479_v19 }
 0x9e5   : > { %10395 = vpush %v5494_v57  ;;  %v5510_v17 = vpop.permute.xlu1 %5509 }
 0x9e6   : > { %10397 = vpush %v5510_v17 }
 0x9e7   : > { %10399 = vpush %v5525_v39 }
 0x9e9   : > { %v5541_v38 = vpop.permute.xlu1 %5540 }
 0x9ea   : > { %10401 = vpush %v5541_v38 }
 0x9eb   : > { %10403 = vpush %v5556_v13 }
 0x9ed   : > { %v5572_v54 = vpop.permute.xlu1 %5571 }
 0x9ee   : > { %10405 = vpush %v5572_v54 }
 0x9ef   : > { %10407 = vpush %v5587_v43 }
 0x9f1   : > { %v5603_v2 = vpop.permute.xlu1 %5602 }
 0x9f2   : > { %10409 = vpush %v5603_v2 }
 0x9f3   : > { %10411 = vpush %v4219_v36 }
 0x9f5   : > { %v5633_v15 = vpop.permute.xlu1 %5632 }
 0x9f6   : > { %10413 = vpush %v5633_v15 }
 0xa13   : > { %s10390_s29 = spop %10389 }
 0xa14   : > { %v5458_v31 = vstv %s10390_s29  ;;  %s10392_s25 = spop %10391 }
 0xa15   : > { %v5459_v58 = vmul.f32 %v5458_v31, %v13769_v61  ;;  %v5460_v4 = vmul.f32 %v5458_v31, %v13771_v45  ;;  %v5465_v37 = vstv %s10392_s25  ;;  %s10394_s24 = spop %10393 }
 0xa16   : > { %v5466_v60 = vmul.f32 %v5465_v37, %v13765_v11  ;;  %s13776_s11 = spop %10395  ;;  %v5467_v57 = vmul.f32 %v5465_v37, %v13763_v51  ;;  %v5481_v13 = vstv %s10394_s24 }
 0xa17   : > { %v13778_v56 = vadd.f32 %v5459_v58, %v5451_v52  ;;  %v13780_v6 = vadd.f32 %v5460_v4, %v5452_v22  ;;  %s13782_s1 = spop %10397  ;;  %v5482_v36 = vmul.f32 %v5481_v13, %v13769_v61  ;;  %v5483_v50 = vmul.f32 %v5481_v13, %v13771_v45 }
 0xa18   : > { %v5512_v28 = vstv %s13782_s1  ;;  %s13785_s3 = spop %10399  ;;  %5470 = vrot.lane.b32.xlu0 %v5466_v60, %s15041_s5  ;;  %v5496_v19 = vstv %s13776_s11  ;;  %s15183_s11 = sld [smem:[#allocation110_spill]] }
 0xa19   : > { %v5513_v8 = vmul.f32 %v5512_v28, %v13769_v61  ;;  %v5527_v39 = vstv %s13785_s3  ;;  %v5497_v17 = vmul.f32 %v5496_v19, %v13765_v11  ;;  %v5498_v46 = vmul.f32 %v5496_v19, %v13763_v51 }
 0xa1a   : > { %v5528_v43 = vmul.f32 %v5527_v39, %v13765_v11  ;;  %v5514_v16 = vmul.f32 %v5512_v28, %v13771_v45  ;;  %v5529_v48 = vmul.f32 %v5527_v39, %v13763_v51 }
 0xa1b   : > { %s13791_s2 = spop %10401  ;;  %5517 = vrot.lane.b32.xlu1 %v5513_v8, %s10520_s20 }
 0xa1c   : > { %5472 = vrot.lane.b32.xlu0 %v5467_v57, %s15041_s5  ;;  %v5543_v35 = vstv %s13791_s2  ;;  %s13798_s7 = spop %10403  ;;  %s15184_s2 = sld [smem:[#allocation111_spill]] }
 0xa1d   : > { %v5544_v44 = vmul.f32 %v5543_v35, %v13769_v61  ;;  %v5558_v24 = vstv %s13798_s7  ;;  %v5545_v47 = vmul.f32 %v5543_v35, %v13771_v45  ;;  %s15185_s7 = sld [smem:[#allocation7_spill]] }
 0xa1e   : > { %v5559_v0 = vmul.f32 %v5558_v24, %v13765_v11  ;;  %v5560_v32 = vmul.f32 %v5558_v24, %v13763_v51 }
 0xa1f   : > { %5532 = vrot.lane.b32.xlu1 %v5528_v43, %s10521_s22  ;;  %s13806_s9 = spop %10405 }
 0xa20   : > { %5486 = vrot.lane.b32.xlu0 %v5482_v36, %s15041_s5  ;;  %v5574_v38 = vstv %s13806_s9  ;;  %s13813_s13 = spop %10407 }
 0xa21   : > { %v5575_v54 = vmul.f32 %v5574_v38, %v13769_v61  ;;  %v5589_v59 = vstv %s13813_s13  ;;  %v5576_v21 = vmul.f32 %v5574_v38, %v13771_v45 }
 0xa22   : > { %v5590_v2 = vmul.f32 %v5589_v59, %v13765_v11  ;;  %v5591_v25 = vmul.f32 %v5589_v59, %v13763_v51 }
 0xa23   : > { %5548 = vrot.lane.b32.xlu1 %v5544_v44, %s10521_s22  ;;  %s10410_s28 = spop %10409 }
 0xa24   : > { %5488 = vrot.lane.b32.xlu0 %v5483_v50, %s15041_s5  ;;  %v5605_v3 = vstv %s10410_s28  ;;  %s10412_s5 = spop %10411 }
 0xa25   : > { %v5606_v9 = vmul.f32 %v5605_v3, %v13769_v61  ;;  %v5619_v15 = vstv %s10412_s5  ;;  %v5607_v14 = vmul.f32 %v5605_v3, %v13771_v45 }
 0xa26   : > { %v5620_v34 = vmul.f32 %v5619_v15, %v13765_v11  ;;  %v5621_v62 = vmul.f32 %v5619_v15, %v13763_v51 }
 0xa27   : > { %5563 = vrot.lane.b32.xlu1 %v5559_v0, %s10522_s16  ;;  %s10414_s17 = spop %10413 }
 0xa28   : > { %5501 = vrot.lane.b32.xlu0 %v5497_v17, %s10520_s20  ;;  %v5635_v49 = vstv %s10414_s17 }
 0xa29   : > { %v5636_v30 = vmul.f32 %v5635_v49, %v13769_v61  ;;  %v5637_v18 = vmul.f32 %v5635_v49, %v13771_v45 }
 0xa2b   : > { %5579 = vrot.lane.b32.xlu1 %v5575_v54, %s10522_s16 }
 0xa2c   : > { %5503 = vrot.lane.b32.xlu0 %v5498_v46, %s10520_s20 }
 0xa2f   : > { %5594 = vrot.lane.b32.xlu1 %v5590_v2, %s10523_s19 }
 0xa30   : > { %5519 = vrot.lane.b32.xlu0 %v5514_v16, %s10520_s20  ;;  %s15144_s20 = smov 8  }
 0xa33   : > { %5610 = vrot.lane.b32.xlu1 %v5606_v9, %s10523_s19 }
 0xa34   : > { %5534 = vrot.lane.b32.xlu0 %v5529_v48, %s10521_s22 }
 0xa37   : > { %5624 = vrot.lane.b32.xlu1 %v5620_v34, %s10524_s4 }
 0xa38   : > { %5550 = vrot.lane.b32.xlu0 %v5545_v47, %s10521_s22  ;;  %s15145_s22 = smov 16  }
 0xa3b   : > { %5640 = vrot.lane.b32.xlu1 %v5636_v30, %s10524_s4 }
 0xa3c   : > { %5565 = vrot.lane.b32.xlu0 %v5560_v32, %s10522_s16 }
 0xa3f   : > { %6257 = vrot.lane.b32.xlu1 %v9827_v5, %s15144_s20  ;;  %v15147_v5 = vld [vmem:[#allocation8_spill] sm:$0xff] }
 0xa40   : > { %5581 = vrot.lane.b32.xlu0 %v5576_v21, %s10522_s16  ;;  %s15180_s16 = smov 24  }
 0xa43   : > { %6514 = vrot.lane.b32.xlu1 %v9859_v1, %s15145_s22 }
 0xa44   : > { %5596 = vrot.lane.b32.xlu0 %v5591_v25, %s10523_s19 }
 0xa48   : > { %5612 = vrot.lane.b32.xlu0 %v5607_v14, %s10523_s19  ;;  %s15181_s19 = smov 32  }
 0xa4c   : > { %5626 = vrot.lane.b32.xlu0 %v5621_v62, %s10524_s4 }
 0xa50   : > { %5642 = vrot.lane.b32.xlu0 %v5637_v18, %s10524_s4  ;;  %s10525_s4 = smov 40  }
 0xa54   : > { %6259 = vrot.lane.b32.xlu0 %v9828_v10, %s15144_s20  ;;  %v5671_v10 = vsub.s32 1, %v15147_v5 }
 0xa58   : > { %6516 = vrot.lane.b32.xlu0 %v9860_v20, %s15145_s22 }
 0xa8a   : > { %v5471_v26 = vpop.permute.xlu0 %5470 }
 0xa8b   : > { %v5476_v55 = vadd.f32 %v5471_v26, %v13778_v56  ;;  %v5682_v26 = vsub.s32 2, %v15147_v5 }
 0xa8d   : > { %v5518_v42 = vpop.permute.xlu1 %5517 }
 0xa8e   : > { %v5473_v63 = vpop.permute.xlu0 %5472 }
 0xa8f   : > { %v5477_v35 = vadd.f32 %v5473_v63, %v13780_v6  ;;  %v5693_v63 = vsub.s32 3, %v15147_v5 }
 0xa91   : > { %v5533_v27 = vpop.permute.xlu1 %5532 }
 0xa92   : > { %v5487_v40 = vpop.permute.xlu0 %5486 }
 0xa93   : > { %v5492_v11 = vadd.f32 %v5487_v40, %v5476_v55 }
 0xa95   : > { %v5549_v53 = vpop.permute.xlu1 %5548 }
 0xa96   : > { %v5489_v51 = vpop.permute.xlu0 %5488 }
 0xa97   : > { %v5493_v19 = vadd.f32 %v5489_v51, %v5477_v35  ;;  %v5704_v51 = vsub.s32 4, %v15147_v5 }
 0xa99   : > { %v5564_v23 = vpop.permute.xlu1 %5563 }
 0xa9a   : > { %v5502_v33 = vpop.permute.xlu0 %5501 }
 0xa9b   : > { %v5507_v22 = vadd.f32 %v5502_v33, %v5492_v11  ;;  %v5715_v11 = vsub.s32 5, %v15147_v5  ;;  %v5726_v33 = vsub.s32 6, %v15147_v5 }
 0xa9d   : > { %v5523_v61 = vadd.f32 %v5518_v42, %v5507_v22  ;;  %v5580_v45 = vpop.permute.xlu1 %5579 }
 0xa9e   : > { %v5504_v31 = vpop.permute.xlu0 %5503 }
 0xa9f   : > { %v5538_v52 = vadd.f32 %v5533_v27, %v5523_v61  ;;  %v5508_v17 = vadd.f32 %v5504_v31, %v5493_v19  ;;  %v5737_v61 = vsub.s32 7, %v15147_v5 }
 0xaa1   : > { %v5554_v58 = vadd.f32 %v5549_v53, %v5538_v52  ;;  %v5595_v4 = vpop.permute.xlu1 %5594 }
 0xaa2   : > { %v5520_v37 = vpop.permute.xlu0 %5519 }
 0xaa3   : > { %v5569_v60 = vadd.f32 %v5564_v23, %v5554_v58  ;;  %v5524_v46 = vadd.f32 %v5520_v37, %v5508_v17 }
 0xaa5   : > { %v5585_v28 = vadd.f32 %v5580_v45, %v5569_v60  ;;  %v5611_v8 = vpop.permute.xlu1 %5610 }
 0xaa6   : > { %v5535_v57 = vpop.permute.xlu0 %5534 }
 0xaa7   : > { %v5600_v39 = vadd.f32 %v5595_v4, %v5585_v28  ;;  %v5539_v59 = vadd.f32 %v5535_v57, %v5524_v46  ;;  %v15152_v46 = vld [vmem:[#allocation17_spill] sm:$0xff] }
 0xaa9   : > { %v5616_v13 = vadd.f32 %v5611_v8, %v5600_v39  ;;  %v5625_v43 = vpop.permute.xlu1 %5624 }
 0xaaa   : > { %v5551_v36 = vpop.permute.xlu0 %5550 }
 0xaab   : > { %v5630_v56 = vadd.f32 %v5625_v43, %v5616_v13  ;;  %v5555_v16 = vadd.f32 %v5551_v36, %v5539_v59  ;;  %v15148_v43 = vld [vmem:[#allocation10_spill] sm:$0xff] }
 0xaad   : > { %v5641_v44 = vpop.permute.xlu1 %5640 }
 0xaae   : > { %v5646_v50 = vadd.f32 %v5641_v44, %v5630_v56  ;;  %v5566_v24 = vpop.permute.xlu0 %5565  ;;  %v15149_v56 = vld [vmem:[#allocation11_spill] sm:$0xff] }
 0xaaf   : > { %v5570_v3 = vadd.f32 %v5566_v24, %v5555_v16  ;;  %v15150_v24 = vld [vmem:[#allocation15_spill] sm:$0xff] }
 0xab0   : > { %v5648_v0 = vsub.f32 0.0, %v5646_v50 }
 0xab1   : > { %v6258_v62 = vpop.permute.xlu1 %6257 }
 0xab2   : > { %v5650_v38 = vmul.f32 1.442695, %v5648_v0  ;;  %v5582_v54 = vpop.permute.xlu0 %5581  ;;  %6354 = vst.msk [vmem:[#allocation3] sm:$0xf] %vm6353_vm1, %v6258_v62  ;;  %v15151_v0 = vld [vmem:[#allocation13_spill] sm:$0xff] }
 0xab3   : > { %v5586_v48 = vadd.f32 %v5582_v54, %v5570_v3 }
 0xab4   : > { %10486 = vpow2.f32 %v5650_v38 }
 0xab5   : > { %v6515_v12 = vpop.permute.xlu1 %6514 }
 0xab6   : > { %v5597_v2 = vpop.permute.xlu0 %5596  ;;  %6611 = vst.msk [vmem:[#allocation3] sm:$0xf] %vm6610_vm2, %v6515_v12 }
 0xab7   : > { %v5601_v15 = vadd.f32 %v5597_v2, %v5586_v48  ;;  %v15153_v2 = vld [vmem:[#allocation12_spill] sm:$0xff] }
 0xaba   : > { %v5613_v9 = vpop.permute.xlu0 %5612 }
 0xabb   : > { %v5617_v47 = vadd.f32 %v5613_v9, %v5601_v15 }
 0xabe   : > { %v5627_v34 = vpop.permute.xlu0 %5626 }
 0xabf   : > { %v5631_v49 = vadd.f32 %v5627_v34, %v5617_v47 }
 0xac1   : > { %v10487_v6 = vpop.eup %10486 }
 0xac2   : > { %v5654_v30 = vadd.f32 1.0, %v10487_v6  ;;  %v5643_v32 = vpop.permute.xlu0 %5642 }
 0xac3   : > { %v5647_v21 = vadd.f32 %v5643_v32, %v5631_v49 }
 0xac4   : > { %10488 = vrcp.f32 %v5654_v30 }
 0xac5   : > { %v5649_v25 = vsub.f32 0.0, %v5647_v21  ;;  %v15154_v21 = vld [vmem:[#allocation19_spill] sm:$0xff] }
 0xac6   : > { %v6260_v18 = vpop.permute.xlu0 %6259 }
 0xac7   : > { %v5652_v14 = vmul.f32 1.442695, %v5649_v25  ;;  %6355 = vst.msk [vmem:[#allocation3 + $0x4] sm:$0xf] %vm6353_vm1, %v6260_v18 }
 0xac9   : > { %10490 = vpow2.f32 %v5652_v14  ;;  %v15155_v14 = vld [vmem:[#allocation14_spill] sm:$0xff] }
 0xaca   : > { %v6517_v1 = vpop.permute.xlu0 %6516 }
 0xacb   : > { %6612 = vst.msk [vmem:[#allocation3 + $0x4] sm:$0xf] %vm6610_vm2, %v6517_v1 }
 0xad1   : > { %v10489_v29 = vpop.eup %10488 }
 0xad2   : > { %v5661_v7 = vrot.slane %v10489_v29, %v15146_v41  ;;  %v5672_v20 = vrot.slane %v10489_v29, %v5671_v10  ;;  %v5683_v42 = vrot.slane %v10489_v29, %v5682_v26  ;;  %v5694_v53 = vrot.slane %v10489_v29, %v5693_v63 }
 0xad3   : > { %v5705_v55 = vrot.slane %v10489_v29, %v5704_v51  ;;  %v5716_v23 = vrot.slane %v10489_v29, %v5715_v11  ;;  %v5727_v22 = vrot.slane %v10489_v29, %v5726_v33  ;;  %v5738_v45 = vrot.slane %v10489_v29, %v5737_v61 }
 0xad4   : > { %5667 = vbcast.lane.b32.xlu0 %v5661_v7, 264  ;;  %5663 = vbcast.lane.b32.xlu1 %v5661_v7, 256 }
 0xad6   : > { %v10491_v27 = vpop.eup %10490 }
 0xad7   : > { %v5655_v40 = vadd.f32 1.0, %v10491_v27  ;;  %v15157_v27 = vld [vmem:[#allocation16_spill] sm:$0xff] }
 0xad8   : > { %5678 = vbcast.lane.b32.xlu0 %v5672_v20, 264  ;;  %5674 = vbcast.lane.b32.xlu1 %v5672_v20, 256 }
 0xad9   : > { %10492 = vrcp.f32 %v5655_v40 }
 0xadc   : > { %5689 = vbcast.lane.b32.xlu0 %v5683_v42, 264  ;;  %5685 = vbcast.lane.b32.xlu1 %v5683_v42, 256  ;;  %v15156_v42 = vld [vmem:[#allocation21_spill] sm:$0xff] }
 0xae0   : > { %5700 = vbcast.lane.b32.xlu0 %v5694_v53, 264  ;;  %5696 = vbcast.lane.b32.xlu1 %v5694_v53, 256 }
 0xae4   : > { %5711 = vbcast.lane.b32.xlu0 %v5705_v55, 264  ;;  %5707 = vbcast.lane.b32.xlu1 %v5705_v55, 256 }
 0xae6   : > { %v10493_v31 = vpop.eup %10492 }
 0xae7   : > { %v5749_v52 = vrot.slane %v10493_v31, %v15146_v41  ;;  %v5760_v58 = vrot.slane %v10493_v31, %v5671_v10  ;;  %v5771_v4 = vrot.slane %v10493_v31, %v5682_v26  ;;  %v5782_v37 = vrot.slane %v10493_v31, %v5693_v63 }
 0xae8   : > { %5722 = vbcast.lane.b32.xlu0 %v5716_v23, 264  ;;  %5718 = vbcast.lane.b32.xlu1 %v5716_v23, 256  ;;  %v5793_v60 = vrot.slane %v10493_v31, %v5704_v51  ;;  %v5804_v28 = vrot.slane %v10493_v31, %v5715_v11  ;;  %v5815_v8 = vrot.slane %v10493_v31, %v5726_v33 }
 0xae9   : > { %v5826_v57 = vrot.slane %v10493_v31, %v5737_v61 }
 0xaec   : > { %5733 = vbcast.lane.b32.xlu0 %v5727_v22, 264  ;;  %5729 = vbcast.lane.b32.xlu1 %v5727_v22, 256 }
 0xaf0   : > { %5744 = vbcast.lane.b32.xlu0 %v5738_v45, 264  ;;  %5740 = vbcast.lane.b32.xlu1 %v5738_v45, 256 }
 0xaf4   : > { %5755 = vbcast.lane.b32.xlu0 %v5749_v52, 264  ;;  %5751 = vbcast.lane.b32.xlu1 %v5749_v52, 256  ;;  %v15158_v52 = vld [vmem:[#allocation23_spill] sm:$0xff] }
 0xaf8   : > { %5766 = vbcast.lane.b32.xlu0 %v5760_v58, 264  ;;  %5762 = vbcast.lane.b32.xlu1 %v5760_v58, 256 }
 0xafc   : > { %5777 = vbcast.lane.b32.xlu0 %v5771_v4, 264  ;;  %5773 = vbcast.lane.b32.xlu1 %v5771_v4, 256  ;;  %v15159_v4 = vld [vmem:[#allocation18_spill] sm:$0xff] }
 0xb00   : > { %5788 = vbcast.lane.b32.xlu0 %v5782_v37, 264  ;;  %5784 = vbcast.lane.b32.xlu1 %v5782_v37, 256 }
 0xb04   : > { %5799 = vbcast.lane.b32.xlu0 %v5793_v60, 264  ;;  %5795 = vbcast.lane.b32.xlu1 %v5793_v60, 256 }
 0xb08   : > { %5810 = vbcast.lane.b32.xlu0 %v5804_v28, 264  ;;  %5806 = vbcast.lane.b32.xlu1 %v5804_v28, 256 }
 0xb0c   : > { %5821 = vbcast.lane.b32.xlu0 %v5815_v8, 264  ;;  %5817 = vbcast.lane.b32.xlu1 %v5815_v8, 256 }
 0xb10   : > { %5832 = vbcast.lane.b32.xlu0 %v5826_v57, 264  ;;  %5828 = vbcast.lane.b32.xlu1 %v5826_v57, 256 }
 0xb46   : > { %v5668_v39 = vpop.permute.xlu0 %5667  ;;  %v5664_v13 = vpop.permute.xlu1 %5663 }
 0xb47   : > { %v5835_v36 = vmul.f32 %v5668_v39, %v15148_v43  ;;  %v5834_v35 = vmul.f32 %v5664_v13, %v15149_v56 }
 0xb49   : > { %5905 = vst.msk [vmem:[#allocation2 + $0x30] sm:$0xff] %vm361_vm0, %v5835_v36  ;;  %5904 = vst.msk [vmem:[#allocation2 + $0x28] sm:$0xff] %vm361_vm0, %v5834_v35 }
 0xb4a   : > { %v5679_v44 = vpop.permute.xlu0 %5678  ;;  %v5675_v50 = vpop.permute.xlu1 %5674 }
 0xb4b   : > { %v5837_v19 = vmul.f32 %v5679_v44, %v15150_v24  ;;  %v5836_v17 = vmul.f32 %v5675_v50, %v15151_v0  ;;  %v15160_v44 = vld [vmem:[#allocation25_spill] sm:$0xff]  ;;  %v15161_v24 = vld [vmem:[#allocation20_spill] sm:$0xff] }
 0xb4d   : > { %5907 = vst.msk [vmem:[#allocation2 + $0x50] sm:$0xff] %vm361_vm0, %v5837_v19  ;;  %5906 = vst.msk [vmem:[#allocation2 + $0x48] sm:$0xff] %vm361_vm0, %v5836_v17 }
 0xb4e   : > { %v5690_v38 = vpop.permute.xlu0 %5689  ;;  %v5686_v54 = vpop.permute.xlu1 %5685 }
 0xb4f   : > { %v5839_v59 = vmul.f32 %v5690_v38, %v15152_v46  ;;  %v5838_v16 = vmul.f32 %v5686_v54, %v15153_v2 }
 0xb50   : > { %v6132_v3 = vld [vmem:[#allocation2 + $0x30] sm:$0xff]  ;;  %v6131_v9 = vld [vmem:[#allocation2 + $0x28] sm:$0xff] }
 0xb51   : > { %5909 = vst.msk [vmem:[#allocation2 + $0x70] sm:$0xff] %vm361_vm0, %v5839_v59  ;;  %5908 = vst.msk [vmem:[#allocation2 + $0x68] sm:$0xff] %vm361_vm0, %v5838_v16  ;;  %v13879_v48 = vpack.c.bf16 %v6132_v3, %v6132_v3  ;;  %v13881_v15 = vpack.c.bf16 %v6131_v9, %v6131_v9  ;;  %v5939_v34 = vld [vmem:[#allocation2 + $0x2f] sm:$0xff]  ;;  %v5938_v47 = vld [vmem:[#allocation2 + $0x27] sm:$0xff] }
 0xb52   : > { %v5701_v6 = vpop.permute.xlu0 %5700  ;;  %v5697_v49 = vpop.permute.xlu1 %5696  ;;  %v13883_v30 = vpack.c.bf16 %v5939_v34, %v5939_v34  ;;  %v13885_v32 = vpack.c.bf16 %v5938_v47, %v5938_v47  ;;  %v15162_v34 = vld [vmem:[#allocation27_spill] sm:$0xff] }
 0xb53   : > { %v5841_v25 = vmul.f32 %v5701_v6, %v15154_v21  ;;  %v5840_v62 = vmul.f32 %v5697_v49, %v15155_v14  ;;  %6263 = vrot.lane.b32.xlu0 %v13879_v48, %s15144_s20  ;;  %6261 = vrot.lane.b32.xlu1 %v13881_v15, %s15144_s20  ;;  %v15163_v6 = vld [vmem:[#allocation22_spill] sm:$0xff] }
 0xb54   : > { %v6134_v18 = vld [vmem:[#allocation2 + $0x50] sm:$0xff]  ;;  %v6133_v29 = vld [vmem:[#allocation2 + $0x48] sm:$0xff]  ;;  %6100 = vst.msk [vmem:[#allocation3 + $0xc] sm:$0xf] %vm6096_vm14, %v13883_v30  ;;  %6099 = vst.msk [vmem:[#allocation3 + $0x8] sm:$0xf] %vm6096_vm14, %v13885_v32 }
 0xb55   : > { %5911 = vst.msk [vmem:[#allocation2 + $0x90] sm:$0xff] %vm361_vm0, %v5841_v25  ;;  %5910 = vst.msk [vmem:[#allocation2 + $0x88] sm:$0xff] %vm361_vm0, %v5840_v62  ;;  %v13899_v41 = vpack.c.bf16 %v6134_v18, %v6134_v18  ;;  %v13901_v7 = vpack.c.bf16 %v6133_v29, %v6133_v29  ;;  %v5941_v5 = vld [vmem:[#allocation2 + $0x4f] sm:$0xff]  ;;  %v5940_v10 = vld [vmem:[#allocation2 + $0x47] sm:$0xff] }
 0xb56   : > { %v5712_v12 = vpop.permute.xlu0 %5711  ;;  %v5708_v1 = vpop.permute.xlu1 %5707  ;;  %v13903_v20 = vpack.c.bf16 %v5941_v5, %v5941_v5  ;;  %v13905_v26 = vpack.c.bf16 %v5940_v10, %v5940_v10 }
 0xb57   : > { %v5843_v63 = vmul.f32 %v5712_v12, %v15156_v42  ;;  %v5842_v40 = vmul.f32 %v5708_v1, %v15157_v27  ;;  %6267 = vrot.lane.b32.xlu0 %v13899_v41, %s15144_s20  ;;  %6265 = vrot.lane.b32.xlu1 %v13901_v7, %s15144_s20  ;;  %v15164_v42 = vld [vmem:[#allocation29_spill] sm:$0xff]  ;;  %v15165_v27 = vld [vmem:[#allocation24_spill] sm:$0xff] }
 0xb58   : > { %v6136_v53 = vld [vmem:[#allocation2 + $0x70] sm:$0xff]  ;;  %v6135_v51 = vld [vmem:[#allocation2 + $0x68] sm:$0xff]  ;;  %6102 = vst.msk [vmem:[#allocation3 + $0x14] sm:$0xf] %vm6096_vm14, %v13903_v20  ;;  %6101 = vst.msk [vmem:[#allocation3 + $0x10] sm:$0xf] %vm6096_vm14, %v13905_v26 }
 0xb59   : > { %5913 = vst.msk [vmem:[#allocation2 + $0xb0] sm:$0xff] %vm361_vm0, %v5843_v63  ;;  %5912 = vst.msk [vmem:[#allocation2 + $0xa8] sm:$0xff] %vm361_vm0, %v5842_v40  ;;  %v9834_v55 = vpack.c.bf16 %v6136_v53, %v6136_v53  ;;  %v13919_v11 = vpack.c.bf16 %v6135_v51, %v6135_v51  ;;  %v5943_v23 = vld [vmem:[#allocation2 + $0x6f] sm:$0xff]  ;;  %v5942_v33 = vld [vmem:[#allocation2 + $0x67] sm:$0xff] }
 0xb5a   : > { %v5723_v22 = vpop.permute.xlu0 %5722  ;;  %v5719_v61 = vpop.permute.xlu1 %5718  ;;  %v13921_v45 = vpack.c.bf16 %v5943_v23, %v5943_v23  ;;  %v13923_v31 = vpack.c.bf16 %v5942_v33, %v5942_v33 }
 0xb5b   : > { %v5845_v58 = vmul.f32 %v5723_v22, %v15158_v52  ;;  %v5844_v37 = vmul.f32 %v5719_v61, %v15159_v4  ;;  %6271 = vrot.lane.b32.xlu0 %v9834_v55, %s15144_s20  ;;  %6269 = vrot.lane.b32.xlu1 %v13919_v11, %s15144_s20 }
 0xb5c   : > { %v6138_v60 = vld [vmem:[#allocation2 + $0x90] sm:$0xff]  ;;  %v6137_v28 = vld [vmem:[#allocation2 + $0x88] sm:$0xff]  ;;  %6104 = vst.msk [vmem:[#allocation3 + $0x1c] sm:$0xf] %vm6096_vm14, %v13921_v45  ;;  %6103 = vst.msk [vmem:[#allocation3 + $0x18] sm:$0xf] %vm6096_vm14, %v13923_v31 }
 0xb5d   : > { %5915 = vst.msk [vmem:[#allocation2 + $0xd0] sm:$0xff] %vm361_vm0, %v5845_v58  ;;  %5914 = vst.msk [vmem:[#allocation2 + $0xc8] sm:$0xff] %vm361_vm0, %v5844_v37  ;;  %v9836_v8 = vpack.c.bf16 %v6138_v60, %v6138_v60  ;;  %v9835_v57 = vpack.c.bf16 %v6137_v28, %v6137_v28  ;;  %v5945_v39 = vld [vmem:[#allocation2 + $0x8f] sm:$0xff]  ;;  %v5944_v13 = vld [vmem:[#allocation2 + $0x87] sm:$0xff] }
 0xb5e   : > { %v5734_v43 = vpop.permute.xlu0 %5733  ;;  %v5730_v36 = vpop.permute.xlu1 %5729  ;;  %v13936_v56 = vpack.c.bf16 %v5945_v39, %v5945_v39  ;;  %v13938_v35 = vpack.c.bf16 %v5944_v13, %v5944_v13  ;;  %v15166_v37 = vld [vmem:[#allocation31_spill] sm:$0xff]  ;;  %v15167_v28 = vld [vmem:[#allocation26_spill] sm:$0xff] }
 0xb5f   : > { %v5847_v50 = vmul.f32 %v5734_v43, %v15160_v44  ;;  %v5846_v19 = vmul.f32 %v5730_v36, %v15161_v24  ;;  %6275 = vrot.lane.b32.xlu0 %v9836_v8, %s15144_s20  ;;  %6273 = vrot.lane.b32.xlu1 %v9835_v57, %s15144_s20 }
 0xb60   : > { %v6140_v0 = vld [vmem:[#allocation2 + $0xb0] sm:$0xff]  ;;  %v6139_v17 = vld [vmem:[#allocation2 + $0xa8] sm:$0xff]  ;;  %6106 = vst.msk [vmem:[#allocation3 + $0x24] sm:$0xf] %vm6096_vm14, %v13936_v56  ;;  %6105 = vst.msk [vmem:[#allocation3 + $0x20] sm:$0xf] %vm6096_vm14, %v13938_v35 }
 0xb61   : > { %5917 = vst.msk [vmem:[#allocation2 + $0xf0] sm:$0xff] %vm361_vm0, %v5847_v50  ;;  %5916 = vst.msk [vmem:[#allocation2 + $0xe8] sm:$0xff] %vm361_vm0, %v5846_v19  ;;  %v9838_v38 = vpack.c.bf16 %v6140_v0, %v6140_v0  ;;  %v9837_v54 = vpack.c.bf16 %v6139_v17, %v6139_v17  ;;  %v5947_v46 = vld [vmem:[#allocation2 + $0xaf] sm:$0xff]  ;;  %v5946_v59 = vld [vmem:[#allocation2 + $0xa7] sm:$0xff] }
 0xb62   : > { %v5745_v2 = vpop.permute.xlu0 %5744  ;;  %v5741_v16 = vpop.permute.xlu1 %5740  ;;  %v13950_v3 = vpack.c.bf16 %v5947_v46, %v5947_v46  ;;  %v13952_v9 = vpack.c.bf16 %v5946_v59, %v5946_v59  ;;  %v15168_v17 = vld [vmem:[#allocation33_spill] sm:$0xff] }
 0xb63   : > { %v5849_v47 = vmul.f32 %v5745_v2, %v15162_v34  ;;  %v5848_v49 = vmul.f32 %v5741_v16, %v15163_v6  ;;  %6279 = vrot.lane.b32.xlu0 %v9838_v38, %s15144_s20  ;;  %6277 = vrot.lane.b32.xlu1 %v9837_v54, %s15144_s20  ;;  %v15169_v54 = vld [vmem:[#allocation28_spill] sm:$0xff] }
 0xb64   : > { %v6142_v21 = vld [vmem:[#allocation2 + $0xd0] sm:$0xff]  ;;  %v6141_v25 = vld [vmem:[#allocation2 + $0xc8] sm:$0xff]  ;;  %6108 = vst.msk [vmem:[#allocation3 + $0x2c] sm:$0xf] %vm6096_vm14, %v13950_v3  ;;  %6107 = vst.msk [vmem:[#allocation3 + $0x28] sm:$0xf] %vm6096_vm14, %v13952_v9 }
 0xb65   : > { %5919 = vst.msk [vmem:[#allocation2 + $0x110] sm:$0xff] %vm361_vm0, %v5849_v47  ;;  %5918 = vst.msk [vmem:[#allocation2 + $0x108] sm:$0xff] %vm361_vm0, %v5848_v49  ;;  %v9840_v14 = vpack.c.bf16 %v6142_v21, %v6142_v21  ;;  %v9839_v62 = vpack.c.bf16 %v6141_v25, %v6141_v25  ;;  %v5949_v18 = vld [vmem:[#allocation2 + $0xcf] sm:$0xff]  ;;  %v5948_v29 = vld [vmem:[#allocation2 + $0xc7] sm:$0xff] }
 0xb66   : > { %v5756_v5 = vpop.permute.xlu0 %5755  ;;  %v5752_v10 = vpop.permute.xlu1 %5751  ;;  %v13964_v12 = vpack.c.bf16 %v5949_v18, %v5949_v18  ;;  %v13966_v1 = vpack.c.bf16 %v5948_v29, %v5948_v29  ;;  %v15171_v29 = vld [vmem:[#allocation30_spill] sm:$0xff] }
 0xb67   : > { %v5851_v63 = vmul.f32 %v5756_v5, %v15164_v42  ;;  %v5850_v40 = vmul.f32 %v5752_v10, %v15165_v27  ;;  %6283 = vrot.lane.b32.xlu0 %v9840_v14, %s15144_s20  ;;  %6281 = vrot.lane.b32.xlu1 %v9839_v62, %s15144_s20  ;;  %v15170_v62 = vld [vmem:[#allocation35_spill] sm:$0xff] }
 0xb68   : > { %v6144_v53 = vld [vmem:[#allocation2 + $0xf0] sm:$0xff]  ;;  %v6143_v51 = vld [vmem:[#allocation2 + $0xe8] sm:$0xff]  ;;  %6110 = vst.msk [vmem:[#allocation3 + $0x34] sm:$0xf] %vm6096_vm14, %v13964_v12  ;;  %6109 = vst.msk [vmem:[#allocation3 + $0x30] sm:$0xf] %vm6096_vm14, %v13966_v1 }
 0xb69   : > { %5921 = vst.msk [vmem:[#allocation2 + $0x130] sm:$0xff] %vm361_vm0, %v5851_v63  ;;  %5920 = vst.msk [vmem:[#allocation2 + $0x128] sm:$0xff] %vm361_vm0, %v5850_v40  ;;  %v9842_v55 = vpack.c.bf16 %v6144_v53, %v6144_v53  ;;  %v9841_v23 = vpack.c.bf16 %v6143_v51, %v6143_v51  ;;  %v5951_v33 = vld [vmem:[#allocation2 + $0xef] sm:$0xff]  ;;  %v5950_v22 = vld [vmem:[#allocation2 + $0xe7] sm:$0xff] }
 0xb6a   : > { %v5767_v61 = vpop.permute.xlu0 %5766  ;;  %v5763_v52 = vpop.permute.xlu1 %5762  ;;  %v13978_v58 = vpack.c.bf16 %v5951_v33, %v5951_v33  ;;  %v13980_v4 = vpack.c.bf16 %v5950_v22, %v5950_v22  ;;  %v15172_v22 = vld [vmem:[#allocation37_spill] sm:$0xff] }
 0xb6b   : > { %v5853_v60 = vmul.f32 %v5767_v61, %v15166_v37  ;;  %v5852_v8 = vmul.f32 %v5763_v52, %v15167_v28  ;;  %6287 = vrot.lane.b32.xlu0 %v9842_v55, %s15144_s20  ;;  %6285 = vrot.lane.b32.xlu1 %v9841_v23, %s15144_s20  ;;  %v15173_v52 = vld [vmem:[#allocation32_spill] sm:$0xff] }
 0xb6c   : > { %v6146_v57 = vld [vmem:[#allocation2 + $0x110] sm:$0xff]  ;;  %v6145_v39 = vld [vmem:[#allocation2 + $0x108] sm:$0xff]  ;;  %6112 = vst.msk [vmem:[#allocation3 + $0x3c] sm:$0xf] %vm6096_vm14, %v13978_v58  ;;  %6111 = vst.msk [vmem:[#allocation3 + $0x38] sm:$0xf] %vm6096_vm14, %v13980_v4 }
 0xb6d   : > { %5923 = vst.msk [vmem:[#allocation2 + $0x150] sm:$0xff] %vm361_vm0, %v5853_v60  ;;  %5922 = vst.msk [vmem:[#allocation2 + $0x148] sm:$0xff] %vm361_vm0, %v5852_v8  ;;  %v9844_v13 = vpack.c.bf16 %v6146_v57, %v6146_v57  ;;  %v9843_v43 = vpack.c.bf16 %v6145_v39, %v6145_v39  ;;  %v5953_v36 = vld [vmem:[#allocation2 + $0x10f] sm:$0xff]  ;;  %v5952_v44 = vld [vmem:[#allocation2 + $0x107] sm:$0xff] }
 0xb6e   : > { %v5778_v50 = vpop.permute.xlu0 %5777  ;;  %v5774_v24 = vpop.permute.xlu1 %5773  ;;  %v13992_v19 = vpack.c.bf16 %v5953_v36, %v5953_v36  ;;  %v13994_v0 = vpack.c.bf16 %v5952_v44, %v5952_v44 }
 0xb6f   : > { %v5855_v38 = vmul.f32 %v5778_v50, %v15168_v17  ;;  %v5854_v46 = vmul.f32 %v5774_v24, %v15169_v54  ;;  %6291 = vrot.lane.b32.xlu0 %v9844_v13, %s15144_s20  ;;  %6289 = vrot.lane.b32.xlu1 %v9843_v43, %s15144_s20  ;;  %v15174_v24 = vld [vmem:[#allocation39_spill] sm:$0xff] }
 0xb70   : > { %v6148_v59 = vld [vmem:[#allocation2 + $0x130] sm:$0xff]  ;;  %v6147_v2 = vld [vmem:[#allocation2 + $0x128] sm:$0xff]  ;;  %6114 = vst.msk [vmem:[#allocation3 + $0x44] sm:$0xf] %vm6096_vm14, %v13992_v19  ;;  %6113 = vst.msk [vmem:[#allocation3 + $0x40] sm:$0xf] %vm6096_vm14, %v13994_v0 }
 0xb71   : > { %5925 = vst.msk [vmem:[#allocation2 + $0x170] sm:$0xff] %vm361_vm0, %v5855_v38  ;;  %5924 = vst.msk [vmem:[#allocation2 + $0x168] sm:$0xff] %vm361_vm0, %v5854_v46  ;;  %v9846_v16 = vpack.c.bf16 %v6148_v59, %v6148_v59  ;;  %v9845_v34 = vpack.c.bf16 %v6147_v2, %v6147_v2  ;;  %v5955_v47 = vld [vmem:[#allocation2 + $0x12f] sm:$0xff]  ;;  %v5954_v6 = vld [vmem:[#allocation2 + $0x127] sm:$0xff] }
 0xb72   : > { %v5789_v49 = vpop.permute.xlu0 %5788  ;;  %v5785_v21 = vpop.permute.xlu1 %5784  ;;  %v14006_v25 = vpack.c.bf16 %v5955_v47, %v5955_v47  ;;  %v14008_v14 = vpack.c.bf16 %v5954_v6, %v5954_v6  ;;  %v15175_v38 = vld [vmem:[#allocation34_spill] sm:$0xff] }
 0xb73   : > { %v5857_v18 = vmul.f32 %v5789_v49, %v15170_v62  ;;  %v5856_v5 = vmul.f32 %v5785_v21, %v15171_v29  ;;  %6295 = vrot.lane.b32.xlu0 %v9846_v16, %s15144_s20  ;;  %6293 = vrot.lane.b32.xlu1 %v9845_v34, %s15144_s20 }
 0xb74   : > { %v6150_v10 = vld [vmem:[#allocation2 + $0x150] sm:$0xff]  ;;  %v6149_v42 = vld [vmem:[#allocation2 + $0x148] sm:$0xff]  ;;  %6116 = vst.msk [vmem:[#allocation3 + $0x4c] sm:$0xf] %vm6096_vm14, %v14006_v25  ;;  %6115 = vst.msk [vmem:[#allocation3 + $0x48] sm:$0xf] %vm6096_vm14, %v14008_v14 }
 0xb75   : > { %5927 = vst.msk [vmem:[#allocation2 + $0x190] sm:$0xff] %vm361_vm0, %v5857_v18  ;;  %5926 = vst.msk [vmem:[#allocation2 + $0x188] sm:$0xff] %vm361_vm0, %v5856_v5  ;;  %v9848_v63 = vpack.c.bf16 %v6150_v10, %v6150_v10  ;;  %v9847_v27 = vpack.c.bf16 %v6149_v42, %v6149_v42  ;;  %v5957_v40 = vld [vmem:[#allocation2 + $0x14f] sm:$0xff]  ;;  %v5956_v53 = vld [vmem:[#allocation2 + $0x147] sm:$0xff] }
 0xb76   : > { %v5800_v51 = vpop.permute.xlu0 %5799  ;;  %v5796_v55 = vpop.permute.xlu1 %5795  ;;  %v14020_v23 = vpack.c.bf16 %v5957_v40, %v5957_v40  ;;  %v14022_v33 = vpack.c.bf16 %v5956_v53, %v5956_v53  ;;  %v15176_v18 = vld [vmem:[#allocation40_spill] sm:$0xff] }
 0xb77   : > { %v5859_v61 = vmul.f32 %v5800_v51, %v15172_v22  ;;  %v5858_v37 = vmul.f32 %v5796_v55, %v15173_v52  ;;  %6299 = vrot.lane.b32.xlu0 %v9848_v63, %s15144_s20  ;;  %6297 = vrot.lane.b32.xlu1 %v9847_v27, %s15144_s20  ;;  %v15177_v5 = vld [vmem:[#allocation36_spill] sm:$0xff] }
 0xb78   : > { %v6152_v60 = vld [vmem:[#allocation2 + $0x170] sm:$0xff]  ;;  %v6151_v28 = vld [vmem:[#allocation2 + $0x168] sm:$0xff]  ;;  %6118 = vst.msk [vmem:[#allocation3 + $0x54] sm:$0xf] %vm6096_vm14, %v14020_v23  ;;  %6117 = vst.msk [vmem:[#allocation3 + $0x50] sm:$0xf] %vm6096_vm14, %v14022_v33 }
 0xb79   : > { %5929 = vst.msk [vmem:[#allocation2 + $0x1b0] sm:$0xff] %vm361_vm0, %v5859_v61  ;;  %5928 = vst.msk [vmem:[#allocation2 + $0x1a8] sm:$0xff] %vm361_vm0, %v5858_v37  ;;  %v9850_v8 = vpack.c.bf16 %v6152_v60, %v6152_v60  ;;  %v9849_v57 = vpack.c.bf16 %v6151_v28, %v6151_v28  ;;  %v5959_v39 = vld [vmem:[#allocation2 + $0x16f] sm:$0xff]  ;;  %v5958_v13 = vld [vmem:[#allocation2 + $0x167] sm:$0xff] }
 0xb7a   : > { %v5811_v43 = vpop.permute.xlu0 %5810  ;;  %v5807_v36 = vpop.permute.xlu1 %5806  ;;  %v14034_v44 = vpack.c.bf16 %v5959_v39, %v5959_v39  ;;  %v14036_v50 = vpack.c.bf16 %v5958_v13, %v5958_v13  ;;  %v15178_v37 = vld [vmem:[#allocation41_spill] sm:$0xff]  ;;  %v15179_v28 = vld [vmem:[#allocation38_spill] sm:$0xff] }
 0xb7b   : > { %v5861_v17 = vmul.f32 %v5811_v43, %v15174_v24  ;;  %v5860_v54 = vmul.f32 %v5807_v36, %v15175_v38  ;;  %6303 = vrot.lane.b32.xlu0 %v9850_v8, %s15144_s20  ;;  %6301 = vrot.lane.b32.xlu1 %v9849_v57, %s15144_s20 }
 0xb7c   : > { %v6154_v46 = vld [vmem:[#allocation2 + $0x190] sm:$0xff]  ;;  %v6153_v59 = vld [vmem:[#allocation2 + $0x188] sm:$0xff]  ;;  %6120 = vst.msk [vmem:[#allocation3 + $0x5c] sm:$0xf] %vm6096_vm14, %v14034_v44  ;;  %6119 = vst.msk [vmem:[#allocation3 + $0x58] sm:$0xf] %vm6096_vm14, %v14036_v50 }
 0xb7d   : > { %5931 = vst.msk [vmem:[#allocation2 + $0x1d0] sm:$0xff] %vm361_vm0, %v5861_v17  ;;  %5930 = vst.msk [vmem:[#allocation2 + $0x1c8] sm:$0xff] %vm361_vm0, %v5860_v54  ;;  %v9852_v2 = vpack.c.bf16 %v6154_v46, %v6154_v46  ;;  %v9851_v16 = vpack.c.bf16 %v6153_v59, %v6153_v59  ;;  %v5961_v34 = vld [vmem:[#allocation2 + $0x18f] sm:$0xff]  ;;  %v5960_v47 = vld [vmem:[#allocation2 + $0x187] sm:$0xff] }
 0xb7e   : > { %v5822_v6 = vpop.permute.xlu0 %5821  ;;  %v5818_v49 = vpop.permute.xlu1 %5817  ;;  %v9820_v21 = vpack.c.bf16 %v5961_v34, %v5961_v34  ;;  %v14048_v62 = vpack.c.bf16 %v5960_v47, %v5960_v47  ;;  %v6389_v47 = vld [vmem:[#allocation2 + $0x31] sm:$0xff] }
 0xb7f   : > { %v5863_v29 = vmul.f32 %v5822_v6, %v15176_v18  ;;  %v5862_v10 = vmul.f32 %v5818_v49, %v15177_v5  ;;  %6307 = vrot.lane.b32.xlu0 %v9852_v2, %s15144_s20  ;;  %6305 = vrot.lane.b32.xlu1 %v9851_v16, %s15144_s20  ;;  %v6388_v6 = vld [vmem:[#allocation2 + $0x29] sm:$0xff]  ;;  %v14075_v18 = vpack.c.bf16 %v6389_v47, %v6389_v47  ;;  %v6391_v5 = vld [vmem:[#allocation2 + $0x51] sm:$0xff] }
 0xb80   : > { %v6156_v42 = vld [vmem:[#allocation2 + $0x1b0] sm:$0xff]  ;;  %v6155_v63 = vld [vmem:[#allocation2 + $0x1a8] sm:$0xff]  ;;  %6122 = vst.msk [vmem:[#allocation3 + $0x64] sm:$0xf] %vm6096_vm14, %v9820_v21  ;;  %6121 = vst.msk [vmem:[#allocation3 + $0x60] sm:$0xf] %vm6096_vm14, %v14048_v62 }
 0xb81   : > { %5933 = vst.msk [vmem:[#allocation2 + $0x1f0] sm:$0xff] %vm361_vm0, %v5863_v29  ;;  %5932 = vst.msk [vmem:[#allocation2 + $0x1e8] sm:$0xff] %vm361_vm0, %v5862_v10  ;;  %v9854_v27 = vpack.c.bf16 %v6156_v42, %v6156_v42  ;;  %v9853_v40 = vpack.c.bf16 %v6155_v63, %v6155_v63  ;;  %v5963_v53 = vld [vmem:[#allocation2 + $0x1af] sm:$0xff]  ;;  %v5962_v51 = vld [vmem:[#allocation2 + $0x1a7] sm:$0xff]  ;;  %v14077_v29 = vpack.c.bf16 %v6388_v6, %v6388_v6 }
 0xb82   : > { %v5833_v55 = vpop.permute.xlu0 %5832  ;;  %v5829_v22 = vpop.permute.xlu1 %5828  ;;  %v9822_v61 = vpack.c.bf16 %v5963_v53, %v5963_v53  ;;  %v9821_v52 = vpack.c.bf16 %v5962_v51, %v5962_v51  ;;  %v6390_v10 = vld [vmem:[#allocation2 + $0x49] sm:$0xff]  ;;  %v14083_v42 = vpack.c.bf16 %v6391_v5, %v6391_v5 }
 0xb83   : > { %v5865_v60 = vmul.f32 %v5833_v55, %v15178_v37  ;;  %v5864_v8 = vmul.f32 %v5829_v22, %v15179_v28  ;;  %6311 = vrot.lane.b32.xlu0 %v9854_v27, %s15144_s20  ;;  %6309 = vrot.lane.b32.xlu1 %v9853_v40, %s15144_s20  ;;  %v14085_v63 = vpack.c.bf16 %v6390_v10, %v6390_v10  ;;  %v6393_v27 = vld [vmem:[#allocation2 + $0x71] sm:$0xff]  ;;  %v6392_v40 = vld [vmem:[#allocation2 + $0x69] sm:$0xff] }
 0xb84   : > { %v6158_v57 = vld [vmem:[#allocation2 + $0x1d0] sm:$0xff]  ;;  %v6157_v39 = vld [vmem:[#allocation2 + $0x1c8] sm:$0xff]  ;;  %6124 = vst.msk [vmem:[#allocation3 + $0x6c] sm:$0xf] %vm6096_vm14, %v9822_v61  ;;  %6123 = vst.msk [vmem:[#allocation3 + $0x68] sm:$0xf] %vm6096_vm14, %v9821_v52  ;;  %v14091_v53 = vpack.c.bf16 %v6393_v27, %v6393_v27  ;;  %v14093_v51 = vpack.c.bf16 %v6392_v40, %v6392_v40 }
 0xb85   : > { %5935 = vst.msk [vmem:[#allocation2 + $0x210] sm:$0xff] %vm361_vm0, %v5865_v60  ;;  %5934 = vst.msk [vmem:[#allocation2 + $0x208] sm:$0xff] %vm361_vm0, %v5864_v8  ;;  %v9856_v13 = vpack.c.bf16 %v6158_v57, %v6158_v57  ;;  %v9855_v43 = vpack.c.bf16 %v6157_v39, %v6157_v39  ;;  %v5965_v36 = vld [vmem:[#allocation2 + $0x1cf] sm:$0xff]  ;;  %v5964_v24 = vld [vmem:[#allocation2 + $0x1c7] sm:$0xff] }
 0xb86   : > { %v9824_v17 = vpack.c.bf16 %v5965_v36, %v5965_v36  ;;  %v9823_v38 = vpack.c.bf16 %v5964_v24, %v5964_v24  ;;  %v6395_v55 = vld [vmem:[#allocation2 + $0x91] sm:$0xff]  ;;  %v6394_v22 = vld [vmem:[#allocation2 + $0x89] sm:$0xff] }
 0xb87   : > { %6315 = vrot.lane.b32.xlu0 %v9856_v13, %s15144_s20  ;;  %6313 = vrot.lane.b32.xlu1 %v9855_v43, %s15144_s20  ;;  %v14099_v61 = vpack.c.bf16 %v6395_v55, %v6395_v55  ;;  %v14101_v52 = vpack.c.bf16 %v6394_v22, %v6394_v22  ;;  %v6397_v37 = vld [vmem:[#allocation2 + $0xb1] sm:$0xff]  ;;  %v6396_v60 = vld [vmem:[#allocation2 + $0xa9] sm:$0xff] }
 0xb88   : > { %v6160_v54 = vld [vmem:[#allocation2 + $0x1f0] sm:$0xff]  ;;  %v6159_v46 = vld [vmem:[#allocation2 + $0x1e8] sm:$0xff]  ;;  %6126 = vst.msk [vmem:[#allocation3 + $0x74] sm:$0xf] %vm6096_vm14, %v9824_v17  ;;  %6125 = vst.msk [vmem:[#allocation3 + $0x70] sm:$0xf] %vm6096_vm14, %v9823_v38  ;;  %v14107_v28 = vpack.c.bf16 %v6397_v37, %v6397_v37  ;;  %v14109_v8 = vpack.c.bf16 %v6396_v60, %v6396_v60 }
 0xb89   : > { %v9858_v59 = vpack.c.bf16 %v6160_v54, %v6160_v54  ;;  %v9857_v2 = vpack.c.bf16 %v6159_v46, %v6159_v46  ;;  %v5967_v16 = vld [vmem:[#allocation2 + $0x1ef] sm:$0xff]  ;;  %v5966_v34 = vld [vmem:[#allocation2 + $0x1e7] sm:$0xff] }
 0xb8a   : > { %v9826_v49 = vpack.c.bf16 %v5967_v16, %v5967_v16  ;;  %v9825_v21 = vpack.c.bf16 %v5966_v34, %v5966_v34  ;;  %v6399_v57 = vld [vmem:[#allocation2 + $0xd1] sm:$0xff]  ;;  %v6398_v39 = vld [vmem:[#allocation2 + $0xc9] sm:$0xff] }
 0xb8b   : > { %6319 = vrot.lane.b32.xlu0 %v9858_v59, %s15144_s20  ;;  %6317 = vrot.lane.b32.xlu1 %v9857_v2, %s15144_s20  ;;  %v9872_v13 = vpack.c.bf16 %v6399_v57, %v6399_v57  ;;  %v14115_v43 = vpack.c.bf16 %v6398_v39, %v6398_v39  ;;  %v6401_v36 = vld [vmem:[#allocation2 + $0xf1] sm:$0xff]  ;;  %v6400_v24 = vld [vmem:[#allocation2 + $0xe9] sm:$0xff] }
 0xb8c   : > { %6128 = vst.msk [vmem:[#allocation3 + $0x7c] sm:$0xf] %vm6096_vm14, %v9826_v49  ;;  %6127 = vst.msk [vmem:[#allocation3 + $0x78] sm:$0xf] %vm6096_vm14, %v9825_v21  ;;  %v9874_v17 = vpack.c.bf16 %v6401_v36, %v6401_v36  ;;  %v9873_v38 = vpack.c.bf16 %v6400_v24, %v6400_v24  ;;  %v6403_v54 = vld [vmem:[#allocation2 + $0x111] sm:$0xff]  ;;  %v6402_v46 = vld [vmem:[#allocation2 + $0x109] sm:$0xff] }
 0xb8d   : > { %v9876_v59 = vpack.c.bf16 %v6403_v54, %v6403_v54  ;;  %v9875_v2 = vpack.c.bf16 %v6402_v46, %v6402_v46  ;;  %v6405_v16 = vld [vmem:[#allocation2 + $0x131] sm:$0xff]  ;;  %v6404_v34 = vld [vmem:[#allocation2 + $0x129] sm:$0xff]  ;;  %vm6867_vm14 = vcmask 257216  }
 0xb8e   : > { %v9878_v47 = vpack.c.bf16 %v6405_v16, %v6405_v16  ;;  %v9877_v6 = vpack.c.bf16 %v6404_v34, %v6404_v34  ;;  %v6407_v49 = vld [vmem:[#allocation2 + $0x151] sm:$0xff]  ;;  %v6406_v21 = vld [vmem:[#allocation2 + $0x149] sm:$0xff] }
 0xb8f   : > { %6520 = vrot.lane.b32.xlu0 %v14075_v18, %s15145_s22  ;;  %6518 = vrot.lane.b32.xlu1 %v14077_v29, %s15145_s22  ;;  %v9880_v5 = vpack.c.bf16 %v6407_v49, %v6407_v49  ;;  %v9879_v10 = vpack.c.bf16 %v6406_v21, %v6406_v21  ;;  %v6409_v27 = vld [vmem:[#allocation2 + $0x171] sm:$0xff]  ;;  %v6408_v40 = vld [vmem:[#allocation2 + $0x169] sm:$0xff] }
 0xb90   : > { %v9882_v55 = vpack.c.bf16 %v6409_v27, %v6409_v27  ;;  %v9881_v22 = vpack.c.bf16 %v6408_v40, %v6408_v40  ;;  %v6411_v37 = vld [vmem:[#allocation2 + $0x191] sm:$0xff]  ;;  %v6410_v60 = vld [vmem:[#allocation2 + $0x189] sm:$0xff] }
 0xb91   : > { %v9884_v57 = vpack.c.bf16 %v6411_v37, %v6411_v37  ;;  %v9883_v39 = vpack.c.bf16 %v6410_v60, %v6410_v60  ;;  %v6412_v36 = vld [vmem:[#allocation2 + $0x1a9] sm:$0xff] }
 0xb92   : > { %v6414_v54 = vld [vmem:[#allocation2 + $0x1c9] sm:$0xff] }
 0xb93   : > { %6524 = vrot.lane.b32.xlu0 %v14083_v42, %s15145_s22  ;;  %6522 = vrot.lane.b32.xlu1 %v14085_v63, %s15145_s22  ;;  %v6416_v16 = vld [vmem:[#allocation2 + $0x1e9] sm:$0xff] }
 0xb94   : > { %v9889_v49 = vpack.c.bf16 %v6416_v16, %v6416_v16 }
 0xb97   : > { %6528 = vrot.lane.b32.xlu0 %v14091_v53, %s15145_s22  ;;  %6526 = vrot.lane.b32.xlu1 %v14093_v51, %s15145_s22 }
 0xb9b   : > { %6532 = vrot.lane.b32.xlu0 %v14099_v61, %s15145_s22  ;;  %6530 = vrot.lane.b32.xlu1 %v14101_v52, %s15145_s22 }
 0xb9f   : > { %6536 = vrot.lane.b32.xlu0 %v14107_v28, %s15145_s22  ;;  %6534 = vrot.lane.b32.xlu1 %v14109_v8, %s15145_s22 }
 0xba3   : > { %6540 = vrot.lane.b32.xlu0 %v9872_v13, %s15145_s22  ;;  %6538 = vrot.lane.b32.xlu1 %v14115_v43, %s15145_s22  ;;  %v6413_v13 = vld [vmem:[#allocation2 + $0x1b1] sm:$0xff] }
 0xba4   : > { %v9886_v24 = vpack.c.bf16 %v6413_v13, %v6413_v13 }
 0xba7   : > { %6544 = vrot.lane.b32.xlu0 %v9874_v17, %s15145_s22  ;;  %6542 = vrot.lane.b32.xlu1 %v9873_v38, %s15145_s22  ;;  %v9885_v17 = vpack.c.bf16 %v6412_v36, %v6412_v36  ;;  %v6415_v38 = vld [vmem:[#allocation2 + $0x1d1] sm:$0xff] }
 0xba8   : > { %v9888_v46 = vpack.c.bf16 %v6415_v38, %v6415_v38 }
 0xbab   : > { %6548 = vrot.lane.b32.xlu0 %v9876_v59, %s15145_s22  ;;  %6546 = vrot.lane.b32.xlu1 %v9875_v2, %s15145_s22  ;;  %v9887_v59 = vpack.c.bf16 %v6414_v54, %v6414_v54  ;;  %v6417_v2 = vld [vmem:[#allocation2 + $0x1f1] sm:$0xff] }
 0xbaf   : > { %6552 = vrot.lane.b32.xlu0 %v9878_v47, %s15145_s22  ;;  %6550 = vrot.lane.b32.xlu1 %v9877_v6, %s15145_s22  ;;  %v9890_v6 = vpack.c.bf16 %v6417_v2, %v6417_v2 }
 0xbb3   : > { %6556 = vrot.lane.b32.xlu0 %v9880_v5, %s15145_s22  ;;  %6554 = vrot.lane.b32.xlu1 %v9879_v10, %s15145_s22 }
 0xbb7   : > { %6560 = vrot.lane.b32.xlu0 %v9882_v55, %s15145_s22  ;;  %6558 = vrot.lane.b32.xlu1 %v9881_v22, %s15145_s22 }
 0xbbb   : > { %6564 = vrot.lane.b32.xlu0 %v9884_v57, %s15145_s22  ;;  %6562 = vrot.lane.b32.xlu1 %v9883_v39, %s15145_s22 }
 0xbbf   : > { %6568 = vrot.lane.b32.xlu0 %v9886_v24, %s15145_s22  ;;  %6566 = vrot.lane.b32.xlu1 %v9885_v17, %s15145_s22 }
 0xbc3   : > { %6572 = vrot.lane.b32.xlu0 %v9888_v46, %s15145_s22  ;;  %6570 = vrot.lane.b32.xlu1 %v9887_v59, %s15145_s22 }
 0xbc5   : > { %v6264_v34 = vpop.permute.xlu0 %6263  ;;  %v6262_v47 = vpop.permute.xlu1 %6261 }
 0xbc6   : > { %6357 = vst.msk [vmem:[#allocation3 + $0xc] sm:$0xf] %vm6353_vm1, %v6264_v34  ;;  %6356 = vst.msk [vmem:[#allocation3 + $0x8] sm:$0xf] %vm6353_vm1, %v6262_v47 }
 0xbc7   : > { %6576 = vrot.lane.b32.xlu0 %v9890_v6, %s15145_s22  ;;  %6574 = vrot.lane.b32.xlu1 %v9889_v49, %s15145_s22 }
 0xbc9   : > { %v6268_v21 = vpop.permute.xlu0 %6267  ;;  %v6266_v5 = vpop.permute.xlu1 %6265 }
 0xbca   : > { %6359 = vst.msk [vmem:[#allocation3 + $0x14] sm:$0xf] %vm6353_vm1, %v6268_v21  ;;  %6358 = vst.msk [vmem:[#allocation3 + $0x10] sm:$0xf] %vm6353_vm1, %v6266_v5  ;;  %v7672_v5 = vld [vmem:[#allocation2 + $0x50] sm:$0xff] }
 0xbcb   : > { %6773 = vrot.lane.b32.xlu0 %v13883_v30, %s15180_s16  ;;  %6771 = vrot.lane.b32.xlu1 %v13885_v32, %s15180_s16 }
 0xbcd   : > { %v6272_v10 = vpop.permute.xlu0 %6271  ;;  %v6270_v27 = vpop.permute.xlu1 %6269 }
 0xbce   : > { %6361 = vst.msk [vmem:[#allocation3 + $0x1c] sm:$0xf] %vm6353_vm1, %v6272_v10  ;;  %6360 = vst.msk [vmem:[#allocation3 + $0x18] sm:$0xf] %vm6353_vm1, %v6270_v27  ;;  %v10020_v27 = vpack.c.bf16 %v7672_v5, %v7672_v5 }
 0xbcf   : > { %6777 = vrot.lane.b32.xlu0 %v13903_v20, %s15180_s16  ;;  %6775 = vrot.lane.b32.xlu1 %v13905_v26, %s15180_s16 }
 0xbd1   : > { %v6276_v40 = vpop.permute.xlu0 %6275  ;;  %v6274_v55 = vpop.permute.xlu1 %6273 }
 0xbd2   : > { %6363 = vst.msk [vmem:[#allocation3 + $0x24] sm:$0xf] %vm6353_vm1, %v6276_v40  ;;  %6362 = vst.msk [vmem:[#allocation3 + $0x20] sm:$0xf] %vm6353_vm1, %v6274_v55  ;;  %v7674_v40 = vld [vmem:[#allocation2 + $0x70] sm:$0xff] }
 0xbd3   : > { %6781 = vrot.lane.b32.xlu0 %v13921_v45, %s15180_s16  ;;  %6779 = vrot.lane.b32.xlu1 %v13923_v31, %s15180_s16 }
 0xbd5   : > { %v6280_v30 = vpop.permute.xlu0 %6279  ;;  %v6278_v32 = vpop.permute.xlu1 %6277 }
 0xbd6   : > { %6365 = vst.msk [vmem:[#allocation3 + $0x2c] sm:$0xf] %vm6353_vm1, %v6280_v30  ;;  %6364 = vst.msk [vmem:[#allocation3 + $0x28] sm:$0xf] %vm6353_vm1, %v6278_v32  ;;  %v10022_v30 = vpack.c.bf16 %v7674_v40, %v7674_v40 }
 0xbd7   : > { %6785 = vrot.lane.b32.xlu0 %v13936_v56, %s15180_s16  ;;  %6783 = vrot.lane.b32.xlu1 %v13938_v35, %s15180_s16 }
 0xbd9   : > { %v6284_v22 = vpop.permute.xlu0 %6283  ;;  %v6282_v37 = vpop.permute.xlu1 %6281 }
 0xbda   : > { %6367 = vst.msk [vmem:[#allocation3 + $0x34] sm:$0xf] %vm6353_vm1, %v6284_v22  ;;  %6366 = vst.msk [vmem:[#allocation3 + $0x30] sm:$0xf] %vm6353_vm1, %v6282_v37  ;;  %v6904_v37 = vld [vmem:[#allocation2 + $0x68] sm:$0xff] }
 0xbdb   : > { %6789 = vrot.lane.b32.xlu0 %v13950_v3, %s15180_s16  ;;  %6787 = vrot.lane.b32.xlu1 %v13952_v9, %s15180_s16 }
 0xbdd   : > { %v6288_v60 = vpop.permute.xlu0 %6287  ;;  %v6286_v57 = vpop.permute.xlu1 %6285 }
 0xbde   : > { %6369 = vst.msk [vmem:[#allocation3 + $0x3c] sm:$0xf] %vm6353_vm1, %v6288_v60  ;;  %6368 = vst.msk [vmem:[#allocation3 + $0x38] sm:$0xf] %vm6353_vm1, %v6286_v57  ;;  %v9927_v57 = vpack.c.bf16 %v6904_v37, %v6904_v37 }
 0xbdf   : > { %6793 = vrot.lane.b32.xlu0 %v13964_v12, %s15180_s16  ;;  %6791 = vrot.lane.b32.xlu1 %v13966_v1, %s15180_s16 }
 0xbe1   : > { %v6292_v39 = vpop.permute.xlu0 %6291  ;;  %v6290_v13 = vpop.permute.xlu1 %6289 }
 0xbe2   : > { %6371 = vst.msk [vmem:[#allocation3 + $0x44] sm:$0xf] %vm6353_vm1, %v6292_v39  ;;  %6370 = vst.msk [vmem:[#allocation3 + $0x40] sm:$0xf] %vm6353_vm1, %v6290_v13  ;;  %v6906_v39 = vld [vmem:[#allocation2 + $0x88] sm:$0xff] }
 0xbe3   : > { %6797 = vrot.lane.b32.xlu0 %v13978_v58, %s15180_s16  ;;  %6795 = vrot.lane.b32.xlu1 %v13980_v4, %s15180_s16 }
 0xbe5   : > { %v6296_v36 = vpop.permute.xlu0 %6295  ;;  %v6294_v24 = vpop.permute.xlu1 %6293 }
 0xbe6   : > { %6373 = vst.msk [vmem:[#allocation3 + $0x4c] sm:$0xf] %vm6353_vm1, %v6296_v36  ;;  %6372 = vst.msk [vmem:[#allocation3 + $0x48] sm:$0xf] %vm6353_vm1, %v6294_v24  ;;  %v9929_v24 = vpack.c.bf16 %v6906_v39, %v6906_v39  ;;  %v7939_v39 = vld [vmem:[#allocation2 + $0xf1] sm:$0xff] }
 0xbe7   : > { %6801 = vrot.lane.b32.xlu0 %v13992_v19, %s15180_s16  ;;  %6799 = vrot.lane.b32.xlu1 %v13994_v0, %s15180_s16 }
 0xbe9   : > { %v6300_v17 = vpop.permute.xlu0 %6299  ;;  %v6298_v38 = vpop.permute.xlu1 %6297 }
 0xbea   : > { %6375 = vst.msk [vmem:[#allocation3 + $0x54] sm:$0xf] %vm6353_vm1, %v6300_v17  ;;  %6374 = vst.msk [vmem:[#allocation3 + $0x50] sm:$0xf] %vm6353_vm1, %v6298_v38 }
 0xbeb   : > { %6805 = vrot.lane.b32.xlu0 %v14006_v25, %s15180_s16  ;;  %6803 = vrot.lane.b32.xlu1 %v14008_v14, %s15180_s16 }
 0xbed   : > { %v6304_v54 = vpop.permute.xlu0 %6303  ;;  %v6302_v46 = vpop.permute.xlu1 %6301 }
 0xbee   : > { %6377 = vst.msk [vmem:[#allocation3 + $0x5c] sm:$0xf] %vm6353_vm1, %v6304_v54  ;;  %6376 = vst.msk [vmem:[#allocation3 + $0x58] sm:$0xf] %vm6353_vm1, %v6302_v46 }
 0xbef   : > { %6809 = vrot.lane.b32.xlu0 %v14020_v23, %s15180_s16  ;;  %6807 = vrot.lane.b32.xlu1 %v14022_v33, %s15180_s16 }
 0xbf1   : > { %v6308_v59 = vpop.permute.xlu0 %6307  ;;  %v6306_v2 = vpop.permute.xlu1 %6305 }
 0xbf2   : > { %6379 = vst.msk [vmem:[#allocation3 + $0x64] sm:$0xf] %vm6353_vm1, %v6308_v59  ;;  %6378 = vst.msk [vmem:[#allocation3 + $0x60] sm:$0xf] %vm6353_vm1, %v6306_v2 }
 0xbf3   : > { %6813 = vrot.lane.b32.xlu0 %v14034_v44, %s15180_s16  ;;  %6811 = vrot.lane.b32.xlu1 %v14036_v50, %s15180_s16 }
 0xbf5   : > { %v6312_v16 = vpop.permute.xlu0 %6311  ;;  %v6310_v34 = vpop.permute.xlu1 %6309 }
 0xbf6   : > { %6381 = vst.msk [vmem:[#allocation3 + $0x6c] sm:$0xf] %vm6353_vm1, %v6312_v16  ;;  %6380 = vst.msk [vmem:[#allocation3 + $0x68] sm:$0xf] %vm6353_vm1, %v6310_v34 }
 0xbf7   : > { %7028 = vrot.lane.b32.xlu0 %v13881_v15, %s15181_s19  ;;  %6815 = vrot.lane.b32.xlu1 %v14048_v62, %s15180_s16 }
 0xbf9   : > { %v6316_v23 = vpop.permute.xlu0 %6315  ;;  %v6314_v33 = vpop.permute.xlu1 %6313 }
 0xbfa   : > { %6383 = vst.msk [vmem:[#allocation3 + $0x74] sm:$0xf] %vm6353_vm1, %v6316_v23  ;;  %6382 = vst.msk [vmem:[#allocation3 + $0x70] sm:$0xf] %vm6353_vm1, %v6314_v33 }
 0xbfb   : > { %7032 = vrot.lane.b32.xlu0 %v13901_v7, %s15181_s19  ;;  %7030 = vrot.lane.b32.xlu1 %v13879_v48, %s15181_s19 }
 0xbfd   : > { %v6320_v44 = vpop.permute.xlu0 %6319  ;;  %v6318_v50 = vpop.permute.xlu1 %6317 }
 0xbfe   : > { %6385 = vst.msk [vmem:[#allocation3 + $0x7c] sm:$0xf] %vm6353_vm1, %v6320_v44  ;;  %6384 = vst.msk [vmem:[#allocation3 + $0x78] sm:$0xf] %vm6353_vm1, %v6318_v50 }
 0xbff   : > { %7285 = vrot.lane.b32.xlu0 %v14077_v29, %s10525_s4  ;;  %7034 = vrot.lane.b32.xlu1 %v13899_v41, %s15181_s19  ;;  %v10461_v41 = vld [vmem:[%s15182_s0 + $0x20] ss:$0 sps:$4 sm:$0xff]  }
 0xc00   : > { %10218 = vmatprep.subr.msk.bf16.mxu1 %vm3428_vm4, %v10461_v41 }
 0xc01   : > { %v6521_v15 = vpop.permute.xlu0 %6520  ;;  %v6519_v62 = vpop.permute.xlu1 %6518 }
 0xc02   : > { %6614 = vst.msk [vmem:[#allocation3 + $0xc] sm:$0xf] %vm6610_vm2, %v6521_v15  ;;  %6613 = vst.msk [vmem:[#allocation3 + $0x8] sm:$0xf] %vm6610_vm2, %v6519_v62 }
 0xc03   : > { %7289 = vrot.lane.b32.xlu0 %v14085_v63, %s10525_s4  ;;  %7287 = vrot.lane.b32.xlu1 %v14075_v18, %s10525_s4  ;;  %v8383_v18 = vsel %vm3428_vm4, %v10461_v41, 0  ;;  %vm7124_vm4 = vcmask 322816  }
 0xc04   : > { %10176 = vmatpush3.bf16.msra.mxu1 %v8383_v18 }
 0xc05   : > { %v6525_v48 = vpop.permute.xlu0 %6524  ;;  %v6523_v47 = vpop.permute.xlu1 %6522 }
 0xc06   : > { %6616 = vst.msk [vmem:[#allocation3 + $0x14] sm:$0xf] %vm6610_vm2, %v6525_v48  ;;  %6615 = vst.msk [vmem:[#allocation3 + $0x10] sm:$0xf] %vm6610_vm2, %v6523_v47 }
 0xc07   : > { %7542 = vrot.lane.b32.xlu0 %v13905_v26, %s10526_s21  ;;  %7291 = vrot.lane.b32.xlu1 %v14083_v42, %s10525_s4  ;;  %v10462_v26 = vld [vmem:[%s15182_s0 + $0x18] sm:$0xff]  }
 0xc08   : > { %10177 = vmatprep.subr.bf16.mxu1 %v10462_v26 }
 0xc09   : > { %v6529_v29 = vpop.permute.xlu0 %6528  ;;  %v6527_v6 = vpop.permute.xlu1 %6526  ;;  %10178 = vmatpush3.bf16.msra.mxu1 %v10462_v26 }
 0xc0a   : > { %6618 = vst.msk [vmem:[#allocation3 + $0x1c] sm:$0xf] %vm6610_vm2, %v6529_v29  ;;  %6617 = vst.msk [vmem:[#allocation3 + $0x18] sm:$0xf] %vm6610_vm2, %v6527_v6 }
 0xc0b   : > { %7546 = vrot.lane.b32.xlu0 %v13923_v31, %s10526_s21  ;;  %7544 = vrot.lane.b32.xlu1 %v13903_v20, %s10526_s21  ;;  %v10463_v20 = vld [vmem:[%s15182_s0 + $0x10] sm:$0xff]  }
 0xc0c   : > { %10179 = vmatprep.subr.bf16.mxu1 %v10463_v20 }
 0xc0d   : > { %v6533_v49 = vpop.permute.xlu0 %6532  ;;  %v6531_v21 = vpop.permute.xlu1 %6530  ;;  %10180 = vmatpush3.bf16.msra.mxu1 %v10463_v20 }
 0xc0e   : > { %6620 = vst.msk [vmem:[#allocation3 + $0x24] sm:$0xf] %vm6610_vm2, %v6533_v49  ;;  %6619 = vst.msk [vmem:[#allocation3 + $0x20] sm:$0xf] %vm6610_vm2, %v6531_v21 }
 0xc0f   : > { %7799 = vrot.lane.b32.xlu0 %v13901_v7, %s10527_s10  ;;  %7548 = vrot.lane.b32.xlu1 %v13921_v45, %s10526_s21  ;;  %v10464_v7 = vld [vmem:[%s15182_s0 + $0x8] sm:$0xff]  }
 0xc10   : > { %10181 = vmatprep.subr.bf16.mxu1 %v10464_v7 }
 0xc11   : > { %v6537_v31 = vpop.permute.xlu0 %6536  ;;  %v6535_v10 = vpop.permute.xlu1 %6534  ;;  %10182 = vmatpush3.bf16.msra.mxu1 %v10464_v7 }
 0xc12   : > { %6622 = vst.msk [vmem:[#allocation3 + $0x2c] sm:$0xf] %vm6610_vm2, %v6537_v31  ;;  %6621 = vst.msk [vmem:[#allocation3 + $0x28] sm:$0xf] %vm6610_vm2, %v6535_v10  ;;  %v7168_v31 = vld [vmem:[#allocation2 + $0xd1] sm:$0xff] }
 0xc13   : > { %7803 = vrot.lane.b32.xlu0 %v13919_v11, %s10527_s10  ;;  %7801 = vrot.lane.b32.xlu1 %v10020_v27, %s10527_s10  ;;  %v10465_v11 = vld [vmem:[%s15182_s0] sm:$0xff]   ;;  %v9966_v40 = vpack.c.bf16 %v7168_v31, %v7168_v31 }
 0xc14   : > { %10183 = vmatprep.subr.bf16.mxu1 %v10465_v11 }
 0xc15   : > { %v6541_v45 = vpop.permute.xlu0 %6540  ;;  %v6539_v55 = vpop.permute.xlu1 %6538  ;;  %10184 = vmatpush3.bf16.msra.mxu1 %v10465_v11 }
 0xc16   : > { %6624 = vst.msk [vmem:[#allocation3 + $0x34] sm:$0xf] %vm6610_vm2, %v6541_v45  ;;  %6623 = vst.msk [vmem:[#allocation3 + $0x30] sm:$0xf] %vm6610_vm2, %v6539_v55 }
 0xc17   : > { %8056 = vrot.lane.b32.xlu0 %v14085_v63, %s10528_s15  ;;  %7805 = vrot.lane.b32.xlu1 %v10022_v30, %s10527_s10 }
 0xc19   : > { %v6545_v32 = vpop.permute.xlu0 %6544  ;;  %v6543_v22 = vpop.permute.xlu1 %6542 }
 0xc1a   : > { %6626 = vst.msk [vmem:[#allocation3 + $0x3c] sm:$0xf] %vm6610_vm2, %v6545_v32  ;;  %6625 = vst.msk [vmem:[#allocation3 + $0x38] sm:$0xf] %vm6610_vm2, %v6543_v22 }
 0xc1b   : > { %8060 = vrot.lane.b32.xlu0 %v14093_v51, %s10528_s15  ;;  %8058 = vrot.lane.b32.xlu1 %v14083_v42, %s10528_s15  ;;  %v6907_v42 = vld [vmem:[#allocation2 + $0x90] sm:$0xff] }
 0xc1c   : > { %v9930_v54 = vpack.c.bf16 %v6907_v42, %v6907_v42  ;;  %v6914_v42 = vld [vmem:[#allocation2 + $0x108] sm:$0xff] }
 0xc1d   : > { %v6549_v63 = vpop.permute.xlu0 %6548  ;;  %v6547_v60 = vpop.permute.xlu1 %6546 }
 0xc1e   : > { %6628 = vst.msk [vmem:[#allocation3 + $0x44] sm:$0xf] %vm6610_vm2, %v6549_v63  ;;  %6627 = vst.msk [vmem:[#allocation3 + $0x40] sm:$0xf] %vm6610_vm2, %v6547_v60 }
 0xc1f   : > { %7036 = vrot.lane.b32.xlu0 %v9927_v57, %s15181_s19  ;;  %8062 = vrot.lane.b32.xlu1 %v14091_v53, %s10528_s15 }
 0xc21   : > { %v6553_v13 = vpop.permute.xlu0 %6552  ;;  %v6551_v36 = vpop.permute.xlu1 %6550 }
 0xc22   : > { %6630 = vst.msk [vmem:[#allocation3 + $0x4c] sm:$0xf] %vm6610_vm2, %v6553_v13  ;;  %6629 = vst.msk [vmem:[#allocation3 + $0x48] sm:$0xf] %vm6610_vm2, %v6551_v36 }
 0xc23   : > { %7040 = vrot.lane.b32.xlu0 %v9929_v24, %s15181_s19  ;;  %7038 = vrot.lane.b32.xlu1 %v10022_v30, %s15181_s19 }
 0xc25   : > { %v6557_v17 = vpop.permute.xlu0 %6556  ;;  %v6555_v38 = vpop.permute.xlu1 %6554 }
 0xc26   : > { %6632 = vst.msk [vmem:[#allocation3 + $0x54] sm:$0xf] %vm6610_vm2, %v6557_v17  ;;  %6631 = vst.msk [vmem:[#allocation3 + $0x50] sm:$0xf] %vm6610_vm2, %v6555_v38 }
 0xc27   : > { %7293 = vrot.lane.b32.xlu0 %v14093_v51, %s10525_s4  ;;  %7042 = vrot.lane.b32.xlu1 %v9930_v54, %s15181_s19 }
 0xc29   : > { %v6561_v46 = vpop.permute.xlu0 %6560  ;;  %v6559_v59 = vpop.permute.xlu1 %6558 }
 0xc2a   : > { %6634 = vst.msk [vmem:[#allocation3 + $0x5c] sm:$0xf] %vm6610_vm2, %v6561_v46  ;;  %6633 = vst.msk [vmem:[#allocation3 + $0x58] sm:$0xf] %vm6610_vm2, %v6559_v59  ;;  %v6915_v46 = vld [vmem:[#allocation2 + $0x110] sm:$0xff] }
 0xc2b   : > { %7297 = vrot.lane.b32.xlu0 %v14101_v52, %s10525_s4  ;;  %7295 = vrot.lane.b32.xlu1 %v14091_v53, %s10525_s4 }
 0xc2d   : > { %v6565_v2 = vpop.permute.xlu0 %6564  ;;  %v6563_v16 = vpop.permute.xlu1 %6562 }
 0xc2e   : > { %6636 = vst.msk [vmem:[#allocation3 + $0x64] sm:$0xf] %vm6610_vm2, %v6565_v2  ;;  %6635 = vst.msk [vmem:[#allocation3 + $0x60] sm:$0xf] %vm6610_vm2, %v6563_v16  ;;  %v9938_v16 = vpack.c.bf16 %v6915_v46, %v6915_v46 }
 0xc2f   : > { %7550 = vrot.lane.b32.xlu0 %v13938_v35, %s10526_s21  ;;  %7299 = vrot.lane.b32.xlu1 %v14099_v61, %s10525_s4  ;;  %v7677_v35 = vld [vmem:[#allocation2 + $0xa8] sm:$0xff] }
 0xc30   : > { %v10025_v50 = vpack.c.bf16 %v7677_v35, %v7677_v35  ;;  %v7172_v35 = vld [vmem:[#allocation2 + $0x111] sm:$0xff] }
 0xc31   : > { %v6569_v51 = vpop.permute.xlu0 %6568  ;;  %v6567_v34 = vpop.permute.xlu1 %6566 }
 0xc32   : > { %6638 = vst.msk [vmem:[#allocation3 + $0x6c] sm:$0xf] %vm6610_vm2, %v6569_v51  ;;  %6637 = vst.msk [vmem:[#allocation3 + $0x68] sm:$0xf] %vm6610_vm2, %v6567_v34  ;;  %v7171_v51 = vld [vmem:[#allocation2 + $0x109] sm:$0xff] }
 0xc33   : > { %7554 = vrot.lane.b32.xlu0 %v13952_v9, %s10526_s21  ;;  %7552 = vrot.lane.b32.xlu1 %v13936_v56, %s10526_s21  ;;  %v7678_v56 = vld [vmem:[#allocation2 + $0xb0] sm:$0xff] }
 0xc34   : > { %v10026_v62 = vpack.c.bf16 %v7678_v56, %v7678_v56 }
 0xc35   : > { %v6573_v53 = vpop.permute.xlu0 %6572  ;;  %v6571_v23 = vpop.permute.xlu1 %6570 }
 0xc36   : > { %6640 = vst.msk [vmem:[#allocation3 + $0x74] sm:$0xf] %vm6610_vm2, %v6573_v53  ;;  %6639 = vst.msk [vmem:[#allocation3 + $0x70] sm:$0xf] %vm6610_vm2, %v6571_v23  ;;  %v9969_v23 = vpack.c.bf16 %v7171_v51, %v7171_v51 }
 0xc37   : > { %7807 = vrot.lane.b32.xlu0 %v9929_v24, %s10527_s10  ;;  %7556 = vrot.lane.b32.xlu1 %v13950_v3, %s10526_s21  ;;  %v10062_v24 = vpack.c.bf16 %v7939_v39, %v7939_v39 }
 0xc39   : > { %v6577_v33 = vpop.permute.xlu0 %6576  ;;  %v6575_v44 = vpop.permute.xlu1 %6574 }
 0xc3a   : > { %6642 = vst.msk [vmem:[#allocation3 + $0x7c] sm:$0xf] %vm6610_vm2, %v6577_v33  ;;  %6641 = vst.msk [vmem:[#allocation3 + $0x78] sm:$0xf] %vm6610_vm2, %v6575_v44 }
 0xc3b   : > { %7811 = vrot.lane.b32.xlu0 %v10025_v50, %s10527_s10  ;;  %7809 = vrot.lane.b32.xlu1 %v9930_v54, %s10527_s10  ;;  %v9937_v54 = vpack.c.bf16 %v6914_v42, %v6914_v42 }
 0xc3d   : > { %v6774_v9 = vpop.permute.xlu0 %6773  ;;  %v6772_v15 = vpop.permute.xlu1 %6771 }
 0xc3e   : > { %6869 = vst.msk [vmem:[#allocation3 + $0x4] sm:$0xf] %vm6867_vm14, %v6774_v9  ;;  %6868 = vst.msk [vmem:[#allocation3] sm:$0xf] %vm6867_vm14, %v6772_v15 }
 0xc3f   : > { %8064 = vrot.lane.b32.xlu0 %v14101_v52, %s10528_s15  ;;  %7813 = vrot.lane.b32.xlu1 %v10026_v62, %s10527_s10  ;;  %v6910_v52 = vld [vmem:[#allocation2 + $0xc8] sm:$0xff] }
 0xc40   : > { %v9933_v18 = vpack.c.bf16 %v6910_v52, %v6910_v52 }
 0xc41   : > { %v6778_v3 = vpop.permute.xlu0 %6777  ;;  %v6776_v48 = vpop.permute.xlu1 %6775 }
 0xc42   : > { %6871 = vst.msk [vmem:[#allocation3 + $0xc] sm:$0xf] %vm6867_vm14, %v6778_v3  ;;  %6870 = vst.msk [vmem:[#allocation3 + $0x8] sm:$0xf] %vm6867_vm14, %v6776_v48 }
 0xc43   : > { %8068 = vrot.lane.b32.xlu0 %v14109_v8, %s10528_s15  ;;  %8066 = vrot.lane.b32.xlu1 %v14099_v61, %s10528_s15  ;;  %v6911_v61 = vld [vmem:[#allocation2 + $0xd0] sm:$0xff] }
 0xc44   : > { %v9934_v21 = vpack.c.bf16 %v6911_v61, %v6911_v61  ;;  %v7943_v61 = vld [vmem:[#allocation2 + $0x131] sm:$0xff] }
 0xc45   : > { %v6782_v47 = vpop.permute.xlu0 %6781  ;;  %v6780_v41 = vpop.permute.xlu1 %6779 }
 0xc46   : > { %6873 = vst.msk [vmem:[#allocation3 + $0x14] sm:$0xf] %vm6867_vm14, %v6782_v47  ;;  %6872 = vst.msk [vmem:[#allocation3 + $0x10] sm:$0xf] %vm6867_vm14, %v6780_v41 }
 0xc47   : > { %7044 = vrot.lane.b32.xlu0 %v10025_v50, %s15181_s19  ;;  %8070 = vrot.lane.b32.xlu1 %v14107_v28, %s10528_s15  ;;  %v9970_v50 = vpack.c.bf16 %v7172_v35, %v7172_v35 }
 0xc49   : > { %v6786_v29 = vpop.permute.xlu0 %6785  ;;  %v6784_v6 = vpop.permute.xlu1 %6783 }
 0xc4a   : > { %6875 = vst.msk [vmem:[#allocation3 + $0x1c] sm:$0xf] %vm6867_vm14, %v6786_v29  ;;  %6874 = vst.msk [vmem:[#allocation3 + $0x18] sm:$0xf] %vm6867_vm14, %v6784_v6 }
 0xc4b   : > { %7048 = vrot.lane.b32.xlu0 %v9933_v18, %s15181_s19  ;;  %7046 = vrot.lane.b32.xlu1 %v10026_v62, %s15181_s19 }
 0xc4d   : > { %v6790_v26 = vpop.permute.xlu0 %6789  ;;  %v6788_v49 = vpop.permute.xlu1 %6787 }
 0xc4e   : > { %6877 = vst.msk [vmem:[#allocation3 + $0x24] sm:$0xf] %vm6867_vm14, %v6790_v26  ;;  %6876 = vst.msk [vmem:[#allocation3 + $0x20] sm:$0xf] %vm6867_vm14, %v6788_v49 }
 0xc4f   : > { %7301 = vrot.lane.b32.xlu0 %v14109_v8, %s10525_s4  ;;  %7050 = vrot.lane.b32.xlu1 %v9934_v21, %s15181_s19 }
 0xc51   : > { %v6794_v5 = vpop.permute.xlu0 %6793  ;;  %v6792_v20 = vpop.permute.xlu1 %6791 }
 0xc52   : > { %6879 = vst.msk [vmem:[#allocation3 + $0x2c] sm:$0xf] %vm6867_vm14, %v6794_v5  ;;  %6878 = vst.msk [vmem:[#allocation3 + $0x28] sm:$0xf] %vm6867_vm14, %v6792_v20  ;;  %v6918_v20 = vld [vmem:[#allocation2 + $0x148] sm:$0xff] }
 0xc53   : > { %7305 = vrot.lane.b32.xlu0 %v14115_v43, %s10525_s4  ;;  %7303 = vrot.lane.b32.xlu1 %v14107_v28, %s10525_s4 }
 0xc55   : > { %v6798_v10 = vpop.permute.xlu0 %6797  ;;  %v6796_v27 = vpop.permute.xlu1 %6795 }
 0xc56   : > { %6881 = vst.msk [vmem:[#allocation3 + $0x34] sm:$0xf] %vm6867_vm14, %v6798_v10  ;;  %6880 = vst.msk [vmem:[#allocation3 + $0x30] sm:$0xf] %vm6867_vm14, %v6796_v27  ;;  %v9941_v27 = vpack.c.bf16 %v6918_v20, %v6918_v20 }
 0xc57   : > { %7558 = vrot.lane.b32.xlu0 %v13966_v1, %s10526_s21  ;;  %7307 = vrot.lane.b32.xlu1 %v9966_v40, %s10525_s4  ;;  %v7681_v1 = vld [vmem:[#allocation2 + $0xe8] sm:$0xff] }
 0xc58   : > { %v10029_v30 = vpack.c.bf16 %v7681_v1, %v7681_v1  ;;  %v7175_v1 = vld [vmem:[#allocation2 + $0x149] sm:$0xff] }
 0xc59   : > { %v6802_v8 = vpop.permute.xlu0 %6801  ;;  %v6800_v7 = vpop.permute.xlu1 %6799 }
 0xc5a   : > { %6883 = vst.msk [vmem:[#allocation3 + $0x3c] sm:$0xf] %vm6867_vm14, %v6802_v8  ;;  %6882 = vst.msk [vmem:[#allocation3 + $0x38] sm:$0xf] %vm6867_vm14, %v6800_v7  ;;  %v6919_v8 = vld [vmem:[#allocation2 + $0x150] sm:$0xff] }
 0xc5b   : > { %7562 = vrot.lane.b32.xlu0 %v13980_v4, %s10526_s21  ;;  %7560 = vrot.lane.b32.xlu1 %v13964_v12, %s10526_s21  ;;  %v7936_v12 = vld [vmem:[#allocation2 + $0xc9] sm:$0xff] }
 0xc5c   : > { %v7682_v4 = vld [vmem:[#allocation2 + $0xf0] sm:$0xff]  ;;  %v10059_v22 = vpack.c.bf16 %v7936_v12, %v7936_v12  ;;  %v7430_v12 = vld [vmem:[#allocation2 + $0x147] sm:$0xff] }
 0xc5d   : > { %v6806_v28 = vpop.permute.xlu0 %6805  ;;  %v6804_v43 = vpop.permute.xlu1 %6803  ;;  %v10030_v37 = vpack.c.bf16 %v7682_v4, %v7682_v4  ;;  %v7176_v4 = vld [vmem:[#allocation2 + $0x151] sm:$0xff] }
 0xc5e   : > { %6885 = vst.msk [vmem:[#allocation3 + $0x44] sm:$0xf] %vm6867_vm14, %v6806_v28  ;;  %6884 = vst.msk [vmem:[#allocation3 + $0x40] sm:$0xf] %vm6867_vm14, %v6804_v43  ;;  %v9942_v43 = vpack.c.bf16 %v6919_v8, %v6919_v8  ;;  %v7437_v8 = vld [vmem:[#allocation2 + $0x1af] sm:$0xff] }
 0xc5f   : > { %7815 = vrot.lane.b32.xlu0 %v9933_v18, %s10527_s10  ;;  %7564 = vrot.lane.b32.xlu1 %v13978_v58, %s10526_s21  ;;  %v7938_v58 = vld [vmem:[#allocation2 + $0xe9] sm:$0xff] }
 0xc60   : > { %v10061_v57 = vpack.c.bf16 %v7938_v58, %v7938_v58  ;;  %v7432_v58 = vld [vmem:[#allocation2 + $0x167] sm:$0xff] }
 0xc61   : > { %v6810_v45 = vpop.permute.xlu0 %6809  ;;  %v6808_v55 = vpop.permute.xlu1 %6807  ;;  %v10005_v39 = vpack.c.bf16 %v7432_v58, %v7432_v58 }
 0xc62   : > { %6887 = vst.msk [vmem:[#allocation3 + $0x4c] sm:$0xf] %vm6867_vm14, %v6810_v45  ;;  %6886 = vst.msk [vmem:[#allocation3 + $0x48] sm:$0xf] %vm6867_vm14, %v6808_v55 }
 0xc63   : > { %7819 = vrot.lane.b32.xlu0 %v10029_v30, %s10527_s10  ;;  %7817 = vrot.lane.b32.xlu1 %v9934_v21, %s10527_s10  ;;  %v10066_v21 = vpack.c.bf16 %v7943_v61, %v7943_v61  ;;  %v7180_v61 = vld [vmem:[#allocation2 + $0x191] sm:$0xff] }
 0xc65   : > { %v6814_v11 = vpop.permute.xlu0 %6813  ;;  %v6812_v32 = vpop.permute.xlu1 %6811 }
 0xc66   : > { %6889 = vst.msk [vmem:[#allocation3 + $0x54] sm:$0xf] %vm6867_vm14, %v6814_v11  ;;  %6888 = vst.msk [vmem:[#allocation3 + $0x50] sm:$0xf] %vm6867_vm14, %v6812_v32 }
 0xc67   : > { %8072 = vrot.lane.b32.xlu0 %v10059_v22, %s10528_s15  ;;  %7821 = vrot.lane.b32.xlu1 %v10030_v37, %s10527_s10  ;;  %v10003_v22 = vpack.c.bf16 %v7430_v12, %v7430_v12  ;;  %v7694_v12 = vld [vmem:[#allocation2 + $0x1b0] sm:$0xff] }
 0xc69   : > { %v7029_v63 = vpop.permute.xlu0 %7028  ;;  %v6816_v60 = vpop.permute.xlu1 %6815 }
 0xc6a   : > { %7125 = vst.msk [vmem:[#allocation3] sm:$0xf] %vm7124_vm4, %v7029_v63  ;;  %v7431_v63 = vld [vmem:[#allocation2 + $0x14f] sm:$0xff] }
 0xc6b   : > { %6890 = vst.msk [vmem:[#allocation3 + $0x58] sm:$0xf] %vm6867_vm14, %v6816_v60  ;;  %8076 = vrot.lane.b32.xlu0 %v10061_v57, %s10528_s15  ;;  %8074 = vrot.lane.b32.xlu1 %v9966_v40, %s10528_s15 }
 0xc6d   : > { %v7033_v13 = vpop.permute.xlu0 %7032  ;;  %v7031_v36 = vpop.permute.xlu1 %7030 }
 0xc6e   : > { %7127 = vst.msk [vmem:[#allocation3 + $0x8] sm:$0xf] %vm7124_vm4, %v7033_v13  ;;  %7126 = vst.msk [vmem:[#allocation3 + $0x4] sm:$0xf] %vm7124_vm4, %v7031_v36  ;;  %v10004_v13 = vpack.c.bf16 %v7431_v63, %v7431_v63  ;;  %v7433_v36 = vld [vmem:[#allocation2 + $0x16f] sm:$0xff] }
 0xc6f   : > { %7052 = vrot.lane.b32.xlu0 %v10029_v30, %s15181_s19  ;;  %8078 = vrot.lane.b32.xlu1 %v10062_v24, %s10528_s15  ;;  %v9973_v30 = vpack.c.bf16 %v7175_v1, %v7175_v1  ;;  %v10010_v1 = vpack.c.bf16 %v7437_v8, %v7437_v8 }
 0xc71   : > { %v7286_v17 = vpop.permute.xlu0 %7285  ;;  %v7035_v38 = vpop.permute.xlu1 %7034 }
 0xc72   : > { %7382 = vst.msk [vmem:[#allocation3] sm:$0xf] %vm7381_vm3, %v7286_v17  ;;  %v10006_v17 = vpack.c.bf16 %v7433_v36, %v7433_v36 }
 0xc73   : > { %7128 = vst.msk [vmem:[#allocation3 + $0xc] sm:$0xf] %vm7124_vm4, %v7035_v38  ;;  %7056 = vrot.lane.b32.xlu0 %v9937_v54, %s15181_s19  ;;  %7054 = vrot.lane.b32.xlu1 %v10030_v37, %s15181_s19  ;;  %v9974_v37 = vpack.c.bf16 %v7176_v4, %v7176_v4  ;;  %v7689_v38 = vld [vmem:[#allocation2 + $0x168] sm:$0xff] }
 0xc74   : > { %v7693_v4 = vld [vmem:[#allocation2 + $0x1a8] sm:$0xff] }
 0xc75   : > { %v7290_v59 = vpop.permute.xlu0 %7289  ;;  %v7288_v2 = vpop.permute.xlu1 %7287 }
 0xc76   : > { %7384 = vst.msk [vmem:[#allocation3 + $0x8] sm:$0xf] %vm7381_vm3, %v7290_v59  ;;  %7383 = vst.msk [vmem:[#allocation3 + $0x4] sm:$0xf] %vm7381_vm3, %v7288_v2  ;;  %v10037_v59 = vpack.c.bf16 %v7689_v38, %v7689_v38  ;;  %v7690_v2 = vld [vmem:[#allocation2 + $0x170] sm:$0xff] }
 0xc77   : > { %7309 = vrot.lane.b32.xlu0 %v10061_v57, %s10525_s4  ;;  %7058 = vrot.lane.b32.xlu1 %v9938_v16, %s15181_s19 }
 0xc79   : > { %v7543_v34 = vpop.permute.xlu0 %7542  ;;  %v7292_v53 = vpop.permute.xlu1 %7291 }
 0xc7a   : > { %7639 = vst.msk [vmem:[#allocation3] sm:$0xf] %vm7638_vm5, %v7543_v34  ;;  %v10038_v34 = vpack.c.bf16 %v7690_v2, %v7690_v2 }
 0xc7b   : > { %7385 = vst.msk [vmem:[#allocation3 + $0xc] sm:$0xf] %vm7381_vm3, %v7292_v53  ;;  %7313 = vrot.lane.b32.xlu0 %v9969_v23, %s10525_s4  ;;  %7311 = vrot.lane.b32.xlu1 %v10062_v24, %s10525_s4  ;;  %v7946_v53 = vld [vmem:[#allocation2 + $0x169] sm:$0xff] }
 0xc7d   : > { %v7547_v33 = vpop.permute.xlu0 %7546  ;;  %v7545_v44 = vpop.permute.xlu1 %7544 }
 0xc7e   : > { %7641 = vst.msk [vmem:[#allocation3 + $0x8] sm:$0xf] %vm7638_vm5, %v7547_v33  ;;  %7640 = vst.msk [vmem:[#allocation3 + $0x4] sm:$0xf] %vm7638_vm5, %v7545_v44  ;;  %v10069_v33 = vpack.c.bf16 %v7946_v53, %v7946_v53  ;;  %v6666_v44 = vld [vmem:[#allocation2 + $0x18f] sm:$0xff] }
 0xc7f   : > { %7566 = vrot.lane.b32.xlu0 %v13994_v0, %s10526_s21  ;;  %7315 = vrot.lane.b32.xlu1 %v9970_v50, %s10525_s4  ;;  %v7685_v0 = vld [vmem:[#allocation2 + $0x128] sm:$0xff] }
 0xc80   : > { %v10033_v47 = vpack.c.bf16 %v7685_v0, %v7685_v0 }
 0xc81   : > { %v7800_v56 = vpop.permute.xlu0 %7799  ;;  %v7549_v9 = vpop.permute.xlu1 %7548 }
 0xc82   : > { %7896 = vst.msk [vmem:[#allocation3] sm:$0xf] %vm7895_vm6, %v7800_v56 }
 0xc83   : > { %7642 = vst.msk [vmem:[#allocation3 + $0xc] sm:$0xf] %vm7638_vm5, %v7549_v9  ;;  %7570 = vrot.lane.b32.xlu0 %v14008_v14, %s10526_s21  ;;  %7568 = vrot.lane.b32.xlu1 %v13992_v19, %s10526_s21  ;;  %v7686_v19 = vld [vmem:[#allocation2 + $0x130] sm:$0xff] }
 0xc84   : > { %v10034_v52 = vpack.c.bf16 %v7686_v19, %v7686_v19  ;;  %v6923_v19 = vld [vmem:[#allocation2 + $0x190] sm:$0xff] }
 0xc85   : > { %v7804_v15 = vpop.permute.xlu0 %7803  ;;  %v7802_v62 = vpop.permute.xlu1 %7801 }
 0xc86   : > { %7898 = vst.msk [vmem:[#allocation3 + $0x8] sm:$0xf] %vm7895_vm6, %v7804_v15  ;;  %7897 = vst.msk [vmem:[#allocation3 + $0x4] sm:$0xf] %vm7895_vm6, %v7802_v62  ;;  %v9914_v15 = vpack.c.bf16 %v6666_v44, %v6666_v44 }
 0xc87   : > { %7823 = vrot.lane.b32.xlu0 %v9937_v54, %s10527_s10  ;;  %7572 = vrot.lane.b32.xlu1 %v14006_v25, %s10526_s21  ;;  %v7942_v25 = vld [vmem:[#allocation2 + $0x129] sm:$0xff] }
 0xc88   : > { %v10065_v18 = vpack.c.bf16 %v7942_v25, %v7942_v25  ;;  %v9946_v25 = vpack.c.bf16 %v6923_v19, %v6923_v19 }
 0xc89   : > { %v8057_v3 = vpop.permute.xlu0 %8056  ;;  %v7806_v48 = vpop.permute.xlu1 %7805 }
 0xc8a   : > { %8153 = vst.msk [vmem:[#allocation3] sm:$0xf] %vm8152_vm7, %v8057_v3 }
 0xc8b   : > { %7899 = vst.msk [vmem:[#allocation3 + $0xc] sm:$0xf] %vm7895_vm6, %v7806_v48  ;;  %7827 = vrot.lane.b32.xlu0 %v10033_v47, %s10527_s10  ;;  %7825 = vrot.lane.b32.xlu1 %v9938_v16, %s10527_s10 }
 0xc8d   : > { %v8061_v14 = vpop.permute.xlu0 %8060  ;;  %v8059_v41 = vpop.permute.xlu1 %8058 }
 0xc8e   : > { %8155 = vst.msk [vmem:[#allocation3 + $0x8] sm:$0xf] %vm8152_vm7, %v8061_v14  ;;  %8154 = vst.msk [vmem:[#allocation3 + $0x4] sm:$0xf] %vm8152_vm7, %v8059_v41  ;;  %v6922_v14 = vld [vmem:[#allocation2 + $0x188] sm:$0xff] }
 0xc8f   : > { %8080 = vrot.lane.b32.xlu0 %v9969_v23, %s10528_s15  ;;  %7829 = vrot.lane.b32.xlu1 %v10034_v52, %s10527_s10 }
 0xc91   : > { %v7037_v29 = vpop.permute.xlu0 %7036  ;;  %v8063_v6 = vpop.permute.xlu1 %8062 }
 0xc92   : > { %7129 = vst.msk [vmem:[#allocation3 + $0x10] sm:$0xf] %vm7124_vm4, %v7037_v29  ;;  %v9945_v29 = vpack.c.bf16 %v6922_v14, %v6922_v14 }
 0xc93   : > { %8156 = vst.msk [vmem:[#allocation3 + $0xc] sm:$0xf] %vm8152_vm7, %v8063_v6  ;;  %8084 = vrot.lane.b32.xlu0 %v10065_v18, %s10528_s15  ;;  %8082 = vrot.lane.b32.xlu1 %v9970_v50, %s10528_s15  ;;  %v7947_v50 = vld [vmem:[#allocation2 + $0x171] sm:$0xff] }
 0xc94   : > { %v10070_v62 = vpack.c.bf16 %v7947_v50, %v7947_v50 }
 0xc95   : > { %v7041_v26 = vpop.permute.xlu0 %7040  ;;  %v7039_v49 = vpop.permute.xlu1 %7038  ;;  %v10466_v5 = vld [vmem:[#allocation3] sm:$0xff]  }
 0xc96   : > { %7131 = vst.msk [vmem:[#allocation3 + $0x18] sm:$0xf] %vm7124_vm4, %v7041_v26  ;;  %7130 = vst.msk [vmem:[#allocation3 + $0x14] sm:$0xf] %vm7124_vm4, %v7039_v49  ;;  %10185 = vmatprep.mubr.msk.bf16.mxu1 %vm8333_vm8, %v10466_v5  ;;  %v7179_v26 = vld [vmem:[#allocation2 + $0x189] sm:$0xff]  ;;  %v9978_v5 = vpack.c.bf16 %v7180_v61, %v7180_v61 }
 0xc97   : > { %7060 = vrot.lane.b32.xlu0 %v10033_v47, %s15181_s19  ;;  %8086 = vrot.lane.b32.xlu1 %v10066_v21, %s10528_s15  ;;  %v9977_v20 = vpack.c.bf16 %v7179_v26, %v7179_v26 }
 0xc99   : > { %v7294_v31 = vpop.permute.xlu0 %7293  ;;  %v7043_v10 = vpop.permute.xlu1 %7042 }
 0xc9a   : > { %v10467_v40 = vld [vmem:[#allocation3 + $0x8] sm:$0xff]   ;;  %7386 = vst.msk [vmem:[#allocation3 + $0x10] sm:$0xf] %vm7381_vm3, %v7294_v31 }
 0xc9b   : > { %7132 = vst.msk [vmem:[#allocation3 + $0x1c] sm:$0xf] %vm7124_vm4, %v7043_v10  ;;  %7064 = vrot.lane.b32.xlu0 %v9941_v27, %s15181_s19  ;;  %7062 = vrot.lane.b32.xlu1 %v10034_v52, %s15181_s19  ;;  %v7434_v31 = vld [vmem:[#allocation2 + $0x187] sm:$0xff] }
 0xc9c   : > { %10186 = vmatmul.mubr.msk.bf16.vlgmr.msra.gmra.mxu1 %vm8333_vm8, %v10467_v40  ;;  %v10007_v40 = vpack.c.bf16 %v7434_v31, %v7434_v31 }
 0xc9d   : > { %v7298_v7 = vpop.permute.xlu0 %7297  ;;  %v7296_v28 = vpop.permute.xlu1 %7295 }
 0xc9e   : > { %7388 = vst.msk [vmem:[#allocation3 + $0x18] sm:$0xf] %vm7381_vm3, %v7298_v7  ;;  %7387 = vst.msk [vmem:[#allocation3 + $0x14] sm:$0xf] %vm7381_vm3, %v7296_v28  ;;  %v7436_v7 = vld [vmem:[#allocation2 + $0x1a7] sm:$0xff] }
 0xc9f   : > { %7317 = vrot.lane.b32.xlu0 %v10065_v18, %s10525_s4  ;;  %7066 = vrot.lane.b32.xlu1 %v9942_v43, %s15181_s19 }
 0xca1   : > { %v7551_v45 = vpop.permute.xlu0 %7550  ;;  %v7300_v55 = vpop.permute.xlu1 %7299 }
 0xca2   : > { %7643 = vst.msk [vmem:[#allocation3 + $0x10] sm:$0xf] %vm7638_vm5, %v7551_v45  ;;  %v10009_v45 = vpack.c.bf16 %v7436_v7, %v7436_v7 }
 0xca3   : > { %7389 = vst.msk [vmem:[#allocation3 + $0x1c] sm:$0xf] %vm7381_vm3, %v7300_v55  ;;  %7321 = vrot.lane.b32.xlu0 %v9973_v30, %s10525_s4  ;;  %7319 = vrot.lane.b32.xlu1 %v10066_v21, %s10525_s4 }
 0xca5   : > { %v7555_v11 = vpop.permute.xlu0 %7554  ;;  %v7553_v32 = vpop.permute.xlu1 %7552 }
 0xca6   : > { %7645 = vst.msk [vmem:[#allocation3 + $0x18] sm:$0xf] %vm7638_vm5, %v7555_v11  ;;  %7644 = vst.msk [vmem:[#allocation3 + $0x14] sm:$0xf] %vm7638_vm5, %v7553_v32 }
 0xca7   : > { %7574 = vrot.lane.b32.xlu0 %v10003_v22, %s10526_s21  ;;  %7323 = vrot.lane.b32.xlu1 %v9974_v37, %s10525_s4  ;;  %v10042_v22 = vpack.c.bf16 %v7694_v12, %v7694_v12 }
 0xca9   : > { %v7808_v60 = vpop.permute.xlu0 %7807  ;;  %v7557_v57 = vpop.permute.xlu1 %7556 }
 0xcaa   : > { %7900 = vst.msk [vmem:[#allocation3 + $0x10] sm:$0xf] %vm7895_vm6, %v7808_v60  ;;  %v7951_v60 = vld [vmem:[#allocation2 + $0x1b1] sm:$0xff] }
 0xcab   : > { %7646 = vst.msk [vmem:[#allocation3 + $0x1c] sm:$0xf] %vm7638_vm5, %v7557_v57  ;;  %7578 = vrot.lane.b32.xlu0 %v10005_v39, %s10526_s21  ;;  %7576 = vrot.lane.b32.xlu1 %v10004_v13, %s10526_s21  ;;  %v7950_v57 = vld [vmem:[#allocation2 + $0x1a9] sm:$0xff]  ;;  %v10074_v36 = vpack.c.bf16 %v7951_v60, %v7951_v60 }
 0xcad   : > { %v7812_v24 = vpop.permute.xlu0 %7811  ;;  %v7810_v42 = vpop.permute.xlu1 %7809 }
 0xcae   : > { %7902 = vst.msk [vmem:[#allocation3 + $0x18] sm:$0xf] %vm7895_vm6, %v7812_v24  ;;  %7901 = vst.msk [vmem:[#allocation3 + $0x14] sm:$0xf] %vm7895_vm6, %v7810_v42  ;;  %v10073_v24 = vpack.c.bf16 %v7950_v57, %v7950_v57 }
 0xcaf   : > { %7831 = vrot.lane.b32.xlu0 %v9941_v27, %s10527_s10  ;;  %7580 = vrot.lane.b32.xlu1 %v10006_v17, %s10526_s21 }
 0xcb1   : > { %v8065_v54 = vpop.permute.xlu0 %8064  ;;  %v7814_v46 = vpop.permute.xlu1 %7813 }
 0xcb2   : > { %8157 = vst.msk [vmem:[#allocation3 + $0x10] sm:$0xf] %vm8152_vm7, %v8065_v54 }
 0xcb3   : > { %7903 = vst.msk [vmem:[#allocation3 + $0x1c] sm:$0xf] %vm7895_vm6, %v7814_v46  ;;  %7835 = vrot.lane.b32.xlu0 %v10037_v59, %s10527_s10  ;;  %7833 = vrot.lane.b32.xlu1 %v9942_v43, %s10527_s10  ;;  %v6670_v46 = vld [vmem:[#allocation2 + $0x1cf] sm:$0xff] }
 0xcb5   : > { %v8069_v16 = vpop.permute.xlu0 %8068  ;;  %v8067_v51 = vpop.permute.xlu1 %8066 }
 0xcb6   : > { %8159 = vst.msk [vmem:[#allocation3 + $0x18] sm:$0xf] %vm8152_vm7, %v8069_v16  ;;  %8158 = vst.msk [vmem:[#allocation3 + $0x14] sm:$0xf] %vm8152_vm7, %v8067_v51  ;;  %v9918_v51 = vpack.c.bf16 %v6670_v46, %v6670_v46 }
 0xcb7   : > { %8088 = vrot.lane.b32.xlu0 %v9973_v30, %s10528_s15  ;;  %7837 = vrot.lane.b32.xlu1 %v10038_v34, %s10527_s10 }
 0xcb9   : > { %v7045_v23 = vpop.permute.xlu0 %7044  ;;  %v8071_v35 = vpop.permute.xlu1 %8070 }
 0xcba   : > { %7133 = vst.msk [vmem:[#allocation3 + $0x20] sm:$0xf] %vm7124_vm4, %v7045_v23 }
 0xcbb   : > { %8160 = vst.msk [vmem:[#allocation3 + $0x1c] sm:$0xf] %vm8152_vm7, %v8071_v35  ;;  %8092 = vrot.lane.b32.xlu0 %v10069_v33, %s10528_s15  ;;  %8090 = vrot.lane.b32.xlu1 %v9974_v37, %s10528_s15  ;;  %v10041_v37 = vpack.c.bf16 %v7693_v4, %v7693_v4  ;;  %v6927_v35 = vld [vmem:[#allocation2 + $0x1d0] sm:$0xff] }
 0xcbd   : > { %v7049_v56 = vpop.permute.xlu0 %7048  ;;  %v7047_v9 = vpop.permute.xlu1 %7046  ;;  %v10468_v0 = vld [vmem:[#allocation3 + $0x10] sm:$0xff]  }
 0xcbe   : > { %7135 = vst.msk [vmem:[#allocation3 + $0x28] sm:$0xf] %vm7124_vm4, %v7049_v56  ;;  %7134 = vst.msk [vmem:[#allocation3 + $0x24] sm:$0xf] %vm7124_vm4, %v7047_v9  ;;  %10189 = vmatprep.mubr.msk.bf16.mxu1 %vm8333_vm8, %v10468_v0  ;;  %v9950_v56 = vpack.c.bf16 %v6927_v35, %v6927_v35  ;;  %v7184_v0 = vld [vmem:[#allocation2 + $0x1d1] sm:$0xff] }
 0xcbf   : > { %6817 = vrot.lane.b32.xlu0 %v9914_v15, %s15180_s16  ;;  %8094 = vrot.lane.b32.xlu1 %v10070_v62, %s10528_s15  ;;  %v9982_v19 = vpack.c.bf16 %v7184_v0, %v7184_v0  ;;  %v7445_v35 = vld [vmem:[#allocation2 + $0x22f] sm:$0xff] }
 0xcc1   : > { %v7302_v3 = vpop.permute.xlu0 %7301  ;;  %v7051_v48 = vpop.permute.xlu1 %7050 }
 0xcc2   : > { %v10469_v47 = vld [vmem:[#allocation3 + $0x18] sm:$0xff]   ;;  %7390 = vst.msk [vmem:[#allocation3 + $0x20] sm:$0xf] %vm7381_vm3, %v7302_v3  ;;  %v7183_v3 = vld [vmem:[#allocation2 + $0x1c9] sm:$0xff] }
 0xcc3   : > { %7136 = vst.msk [vmem:[#allocation3 + $0x2c] sm:$0xf] %vm7124_vm4, %v7051_v48  ;;  %7070 = vrot.lane.b32.xlu0 %v10038_v34, %s15181_s19  ;;  %7068 = vrot.lane.b32.xlu1 %v10037_v59, %s15181_s19  ;;  %v6669_v59 = vld [vmem:[#allocation2 + $0x1c7] sm:$0xff]  ;;  %v9981_v14 = vpack.c.bf16 %v7183_v3, %v7183_v3  ;;  %v7702_v3 = vld [vmem:[#allocation2 + $0x230] sm:$0xff] }
 0xcc4   : > { %10190 = vmatmul.mubr.msk.bf16.gmra.mxu1 %vm8333_vm8, %v10469_v47  ;;  %v9917_v34 = vpack.c.bf16 %v6669_v59, %v6669_v59 }
 0xcc5   : > { %v7306_v41 = vpop.permute.xlu0 %7305  ;;  %v7304_v52 = vpop.permute.xlu1 %7303 }
 0xcc6   : > { %7392 = vst.msk [vmem:[#allocation3 + $0x28] sm:$0xf] %vm7381_vm3, %v7306_v41  ;;  %7391 = vst.msk [vmem:[#allocation3 + $0x24] sm:$0xf] %vm7381_vm3, %v7304_v52 }
 0xcc7   : > { %7074 = vrot.lane.b32.xlu0 %v9946_v25, %s15181_s19  ;;  %7072 = vrot.lane.b32.xlu1 %v9945_v29, %s15181_s19 }
 0xcc9   : > { %v7559_v6 = vpop.permute.xlu0 %7558  ;;  %v7308_v18 = vpop.permute.xlu1 %7307 }
 0xcca   : > { %7647 = vst.msk [vmem:[#allocation3 + $0x20] sm:$0xf] %vm7638_vm5, %v7559_v6 }
 0xccb   : > { %7393 = vst.msk [vmem:[#allocation3 + $0x2c] sm:$0xf] %vm7381_vm3, %v7308_v18  ;;  %7327 = vrot.lane.b32.xlu0 %v10070_v62, %s10525_s4  ;;  %7325 = vrot.lane.b32.xlu1 %v10069_v33, %s10525_s4  ;;  %v6926_v33 = vld [vmem:[#allocation2 + $0x1c8] sm:$0xff] }
 0xccc   : > { %v9949_v9 = vpack.c.bf16 %v6926_v33, %v6926_v33  ;;  %v7444_v33 = vld [vmem:[#allocation2 + $0x227] sm:$0xff] }
 0xccd   : > { %v7563_v49 = vpop.permute.xlu0 %7562  ;;  %v7561_v21 = vpop.permute.xlu1 %7560 }
 0xcce   : > { %7649 = vst.msk [vmem:[#allocation3 + $0x28] sm:$0xf] %vm7638_vm5, %v7563_v49  ;;  %7648 = vst.msk [vmem:[#allocation3 + $0x24] sm:$0xf] %vm7638_vm5, %v7561_v21 }
 0xccf   : > { %7331 = vrot.lane.b32.xlu0 %v9978_v5, %s10525_s4  ;;  %7329 = vrot.lane.b32.xlu1 %v9977_v20, %s10525_s4 }
 0xcd1   : > { %v7816_v10 = vpop.permute.xlu0 %7815  ;;  %v7565_v27 = vpop.permute.xlu1 %7564 }
 0xcd2   : > { %7904 = vst.msk [vmem:[#allocation3 + $0x20] sm:$0xf] %vm7895_vm6, %v7816_v10 }
 0xcd3   : > { %7650 = vst.msk [vmem:[#allocation3 + $0x2c] sm:$0xf] %vm7638_vm5, %v7565_v27  ;;  %7584 = vrot.lane.b32.xlu0 %v9914_v15, %s10526_s21  ;;  %7582 = vrot.lane.b32.xlu1 %v10007_v40, %s10526_s21 }
 0xcd5   : > { %v7820_v28 = vpop.permute.xlu0 %7819  ;;  %v7818_v43 = vpop.permute.xlu1 %7817 }
 0xcd6   : > { %7906 = vst.msk [vmem:[#allocation3 + $0x28] sm:$0xf] %vm7895_vm6, %v7820_v28  ;;  %7905 = vst.msk [vmem:[#allocation3 + $0x24] sm:$0xf] %vm7895_vm6, %v7818_v43 }
 0xcd7   : > { %7588 = vrot.lane.b32.xlu0 %v10010_v1, %s10526_s21  ;;  %7586 = vrot.lane.b32.xlu1 %v10009_v45, %s10526_s21 }
 0xcd9   : > { %v8073_v55 = vpop.permute.xlu0 %8072  ;;  %v7822_v30 = vpop.permute.xlu1 %7821 }
 0xcda   : > { %8161 = vst.msk [vmem:[#allocation3 + $0x20] sm:$0xf] %vm8152_vm7, %v8073_v55 }
 0xcdb   : > { %7907 = vst.msk [vmem:[#allocation3 + $0x2c] sm:$0xf] %vm7895_vm6, %v7822_v30  ;;  %7841 = vrot.lane.b32.xlu0 %v9946_v25, %s10527_s10  ;;  %7839 = vrot.lane.b32.xlu1 %v9945_v29, %s10527_s10  ;;  %v7441_v25 = vld [vmem:[#allocation2 + $0x1ef] sm:$0xff]  ;;  %v7440_v29 = vld [vmem:[#allocation2 + $0x1e7] sm:$0xff] }
 0xcdc   : > { %v10014_v61 = vpack.c.bf16 %v7441_v25, %v7441_v25  ;;  %v10013_v26 = vpack.c.bf16 %v7440_v29, %v7440_v29 }
 0xcdd   : > { %v8077_v11 = vpop.permute.xlu0 %8076  ;;  %v8075_v32 = vpop.permute.xlu1 %8074 }
 0xcde   : > { %8163 = vst.msk [vmem:[#allocation3 + $0x28] sm:$0xf] %vm8152_vm7, %v8077_v11  ;;  %8162 = vst.msk [vmem:[#allocation3 + $0x24] sm:$0xf] %vm8152_vm7, %v8075_v32 }
 0xcdf   : > { %7845 = vrot.lane.b32.xlu0 %v10042_v22, %s10527_s10  ;;  %7843 = vrot.lane.b32.xlu1 %v10041_v37, %s10527_s10 }
 0xce1   : > { %v7053_v58 = vpop.permute.xlu0 %7052  ;;  %v8079_v63 = vpop.permute.xlu1 %8078 }
 0xce2   : > { %7137 = vst.msk [vmem:[#allocation3 + $0x30] sm:$0xf] %vm7124_vm4, %v7053_v58 }
 0xce3   : > { %8164 = vst.msk [vmem:[#allocation3 + $0x2c] sm:$0xf] %vm8152_vm7, %v8079_v63  ;;  %8098 = vrot.lane.b32.xlu0 %v9978_v5, %s10528_s15  ;;  %8096 = vrot.lane.b32.xlu1 %v9977_v20, %s10528_s15  ;;  %v7698_v5 = vld [vmem:[#allocation2 + $0x1f0] sm:$0xff]  ;;  %v7697_v20 = vld [vmem:[#allocation2 + $0x1e8] sm:$0xff] }
 0xce4   : > { %v10046_v27 = vpack.c.bf16 %v7698_v5, %v7698_v5  ;;  %v10045_v40 = vpack.c.bf16 %v7697_v20, %v7697_v20 }
 0xce5   : > { %v7057_v39 = vpop.permute.xlu0 %7056  ;;  %v7055_v13 = vpop.permute.xlu1 %7054  ;;  %v10470_v42 = vld [vmem:[#allocation3 + $0x20] sm:$0xff]  }
 0xce6   : > { %7139 = vst.msk [vmem:[#allocation3 + $0x38] sm:$0xf] %vm7124_vm4, %v7057_v39  ;;  %7138 = vst.msk [vmem:[#allocation3 + $0x34] sm:$0xf] %vm7124_vm4, %v7055_v13  ;;  %10193 = vmatprep.mubr.msk.bf16.mxu1 %vm8333_vm8, %v10470_v42 }
 0xce7   : > { %8102 = vrot.lane.b32.xlu0 %v10074_v36, %s10528_s15  ;;  %8100 = vrot.lane.b32.xlu1 %v10073_v24, %s10528_s15 }
 0xce9   : > { %v7310_v17 = vpop.permute.xlu0 %7309  ;;  %v7059_v38 = vpop.permute.xlu1 %7058 }
 0xcea   : > { %v10471_v54 = vld [vmem:[#allocation3 + $0x28] sm:$0xff]   ;;  %7394 = vst.msk [vmem:[#allocation3 + $0x30] sm:$0xf] %vm7381_vm3, %v7310_v17 }
 0xceb   : > { %7140 = vst.msk [vmem:[#allocation3 + $0x3c] sm:$0xf] %vm7124_vm4, %v7059_v38  ;;  %6821 = vrot.lane.b32.xlu0 %v10010_v1, %s15180_s16  ;;  %6819 = vrot.lane.b32.xlu1 %v10009_v45, %s15180_s16  ;;  %v7955_v1 = vld [vmem:[#allocation2 + $0x1f1] sm:$0xff]  ;;  %v7954_v45 = vld [vmem:[#allocation2 + $0x1e9] sm:$0xff] }
 0xcec   : > { %10194 = vmatmul.mubr.msk.bf16.gmra.mxu1 %vm8333_vm8, %v10471_v54  ;;  %v10078_v12 = vpack.c.bf16 %v7955_v1, %v7955_v1  ;;  %v10077_v4 = vpack.c.bf16 %v7954_v45, %v7954_v45 }
 0xced   : > { %v7314_v2 = vpop.permute.xlu0 %7313  ;;  %v7312_v16 = vpop.permute.xlu1 %7311 }
 0xcee   : > { %7396 = vst.msk [vmem:[#allocation3 + $0x38] sm:$0xf] %vm7381_vm3, %v7314_v2  ;;  %7395 = vst.msk [vmem:[#allocation3 + $0x34] sm:$0xf] %vm7381_vm3, %v7312_v16  ;;  %v7188_v2 = vld [vmem:[#allocation2 + $0x211] sm:$0xff]  ;;  %v7187_v16 = vld [vmem:[#allocation2 + $0x209] sm:$0xff] }
 0xcef   : > { %6825 = vrot.lane.b32.xlu0 %v9918_v51, %s15180_s16  ;;  %6823 = vrot.lane.b32.xlu1 %v9917_v34, %s15180_s16 }
 0xcf1   : > { %v7567_v53 = vpop.permute.xlu0 %7566  ;;  %v7316_v23 = vpop.permute.xlu1 %7315 }
 0xcf2   : > { %7651 = vst.msk [vmem:[#allocation3 + $0x30] sm:$0xf] %vm7638_vm5, %v7567_v53  ;;  %v9986_v53 = vpack.c.bf16 %v7188_v2, %v7188_v2  ;;  %v8690_v2 = vld [vmem:[%s15185_s7 + $0x10] sm:$0xff] }
 0xcf3   : > { %7397 = vst.msk [vmem:[#allocation3 + $0x3c] sm:$0xf] %vm7381_vm3, %v7316_v23  ;;  %7078 = vrot.lane.b32.xlu0 %v10042_v22, %s15181_s19  ;;  %7076 = vrot.lane.b32.xlu1 %v10041_v37, %s15181_s19  ;;  %v6674_v22 = vld [vmem:[#allocation2 + $0x20f] sm:$0xff]  ;;  %v6673_v37 = vld [vmem:[#allocation2 + $0x207] sm:$0xff]  ;;  %v9985_v23 = vpack.c.bf16 %v7187_v16, %v7187_v16 }
 0xcf4   : > { %v9922_v60 = vpack.c.bf16 %v6674_v22, %v6674_v22  ;;  %v9921_v57 = vpack.c.bf16 %v6673_v37, %v6673_v37 }
 0xcf5   : > { %v7571_v44 = vpop.permute.xlu0 %7570  ;;  %v7569_v50 = vpop.permute.xlu1 %7568 }
 0xcf6   : > { %7653 = vst.msk [vmem:[#allocation3 + $0x38] sm:$0xf] %vm7638_vm5, %v7571_v44  ;;  %7652 = vst.msk [vmem:[#allocation3 + $0x34] sm:$0xf] %vm7638_vm5, %v7569_v50 }
 0xcf7   : > { %7082 = vrot.lane.b32.xlu0 %v9950_v56, %s15181_s19  ;;  %7080 = vrot.lane.b32.xlu1 %v9949_v9, %s15181_s19 }
 0xcf9   : > { %v7824_v15 = vpop.permute.xlu0 %7823  ;;  %v7573_v62 = vpop.permute.xlu1 %7572 }
 0xcfa   : > { %7908 = vst.msk [vmem:[#allocation3 + $0x30] sm:$0xf] %vm7895_vm6, %v7824_v15 }
 0xcfb   : > { %7654 = vst.msk [vmem:[#allocation3 + $0x3c] sm:$0xf] %vm7638_vm5, %v7573_v62  ;;  %7335 = vrot.lane.b32.xlu0 %v10074_v36, %s10525_s4  ;;  %7333 = vrot.lane.b32.xlu1 %v10073_v24, %s10525_s4  ;;  %v6931_v36 = vld [vmem:[#allocation2 + $0x210] sm:$0xff]  ;;  %v6930_v24 = vld [vmem:[#allocation2 + $0x208] sm:$0xff] }
 0xcfc   : > { %v9954_v38 = vpack.c.bf16 %v6931_v36, %v6931_v36  ;;  %v9953_v54 = vpack.c.bf16 %v6930_v24, %v6930_v24 }
 0xcfd   : > { %v7828_v48 = vpop.permute.xlu0 %7827  ;;  %v7826_v47 = vpop.permute.xlu1 %7825 }
 0xcfe   : > { %7910 = vst.msk [vmem:[#allocation3 + $0x38] sm:$0xf] %vm7895_vm6, %v7828_v48  ;;  %7909 = vst.msk [vmem:[#allocation3 + $0x34] sm:$0xf] %vm7895_vm6, %v7826_v47  ;;  %v7701_v48 = vld [vmem:[#allocation2 + $0x228] sm:$0xff] }
 0xcff   : > { %7339 = vrot.lane.b32.xlu0 %v9982_v19, %s10525_s4  ;;  %7337 = vrot.lane.b32.xlu1 %v9981_v14, %s10525_s4 }
 0xd01   : > { %v8081_v41 = vpop.permute.xlu0 %8080  ;;  %v7830_v52 = vpop.permute.xlu1 %7829 }
 0xd02   : > { %8165 = vst.msk [vmem:[#allocation3 + $0x30] sm:$0xf] %vm8152_vm7, %v8081_v41  ;;  %v10050_v41 = vpack.c.bf16 %v7702_v3, %v7702_v3 }
 0xd03   : > { %7911 = vst.msk [vmem:[#allocation3 + $0x3c] sm:$0xf] %vm7895_vm6, %v7830_v52  ;;  %7592 = vrot.lane.b32.xlu0 %v9918_v51, %s10526_s21  ;;  %7590 = vrot.lane.b32.xlu1 %v9917_v34, %s10526_s21  ;;  %v10049_v52 = vpack.c.bf16 %v7701_v48, %v7701_v48  ;;  %v8689_v48 = vld [vmem:[%s15185_s7 + $0x8] sm:$0xff] }
 0xd05   : > { %v8085_v6 = vpop.permute.xlu0 %8084  ;;  %v8083_v18 = vpop.permute.xlu1 %8082 }
 0xd06   : > { %8167 = vst.msk [vmem:[#allocation3 + $0x38] sm:$0xf] %vm8152_vm7, %v8085_v6  ;;  %8166 = vst.msk [vmem:[#allocation3 + $0x34] sm:$0xf] %vm8152_vm7, %v8083_v18  ;;  %v7959_v6 = vld [vmem:[#allocation2 + $0x231] sm:$0xff]  ;;  %v7958_v18 = vld [vmem:[#allocation2 + $0x229] sm:$0xff] }
 0xd07   : > { %7596 = vrot.lane.b32.xlu0 %v10014_v61, %s10526_s21  ;;  %7594 = vrot.lane.b32.xlu1 %v10013_v26, %s10526_s21 }
 0xd09   : > { %v7061_v49 = vpop.permute.xlu0 %7060  ;;  %v8087_v21 = vpop.permute.xlu1 %8086 }
 0xd0a   : > { %7141 = vst.msk [vmem:[#allocation3 + $0x40] sm:$0xf] %vm7124_vm4, %v7061_v49  ;;  %v10082_v49 = vpack.c.bf16 %v7959_v6, %v7959_v6 }
 0xd0b   : > { %8168 = vst.msk [vmem:[#allocation3 + $0x3c] sm:$0xf] %vm8152_vm7, %v8087_v21  ;;  %7849 = vrot.lane.b32.xlu0 %v9950_v56, %s10527_s10  ;;  %7847 = vrot.lane.b32.xlu1 %v9949_v9, %s10527_s10  ;;  %v10018_v56 = vpack.c.bf16 %v7445_v35, %v7445_v35  ;;  %v10017_v9 = vpack.c.bf16 %v7444_v33, %v7444_v33  ;;  %v8688_v33 = vld [vmem:[%s15185_s7] sm:$0xff] }
 0xd0c   : > { %v10081_v21 = vpack.c.bf16 %v7958_v18, %v7958_v18 }
 0xd0d   : > { %v7065_v31 = vpop.permute.xlu0 %7064  ;;  %v7063_v10 = vpop.permute.xlu1 %7062  ;;  %v10472_v8 = vld [vmem:[#allocation3 + $0x30] sm:$0xff]  }
 0xd0e   : > { %7143 = vst.msk [vmem:[#allocation3 + $0x48] sm:$0xf] %vm7124_vm4, %v7065_v31  ;;  %7142 = vst.msk [vmem:[#allocation3 + $0x44] sm:$0xf] %vm7124_vm4, %v7063_v10  ;;  %10197 = vmatprep.mubr.msk.bf16.mxu1 %vm8333_vm8, %v10472_v8 }
 0xd0f   : > { %7853 = vrot.lane.b32.xlu0 %v10046_v27, %s10527_s10  ;;  %7851 = vrot.lane.b32.xlu1 %v10045_v40, %s10527_s10 }
 0xd11   : > { %v7318_v7 = vpop.permute.xlu0 %7317  ;;  %v7067_v28 = vpop.permute.xlu1 %7066 }
 0xd12   : > { %v10473_v43 = vld [vmem:[#allocation3 + $0x38] sm:$0xff]   ;;  %7398 = vst.msk [vmem:[#allocation3 + $0x40] sm:$0xf] %vm7381_vm3, %v7318_v7 }
 0xd13   : > { %7144 = vst.msk [vmem:[#allocation3 + $0x4c] sm:$0xf] %vm7124_vm4, %v7067_v28  ;;  %8106 = vrot.lane.b32.xlu0 %v9982_v19, %s10528_s15  ;;  %8104 = vrot.lane.b32.xlu1 %v9981_v14, %s10528_s15 }
 0xd14   : > { %10198 = vmatmul.mubr.msk.bf16.gmra.mxu1 %vm8333_vm8, %v10473_v43 }
 0xd15   : > { %v7322_v55 = vpop.permute.xlu0 %7321  ;;  %v7320_v30 = vpop.permute.xlu1 %7319 }
 0xd16   : > { %7400 = vst.msk [vmem:[#allocation3 + $0x48] sm:$0xf] %vm7381_vm3, %v7322_v55  ;;  %7399 = vst.msk [vmem:[#allocation3 + $0x44] sm:$0xf] %vm7381_vm3, %v7320_v30  ;;  %v14628_v55 = vld [vmem:[%s15183_s11] ss:$0 sm:$0xff] }
 0xd17   : > { %8110 = vrot.lane.b32.xlu0 %v10078_v12, %s10528_s15  ;;  %8108 = vrot.lane.b32.xlu1 %v10077_v4, %s10528_s15 }
 0xd19   : > { %v7575_v11 = vpop.permute.xlu0 %7574  ;;  %v7324_v32 = vpop.permute.xlu1 %7323 }
 0xd1a   : > { %7655 = vst.msk [vmem:[#allocation3 + $0x40] sm:$0xf] %vm7638_vm5, %v7575_v11 }
 0xd1b   : > { %7401 = vst.msk [vmem:[#allocation3 + $0x4c] sm:$0xf] %vm7381_vm3, %v7324_v32  ;;  %6829 = vrot.lane.b32.xlu0 %v10014_v61, %s15180_s16  ;;  %6827 = vrot.lane.b32.xlu1 %v10013_v26, %s15180_s16 }
 0xd1d   : > { %v7579_v58 = vpop.permute.xlu0 %7578  ;;  %v7577_v63 = vpop.permute.xlu1 %7576 }
 0xd1e   : > { %7657 = vst.msk [vmem:[#allocation3 + $0x48] sm:$0xf] %vm7638_vm5, %v7579_v58  ;;  %7656 = vst.msk [vmem:[#allocation3 + $0x44] sm:$0xf] %vm7638_vm5, %v7577_v63 }
 0xd1f   : > { %6833 = vrot.lane.b32.xlu0 %v9922_v60, %s15180_s16  ;;  %6831 = vrot.lane.b32.xlu1 %v9921_v57, %s15180_s16 }
 0xd21   : > { %v7832_v39 = vpop.permute.xlu0 %7831  ;;  %v7581_v13 = vpop.permute.xlu1 %7580 }
 0xd22   : > { %7912 = vst.msk [vmem:[#allocation3 + $0x40] sm:$0xf] %vm7895_vm6, %v7832_v39 }
 0xd23   : > { %7658 = vst.msk [vmem:[#allocation3 + $0x4c] sm:$0xf] %vm7638_vm5, %v7581_v13  ;;  %7086 = vrot.lane.b32.xlu0 %v10046_v27, %s15181_s19  ;;  %7084 = vrot.lane.b32.xlu1 %v10045_v40, %s15181_s19 }
 0xd25   : > { %v7836_v42 = vpop.permute.xlu0 %7835  ;;  %v7834_v17 = vpop.permute.xlu1 %7833 }
 0xd26   : > { %7914 = vst.msk [vmem:[#allocation3 + $0x48] sm:$0xf] %vm7895_vm6, %v7836_v42  ;;  %7913 = vst.msk [vmem:[#allocation3 + $0x44] sm:$0xf] %vm7895_vm6, %v7834_v17 }
 0xd27   : > { %7090 = vrot.lane.b32.xlu0 %v9954_v38, %s15181_s19  ;;  %7088 = vrot.lane.b32.xlu1 %v9953_v54, %s15181_s19 }
 0xd29   : > { %v8089_v46 = vpop.permute.xlu0 %8088  ;;  %v7838_v59 = vpop.permute.xlu1 %7837 }
 0xd2a   : > { %8169 = vst.msk [vmem:[#allocation3 + $0x40] sm:$0xf] %vm8152_vm7, %v8089_v46 }
 0xd2b   : > { %7915 = vst.msk [vmem:[#allocation3 + $0x4c] sm:$0xf] %vm7895_vm6, %v7838_v59  ;;  %7343 = vrot.lane.b32.xlu0 %v10078_v12, %s10525_s4  ;;  %7341 = vrot.lane.b32.xlu1 %v10077_v4, %s10525_s4  ;;  %v14633_v12 = vld [vmem:[%s15184_s2] ss:$0 sm:$0xff] }
 0xd2d   : > { %v8093_v51 = vpop.permute.xlu0 %8092  ;;  %v8091_v34 = vpop.permute.xlu1 %8090 }
 0xd2e   : > { %8171 = vst.msk [vmem:[#allocation3 + $0x48] sm:$0xf] %vm8152_vm7, %v8093_v51  ;;  %8170 = vst.msk [vmem:[#allocation3 + $0x44] sm:$0xf] %vm8152_vm7, %v8091_v34 }
 0xd2f   : > { %7347 = vrot.lane.b32.xlu0 %v9986_v53, %s10525_s4  ;;  %7345 = vrot.lane.b32.xlu1 %v9985_v23, %s10525_s4 }
 0xd31   : > { %v6818_v44 = vpop.permute.xlu0 %6817  ;;  %v8095_v50 = vpop.permute.xlu1 %8094 }
 0xd32   : > { %6891 = vst.msk [vmem:[#allocation3 + $0x5c] sm:$0xf] %vm6867_vm14, %v6818_v44 }
 0xd33   : > { %8172 = vst.msk [vmem:[#allocation3 + $0x4c] sm:$0xf] %vm8152_vm7, %v8095_v50  ;;  %7600 = vrot.lane.b32.xlu0 %v9922_v60, %s10526_s21  ;;  %7598 = vrot.lane.b32.xlu1 %v9921_v57, %s10526_s21 }
 0xd35   : > { %v7071_v15 = vpop.permute.xlu0 %7070  ;;  %v7069_v62 = vpop.permute.xlu1 %7068  ;;  %v10474_v0 = vld [vmem:[#allocation3 + $0x40] sm:$0xff]  }
 0xd36   : > { %7146 = vst.msk [vmem:[#allocation3 + $0x54] sm:$0xf] %vm7124_vm4, %v7071_v15  ;;  %7145 = vst.msk [vmem:[#allocation3 + $0x50] sm:$0xf] %vm7124_vm4, %v7069_v62  ;;  %10201 = vmatprep.mubr.msk.bf16.mxu1 %vm8333_vm8, %v10474_v0 }
 0xd37   : > { %7604 = vrot.lane.b32.xlu0 %v10018_v56, %s10526_s21  ;;  %7602 = vrot.lane.b32.xlu1 %v10017_v9, %s10526_s21  ;;  %v8691_v9 = vld [vmem:[%s15185_s7 + $0x18] sm:$0xff] }
 0xd39   : > { %v7075_v47 = vpop.permute.xlu0 %7074  ;;  %v7073_v19 = vpop.permute.xlu1 %7072 }
 0xd3a   : > { %v10475_v14 = vld [vmem:[#allocation3 + $0x48] sm:$0xff]   ;;  %7148 = vst.msk [vmem:[#allocation3 + $0x5c] sm:$0xf] %vm7124_vm4, %v7075_v47  ;;  %7147 = vst.msk [vmem:[#allocation3 + $0x58] sm:$0xf] %vm7124_vm4, %v7073_v19 }
 0xd3b   : > { %7857 = vrot.lane.b32.xlu0 %v9954_v38, %s10527_s10  ;;  %7855 = vrot.lane.b32.xlu1 %v9953_v54, %s10527_s10 }
 0xd3c   : > { %10202 = vmatmul.mubr.msk.bf16.gmra.mxu1 %vm8333_vm8, %v10475_v14 }
 0xd3d   : > { %v7328_v25 = vpop.permute.xlu0 %7327  ;;  %v7326_v29 = vpop.permute.xlu1 %7325 }
 0xd3e   : > { %7403 = vst.msk [vmem:[#allocation3 + $0x54] sm:$0xf] %vm7381_vm3, %v7328_v25  ;;  %7402 = vst.msk [vmem:[#allocation3 + $0x50] sm:$0xf] %vm7381_vm3, %v7326_v29 }
 0xd3f   : > { %7861 = vrot.lane.b32.xlu0 %v10050_v41, %s10527_s10  ;;  %7859 = vrot.lane.b32.xlu1 %v10049_v52, %s10527_s10 }
 0xd41   : > { %v7332_v61 = vpop.permute.xlu0 %7331  ;;  %v7330_v26 = vpop.permute.xlu1 %7329 }
 0xd42   : > { %7405 = vst.msk [vmem:[#allocation3 + $0x5c] sm:$0xf] %vm7381_vm3, %v7332_v61  ;;  %7404 = vst.msk [vmem:[#allocation3 + $0x58] sm:$0xf] %vm7381_vm3, %v7330_v26 }
 0xd43   : > { %8114 = vrot.lane.b32.xlu0 %v9986_v53, %s10528_s15  ;;  %8112 = vrot.lane.b32.xlu1 %v9985_v23, %s10528_s15 }
 0xd45   : > { %v7585_v5 = vpop.permute.xlu0 %7584  ;;  %v7583_v20 = vpop.permute.xlu1 %7582 }
 0xd46   : > { %7660 = vst.msk [vmem:[#allocation3 + $0x54] sm:$0xf] %vm7638_vm5, %v7585_v5  ;;  %7659 = vst.msk [vmem:[#allocation3 + $0x50] sm:$0xf] %vm7638_vm5, %v7583_v20 }
 0xd47   : > { %8118 = vrot.lane.b32.xlu0 %v10082_v49, %s10528_s15  ;;  %8116 = vrot.lane.b32.xlu1 %v10081_v21, %s10528_s15 }
 0xd49   : > { %v7589_v31 = vpop.permute.xlu0 %7588  ;;  %v7587_v10 = vpop.permute.xlu1 %7586 }
 0xd4a   : > { %7662 = vst.msk [vmem:[#allocation3 + $0x5c] sm:$0xf] %vm7638_vm5, %v7589_v31  ;;  %7661 = vst.msk [vmem:[#allocation3 + $0x58] sm:$0xf] %vm7638_vm5, %v7587_v10 }
 0xd4d   : > { %v7842_v27 = vpop.permute.xlu0 %7841  ;;  %v7840_v40 = vpop.permute.xlu1 %7839 }
 0xd4e   : > { %7917 = vst.msk [vmem:[#allocation3 + $0x54] sm:$0xf] %vm7895_vm6, %v7842_v27  ;;  %7916 = vst.msk [vmem:[#allocation3 + $0x50] sm:$0xf] %vm7895_vm6, %v7840_v40 }
 0xd51   : > { %v7846_v8 = vpop.permute.xlu0 %7845  ;;  %v7844_v7 = vpop.permute.xlu1 %7843 }
 0xd52   : > { %7919 = vst.msk [vmem:[#allocation3 + $0x5c] sm:$0xf] %vm7895_vm6, %v7846_v8  ;;  %7918 = vst.msk [vmem:[#allocation3 + $0x58] sm:$0xf] %vm7895_vm6, %v7844_v7 }
 0xd55   : > { %v8099_v28 = vpop.permute.xlu0 %8098  ;;  %v8097_v43 = vpop.permute.xlu1 %8096 }
 0xd56   : > { %8174 = vst.msk [vmem:[#allocation3 + $0x54] sm:$0xf] %vm8152_vm7, %v8099_v28  ;;  %8173 = vst.msk [vmem:[#allocation3 + $0x50] sm:$0xf] %vm8152_vm7, %v8097_v43 }
 0xd59   : > { %v8103_v1 = vpop.permute.xlu0 %8102  ;;  %v8101_v45 = vpop.permute.xlu1 %8100 }
 0xd5a   : > { %8176 = vst.msk [vmem:[#allocation3 + $0x5c] sm:$0xf] %vm8152_vm7, %v8103_v1  ;;  %8175 = vst.msk [vmem:[#allocation3 + $0x58] sm:$0xf] %vm8152_vm7, %v8101_v45 }
 0xd5c   : > { %v10187_v30 = vpop.f32.mrf.mxu1 }
 0xd5d   : > { %v8555_v4 = vmul.f32 %v10187_v30, %v14628_v55  ;;  %v6822_v11 = vpop.permute.xlu0 %6821  ;;  %v6820_v32 = vpop.permute.xlu1 %6819  ;;  %v10476_v22 = vld [vmem:[#allocation3 + $0x50] sm:$0xff]  }
 0xd5e   : > { %6893 = vst.msk [vmem:[#allocation3 + $0x64] sm:$0xf] %vm6867_vm14, %v6822_v11  ;;  %6892 = vst.msk [vmem:[#allocation3 + $0x60] sm:$0xf] %vm6867_vm14, %v6820_v32  ;;  %v8419_v37 = vpop.f32.mrf.mxu1  ;;  %10205 = vmatprep.mubr.msk.bf16.mxu1 %vm8333_vm8, %v10476_v22 }
 0xd5f   : > { %v8594_v58 = vadd.f32 %v14633_v12, %v8555_v4  ;;  %v8553_v63 = vmul.f32 %v14628_v55, %v8419_v37 }
 0xd60   : > { %v10188_v60 = vpop.f32.mrf.mxu1 }
 0xd61   : > { %v8626_v57 = vmul.f32 0.01, %v8594_v58  ;;  %v8592_v39 = vadd.f32 %v14633_v12, %v8553_v63  ;;  %v8556_v13 = vmul.f32 %v10188_v60, %v14628_v55  ;;  %v6826_v36 = vpop.permute.xlu0 %6825  ;;  %v6824_v24 = vpop.permute.xlu1 %6823  ;;  %v10477_v17 = vld [vmem:[#allocation3 + $0x58] sm:$0xff]  }
 0xd62   : > { %6895 = vst.msk [vmem:[#allocation3 + $0x6c] sm:$0xf] %vm6867_vm14, %v6826_v36  ;;  %6894 = vst.msk [vmem:[#allocation3 + $0x68] sm:$0xf] %vm6867_vm14, %v6824_v24  ;;  %v8422_v42 = vpop.f32.mrf.mxu1  ;;  %10206 = vmatmul.mubr.msk.bf16.gmra.mxu1 %vm8333_vm8, %v10477_v17  ;;  %v8692_v24 = vld [vmem:[%s15185_s7 + $0x20] sm:$0xff] }
 0xd63   : > { %v8658_v38 = vmax.f32 %v8594_v58, %v8626_v57  ;;  %v8624_v54 = vmul.f32 0.01, %v8592_v39  ;;  %v8595_v46 = vadd.f32 %v14633_v12, %v8556_v13  ;;  %v8554_v59 = vmul.f32 %v14628_v55, %v8422_v42  ;;  %v8694_v58 = vld [vmem:[%s15185_s7 + $0x30] sm:$0xff] }
 0xd65   : > { %v8722_v16 = vadd.f32 %v8690_v2, %v8658_v38  ;;  %v8656_v51 = vmax.f32 %v8592_v39, %v8624_v54  ;;  %v8627_v34 = vmul.f32 0.01, %v8595_v46  ;;  %v8593_v53 = vadd.f32 %v14633_v12, %v8554_v59  ;;  %v7079_v23 = vpop.permute.xlu0 %7078  ;;  %v7077_v35 = vpop.permute.xlu1 %7076 }
 0xd66   : > { %7150 = vst.msk [vmem:[#allocation3 + $0x64] sm:$0xf] %vm7124_vm4, %v7079_v23  ;;  %7149 = vst.msk [vmem:[#allocation3 + $0x60] sm:$0xf] %vm7124_vm4, %v7077_v35 }
 0xd67   : > { %8754 = vst.msk [vmem:[%s15185_s7 + $0x10] sm:$0xff] %vm361_vm0, %v8722_v16  ;;  %v8720_v44 = vadd.f32 %v8688_v33, %v8656_v51  ;;  %v8659_v50 = vmax.f32 %v8595_v46, %v8627_v34  ;;  %v8625_v56 = vmul.f32 0.01, %v8593_v53  ;;  %v8695_v46 = vld [vmem:[%s15185_s7 + $0x38] sm:$0xff] }
 0xd69   : > { %8752 = vst.msk [vmem:[%s15185_s7] sm:$0xff] %vm361_vm0, %v8720_v44  ;;  %v8723_v15 = vadd.f32 %v8691_v9, %v8659_v50  ;;  %v8657_v62 = vmax.f32 %v8593_v53, %v8625_v56  ;;  %v7083_v0 = vpop.permute.xlu0 %7082  ;;  %v7081_v3 = vpop.permute.xlu1 %7080  ;;  %v8693_v53 = vld [vmem:[%s15185_s7 + $0x28] sm:$0xff] }
 0xd6a   : > { %7152 = vst.msk [vmem:[#allocation3 + $0x6c] sm:$0xf] %vm7124_vm4, %v7083_v0  ;;  %7151 = vst.msk [vmem:[#allocation3 + $0x68] sm:$0xf] %vm7124_vm4, %v7081_v3 }
 0xd6b   : > { %8755 = vst.msk [vmem:[%s15185_s7 + $0x18] sm:$0xff] %vm361_vm0, %v8723_v15  ;;  %v8721_v47 = vadd.f32 %v8689_v48, %v8657_v62 }
 0xd6d   : > { %8753 = vst.msk [vmem:[%s15185_s7 + $0x8] sm:$0xff] %vm361_vm0, %v8721_v47  ;;  %v7336_v19 = vpop.permute.xlu0 %7335  ;;  %v7334_v14 = vpop.permute.xlu1 %7333 }
 0xd6e   : > { %7407 = vst.msk [vmem:[#allocation3 + $0x64] sm:$0xf] %vm7381_vm3, %v7336_v19  ;;  %7406 = vst.msk [vmem:[#allocation3 + $0x60] sm:$0xf] %vm7381_vm3, %v7334_v14 }
 0xd71   : > { %v7340_v41 = vpop.permute.xlu0 %7339  ;;  %v7338_v52 = vpop.permute.xlu1 %7337 }
 0xd72   : > { %7409 = vst.msk [vmem:[#allocation3 + $0x6c] sm:$0xf] %vm7381_vm3, %v7340_v41  ;;  %7408 = vst.msk [vmem:[#allocation3 + $0x68] sm:$0xf] %vm7381_vm3, %v7338_v52 }
 0xd75   : > { %v7593_v25 = vpop.permute.xlu0 %7592  ;;  %v7591_v29 = vpop.permute.xlu1 %7590 }
 0xd76   : > { %7664 = vst.msk [vmem:[#allocation3 + $0x64] sm:$0xf] %vm7638_vm5, %v7593_v25  ;;  %7663 = vst.msk [vmem:[#allocation3 + $0x60] sm:$0xf] %vm7638_vm5, %v7591_v29 }
 0xd79   : > { %v7597_v6 = vpop.permute.xlu0 %7596  ;;  %v7595_v18 = vpop.permute.xlu1 %7594 }
 0xd7a   : > { %7666 = vst.msk [vmem:[#allocation3 + $0x6c] sm:$0xf] %vm7638_vm5, %v7597_v6  ;;  %7665 = vst.msk [vmem:[#allocation3 + $0x68] sm:$0xf] %vm7638_vm5, %v7595_v18 }
 0xd7d   : > { %v7850_v61 = vpop.permute.xlu0 %7849  ;;  %v7848_v26 = vpop.permute.xlu1 %7847 }
 0xd7e   : > { %7921 = vst.msk [vmem:[#allocation3 + $0x64] sm:$0xf] %vm7895_vm6, %v7850_v61  ;;  %7920 = vst.msk [vmem:[#allocation3 + $0x60] sm:$0xf] %vm7895_vm6, %v7848_v26 }
 0xd81   : > { %v7854_v49 = vpop.permute.xlu0 %7853  ;;  %v7852_v21 = vpop.permute.xlu1 %7851 }
 0xd82   : > { %7923 = vst.msk [vmem:[#allocation3 + $0x6c] sm:$0xf] %vm7895_vm6, %v7854_v49  ;;  %7922 = vst.msk [vmem:[#allocation3 + $0x68] sm:$0xf] %vm7895_vm6, %v7852_v21 }
 0xd84   : > { %v10191_v5 = vpop.f32.mrf.mxu1 }
 0xd85   : > { %v8559_v20 = vmul.f32 %v10191_v5, %v14628_v55  ;;  %v8107_v31 = vpop.permute.xlu0 %8106  ;;  %v8105_v10 = vpop.permute.xlu1 %8104 }
 0xd86   : > { %8178 = vst.msk [vmem:[#allocation3 + $0x64] sm:$0xf] %vm8152_vm7, %v8107_v31  ;;  %8177 = vst.msk [vmem:[#allocation3 + $0x60] sm:$0xf] %vm8152_vm7, %v8105_v10  ;;  %v8435_v27 = vpop.f32.mrf.mxu1 }
 0xd87   : > { %v8598_v40 = vadd.f32 %v14633_v12, %v8559_v20  ;;  %v8557_v8 = vmul.f32 %v14628_v55, %v8435_v27 }
 0xd88   : > { %v10192_v7 = vpop.f32.mrf.mxu1 }
 0xd89   : > { %v8630_v28 = vmul.f32 0.01, %v8598_v40  ;;  %v8596_v43 = vadd.f32 %v14633_v12, %v8557_v8  ;;  %v8560_v1 = vmul.f32 %v10192_v7, %v14628_v55  ;;  %v8111_v45 = vpop.permute.xlu0 %8110  ;;  %v8109_v30 = vpop.permute.xlu1 %8108  ;;  %v8698_v8 = vld [vmem:[%s15185_s7 + $0x50] sm:$0xff] }
 0xd8a   : > { %8180 = vst.msk [vmem:[#allocation3 + $0x6c] sm:$0xf] %vm8152_vm7, %v8111_v45  ;;  %8179 = vst.msk [vmem:[#allocation3 + $0x68] sm:$0xf] %vm8152_vm7, %v8109_v30  ;;  %v8438_v4 = vpop.f32.mrf.mxu1 }
 0xd8b   : > { %v8662_v11 = vmax.f32 %v8598_v40, %v8630_v28  ;;  %v8628_v32 = vmul.f32 0.01, %v8596_v43  ;;  %v8599_v22 = vadd.f32 %v14633_v12, %v8560_v1  ;;  %v8558_v37 = vmul.f32 %v14628_v55, %v8438_v4  ;;  %v8696_v4 = vld [vmem:[%s15185_s7 + $0x40] sm:$0xff] }
 0xd8d   : > { %v8726_v63 = vadd.f32 %v8694_v58, %v8662_v11  ;;  %v8660_v60 = vmax.f32 %v8596_v43, %v8628_v32  ;;  %v8631_v57 = vmul.f32 0.01, %v8599_v22  ;;  %v8597_v39 = vadd.f32 %v14633_v12, %v8558_v37  ;;  %v6830_v13 = vpop.permute.xlu0 %6829  ;;  %v6828_v36 = vpop.permute.xlu1 %6827  ;;  %v10478_v42 = vld [vmem:[#allocation3 + $0x60] sm:$0xff]   ;;  %v8699_v37 = vld [vmem:[%s15185_s7 + $0x58] sm:$0xff] }
 0xd8e   : > { %6897 = vst.msk [vmem:[#allocation3 + $0x74] sm:$0xf] %vm6867_vm14, %v6830_v13  ;;  %6896 = vst.msk [vmem:[#allocation3 + $0x70] sm:$0xf] %vm6867_vm14, %v6828_v36  ;;  %10209 = vmatprep.mubr.msk.bf16.mxu1 %vm8333_vm8, %v10478_v42 }
 0xd8f   : > { %8758 = vst.msk [vmem:[%s15185_s7 + $0x30] sm:$0xff] %vm361_vm0, %v8726_v63  ;;  %v8724_v17 = vadd.f32 %v8692_v24, %v8660_v60  ;;  %v8663_v38 = vmax.f32 %v8599_v22, %v8631_v57  ;;  %v8629_v54 = vmul.f32 0.01, %v8597_v39 }
 0xd91   : > { %8756 = vst.msk [vmem:[%s15185_s7 + $0x20] sm:$0xff] %vm361_vm0, %v8724_v17  ;;  %v8727_v59 = vadd.f32 %v8695_v46, %v8663_v38  ;;  %v8661_v2 = vmax.f32 %v8597_v39, %v8629_v54  ;;  %v6834_v16 = vpop.permute.xlu0 %6833  ;;  %v6832_v51 = vpop.permute.xlu1 %6831  ;;  %v10479_v34 = vld [vmem:[#allocation3 + $0x68] sm:$0xff]  }
 0xd92   : > { %6899 = vst.msk [vmem:[#allocation3 + $0x7c] sm:$0xf] %vm6867_vm14, %v6834_v16  ;;  %6898 = vst.msk [vmem:[#allocation3 + $0x78] sm:$0xf] %vm6867_vm14, %v6832_v51  ;;  %10210 = vmatmul.mubr.msk.bf16.gmra.mxu1 %vm8333_vm8, %v10479_v34  ;;  %v8697_v39 = vld [vmem:[%s15185_s7 + $0x48] sm:$0xff] }
 0xd93   : > { %8759 = vst.msk [vmem:[%s15185_s7 + $0x38] sm:$0xff] %vm361_vm0, %v8727_v59  ;;  %v8725_v23 = vadd.f32 %v8693_v53, %v8661_v2 }
 0xd95   : > { %8757 = vst.msk [vmem:[%s15185_s7 + $0x28] sm:$0xff] %vm361_vm0, %v8725_v23  ;;  %v7087_v35 = vpop.permute.xlu0 %7086  ;;  %v7085_v33 = vpop.permute.xlu1 %7084 }
 0xd96   : > { %7154 = vst.msk [vmem:[#allocation3 + $0x74] sm:$0xf] %vm7124_vm4, %v7087_v35  ;;  %7153 = vst.msk [vmem:[#allocation3 + $0x70] sm:$0xf] %vm7124_vm4, %v7085_v33 }
 0xd99   : > { %v7091_v44 = vpop.permute.xlu0 %7090  ;;  %v7089_v50 = vpop.permute.xlu1 %7088 }
 0xd9a   : > { %7156 = vst.msk [vmem:[#allocation3 + $0x7c] sm:$0xf] %vm7124_vm4, %v7091_v44  ;;  %7155 = vst.msk [vmem:[#allocation3 + $0x78] sm:$0xf] %vm7124_vm4, %v7089_v50  ;;  %v8702_v44 = vld [vmem:[%s15185_s7 + $0x70] sm:$0xff] }
 0xd9d   : > { %v7344_v56 = vpop.permute.xlu0 %7343  ;;  %v7342_v9 = vpop.permute.xlu1 %7341 }
 0xd9e   : > { %7411 = vst.msk [vmem:[#allocation3 + $0x74] sm:$0xf] %vm7381_vm3, %v7344_v56  ;;  %7410 = vst.msk [vmem:[#allocation3 + $0x70] sm:$0xf] %vm7381_vm3, %v7342_v9 }
 0xda1   : > { %v7348_v15 = vpop.permute.xlu0 %7347  ;;  %v7346_v62 = vpop.permute.xlu1 %7345 }
 0xda2   : > { %7413 = vst.msk [vmem:[#allocation3 + $0x7c] sm:$0xf] %vm7381_vm3, %v7348_v15  ;;  %7412 = vst.msk [vmem:[#allocation3 + $0x78] sm:$0xf] %vm7381_vm3, %v7346_v62  ;;  %v8700_v62 = vld [vmem:[%s15185_s7 + $0x60] sm:$0xff] }
 0xda5   : > { %v7601_v0 = vpop.permute.xlu0 %7600  ;;  %v7599_v3 = vpop.permute.xlu1 %7598 }
 0xda6   : > { %7668 = vst.msk [vmem:[#allocation3 + $0x74] sm:$0xf] %vm7638_vm5, %v7601_v0  ;;  %7667 = vst.msk [vmem:[#allocation3 + $0x70] sm:$0xf] %vm7638_vm5, %v7599_v3 }
 0xda9   : > { %v7605_v48 = vpop.permute.xlu0 %7604  ;;  %v7603_v47 = vpop.permute.xlu1 %7602 }
 0xdaa   : > { %7670 = vst.msk [vmem:[#allocation3 + $0x7c] sm:$0xf] %vm7638_vm5, %v7605_v48  ;;  %7669 = vst.msk [vmem:[#allocation3 + $0x78] sm:$0xf] %vm7638_vm5, %v7603_v47  ;;  %v8703_v47 = vld [vmem:[%s15185_s7 + $0x78] sm:$0xff] }
 0xdac   : > { %v10195_v19 = vpop.f32.mrf.mxu1 }
 0xdad   : > { %v8563_v14 = vmul.f32 %v10195_v19, %v14628_v55  ;;  %v7858_v41 = vpop.permute.xlu0 %7857  ;;  %v7856_v52 = vpop.permute.xlu1 %7855 }
 0xdae   : > { %7925 = vst.msk [vmem:[#allocation3 + $0x74] sm:$0xf] %vm7895_vm6, %v7858_v41  ;;  %7924 = vst.msk [vmem:[#allocation3 + $0x70] sm:$0xf] %vm7895_vm6, %v7856_v52  ;;  %v8451_v25 = vpop.f32.mrf.mxu1  ;;  %v8701_v41 = vld [vmem:[%s15185_s7 + $0x68] sm:$0xff] }
 0xdaf   : > { %v8602_v29 = vadd.f32 %v14633_v12, %v8563_v14  ;;  %v8561_v6 = vmul.f32 %v14628_v55, %v8451_v25 }
 0xdb0   : > { %v10196_v18 = vpop.f32.mrf.mxu1 }
 0xdb1   : > { %v8634_v61 = vmul.f32 0.01, %v8602_v29  ;;  %v8600_v26 = vadd.f32 %v14633_v12, %v8561_v6  ;;  %v8564_v49 = vmul.f32 %v10196_v18, %v14628_v55  ;;  %v7862_v21 = vpop.permute.xlu0 %7861  ;;  %v7860_v5 = vpop.permute.xlu1 %7859 }
 0xdb2   : > { %7927 = vst.msk [vmem:[#allocation3 + $0x7c] sm:$0xf] %vm7895_vm6, %v7862_v21  ;;  %7926 = vst.msk [vmem:[#allocation3 + $0x78] sm:$0xf] %vm7895_vm6, %v7860_v5  ;;  %v8454_v20 = vpop.f32.mrf.mxu1 }
 0xdb3   : > { %v8666_v31 = vmax.f32 %v8602_v29, %v8634_v61  ;;  %v8632_v10 = vmul.f32 0.01, %v8600_v26  ;;  %v8603_v27 = vadd.f32 %v14633_v12, %v8564_v49  ;;  %v8562_v40 = vmul.f32 %v14628_v55, %v8454_v20 }
 0xdb5   : > { %v8730_v7 = vadd.f32 %v8698_v8, %v8666_v31  ;;  %v8664_v28 = vmax.f32 %v8600_v26, %v8632_v10  ;;  %v8635_v43 = vmul.f32 0.01, %v8603_v27  ;;  %v8601_v1 = vadd.f32 %v14633_v12, %v8562_v40  ;;  %v8115_v45 = vpop.permute.xlu0 %8114  ;;  %v8113_v30 = vpop.permute.xlu1 %8112  ;;  %v8706_v8 = vld [vmem:[%s15185_s7 + $0x90] sm:$0xff] }
 0xdb6   : > { %8182 = vst.msk [vmem:[#allocation3 + $0x74] sm:$0xf] %vm8152_vm7, %v8115_v45  ;;  %8181 = vst.msk [vmem:[#allocation3 + $0x70] sm:$0xf] %vm8152_vm7, %v8113_v30  ;;  %v8704_v45 = vld [vmem:[%s15185_s7 + $0x80] sm:$0xff] }
 0xdb7   : > { %8762 = vst.msk [vmem:[%s15185_s7 + $0x50] sm:$0xff] %vm361_vm0, %v8730_v7  ;;  %v8728_v11 = vadd.f32 %v8696_v4, %v8664_v28  ;;  %v8667_v32 = vmax.f32 %v8603_v27, %v8635_v43  ;;  %v8633_v22 = vmul.f32 0.01, %v8601_v1 }
 0xdb9   : > { %8760 = vst.msk [vmem:[%s15185_s7 + $0x40] sm:$0xff] %vm361_vm0, %v8728_v11  ;;  %v8731_v58 = vadd.f32 %v8699_v37, %v8667_v32  ;;  %v8665_v63 = vmax.f32 %v8601_v1, %v8633_v22  ;;  %v8119_v60 = vpop.permute.xlu0 %8118  ;;  %v8117_v57 = vpop.permute.xlu1 %8116  ;;  %v8707_v32 = vld [vmem:[%s15185_s7 + $0x98] sm:$0xff] }
 0xdba   : > { %8184 = vst.msk [vmem:[#allocation3 + $0x7c] sm:$0xf] %vm8152_vm7, %v8119_v60  ;;  %8183 = vst.msk [vmem:[#allocation3 + $0x78] sm:$0xf] %vm8152_vm7, %v8117_v57 }
 0xdbb   : > { %8763 = vst.msk [vmem:[%s15185_s7 + $0x58] sm:$0xff] %vm361_vm0, %v8731_v58  ;;  %v8729_v13 = vadd.f32 %v8697_v39, %v8665_v63  ;;  %v8705_v58 = vld [vmem:[%s15185_s7 + $0x88] sm:$0xff] }
 0xdbd   : > { %8761 = vst.msk [vmem:[%s15185_s7 + $0x48] sm:$0xff] %vm361_vm0, %v8729_v13  ;;  %v10480_v36 = vld [vmem:[#allocation3 + $0x70] sm:$0xff]  }
 0xdbe   : > { %10213 = vmatprep.mubr.msk.bf16.mxu1 %vm8333_vm8, %v10480_v36 }
 0xdc1   : > { %v10481_v24 = vld [vmem:[#allocation3 + $0x78] sm:$0xff]  }
 0xdc2   : > { %10214 = vmatmul.mubr.msk.bf16.gmra.mxu1 %vm8333_vm8, %v10481_v24 }
 0xdd4   : > { %v10199_v42 = vpop.f32.mrf.mxu1 }
 0xdd5   : > { %v8567_v17 = vmul.f32 %v10199_v42, %v14628_v55 }
 0xdd6   : > { %v8467_v38 = vpop.f32.mrf.mxu1 }
 0xdd7   : > { %v8606_v54 = vadd.f32 %v14633_v12, %v8567_v17  ;;  %v8565_v46 = vmul.f32 %v14628_v55, %v8467_v38 }
 0xdd8   : > { %v10200_v59 = vpop.f32.mrf.mxu1 }
 0xdd9   : > { %v8638_v2 = vmul.f32 0.01, %v8606_v54  ;;  %v8604_v16 = vadd.f32 %v14633_v12, %v8565_v46  ;;  %v8568_v51 = vmul.f32 %v10200_v59, %v14628_v55 }
 0xdda   : > { %v8470_v34 = vpop.f32.mrf.mxu1 }
 0xddb   : > { %v8670_v53 = vmax.f32 %v8606_v54, %v8638_v2  ;;  %v8636_v23 = vmul.f32 0.01, %v8604_v16  ;;  %v8607_v35 = vadd.f32 %v14633_v12, %v8568_v51  ;;  %v8566_v33 = vmul.f32 %v14628_v55, %v8470_v34  ;;  %v8710_v51 = vld [vmem:[%s15185_s7 + $0xb0] sm:$0xff] }
 0xddd   : > { %v8734_v50 = vadd.f32 %v8702_v44, %v8670_v53  ;;  %v8668_v56 = vmax.f32 %v8604_v16, %v8636_v23  ;;  %v8639_v9 = vmul.f32 0.01, %v8607_v35  ;;  %v8605_v15 = vadd.f32 %v14633_v12, %v8566_v33  ;;  %v8708_v33 = vld [vmem:[%s15185_s7 + $0xa0] sm:$0xff] }
 0xddf   : > { %8766 = vst.msk [vmem:[%s15185_s7 + $0x70] sm:$0xff] %vm361_vm0, %v8734_v50  ;;  %v8732_v0 = vadd.f32 %v8700_v62, %v8668_v56  ;;  %v8671_v3 = vmax.f32 %v8607_v35, %v8639_v9  ;;  %v8637_v48 = vmul.f32 0.01, %v8605_v15  ;;  %v8711_v9 = vld [vmem:[%s15185_s7 + $0xb8] sm:$0xff] }
 0xde1   : > { %8764 = vst.msk [vmem:[%s15185_s7 + $0x60] sm:$0xff] %vm361_vm0, %v8732_v0  ;;  %v8735_v19 = vadd.f32 %v8703_v47, %v8671_v3  ;;  %v8669_v14 = vmax.f32 %v8605_v15, %v8637_v48  ;;  %v8709_v0 = vld [vmem:[%s15185_s7 + $0xa8] sm:$0xff] }
 0xde3   : > { %8767 = vst.msk [vmem:[%s15185_s7 + $0x78] sm:$0xff] %vm361_vm0, %v8735_v19  ;;  %v8733_v52 = vadd.f32 %v8701_v41, %v8669_v14 }
 0xde5   : > { %8765 = vst.msk [vmem:[%s15185_s7 + $0x68] sm:$0xff] %vm361_vm0, %v8733_v52 }
 0xdfc   : > { %v10203_v25 = vpop.f32.mrf.mxu1 }
 0xdfd   : > { %v8571_v29 = vmul.f32 %v10203_v25, %v14628_v55 }
 0xdfe   : > { %v8483_v6 = vpop.f32.mrf.mxu1 }
 0xdff   : > { %v8610_v18 = vadd.f32 %v14633_v12, %v8571_v29  ;;  %v8569_v61 = vmul.f32 %v14628_v55, %v8483_v6 }
 0xe00   : > { %v10204_v26 = vpop.f32.mrf.mxu1 }
 0xe01   : > { %v8642_v49 = vmul.f32 0.01, %v8610_v18  ;;  %v8608_v21 = vadd.f32 %v14633_v12, %v8569_v61  ;;  %v8572_v5 = vmul.f32 %v10204_v26, %v14628_v55 }
 0xe02   : > { %v8486_v20 = vpop.f32.mrf.mxu1 }
 0xe03   : > { %v8674_v31 = vmax.f32 %v8610_v18, %v8642_v49  ;;  %v8640_v10 = vmul.f32 0.01, %v8608_v21  ;;  %v8611_v27 = vadd.f32 %v14633_v12, %v8572_v5  ;;  %v8570_v40 = vmul.f32 %v14628_v55, %v8486_v20  ;;  %v8714_v5 = vld [vmem:[%s15185_s7 + $0xd0] sm:$0xff] }
 0xe05   : > { %v8738_v7 = vadd.f32 %v8706_v8, %v8674_v31  ;;  %v8672_v28 = vmax.f32 %v8608_v21, %v8640_v10  ;;  %v8643_v43 = vmul.f32 0.01, %v8611_v27  ;;  %v8609_v1 = vadd.f32 %v14633_v12, %v8570_v40  ;;  %v8712_v40 = vld [vmem:[%s15185_s7 + $0xc0] sm:$0xff] }
 0xe07   : > { %8770 = vst.msk [vmem:[%s15185_s7 + $0x90] sm:$0xff] %vm361_vm0, %v8738_v7  ;;  %v8736_v30 = vadd.f32 %v8704_v45, %v8672_v28  ;;  %v8675_v4 = vmax.f32 %v8611_v27, %v8643_v43  ;;  %v8641_v11 = vmul.f32 0.01, %v8609_v1  ;;  %v8715_v43 = vld [vmem:[%s15185_s7 + $0xd8] sm:$0xff] }
 0xe09   : > { %8768 = vst.msk [vmem:[%s15185_s7 + $0x80] sm:$0xff] %vm361_vm0, %v8736_v30  ;;  %v8739_v22 = vadd.f32 %v8707_v32, %v8675_v4  ;;  %v8673_v37 = vmax.f32 %v8609_v1, %v8641_v11  ;;  %v8713_v30 = vld [vmem:[%s15185_s7 + $0xc8] sm:$0xff] }
 0xe0b   : > { %8771 = vst.msk [vmem:[%s15185_s7 + $0x98] sm:$0xff] %vm361_vm0, %v8739_v22  ;;  %v8737_v63 = vadd.f32 %v8705_v58, %v8673_v37 }
 0xe0d   : > { %8769 = vst.msk [vmem:[%s15185_s7 + $0x88] sm:$0xff] %vm361_vm0, %v8737_v63 }
 0xe22   : > { %v10207_v60 = vpop.f32.mrf.mxu1 }
 0xe23   : > { %v8575_v57 = vmul.f32 %v10207_v60, %v14628_v55 }
 0xe24   : > { %v8499_v39 = vpop.f32.mrf.mxu1 }
 0xe25   : > { %v8614_v13 = vadd.f32 %v14633_v12, %v8575_v57  ;;  %v8573_v36 = vmul.f32 %v14628_v55, %v8499_v39 }
 0xe26   : > { %v10208_v24 = vpop.f32.mrf.mxu1 }
 0xe27   : > { %v8646_v42 = vmul.f32 0.01, %v8614_v13  ;;  %v8612_v17 = vadd.f32 %v14633_v12, %v8573_v36  ;;  %v8576_v38 = vmul.f32 %v10208_v24, %v14628_v55 }
 0xe28   : > { %v8502_v54 = vpop.f32.mrf.mxu1 }
 0xe29   : > { %v8678_v46 = vmax.f32 %v8614_v13, %v8646_v42  ;;  %v8644_v59 = vmul.f32 0.01, %v8612_v17  ;;  %v8615_v2 = vadd.f32 %v14633_v12, %v8576_v38  ;;  %v8574_v16 = vmul.f32 %v14628_v55, %v8502_v54  ;;  %v8718_v38 = vld [vmem:[%s15185_s7 + $0xf0] sm:$0xff] }
 0xe2b   : > { %v8742_v34 = vadd.f32 %v8710_v51, %v8678_v46  ;;  %v8676_v53 = vmax.f32 %v8612_v17, %v8644_v59  ;;  %v8647_v23 = vmul.f32 0.01, %v8615_v2  ;;  %v8613_v35 = vadd.f32 %v14633_v12, %v8574_v16  ;;  %v8716_v16 = vld [vmem:[%s15185_s7 + $0xe0] sm:$0xff] }
 0xe2d   : > { %8774 = vst.msk [vmem:[%s15185_s7 + $0xb0] sm:$0xff] %vm361_vm0, %v8742_v34  ;;  %v8740_v44 = vadd.f32 %v8708_v33, %v8676_v53  ;;  %v8679_v50 = vmax.f32 %v8615_v2, %v8647_v23  ;;  %v8645_v56 = vmul.f32 0.01, %v8613_v35  ;;  %v8719_v23 = vld [vmem:[%s15185_s7 + $0xf8] sm:$0xff] }
 0xe2f   : > { %8772 = vst.msk [vmem:[%s15185_s7 + $0xa0] sm:$0xff] %vm361_vm0, %v8740_v44  ;;  %v8743_v15 = vadd.f32 %v8711_v9, %v8679_v50  ;;  %v8677_v62 = vmax.f32 %v8613_v35, %v8645_v56 }
 0xe31   : > { %8775 = vst.msk [vmem:[%s15185_s7 + $0xb8] sm:$0xff] %vm361_vm0, %v8743_v15  ;;  %v8741_v3 = vadd.f32 %v8709_v0, %v8677_v62 }
 0xe33   : > { %8773 = vst.msk [vmem:[%s15185_s7 + $0xa8] sm:$0xff] %vm361_vm0, %v8741_v3 }
 0xe52   : > { %v10211_v48 = vpop.f32.mrf.mxu1 }
 0xe53   : > { %v8579_v47 = vmul.f32 %v10211_v48, %v14628_v55 }
 0xe54   : > { %v8515_v19 = vpop.f32.mrf.mxu1 }
 0xe55   : > { %v8618_v14 = vadd.f32 %v14633_v12, %v8579_v47  ;;  %v8577_v41 = vmul.f32 %v14628_v55, %v8515_v19 }
 0xe56   : > { %v10212_v52 = vpop.f32.mrf.mxu1 }
 0xe57   : > { %v8650_v25 = vmul.f32 0.01, %v8618_v14  ;;  %v8616_v29 = vadd.f32 %v14633_v12, %v8577_v41  ;;  %v8580_v6 = vmul.f32 %v10212_v52, %v14628_v55 }
 0xe58   : > { %v8518_v18 = vpop.f32.mrf.mxu1 }
 0xe59   : > { %v8682_v61 = vmax.f32 %v8618_v14, %v8650_v25  ;;  %v8648_v26 = vmul.f32 0.01, %v8616_v29  ;;  %v8619_v49 = vadd.f32 %v14633_v12, %v8580_v6  ;;  %v8578_v21 = vmul.f32 %v14628_v55, %v8518_v18 }
 0xe5b   : > { %v8746_v20 = vadd.f32 %v8714_v5, %v8682_v61  ;;  %v8680_v31 = vmax.f32 %v8616_v29, %v8648_v26  ;;  %v8651_v10 = vmul.f32 0.01, %v8619_v49  ;;  %v8617_v27 = vadd.f32 %v14633_v12, %v8578_v21 }
 0xe5d   : > { %8778 = vst.msk [vmem:[%s15185_s7 + $0xd0] sm:$0xff] %vm361_vm0, %v8746_v20  ;;  %v8744_v8 = vadd.f32 %v8712_v40, %v8680_v31  ;;  %v8683_v7 = vmax.f32 %v8619_v49, %v8651_v10  ;;  %v8649_v28 = vmul.f32 0.01, %v8617_v27 }
 0xe5f   : > { %8776 = vst.msk [vmem:[%s15185_s7 + $0xc0] sm:$0xff] %vm361_vm0, %v8744_v8  ;;  %v8747_v1 = vadd.f32 %v8715_v43, %v8683_v7  ;;  %v8681_v45 = vmax.f32 %v8617_v27, %v8649_v28 }
 0xe61   : > { %8779 = vst.msk [vmem:[%s15185_s7 + $0xd8] sm:$0xff] %vm361_vm0, %v8747_v1  ;;  %v8745_v4 = vadd.f32 %v8713_v30, %v8681_v45 }
 0xe63   : > { %8777 = vst.msk [vmem:[%s15185_s7 + $0xc8] sm:$0xff] %vm361_vm0, %v8745_v4 }
 0xe82   : > { %v10215_v11 = vpop.f32.mrf.mxu1 }
 0xe83   : > { %v8583_v32 = vmul.f32 %v10215_v11, %v14628_v55 }
 0xe84   : > { %v8531_v22 = vpop.f32.mrf.mxu1 }
 0xe85   : > { %v8622_v37 = vadd.f32 %v14633_v12, %v8583_v32  ;;  %v8581_v58 = vmul.f32 %v14628_v55, %v8531_v22 }
 0xe86   : > { %v10216_v63 = vpop.f32.mrf.mxu1 }
 0xe87   : > { %v8654_v60 = vmul.f32 0.01, %v8622_v37  ;;  %v8620_v57 = vadd.f32 %v14633_v12, %v8581_v58  ;;  %v8584_v39 = vmul.f32 %v10216_v63, %v14628_v55 }
 0xe88   : > { %v8534_v13 = vpop.f32.mrf.mxu1 }
 0xe89   : > { %v8686_v36 = vmax.f32 %v8622_v37, %v8654_v60  ;;  %v8652_v24 = vmul.f32 0.01, %v8620_v57  ;;  %v8623_v42 = vadd.f32 %v14633_v12, %v8584_v39  ;;  %v8582_v17 = vmul.f32 %v14628_v55, %v8534_v13  ;;  %v8717_v55 = vld [vmem:[%s15185_s7 + $0xe8] sm:$0xff] }
 0xe8b   : > { %v8750_v54 = vadd.f32 %v8718_v38, %v8686_v36  ;;  %v8684_v46 = vmax.f32 %v8620_v57, %v8652_v24  ;;  %v8655_v59 = vmul.f32 0.01, %v8623_v42  ;;  %v8621_v2 = vadd.f32 %v14633_v12, %v8582_v17 }
 0xe8d   : > { %8782 = vst.msk [vmem:[%s15185_s7 + $0xf0] sm:$0xff] %vm361_vm0, %v8750_v54  ;;  %v8748_v51 = vadd.f32 %v8716_v16, %v8684_v46  ;;  %v8687_v34 = vmax.f32 %v8623_v42, %v8655_v59  ;;  %v8653_v53 = vmul.f32 0.01, %v8621_v2 }
 0xe8f   : > { %8780 = vst.msk [vmem:[%s15185_s7 + $0xe0] sm:$0xff] %vm361_vm0, %v8748_v51  ;;  %v8751_v35 = vadd.f32 %v8719_v23, %v8687_v34  ;;  %v8685_v33 = vmax.f32 %v8621_v2, %v8653_v53 }
 0xe91   : > { %8783 = vst.msk [vmem:[%s15185_s7 + $0xf8] sm:$0xff] %vm361_vm0, %v8751_v35  ;;  %v8749_v44 = vadd.f32 %v8717_v55, %v8685_v33 }
 0xe93   : > { %8781 = vst.msk [vmem:[%s15185_s7 + $0xe8] sm:$0xff] %vm361_vm0, %v8749_v44 }
 0xe94 PF: > { %s15186_s9 = sld [smem:[#allocation6_spill]] }
 0xe9a   : > { %s20_s13 = sadd.s32 1, %s15186_s9  }
 0xe9b   : > { %p17_p4 = scmp.ge.s32.totalorder %s20_s13, 4  }
 0xe9d   :  { %19 = sbr.rel (!%p17_p4) target bundleno = 12 (0xc), region = 93 }

</bundles_post_ra>
